<compile_context>
chip_gen: v7x
topology: tpu7x:2x2x1
jax: 0.10.0
libtpu: 0.0.40
codegen_flags: <defaults>
</compile_context>

<pallas_src>
import numpy as np
import jax
import jax.numpy as jnp
from jax import lax
from jax.experimental import pallas as pl
from jax.experimental.pallas import tpu as pltpu

# ---- model hyper-parameters (small, consistent with the module's __init__) ----
OBS_DIM = 12
ACT_DIM = 6
N_EMB = 32
N_HEADS = 4
N_LAYERS = 2
FF_DIM = 2048          # nn.TransformerEncoderLayer default dim_feedforward
EPS = 1e-5             # nn.TransformerEncoderLayer default layer_norm_eps
NEG_INF = -1e9


def _round8(n):
    return ((n + 7) // 8) * 8


def _layer_norm(x, w, b):
    mean = jnp.mean(x, axis=-1, keepdims=True)
    var = jnp.mean(jnp.square(x - mean), axis=-1, keepdims=True)
    return (x - mean) * lax.rsqrt(var + EPS) * w + b


def _make_critic_kernel(block_b, T):
    """Build the kernel closed over the static slab-layout constants."""
    E, H = N_EMB, N_HEADS
    Dh = E // H
    Bb = block_b
    P_OBS = _round8(Bb)                     # obs segment rows (sublane padded)
    N_ACT = Bb * T                          # action segment rows
    N = _round8(P_OBS + N_ACT)              # slab rows, multiple of 8
    HN = H * N
    scale = 1.0 / float(np.sqrt(Dh))

    def kernel(obs_ref, act_ref,
               w_obs_ref, b_obs_ref, w_act_ref, b_act_ref,
               ln1_w_ref, ln1_b_ref, w_qkv_ref, b_qkv_ref, w_o_ref, b_o_ref,
               ln2_w_ref, ln2_b_ref, w_ff1_ref, b_ff1_ref, w_ff2_ref, b_ff2_ref,
               w_out_ref, b_out_ref,
               out_ref):
        # ---- embeddings for the whole batch block (two row-wise matmuls) ----
        obs_emb = jnp.dot(obs_ref[0], w_obs_ref[...],
                          preferred_element_type=jnp.float32) + b_obs_ref[...]   # (Bb, E)
        act_emb = jnp.dot(act_ref[0], w_act_ref[...],
                          preferred_element_type=jnp.float32) + b_act_ref[...]   # (Bb*T, E)

        # ---- segment-major slab: [obs rows | obs pad | action rows | tail pad] ----
        pieces = [obs_emb]
        if P_OBS > Bb:
            pieces.append(jnp.zeros((P_OBS - Bb, E), jnp.float32))
        pieces.append(act_emb)
        if N > P_OBS + N_ACT:
            pieces.append(jnp.zeros((N - P_OBS - N_ACT, E), jnp.float32))
        x = jnp.concatenate(pieces, axis=0)                                       # (N, E)

        # ---- per-head lane-selection masks (hoisted out of the layer loop) ----
        lane = lax.broadcasted_iota(jnp.int32, (1, E), 1)
        head_sel = [jnp.logical_and(lane >= h * Dh, lane < (h + 1) * Dh)
                    .astype(jnp.float32) for h in range(H)]                       # (1, E) each
        q_sel = [hs * scale for hs in head_sel]   # fold 1/sqrt(Dh) into the Q head mask

        # ---- block-diagonal item / real-key mask, built in-kernel (no div/mod) ----
        r = lax.broadcasted_iota(jnp.int32, (N, N), 0)
        c = lax.broadcasted_iota(jnp.int32, (N, N), 1)

        def seg_of(idx):
            # item id of a slab row; pad rows map to item 0/last (harmless, never read
            # and always masked as keys), so no softmax row is ever fully -inf.
            act_item = jnp.zeros_like(idx)
            for i in range(1, Bb):
                act_item = act_item + (idx >= P_OBS + i * T).astype(jnp.int32)
            return jnp.where(idx < Bb, idx,
                             jnp.where(idx >= P_OBS, act_item, jnp.zeros_like(idx)))

        key_real = jnp.logical_or(
            c < Bb, jnp.logical_and(c >= P_OBS, c < P_OBS + N_ACT))
        same_item = seg_of(r) == seg_of(c)
        mask_nn = jnp.where(jnp.logical_and(same_item, key_real), 0.0, NEG_INF)    # (N, N)
        mask = jnp.concatenate([mask_nn] * H, axis=0)                              # (HN, N)

        # ---- pre-norm transformer encoder layers (num_layers static) ----
        for l in range(N_LAYERS):
            # self-attention sub-block: x = x + Wo @ MHA(LN1(x))
            y = _layer_norm(x, ln1_w_ref[l], ln1_b_ref[l])
            qkv = jnp.dot(y.astype(jnp.bfloat16), w_qkv_ref[l],
                          preferred_element_type=jnp.float32) + b_qkv_ref[l]       # (N, 3E)
            q = qkv[:, 0:E]
            k = qkv[:, E:2 * E]
            v = qkv[:, 2 * E:3 * E]

            # lane-packed block-diagonal attention: all heads in TWO MXU matmuls.
            q_bd = jnp.concatenate([q * q_sel[h] for h in range(H)], axis=0)       # (HN, E)
            s = jnp.dot(q_bd, k.T, preferred_element_type=jnp.float32) + mask      # (HN, N)
            s = s - jnp.max(s, axis=-1, keepdims=True)
            p = jnp.exp(s)
            p = p * pl.reciprocal(jnp.sum(p, axis=-1, keepdims=True), approx=True)
            o_full = jnp.dot(p, v, preferred_element_type=jnp.float32)             # (HN, E)

            # head-concatenated output: sublane-aligned block select + lane mask.
            o_cat = o_full[0:N] * head_sel[0]
            for h in range(1, H):
                o_cat = o_cat + o_full[h * N:(h + 1) * N] * head_sel[h]            # (N, E)

            x = x + jnp.dot(o_cat.astype(jnp.bfloat16), w_o_ref[l],
                            preferred_element_type=jnp.float32) + b_o_ref[l]

            # feed-forward sub-block: x = x + W2 @ relu(W1 @ LN2(x))
            y = _layer_norm(x, ln2_w_ref[l], ln2_b_ref[l])
            h1 = jnp.maximum(
                jnp.dot(y.astype(jnp.bfloat16), w_ff1_ref[l],
                        preferred_element_type=jnp.float32) + b_ff1_ref[l], 0.0)   # (N, FF)
            x = x + jnp.dot(h1.astype(jnp.bfloat16), w_ff2_ref[l],
                            preferred_element_type=jnp.float32) + b_ff2_ref[l]

        # ---- output head over ALL rows: one lane-major (1, N) store ----
        head = lax.dot_general(w_out_ref[...], x, (((1,), (1,)), ((), ())),
                               preferred_element_type=jnp.float32)                 # (1, N)
        out_ref[0] = head + b_out_ref[...]

    return kernel, N, P_OBS


def _default_target_steps():
    # Multi-TensorCore chips (v7x / v4 / v5p) want >= 2 grid steps so both cores get
    # work under dimension_semantics=("parallel",); single-TC v5e/v6e prefer one big
    # slab (the grid is a purely serial loop there).
    try:
        kind = jax.devices()[0].device_kind.lower()
    except Exception:
        kind = ""
    multi_tc = any(tag in kind for tag in ("7", "v4", "v5p"))
    return 2 if multi_tc else 1


def transformer_critic(init_obs, actions, params, *, block_b=None):
    B, obs_dim = init_obs.shape
    _, T, act_dim = actions.shape

    def slab_rows(d):
        return _round8(_round8(d) + d * T)

    if block_b is None:
        target_steps = _default_target_steps()
        cap = 512                                   # rows per step (keeps FFN act ~4 MB)
        d_cap = max((d for d in range(1, B + 1) if slab_rows(d) <= cap), default=1)
        nsteps = max(target_steps, -(-B // d_cap))
        block_b = -(-B // nsteps)
    nsteps = -(-B // block_b)
    B_pad = nsteps * block_b
    if B_pad != B:
        # pad the batch instead of collapsing to a tiny block size / long serial grid
        pad = B_pad - B
        init_obs = jnp.concatenate(
            [init_obs, jnp.zeros((pad, obs_dim), init_obs.dtype)], axis=0)
        actions = jnp.concatenate(
            [actions, jnp.zeros((pad, T, act_dim), actions.dtype)], axis=0)

    kernel, N, P_OBS = _make_critic_kernel(block_b, T)

    # gridded axis becomes the leading dim so block shapes stay legal
    obs3 = init_obs.reshape(nsteps, block_b, obs_dim)
    act3 = actions.reshape(nsteps, block_b * T, act_dim)

    def const_spec(a):
        nd = a.ndim
        return pl.BlockSpec(a.shape, lambda b, _nd=nd: (0,) * _nd)

    in_specs = [
        pl.BlockSpec((1, block_b, obs_dim), lambda b: (b, 0, 0)),
        pl.BlockSpec((1, block_b * T, act_dim), lambda b: (b, 0, 0)),
    ] + [const_spec(p) for p in params]

    out_spec = pl.BlockSpec((1, 1, N), lambda b: (b, 0, 0))

    out = pl.pallas_call(
        kernel,
        out_shape=jax.ShapeDtypeStruct((nsteps, 1, N), jnp.float32),
        grid_spec=pltpu.PrefetchScalarGridSpec(
            num_scalar_prefetch=0,
            grid=(nsteps,),
            in_specs=in_specs,
            out_specs=out_spec,
            scratch_shapes=[],
        ),
        compiler_params=pltpu.CompilerParams(
            dimension_semantics=("parallel",),
        ),
    )(obs3, act3, *params)

    # action rows are one contiguous lane range per step, ordered (item-in-block, t)
    out = out[:, 0, P_OBS:P_OBS + block_b * T].reshape(B_pad, T)
    return out[:B, :, None]


def init_params(key):
    L, E, FF = N_LAYERS, N_EMB, FF_DIM
    ks = jax.random.split(key, 16)

    def nrm(k, shape, fan_in, scale=1.0):
        return (scale * jax.random.normal(k, shape, jnp.float32) /
                jnp.sqrt(jnp.float32(fan_in))).astype(jnp.float32)

    w_obs = nrm(ks[0], (OBS_DIM, E), OBS_DIM)
    b_obs = nrm(ks[1], (1, E), E, 0.1)
    w_act = nrm(ks[2], (ACT_DIM, E), ACT_DIM)
    b_act = nrm(ks[3], (1, E), E, 0.1)
    ln1_w = jnp.ones((L, 1, E), jnp.float32)
    ln1_b = jnp.zeros((L, 1, E), jnp.float32)
    # big matmul weights stored in bf16: halves weight DMA, native MXU bf16 path
    w_qkv = nrm(ks[4], (L, E, 3 * E), E).astype(jnp.bfloat16)      # (in, out): y @ w_qkv
    b_qkv = nrm(ks[5], (L, 1, 3 * E), E, 0.1)
    w_o = nrm(ks[6], (L, E, E), E).astype(jnp.bfloat16)
    b_o = nrm(ks[7], (L, 1, E), E, 0.1)
    ln2_w = jnp.ones((L, 1, E), jnp.float32)
    ln2_b = jnp.zeros((L, 1, E), jnp.float32)
    w_ff1 = nrm(ks[8], (L, E, FF), E).astype(jnp.bfloat16)
    b_ff1 = nrm(ks[9], (L, 1, FF), E, 0.1)
    w_ff2 = nrm(ks[10], (L, FF, E), FF).astype(jnp.bfloat16)
    b_ff2 = nrm(ks[11], (L, 1, E), FF, 0.1)
    w_out = nrm(ks[12], (1, E), E)
    b_out = nrm(ks[13], (1, 1), E, 0.1)
    return [w_obs, b_obs, w_act, b_act, ln1_w, ln1_b, w_qkv, b_qkv, w_o, b_o,
            ln2_w, ln2_b, w_ff1, b_ff1, w_ff2, b_ff2, w_out, b_out]


def reference(init_obs, actions, params):
    # pure-JAX mirror of the PyTorch forward (eval mode), same (bf16-stored) weights
    (w_obs, b_obs, w_act, b_act, ln1_w, ln1_b, w_qkv, b_qkv, w_o, b_o,
     ln2_w, ln2_b, w_ff1, b_ff1, w_ff2, b_ff2, w_out, b_out) = params
    f32 = lambda a: a.astype(jnp.float32)
    H, E = N_HEADS, N_EMB
    Dh = E // H

    def ln(z, w, b):
        m = z.mean(-1, keepdims=True)
        v = ((z - m) ** 2).mean(-1, keepdims=True)
        return (z - m) / jnp.sqrt(v + EPS) * w + b

    with jax.default_matmul_precision("float32"):
        obs_e = init_obs @ w_obs + b_obs[0]
        act_e = actions @ w_act + b_act[0]
        x = jnp.concatenate([obs_e[:, None, :], act_e], axis=1)
        for l in range(N_LAYERS):
            y = ln(x, ln1_w[l, 0], ln1_b[l, 0])
            qkv = y @ f32(w_qkv[l]) + b_qkv[l, 0]
            q, k, v = jnp.split(qkv, 3, axis=-1)
            B_, S_, _ = q.shape
            qh = q.reshape(B_, S_, H, Dh).transpose(0, 2, 1, 3) / jnp.sqrt(jnp.float32(Dh))
            kh = k.reshape(B_, S_, H, Dh).transpose(0, 2, 1, 3)
            vh = v.reshape(B_, S_, H, Dh).transpose(0, 2, 1, 3)
            sc = qh @ kh.transpose(0, 1, 3, 2)
            p = jax.nn.softmax(sc, axis=-1)
            o = (p @ vh).transpose(0, 2, 1, 3).reshape(B_, S_, E)
            x = x + o @ f32(w_o[l]) + b_o[l, 0]
            y = ln(x, ln2_w[l, 0], ln2_b[l, 0])
            h1 = jax.nn.relu(y @ f32(w_ff1[l]) + b_ff1[l, 0])
            x = x + h1 @ f32(w_ff2[l]) + b_ff2[l, 0]
        out = x @ f32(w_out).T + b_out[0]
    return out[:, 1:, :]


if __name__ == "__main__":
    B, T = 8, 8
    key = jax.random.PRNGKey(0)
    k_obs, k_act, k_par = jax.random.split(key, 3)
    init_obs = jax.random.normal(k_obs, (B, OBS_DIM), jnp.float32)
    actions = jax.random.normal(k_act, (B, T, ACT_DIM), jnp.float32)
    params = init_params(k_par)

    out = transformer_critic(init_obs, actions, params)
    out = jax.block_until_ready(out)
    assert out.shape == (B, T, 1)

    ref = reference(init_obs, actions, params)
    np.testing.assert_allclose(np.asarray(out), np.asarray(ref), rtol=2e-2, atol=2e-2)
    print("KERNEL_OK")
</pallas_src>

<mosaic_0001>
module attributes {stable_mosaic.version = 11 : i64} {
  func.func @kernel(%arg0: i32, %arg1: memref<1x8x12xf32, #tpu.memory_space<vmem>>, %arg2: memref<1x64x6xf32, #tpu.memory_space<vmem>>, %arg3: memref<12x32xf32, #tpu.memory_space<vmem>>, %arg4: memref<1x32xf32, #tpu.memory_space<vmem>>, %arg5: memref<6x32xf32, #tpu.memory_space<vmem>>, %arg6: memref<1x32xf32, #tpu.memory_space<vmem>>, %arg7: memref<2x1x32xf32, #tpu.memory_space<vmem>>, %arg8: memref<2x1x32xf32, #tpu.memory_space<vmem>>, %arg9: memref<2x32x96xbf16, #tpu.memory_space<vmem>>, %arg10: memref<2x1x96xf32, #tpu.memory_space<vmem>>, %arg11: memref<2x32x32xbf16, #tpu.memory_space<vmem>>, %arg12: memref<2x1x32xf32, #tpu.memory_space<vmem>>, %arg13: memref<2x1x32xf32, #tpu.memory_space<vmem>>, %arg14: memref<2x1x32xf32, #tpu.memory_space<vmem>>, %arg15: memref<2x32x2048xbf16, #tpu.memory_space<vmem>>, %arg16: memref<2x1x2048xf32, #tpu.memory_space<vmem>>, %arg17: memref<2x2048x32xbf16, #tpu.memory_space<vmem>>, %arg18: memref<2x1x32xf32, #tpu.memory_space<vmem>>, %arg19: memref<1x32xf32, #tpu.memory_space<vmem>>, %arg20: memref<1x1xf32, #tpu.memory_space<vmem>>, %arg21: memref<1x1x72xf32, #tpu.memory_space<vmem>>) attributes {dimension_semantics = [#tpu.dimension_semantics<parallel>], iteration_bounds = array<i64: 1>, scalar_prefetch = 0 : i64, scratch_operands = 0 : i64, tpu.core_type = #tpu.core_type<tc>, window_params = [{transform_indices = @transform_0, window_bounds = array<i64: 1, 8, 12>}, {transform_indices = @transform_1, window_bounds = array<i64: 1, 64, 6>}, {pipeline_mode = #tpu.pipeline_mode<synchronous>, transform_indices = @transform_2, window_bounds = array<i64: 12, 32>}, {pipeline_mode = #tpu.pipeline_mode<synchronous>, transform_indices = @transform_3, window_bounds = array<i64: 1, 32>}, {pipeline_mode = #tpu.pipeline_mode<synchronous>, transform_indices = @transform_4, window_bounds = array<i64: 6, 32>}, {pipeline_mode = #tpu.pipeline_mode<synchronous>, transform_indices = @transform_5, window_bounds = array<i64: 1, 32>}, {pipeline_mode = #tpu.pipeline_mode<synchronous>, transform_indices = @transform_6, window_bounds = array<i64: 2, 1, 32>}, {pipeline_mode = #tpu.pipeline_mode<synchronous>, transform_indices = @transform_7, window_bounds = array<i64: 2, 1, 32>}, {pipeline_mode = #tpu.pipeline_mode<synchronous>, transform_indices = @transform_8, window_bounds = array<i64: 2, 32, 96>}, {pipeline_mode = #tpu.pipeline_mode<synchronous>, transform_indices = @transform_9, window_bounds = array<i64: 2, 1, 96>}, {pipeline_mode = #tpu.pipeline_mode<synchronous>, transform_indices = @transform_10, window_bounds = array<i64: 2, 32, 32>}, {pipeline_mode = #tpu.pipeline_mode<synchronous>, transform_indices = @transform_11, window_bounds = array<i64: 2, 1, 32>}, {pipeline_mode = #tpu.pipeline_mode<synchronous>, transform_indices = @transform_12, window_bounds = array<i64: 2, 1, 32>}, {pipeline_mode = #tpu.pipeline_mode<synchronous>, transform_indices = @transform_13, window_bounds = array<i64: 2, 1, 32>}, {pipeline_mode = #tpu.pipeline_mode<synchronous>, transform_indices = @transform_14, window_bounds = array<i64: 2, 32, 2048>}, {pipeline_mode = #tpu.pipeline_mode<synchronous>, transform_indices = @transform_15, window_bounds = array<i64: 2, 1, 2048>}, {pipeline_mode = #tpu.pipeline_mode<synchronous>, transform_indices = @transform_16, window_bounds = array<i64: 2, 2048, 32>}, {pipeline_mode = #tpu.pipeline_mode<synchronous>, transform_indices = @transform_17, window_bounds = array<i64: 2, 1, 32>}, {pipeline_mode = #tpu.pipeline_mode<synchronous>, transform_indices = @transform_18, window_bounds = array<i64: 1, 32>}, {pipeline_mode = #tpu.pipeline_mode<synchronous>, transform_indices = @transform_19, window_bounds = array<i64: 1, 1>}, {transform_indices = @transform_20, window_bounds = array<i64: 1, 1, 72>}]} {
    %c0 = arith.constant 0 : index
    %c0_0 = arith.constant 0 : index
    %c0_1 = arith.constant 0 : index
    %0 = vector.load %arg1[%c0, %c0_0, %c0_1] : memref<1x8x12xf32, #tpu.memory_space<vmem>>, vector<1x8x12xf32>
    %1 = vector.shape_cast %0 : vector<1x8x12xf32> to vector<8x12xf32>
    %c0_2 = arith.constant 0 : index
    %c0_3 = arith.constant 0 : index
    %2 = vector.load %arg3[%c0_2, %c0_3] : memref<12x32xf32, #tpu.memory_space<vmem>>, vector<12x32xf32>
    %cst = arith.constant dense<0.000000e+00> : vector<8x32xf32>
    %3 = tpu.matmul %1, %2, %cst {dimension_numbers = #tpu.dot_dimension_numbers<[1], [0], [0], [1], [0, 0, 1, 1], [], []>} : vector<8x12xf32>, vector<12x32xf32>, vector<8x32xf32> -> vector<8x32xf32>
    %c0_4 = arith.constant 0 : index
    %c0_5 = arith.constant 0 : index
    %4 = vector.load %arg4[%c0_4, %c0_5] : memref<1x32xf32, #tpu.memory_space<vmem>>, vector<1x32xf32>
    %5 = vector.broadcast %4 : vector<1x32xf32> to vector<8x32xf32>
    %6 = arith.addf %3, %5 : vector<8x32xf32>
    %c0_6 = arith.constant 0 : index
    %c0_7 = arith.constant 0 : index
    %c0_8 = arith.constant 0 : index
    %7 = vector.load %arg2[%c0_6, %c0_7, %c0_8] : memref<1x64x6xf32, #tpu.memory_space<vmem>>, vector<1x64x6xf32>
    %8 = vector.shape_cast %7 : vector<1x64x6xf32> to vector<64x6xf32>
    %c0_9 = arith.constant 0 : index
    %c0_10 = arith.constant 0 : index
    %9 = vector.load %arg5[%c0_9, %c0_10] : memref<6x32xf32, #tpu.memory_space<vmem>>, vector<6x32xf32>
    %cst_11 = arith.constant dense<0.000000e+00> : vector<64x32xf32>
    %10 = tpu.matmul %8, %9, %cst_11 {dimension_numbers = #tpu.dot_dimension_numbers<[1], [0], [0], [1], [0, 0, 1, 1], [], []>} : vector<64x6xf32>, vector<6x32xf32>, vector<64x32xf32> -> vector<64x32xf32>
    %c0_12 = arith.constant 0 : index
    %c0_13 = arith.constant 0 : index
    %11 = vector.load %arg6[%c0_12, %c0_13] : memref<1x32xf32, #tpu.memory_space<vmem>>, vector<1x32xf32>
    %12 = vector.broadcast %11 : vector<1x32xf32> to vector<64x32xf32>
    %13 = arith.addf %10, %12 : vector<64x32xf32>
    %14 = tpu.concatenate %6, %13 in 0 : vector<8x32xf32>, vector<64x32xf32> -> vector<72x32xf32>
    %15 = tpu.iota {dimensions = array<i32: 1>} : vector<1x32xi32>
    %c0_i32 = arith.constant 0 : i32
    %16 = vector.broadcast %c0_i32 : i32 to vector<1x32xi32>
    %17 = arith.cmpi sge, %15, %16 : vector<1x32xi32>
    %c8_i32 = arith.constant 8 : i32
    %18 = vector.broadcast %c8_i32 : i32 to vector<1x32xi32>
    %19 = arith.cmpi slt, %15, %18 : vector<1x32xi32>
    %20 = arith.andi %17, %19 : vector<1x32xi1>
    %21 = arith.extui %20 : vector<1x32xi1> to vector<1x32xi32>
    %22 = arith.sitofp %21 : vector<1x32xi32> to vector<1x32xf32>
    %c8_i32_14 = arith.constant 8 : i32
    %23 = vector.broadcast %c8_i32_14 : i32 to vector<1x32xi32>
    %24 = arith.cmpi sge, %15, %23 : vector<1x32xi32>
    %c16_i32 = arith.constant 16 : i32
    %25 = vector.broadcast %c16_i32 : i32 to vector<1x32xi32>
    %26 = arith.cmpi slt, %15, %25 : vector<1x32xi32>
    %27 = arith.andi %24, %26 : vector<1x32xi1>
    %28 = arith.extui %27 : vector<1x32xi1> to vector<1x32xi32>
    %29 = arith.sitofp %28 : vector<1x32xi32> to vector<1x32xf32>
    %c16_i32_15 = arith.constant 16 : i32
    %30 = vector.broadcast %c16_i32_15 : i32 to vector<1x32xi32>
    %31 = arith.cmpi sge, %15, %30 : vector<1x32xi32>
    %c24_i32 = arith.constant 24 : i32
    %32 = vector.broadcast %c24_i32 : i32 to vector<1x32xi32>
    %33 = arith.cmpi slt, %15, %32 : vector<1x32xi32>
    %34 = arith.andi %31, %33 : vector<1x32xi1>
    %35 = arith.extui %34 : vector<1x32xi1> to vector<1x32xi32>
    %36 = arith.sitofp %35 : vector<1x32xi32> to vector<1x32xf32>
    %c24_i32_16 = arith.constant 24 : i32
    %37 = vector.broadcast %c24_i32_16 : i32 to vector<1x32xi32>
    %38 = arith.cmpi sge, %15, %37 : vector<1x32xi32>
    %c32_i32 = arith.constant 32 : i32
    %39 = vector.broadcast %c32_i32 : i32 to vector<1x32xi32>
    %40 = arith.cmpi slt, %15, %39 : vector<1x32xi32>
    %41 = arith.andi %38, %40 : vector<1x32xi1>
    %42 = arith.extui %41 : vector<1x32xi1> to vector<1x32xi32>
    %43 = arith.sitofp %42 : vector<1x32xi32> to vector<1x32xf32>
    %cst_17 = arith.constant 0.353553385 : f32
    %44 = vector.broadcast %cst_17 : f32 to vector<1x32xf32>
    %45 = arith.mulf %22, %44 : vector<1x32xf32>
    %cst_18 = arith.constant 0.353553385 : f32
    %46 = vector.broadcast %cst_18 : f32 to vector<1x32xf32>
    %47 = arith.mulf %29, %46 : vector<1x32xf32>
    %cst_19 = arith.constant 0.353553385 : f32
    %48 = vector.broadcast %cst_19 : f32 to vector<1x32xf32>
    %49 = arith.mulf %36, %48 : vector<1x32xf32>
    %cst_20 = arith.constant 0.353553385 : f32
    %50 = vector.broadcast %cst_20 : f32 to vector<1x32xf32>
    %51 = arith.mulf %43, %50 : vector<1x32xf32>
    %52 = tpu.iota {dimensions = array<i32: 0>} : vector<72x72xi32>
    %53 = tpu.iota {dimensions = array<i32: 1>} : vector<72x72xi32>
    %c8_i32_21 = arith.constant 8 : i32
    %54 = vector.broadcast %c8_i32_21 : i32 to vector<72x72xi32>
    %55 = arith.cmpi slt, %53, %54 : vector<72x72xi32>
    %c8_i32_22 = arith.constant 8 : i32
    %56 = vector.broadcast %c8_i32_22 : i32 to vector<72x72xi32>
    %57 = arith.cmpi sge, %53, %56 : vector<72x72xi32>
    %c72_i32 = arith.constant 72 : i32
    %58 = vector.broadcast %c72_i32 : i32 to vector<72x72xi32>
    %59 = arith.cmpi slt, %53, %58 : vector<72x72xi32>
    %60 = arith.andi %57, %59 : vector<72x72xi1>
    %61 = arith.ori %55, %60 : vector<72x72xi1>
    %c0_i32_23 = arith.constant 0 : i32
    %62 = vector.broadcast %c0_i32_23 : i32 to vector<72x72xi32>
    %c16_i32_24 = arith.constant 16 : i32
    %63 = vector.broadcast %c16_i32_24 : i32 to vector<72x72xi32>
    %64 = arith.cmpi sge, %52, %63 : vector<72x72xi32>
    %65 = arith.extui %64 : vector<72x72xi1> to vector<72x72xi32>
    %66 = arith.addi %62, %65 : vector<72x72xi32>
    %c24_i32_25 = arith.constant 24 : i32
    %67 = vector.broadcast %c24_i32_25 : i32 to vector<72x72xi32>
    %68 = arith.cmpi sge, %52, %67 : vector<72x72xi32>
    %69 = arith.extui %68 : vector<72x72xi1> to vector<72x72xi32>
    %70 = arith.addi %66, %69 : vector<72x72xi32>
    %c32_i32_26 = arith.constant 32 : i32
    %71 = vector.broadcast %c32_i32_26 : i32 to vector<72x72xi32>
    %72 = arith.cmpi sge, %52, %71 : vector<72x72xi32>
    %73 = arith.extui %72 : vector<72x72xi1> to vector<72x72xi32>
    %74 = arith.addi %70, %73 : vector<72x72xi32>
    %c40_i32 = arith.constant 40 : i32
    %75 = vector.broadcast %c40_i32 : i32 to vector<72x72xi32>
    %76 = arith.cmpi sge, %52, %75 : vector<72x72xi32>
    %77 = arith.extui %76 : vector<72x72xi1> to vector<72x72xi32>
    %78 = arith.addi %74, %77 : vector<72x72xi32>
    %c48_i32 = arith.constant 48 : i32
    %79 = vector.broadcast %c48_i32 : i32 to vector<72x72xi32>
    %80 = arith.cmpi sge, %52, %79 : vector<72x72xi32>
    %81 = arith.extui %80 : vector<72x72xi1> to vector<72x72xi32>
    %82 = arith.addi %78, %81 : vector<72x72xi32>
    %c56_i32 = arith.constant 56 : i32
    %83 = vector.broadcast %c56_i32 : i32 to vector<72x72xi32>
    %84 = arith.cmpi sge, %52, %83 : vector<72x72xi32>
    %85 = arith.extui %84 : vector<72x72xi1> to vector<72x72xi32>
    %86 = arith.addi %82, %85 : vector<72x72xi32>
    %c64_i32 = arith.constant 64 : i32
    %87 = vector.broadcast %c64_i32 : i32 to vector<72x72xi32>
    %88 = arith.cmpi sge, %52, %87 : vector<72x72xi32>
    %89 = arith.extui %88 : vector<72x72xi1> to vector<72x72xi32>
    %90 = arith.addi %86, %89 : vector<72x72xi32>
    %c8_i32_27 = arith.constant 8 : i32
    %91 = vector.broadcast %c8_i32_27 : i32 to vector<72x72xi32>
    %92 = arith.cmpi slt, %52, %91 : vector<72x72xi32>
    %c8_i32_28 = arith.constant 8 : i32
    %93 = vector.broadcast %c8_i32_28 : i32 to vector<72x72xi32>
    %94 = arith.cmpi sge, %52, %93 : vector<72x72xi32>
    %c0_i32_29 = arith.constant 0 : i32
    %95 = vector.broadcast %c0_i32_29 : i32 to vector<72x72xi32>
    %96 = arith.select %94, %90, %95 : vector<72x72xi1>, vector<72x72xi32>
    %97 = arith.select %92, %52, %96 : vector<72x72xi1>, vector<72x72xi32>
    %c0_i32_30 = arith.constant 0 : i32
    %98 = vector.broadcast %c0_i32_30 : i32 to vector<72x72xi32>
    %c16_i32_31 = arith.constant 16 : i32
    %99 = vector.broadcast %c16_i32_31 : i32 to vector<72x72xi32>
    %100 = arith.cmpi sge, %53, %99 : vector<72x72xi32>
    %101 = arith.extui %100 : vector<72x72xi1> to vector<72x72xi32>
    %102 = arith.addi %98, %101 : vector<72x72xi32>
    %c24_i32_32 = arith.constant 24 : i32
    %103 = vector.broadcast %c24_i32_32 : i32 to vector<72x72xi32>
    %104 = arith.cmpi sge, %53, %103 : vector<72x72xi32>
    %105 = arith.extui %104 : vector<72x72xi1> to vector<72x72xi32>
    %106 = arith.addi %102, %105 : vector<72x72xi32>
    %c32_i32_33 = arith.constant 32 : i32
    %107 = vector.broadcast %c32_i32_33 : i32 to vector<72x72xi32>
    %108 = arith.cmpi sge, %53, %107 : vector<72x72xi32>
    %109 = arith.extui %108 : vector<72x72xi1> to vector<72x72xi32>
    %110 = arith.addi %106, %109 : vector<72x72xi32>
    %c40_i32_34 = arith.constant 40 : i32
    %111 = vector.broadcast %c40_i32_34 : i32 to vector<72x72xi32>
    %112 = arith.cmpi sge, %53, %111 : vector<72x72xi32>
    %113 = arith.extui %112 : vector<72x72xi1> to vector<72x72xi32>
    %114 = arith.addi %110, %113 : vector<72x72xi32>
    %c48_i32_35 = arith.constant 48 : i32
    %115 = vector.broadcast %c48_i32_35 : i32 to vector<72x72xi32>
    %116 = arith.cmpi sge, %53, %115 : vector<72x72xi32>
    %117 = arith.extui %116 : vector<72x72xi1> to vector<72x72xi32>
    %118 = arith.addi %114, %117 : vector<72x72xi32>
    %c56_i32_36 = arith.constant 56 : i32
    %119 = vector.broadcast %c56_i32_36 : i32 to vector<72x72xi32>
    %120 = arith.cmpi sge, %53, %119 : vector<72x72xi32>
    %121 = arith.extui %120 : vector<72x72xi1> to vector<72x72xi32>
    %122 = arith.addi %118, %121 : vector<72x72xi32>
    %c64_i32_37 = arith.constant 64 : i32
    %123 = vector.broadcast %c64_i32_37 : i32 to vector<72x72xi32>
    %124 = arith.cmpi sge, %53, %123 : vector<72x72xi32>
    %125 = arith.extui %124 : vector<72x72xi1> to vector<72x72xi32>
    %126 = arith.addi %122, %125 : vector<72x72xi32>
    %c8_i32_38 = arith.constant 8 : i32
    %127 = vector.broadcast %c8_i32_38 : i32 to vector<72x72xi32>
    %128 = arith.cmpi slt, %53, %127 : vector<72x72xi32>
    %c8_i32_39 = arith.constant 8 : i32
    %129 = vector.broadcast %c8_i32_39 : i32 to vector<72x72xi32>
    %130 = arith.cmpi sge, %53, %129 : vector<72x72xi32>
    %c0_i32_40 = arith.constant 0 : i32
    %131 = vector.broadcast %c0_i32_40 : i32 to vector<72x72xi32>
    %132 = arith.select %130, %126, %131 : vector<72x72xi1>, vector<72x72xi32>
    %133 = arith.select %128, %53, %132 : vector<72x72xi1>, vector<72x72xi32>
    %134 = arith.cmpi eq, %97, %133 : vector<72x72xi32>
    %135 = arith.andi %134, %61 : vector<72x72xi1>
    %cst_41 = arith.constant 0.000000e+00 : f32
    %cst_42 = arith.constant -1.000000e+09 : f32
    %136 = vector.broadcast %cst_41 : f32 to vector<72x72xf32>
    %137 = vector.broadcast %cst_42 : f32 to vector<72x72xf32>
    %138 = arith.select %135, %136, %137 : vector<72x72xi1>, vector<72x72xf32>
    %139 = tpu.concatenate %138, %138, %138, %138 in 0 : vector<72x72xf32>, vector<72x72xf32>, vector<72x72xf32>, vector<72x72xf32> -> vector<288x72xf32>
    %c0_43 = arith.constant 0 : index
    %c0_44 = arith.constant 0 : index
    %c0_45 = arith.constant 0 : index
    %140 = vector.load %arg7[%c0_43, %c0_44, %c0_45] : memref<2x1x32xf32, #tpu.memory_space<vmem>>, vector<1x1x32xf32>
    %141 = vector.shape_cast %140 : vector<1x1x32xf32> to vector<1x32xf32>
    %c0_46 = arith.constant 0 : index
    %c0_47 = arith.constant 0 : index
    %c0_48 = arith.constant 0 : index
    %142 = vector.load %arg8[%c0_46, %c0_47, %c0_48] : memref<2x1x32xf32, #tpu.memory_space<vmem>>, vector<1x1x32xf32>
    %143 = vector.shape_cast %142 : vector<1x1x32xf32> to vector<1x32xf32>
    %cst_49 = arith.constant dense<0.000000e+00> : vector<72xf32>
    %144 = vector.multi_reduction <add>, %14, %cst_49 [1] : vector<72x32xf32> to vector<72xf32>
    %145 = vector.shape_cast %144 : vector<72xf32> to vector<72x1xf32>
    %cst_50 = arith.constant 3.200000e+01 : f32
    %146 = vector.broadcast %cst_50 : f32 to vector<72x1xf32>
    %147 = arith.divf %145, %146 : vector<72x1xf32>
    %148 = vector.broadcast %147 : vector<72x1xf32> to vector<72x32xf32>
    %149 = arith.subf %14, %148 : vector<72x32xf32>
    %150 = arith.mulf %149, %149 : vector<72x32xf32>
    %cst_51 = arith.constant dense<0.000000e+00> : vector<72xf32>
    %151 = vector.multi_reduction <add>, %150, %cst_51 [1] : vector<72x32xf32> to vector<72xf32>
    %152 = vector.shape_cast %151 : vector<72xf32> to vector<72x1xf32>
    %cst_52 = arith.constant 3.200000e+01 : f32
    %153 = vector.broadcast %cst_52 : f32 to vector<72x1xf32>
    %154 = arith.divf %152, %153 : vector<72x1xf32>
    %155 = vector.broadcast %147 : vector<72x1xf32> to vector<72x32xf32>
    %156 = arith.subf %14, %155 : vector<72x32xf32>
    %cst_53 = arith.constant 9.99999974E-6 : f32
    %157 = vector.broadcast %cst_53 : f32 to vector<72x1xf32>
    %158 = arith.addf %154, %157 : vector<72x1xf32>
    %159 = math.rsqrt %158 : vector<72x1xf32>
    %160 = vector.broadcast %159 : vector<72x1xf32> to vector<72x32xf32>
    %161 = arith.mulf %156, %160 : vector<72x32xf32>
    %162 = vector.broadcast %141 : vector<1x32xf32> to vector<72x32xf32>
    %163 = arith.mulf %161, %162 : vector<72x32xf32>
    %164 = vector.broadcast %143 : vector<1x32xf32> to vector<72x32xf32>
    %165 = arith.addf %163, %164 : vector<72x32xf32>
    %166 = arith.truncf %165 : vector<72x32xf32> to vector<72x32xbf16>
    %c0_54 = arith.constant 0 : index
    %c0_55 = arith.constant 0 : index
    %c0_56 = arith.constant 0 : index
    %167 = vector.load %arg9[%c0_54, %c0_55, %c0_56] : memref<2x32x96xbf16, #tpu.memory_space<vmem>>, vector<1x32x96xbf16>
    %168 = vector.shape_cast %167 : vector<1x32x96xbf16> to vector<32x96xbf16>
    %cst_57 = arith.constant dense<0.000000e+00> : vector<72x96xf32>
    %169 = tpu.matmul %166, %168, %cst_57 {dimension_numbers = #tpu.dot_dimension_numbers<[1], [0], [0], [1], [0, 0, 1, 1], [], []>} : vector<72x32xbf16>, vector<32x96xbf16>, vector<72x96xf32> -> vector<72x96xf32>
    %c0_58 = arith.constant 0 : index
    %c0_59 = arith.constant 0 : index
    %c0_60 = arith.constant 0 : index
    %170 = vector.load %arg10[%c0_58, %c0_59, %c0_60] : memref<2x1x96xf32, #tpu.memory_space<vmem>>, vector<1x1x96xf32>
    %171 = vector.shape_cast %170 : vector<1x1x96xf32> to vector<1x96xf32>
    %172 = vector.broadcast %171 : vector<1x96xf32> to vector<72x96xf32>
    %173 = arith.addf %169, %172 : vector<72x96xf32>
    %174 = vector.extract_strided_slice %173 {offsets = [0, 0], sizes = [72, 32], strides = [1, 1]} : vector<72x96xf32> to vector<72x32xf32>
    %175 = vector.extract_strided_slice %173 {offsets = [0, 32], sizes = [72, 32], strides = [1, 1]} : vector<72x96xf32> to vector<72x32xf32>
    %176 = vector.extract_strided_slice %173 {offsets = [0, 64], sizes = [72, 32], strides = [1, 1]} : vector<72x96xf32> to vector<72x32xf32>
    %177 = vector.broadcast %45 : vector<1x32xf32> to vector<72x32xf32>
    %178 = arith.mulf %174, %177 : vector<72x32xf32>
    %179 = vector.broadcast %47 : vector<1x32xf32> to vector<72x32xf32>
    %180 = arith.mulf %174, %179 : vector<72x32xf32>
    %181 = vector.broadcast %49 : vector<1x32xf32> to vector<72x32xf32>
    %182 = arith.mulf %174, %181 : vector<72x32xf32>
    %183 = vector.broadcast %51 : vector<1x32xf32> to vector<72x32xf32>
    %184 = arith.mulf %174, %183 : vector<72x32xf32>
    %185 = tpu.concatenate %178, %180, %182, %184 in 0 : vector<72x32xf32>, vector<72x32xf32>, vector<72x32xf32>, vector<72x32xf32> -> vector<288x32xf32>
    %186 = tpu.transpose %175, [1, 0] : vector<72x32xf32> -> vector<32x72xf32>
    %cst_61 = arith.constant dense<0.000000e+00> : vector<288x72xf32>
    %187 = tpu.matmul %185, %186, %cst_61 {dimension_numbers = #tpu.dot_dimension_numbers<[1], [0], [0], [1], [0, 0, 1, 1], [], []>} : vector<288x32xf32>, vector<32x72xf32>, vector<288x72xf32> -> vector<288x72xf32>
    %188 = arith.addf %187, %139 : vector<288x72xf32>
    %cst_62 = arith.constant dense<0xFF800000> : vector<288xf32>
    %189 = vector.multi_reduction <maximumf>, %188, %cst_62 [1] : vector<288x72xf32> to vector<288xf32>
    %190 = vector.shape_cast %189 : vector<288xf32> to vector<288x1xf32>
    %191 = vector.broadcast %190 : vector<288x1xf32> to vector<288x72xf32>
    %192 = arith.subf %188, %191 : vector<288x72xf32>
    %193 = math.exp %192 : vector<288x72xf32>
    %cst_63 = arith.constant dense<0.000000e+00> : vector<288xf32>
    %194 = vector.multi_reduction <add>, %193, %cst_63 [1] : vector<288x72xf32> to vector<288xf32>
    %195 = vector.shape_cast %194 : vector<288xf32> to vector<288x1xf32>
    %196 = tpu.reciprocal %195 {approx = true} : vector<288x1xf32> -> vector<288x1xf32>
    %197 = vector.broadcast %196 : vector<288x1xf32> to vector<288x72xf32>
    %198 = arith.mulf %193, %197 : vector<288x72xf32>
    %cst_64 = arith.constant dense<0.000000e+00> : vector<288x32xf32>
    %199 = tpu.matmul %198, %176, %cst_64 {dimension_numbers = #tpu.dot_dimension_numbers<[1], [0], [0], [1], [0, 0, 1, 1], [], []>} : vector<288x72xf32>, vector<72x32xf32>, vector<288x32xf32> -> vector<288x32xf32>
    %200 = vector.extract_strided_slice %199 {offsets = [0, 0], sizes = [72, 32], strides = [1, 1]} : vector<288x32xf32> to vector<72x32xf32>
    %201 = vector.broadcast %22 : vector<1x32xf32> to vector<72x32xf32>
    %202 = arith.mulf %200, %201 : vector<72x32xf32>
    %203 = vector.extract_strided_slice %199 {offsets = [72, 0], sizes = [72, 32], strides = [1, 1]} : vector<288x32xf32> to vector<72x32xf32>
    %204 = vector.broadcast %29 : vector<1x32xf32> to vector<72x32xf32>
    %205 = arith.mulf %203, %204 : vector<72x32xf32>
    %206 = arith.addf %202, %205 : vector<72x32xf32>
    %207 = vector.extract_strided_slice %199 {offsets = [144, 0], sizes = [72, 32], strides = [1, 1]} : vector<288x32xf32> to vector<72x32xf32>
    %208 = vector.broadcast %36 : vector<1x32xf32> to vector<72x32xf32>
    %209 = arith.mulf %207, %208 : vector<72x32xf32>
    %210 = arith.addf %206, %209 : vector<72x32xf32>
    %211 = vector.extract_strided_slice %199 {offsets = [216, 0], sizes = [72, 32], strides = [1, 1]} : vector<288x32xf32> to vector<72x32xf32>
    %212 = vector.broadcast %43 : vector<1x32xf32> to vector<72x32xf32>
    %213 = arith.mulf %211, %212 : vector<72x32xf32>
    %214 = arith.addf %210, %213 : vector<72x32xf32>
    %215 = arith.truncf %214 : vector<72x32xf32> to vector<72x32xbf16>
    %c0_65 = arith.constant 0 : index
    %c0_66 = arith.constant 0 : index
    %c0_67 = arith.constant 0 : index
    %216 = vector.load %arg11[%c0_65, %c0_66, %c0_67] : memref<2x32x32xbf16, #tpu.memory_space<vmem>>, vector<1x32x32xbf16>
    %217 = vector.shape_cast %216 : vector<1x32x32xbf16> to vector<32x32xbf16>
    %cst_68 = arith.constant dense<0.000000e+00> : vector<72x32xf32>
    %218 = tpu.matmul %215, %217, %cst_68 {dimension_numbers = #tpu.dot_dimension_numbers<[1], [0], [0], [1], [0, 0, 1, 1], [], []>} : vector<72x32xbf16>, vector<32x32xbf16>, vector<72x32xf32> -> vector<72x32xf32>
    %219 = arith.addf %14, %218 : vector<72x32xf32>
    %c0_69 = arith.constant 0 : index
    %c0_70 = arith.constant 0 : index
    %c0_71 = arith.constant 0 : index
    %220 = vector.load %arg12[%c0_69, %c0_70, %c0_71] : memref<2x1x32xf32, #tpu.memory_space<vmem>>, vector<1x1x32xf32>
    %221 = vector.shape_cast %220 : vector<1x1x32xf32> to vector<1x32xf32>
    %222 = vector.broadcast %221 : vector<1x32xf32> to vector<72x32xf32>
    %223 = arith.addf %219, %222 : vector<72x32xf32>
    %c0_72 = arith.constant 0 : index
    %c0_73 = arith.constant 0 : index
    %c0_74 = arith.constant 0 : index
    %224 = vector.load %arg13[%c0_72, %c0_73, %c0_74] : memref<2x1x32xf32, #tpu.memory_space<vmem>>, vector<1x1x32xf32>
    %225 = vector.shape_cast %224 : vector<1x1x32xf32> to vector<1x32xf32>
    %c0_75 = arith.constant 0 : index
    %c0_76 = arith.constant 0 : index
    %c0_77 = arith.constant 0 : index
    %226 = vector.load %arg14[%c0_75, %c0_76, %c0_77] : memref<2x1x32xf32, #tpu.memory_space<vmem>>, vector<1x1x32xf32>
    %227 = vector.shape_cast %226 : vector<1x1x32xf32> to vector<1x32xf32>
    %cst_78 = arith.constant dense<0.000000e+00> : vector<72xf32>
    %228 = vector.multi_reduction <add>, %223, %cst_78 [1] : vector<72x32xf32> to vector<72xf32>
    %229 = vector.shape_cast %228 : vector<72xf32> to vector<72x1xf32>
    %cst_79 = arith.constant 3.200000e+01 : f32
    %230 = vector.broadcast %cst_79 : f32 to vector<72x1xf32>
    %231 = arith.divf %229, %230 : vector<72x1xf32>
    %232 = vector.broadcast %231 : vector<72x1xf32> to vector<72x32xf32>
    %233 = arith.subf %223, %232 : vector<72x32xf32>
    %234 = arith.mulf %233, %233 : vector<72x32xf32>
    %cst_80 = arith.constant dense<0.000000e+00> : vector<72xf32>
    %235 = vector.multi_reduction <add>, %234, %cst_80 [1] : vector<72x32xf32> to vector<72xf32>
    %236 = vector.shape_cast %235 : vector<72xf32> to vector<72x1xf32>
    %cst_81 = arith.constant 3.200000e+01 : f32
    %237 = vector.broadcast %cst_81 : f32 to vector<72x1xf32>
    %238 = arith.divf %236, %237 : vector<72x1xf32>
    %239 = vector.broadcast %231 : vector<72x1xf32> to vector<72x32xf32>
    %240 = arith.subf %223, %239 : vector<72x32xf32>
    %cst_82 = arith.constant 9.99999974E-6 : f32
    %241 = vector.broadcast %cst_82 : f32 to vector<72x1xf32>
    %242 = arith.addf %238, %241 : vector<72x1xf32>
    %243 = math.rsqrt %242 : vector<72x1xf32>
    %244 = vector.broadcast %243 : vector<72x1xf32> to vector<72x32xf32>
    %245 = arith.mulf %240, %244 : vector<72x32xf32>
    %246 = vector.broadcast %225 : vector<1x32xf32> to vector<72x32xf32>
    %247 = arith.mulf %245, %246 : vector<72x32xf32>
    %248 = vector.broadcast %227 : vector<1x32xf32> to vector<72x32xf32>
    %249 = arith.addf %247, %248 : vector<72x32xf32>
    %250 = arith.truncf %249 : vector<72x32xf32> to vector<72x32xbf16>
    %c0_83 = arith.constant 0 : index
    %c0_84 = arith.constant 0 : index
    %c0_85 = arith.constant 0 : index
    %251 = vector.load %arg15[%c0_83, %c0_84, %c0_85] : memref<2x32x2048xbf16, #tpu.memory_space<vmem>>, vector<1x32x2048xbf16>
    %252 = vector.shape_cast %251 : vector<1x32x2048xbf16> to vector<32x2048xbf16>
    %cst_86 = arith.constant dense<0.000000e+00> : vector<72x2048xf32>
    %253 = tpu.matmul %250, %252, %cst_86 {dimension_numbers = #tpu.dot_dimension_numbers<[1], [0], [0], [1], [0, 0, 1, 1], [], []>} : vector<72x32xbf16>, vector<32x2048xbf16>, vector<72x2048xf32> -> vector<72x2048xf32>
    %c0_87 = arith.constant 0 : index
    %c0_88 = arith.constant 0 : index
    %c0_89 = arith.constant 0 : index
    %254 = vector.load %arg16[%c0_87, %c0_88, %c0_89] : memref<2x1x2048xf32, #tpu.memory_space<vmem>>, vector<1x1x2048xf32>
    %255 = vector.shape_cast %254 : vector<1x1x2048xf32> to vector<1x2048xf32>
    %256 = vector.broadcast %255 : vector<1x2048xf32> to vector<72x2048xf32>
    %257 = arith.addf %253, %256 : vector<72x2048xf32>
    %cst_90 = arith.constant 0.000000e+00 : f32
    %258 = vector.broadcast %cst_90 : f32 to vector<72x2048xf32>
    %259 = arith.maximumf %257, %258 : vector<72x2048xf32>
    %260 = arith.truncf %259 : vector<72x2048xf32> to vector<72x2048xbf16>
    %c0_91 = arith.constant 0 : index
    %c0_92 = arith.constant 0 : index
    %c0_93 = arith.constant 0 : index
    %261 = vector.load %arg17[%c0_91, %c0_92, %c0_93] : memref<2x2048x32xbf16, #tpu.memory_space<vmem>>, vector<1x2048x32xbf16>
    %262 = vector.shape_cast %261 : vector<1x2048x32xbf16> to vector<2048x32xbf16>
    %cst_94 = arith.constant dense<0.000000e+00> : vector<72x32xf32>
    %263 = tpu.matmul %260, %262, %cst_94 {dimension_numbers = #tpu.dot_dimension_numbers<[1], [0], [0], [1], [0, 0, 1, 1], [], []>} : vector<72x2048xbf16>, vector<2048x32xbf16>, vector<72x32xf32> -> vector<72x32xf32>
    %264 = arith.addf %223, %263 : vector<72x32xf32>
    %c0_95 = arith.constant 0 : index
    %c0_96 = arith.constant 0 : index
    %c0_97 = arith.constant 0 : index
    %265 = vector.load %arg18[%c0_95, %c0_96, %c0_97] : memref<2x1x32xf32, #tpu.memory_space<vmem>>, vector<1x1x32xf32>
    %266 = vector.shape_cast %265 : vector<1x1x32xf32> to vector<1x32xf32>
    %267 = vector.broadcast %266 : vector<1x32xf32> to vector<72x32xf32>
    %268 = arith.addf %264, %267 : vector<72x32xf32>
    %c1 = arith.constant 1 : index
    %c0_98 = arith.constant 0 : index
    %c0_99 = arith.constant 0 : index
    %269 = vector.load %arg7[%c1, %c0_98, %c0_99] : memref<2x1x32xf32, #tpu.memory_space<vmem>>, vector<1x1x32xf32>
    %270 = vector.shape_cast %269 : vector<1x1x32xf32> to vector<1x32xf32>
    %c1_100 = arith.constant 1 : index
    %c0_101 = arith.constant 0 : index
    %c0_102 = arith.constant 0 : index
    %271 = vector.load %arg8[%c1_100, %c0_101, %c0_102] : memref<2x1x32xf32, #tpu.memory_space<vmem>>, vector<1x1x32xf32>
    %272 = vector.shape_cast %271 : vector<1x1x32xf32> to vector<1x32xf32>
    %cst_103 = arith.constant dense<0.000000e+00> : vector<72xf32>
    %273 = vector.multi_reduction <add>, %268, %cst_103 [1] : vector<72x32xf32> to vector<72xf32>
    %274 = vector.shape_cast %273 : vector<72xf32> to vector<72x1xf32>
    %cst_104 = arith.constant 3.200000e+01 : f32
    %275 = vector.broadcast %cst_104 : f32 to vector<72x1xf32>
    %276 = arith.divf %274, %275 : vector<72x1xf32>
    %277 = vector.broadcast %276 : vector<72x1xf32> to vector<72x32xf32>
    %278 = arith.subf %268, %277 : vector<72x32xf32>
    %279 = arith.mulf %278, %278 : vector<72x32xf32>
    %cst_105 = arith.constant dense<0.000000e+00> : vector<72xf32>
    %280 = vector.multi_reduction <add>, %279, %cst_105 [1] : vector<72x32xf32> to vector<72xf32>
    %281 = vector.shape_cast %280 : vector<72xf32> to vector<72x1xf32>
    %cst_106 = arith.constant 3.200000e+01 : f32
    %282 = vector.broadcast %cst_106 : f32 to vector<72x1xf32>
    %283 = arith.divf %281, %282 : vector<72x1xf32>
    %284 = vector.broadcast %276 : vector<72x1xf32> to vector<72x32xf32>
    %285 = arith.subf %268, %284 : vector<72x32xf32>
    %cst_107 = arith.constant 9.99999974E-6 : f32
    %286 = vector.broadcast %cst_107 : f32 to vector<72x1xf32>
    %287 = arith.addf %283, %286 : vector<72x1xf32>
    %288 = math.rsqrt %287 : vector<72x1xf32>
    %289 = vector.broadcast %288 : vector<72x1xf32> to vector<72x32xf32>
    %290 = arith.mulf %285, %289 : vector<72x32xf32>
    %291 = vector.broadcast %270 : vector<1x32xf32> to vector<72x32xf32>
    %292 = arith.mulf %290, %291 : vector<72x32xf32>
    %293 = vector.broadcast %272 : vector<1x32xf32> to vector<72x32xf32>
    %294 = arith.addf %292, %293 : vector<72x32xf32>
    %295 = arith.truncf %294 : vector<72x32xf32> to vector<72x32xbf16>
    %c1_108 = arith.constant 1 : index
    %c0_109 = arith.constant 0 : index
    %c0_110 = arith.constant 0 : index
    %296 = vector.load %arg9[%c1_108, %c0_109, %c0_110] : memref<2x32x96xbf16, #tpu.memory_space<vmem>>, vector<1x32x96xbf16>
    %297 = vector.shape_cast %296 : vector<1x32x96xbf16> to vector<32x96xbf16>
    %cst_111 = arith.constant dense<0.000000e+00> : vector<72x96xf32>
    %298 = tpu.matmul %295, %297, %cst_111 {dimension_numbers = #tpu.dot_dimension_numbers<[1], [0], [0], [1], [0, 0, 1, 1], [], []>} : vector<72x32xbf16>, vector<32x96xbf16>, vector<72x96xf32> -> vector<72x96xf32>
    %c1_112 = arith.constant 1 : index
    %c0_113 = arith.constant 0 : index
    %c0_114 = arith.constant 0 : index
    %299 = vector.load %arg10[%c1_112, %c0_113, %c0_114] : memref<2x1x96xf32, #tpu.memory_space<vmem>>, vector<1x1x96xf32>
    %300 = vector.shape_cast %299 : vector<1x1x96xf32> to vector<1x96xf32>
    %301 = vector.broadcast %300 : vector<1x96xf32> to vector<72x96xf32>
    %302 = arith.addf %298, %301 : vector<72x96xf32>
    %303 = vector.extract_strided_slice %302 {offsets = [0, 0], sizes = [72, 32], strides = [1, 1]} : vector<72x96xf32> to vector<72x32xf32>
    %304 = vector.extract_strided_slice %302 {offsets = [0, 32], sizes = [72, 32], strides = [1, 1]} : vector<72x96xf32> to vector<72x32xf32>
    %305 = vector.extract_strided_slice %302 {offsets = [0, 64], sizes = [72, 32], strides = [1, 1]} : vector<72x96xf32> to vector<72x32xf32>
    %306 = vector.broadcast %45 : vector<1x32xf32> to vector<72x32xf32>
    %307 = arith.mulf %303, %306 : vector<72x32xf32>
    %308 = vector.broadcast %47 : vector<1x32xf32> to vector<72x32xf32>
    %309 = arith.mulf %303, %308 : vector<72x32xf32>
    %310 = vector.broadcast %49 : vector<1x32xf32> to vector<72x32xf32>
    %311 = arith.mulf %303, %310 : vector<72x32xf32>
    %312 = vector.broadcast %51 : vector<1x32xf32> to vector<72x32xf32>
    %313 = arith.mulf %303, %312 : vector<72x32xf32>
    %314 = tpu.concatenate %307, %309, %311, %313 in 0 : vector<72x32xf32>, vector<72x32xf32>, vector<72x32xf32>, vector<72x32xf32> -> vector<288x32xf32>
    %315 = tpu.transpose %304, [1, 0] : vector<72x32xf32> -> vector<32x72xf32>
    %cst_115 = arith.constant dense<0.000000e+00> : vector<288x72xf32>
    %316 = tpu.matmul %314, %315, %cst_115 {dimension_numbers = #tpu.dot_dimension_numbers<[1], [0], [0], [1], [0, 0, 1, 1], [], []>} : vector<288x32xf32>, vector<32x72xf32>, vector<288x72xf32> -> vector<288x72xf32>
    %317 = arith.addf %316, %139 : vector<288x72xf32>
    %cst_116 = arith.constant dense<0xFF800000> : vector<288xf32>
    %318 = vector.multi_reduction <maximumf>, %317, %cst_116 [1] : vector<288x72xf32> to vector<288xf32>
    %319 = vector.shape_cast %318 : vector<288xf32> to vector<288x1xf32>
    %320 = vector.broadcast %319 : vector<288x1xf32> to vector<288x72xf32>
    %321 = arith.subf %317, %320 : vector<288x72xf32>
    %322 = math.exp %321 : vector<288x72xf32>
    %cst_117 = arith.constant dense<0.000000e+00> : vector<288xf32>
    %323 = vector.multi_reduction <add>, %322, %cst_117 [1] : vector<288x72xf32> to vector<288xf32>
    %324 = vector.shape_cast %323 : vector<288xf32> to vector<288x1xf32>
    %325 = tpu.reciprocal %324 {approx = true} : vector<288x1xf32> -> vector<288x1xf32>
    %326 = vector.broadcast %325 : vector<288x1xf32> to vector<288x72xf32>
    %327 = arith.mulf %322, %326 : vector<288x72xf32>
    %cst_118 = arith.constant dense<0.000000e+00> : vector<288x32xf32>
    %328 = tpu.matmul %327, %305, %cst_118 {dimension_numbers = #tpu.dot_dimension_numbers<[1], [0], [0], [1], [0, 0, 1, 1], [], []>} : vector<288x72xf32>, vector<72x32xf32>, vector<288x32xf32> -> vector<288x32xf32>
    %329 = vector.extract_strided_slice %328 {offsets = [0, 0], sizes = [72, 32], strides = [1, 1]} : vector<288x32xf32> to vector<72x32xf32>
    %330 = vector.broadcast %22 : vector<1x32xf32> to vector<72x32xf32>
    %331 = arith.mulf %329, %330 : vector<72x32xf32>
    %332 = vector.extract_strided_slice %328 {offsets = [72, 0], sizes = [72, 32], strides = [1, 1]} : vector<288x32xf32> to vector<72x32xf32>
    %333 = vector.broadcast %29 : vector<1x32xf32> to vector<72x32xf32>
    %334 = arith.mulf %332, %333 : vector<72x32xf32>
    %335 = arith.addf %331, %334 : vector<72x32xf32>
    %336 = vector.extract_strided_slice %328 {offsets = [144, 0], sizes = [72, 32], strides = [1, 1]} : vector<288x32xf32> to vector<72x32xf32>
    %337 = vector.broadcast %36 : vector<1x32xf32> to vector<72x32xf32>
    %338 = arith.mulf %336, %337 : vector<72x32xf32>
    %339 = arith.addf %335, %338 : vector<72x32xf32>
    %340 = vector.extract_strided_slice %328 {offsets = [216, 0], sizes = [72, 32], strides = [1, 1]} : vector<288x32xf32> to vector<72x32xf32>
    %341 = vector.broadcast %43 : vector<1x32xf32> to vector<72x32xf32>
    %342 = arith.mulf %340, %341 : vector<72x32xf32>
    %343 = arith.addf %339, %342 : vector<72x32xf32>
    %344 = arith.truncf %343 : vector<72x32xf32> to vector<72x32xbf16>
    %c1_119 = arith.constant 1 : index
    %c0_120 = arith.constant 0 : index
    %c0_121 = arith.constant 0 : index
    %345 = vector.load %arg11[%c1_119, %c0_120, %c0_121] : memref<2x32x32xbf16, #tpu.memory_space<vmem>>, vector<1x32x32xbf16>
    %346 = vector.shape_cast %345 : vector<1x32x32xbf16> to vector<32x32xbf16>
    %cst_122 = arith.constant dense<0.000000e+00> : vector<72x32xf32>
    %347 = tpu.matmul %344, %346, %cst_122 {dimension_numbers = #tpu.dot_dimension_numbers<[1], [0], [0], [1], [0, 0, 1, 1], [], []>} : vector<72x32xbf16>, vector<32x32xbf16>, vector<72x32xf32> -> vector<72x32xf32>
    %348 = arith.addf %268, %347 : vector<72x32xf32>
    %c1_123 = arith.constant 1 : index
    %c0_124 = arith.constant 0 : index
    %c0_125 = arith.constant 0 : index
    %349 = vector.load %arg12[%c1_123, %c0_124, %c0_125] : memref<2x1x32xf32, #tpu.memory_space<vmem>>, vector<1x1x32xf32>
    %350 = vector.shape_cast %349 : vector<1x1x32xf32> to vector<1x32xf32>
    %351 = vector.broadcast %350 : vector<1x32xf32> to vector<72x32xf32>
    %352 = arith.addf %348, %351 : vector<72x32xf32>
    %c1_126 = arith.constant 1 : index
    %c0_127 = arith.constant 0 : index
    %c0_128 = arith.constant 0 : index
    %353 = vector.load %arg13[%c1_126, %c0_127, %c0_128] : memref<2x1x32xf32, #tpu.memory_space<vmem>>, vector<1x1x32xf32>
    %354 = vector.shape_cast %353 : vector<1x1x32xf32> to vector<1x32xf32>
    %c1_129 = arith.constant 1 : index
    %c0_130 = arith.constant 0 : index
    %c0_131 = arith.constant 0 : index
    %355 = vector.load %arg14[%c1_129, %c0_130, %c0_131] : memref<2x1x32xf32, #tpu.memory_space<vmem>>, vector<1x1x32xf32>
    %356 = vector.shape_cast %355 : vector<1x1x32xf32> to vector<1x32xf32>
    %cst_132 = arith.constant dense<0.000000e+00> : vector<72xf32>
    %357 = vector.multi_reduction <add>, %352, %cst_132 [1] : vector<72x32xf32> to vector<72xf32>
    %358 = vector.shape_cast %357 : vector<72xf32> to vector<72x1xf32>
    %cst_133 = arith.constant 3.200000e+01 : f32
    %359 = vector.broadcast %cst_133 : f32 to vector<72x1xf32>
    %360 = arith.divf %358, %359 : vector<72x1xf32>
    %361 = vector.broadcast %360 : vector<72x1xf32> to vector<72x32xf32>
    %362 = arith.subf %352, %361 : vector<72x32xf32>
    %363 = arith.mulf %362, %362 : vector<72x32xf32>
    %cst_134 = arith.constant dense<0.000000e+00> : vector<72xf32>
    %364 = vector.multi_reduction <add>, %363, %cst_134 [1] : vector<72x32xf32> to vector<72xf32>
    %365 = vector.shape_cast %364 : vector<72xf32> to vector<72x1xf32>
    %cst_135 = arith.constant 3.200000e+01 : f32
    %366 = vector.broadcast %cst_135 : f32 to vector<72x1xf32>
    %367 = arith.divf %365, %366 : vector<72x1xf32>
    %368 = vector.broadcast %360 : vector<72x1xf32> to vector<72x32xf32>
    %369 = arith.subf %352, %368 : vector<72x32xf32>
    %cst_136 = arith.constant 9.99999974E-6 : f32
    %370 = vector.broadcast %cst_136 : f32 to vector<72x1xf32>
    %371 = arith.addf %367, %370 : vector<72x1xf32>
    %372 = math.rsqrt %371 : vector<72x1xf32>
    %373 = vector.broadcast %372 : vector<72x1xf32> to vector<72x32xf32>
    %374 = arith.mulf %369, %373 : vector<72x32xf32>
    %375 = vector.broadcast %354 : vector<1x32xf32> to vector<72x32xf32>
    %376 = arith.mulf %374, %375 : vector<72x32xf32>
    %377 = vector.broadcast %356 : vector<1x32xf32> to vector<72x32xf32>
    %378 = arith.addf %376, %377 : vector<72x32xf32>
    %379 = arith.truncf %378 : vector<72x32xf32> to vector<72x32xbf16>
    %c1_137 = arith.constant 1 : index
    %c0_138 = arith.constant 0 : index
    %c0_139 = arith.constant 0 : index
    %380 = vector.load %arg15[%c1_137, %c0_138, %c0_139] : memref<2x32x2048xbf16, #tpu.memory_space<vmem>>, vector<1x32x2048xbf16>
    %381 = vector.shape_cast %380 : vector<1x32x2048xbf16> to vector<32x2048xbf16>
    %cst_140 = arith.constant dense<0.000000e+00> : vector<72x2048xf32>
    %382 = tpu.matmul %379, %381, %cst_140 {dimension_numbers = #tpu.dot_dimension_numbers<[1], [0], [0], [1], [0, 0, 1, 1], [], []>} : vector<72x32xbf16>, vector<32x2048xbf16>, vector<72x2048xf32> -> vector<72x2048xf32>
    %c1_141 = arith.constant 1 : index
    %c0_142 = arith.constant 0 : index
    %c0_143 = arith.constant 0 : index
    %383 = vector.load %arg16[%c1_141, %c0_142, %c0_143] : memref<2x1x2048xf32, #tpu.memory_space<vmem>>, vector<1x1x2048xf32>
    %384 = vector.shape_cast %383 : vector<1x1x2048xf32> to vector<1x2048xf32>
    %385 = vector.broadcast %384 : vector<1x2048xf32> to vector<72x2048xf32>
    %386 = arith.addf %382, %385 : vector<72x2048xf32>
    %cst_144 = arith.constant 0.000000e+00 : f32
    %387 = vector.broadcast %cst_144 : f32 to vector<72x2048xf32>
    %388 = arith.maximumf %386, %387 : vector<72x2048xf32>
    %389 = arith.truncf %388 : vector<72x2048xf32> to vector<72x2048xbf16>
    %c1_145 = arith.constant 1 : index
    %c0_146 = arith.constant 0 : index
    %c0_147 = arith.constant 0 : index
    %390 = vector.load %arg17[%c1_145, %c0_146, %c0_147] : memref<2x2048x32xbf16, #tpu.memory_space<vmem>>, vector<1x2048x32xbf16>
    %391 = vector.shape_cast %390 : vector<1x2048x32xbf16> to vector<2048x32xbf16>
    %cst_148 = arith.constant dense<0.000000e+00> : vector<72x32xf32>
    %392 = tpu.matmul %389, %391, %cst_148 {dimension_numbers = #tpu.dot_dimension_numbers<[1], [0], [0], [1], [0, 0, 1, 1], [], []>} : vector<72x2048xbf16>, vector<2048x32xbf16>, vector<72x32xf32> -> vector<72x32xf32>
    %393 = arith.addf %352, %392 : vector<72x32xf32>
    %c1_149 = arith.constant 1 : index
    %c0_150 = arith.constant 0 : index
    %c0_151 = arith.constant 0 : index
    %394 = vector.load %arg18[%c1_149, %c0_150, %c0_151] : memref<2x1x32xf32, #tpu.memory_space<vmem>>, vector<1x1x32xf32>
    %395 = vector.shape_cast %394 : vector<1x1x32xf32> to vector<1x32xf32>
    %396 = vector.broadcast %395 : vector<1x32xf32> to vector<72x32xf32>
    %397 = arith.addf %393, %396 : vector<72x32xf32>
    %c0_152 = arith.constant 0 : index
    %c0_153 = arith.constant 0 : index
    %398 = vector.load %arg19[%c0_152, %c0_153] : memref<1x32xf32, #tpu.memory_space<vmem>>, vector<1x32xf32>
    %cst_154 = arith.constant dense<0.000000e+00> : vector<1x72xf32>
    %399 = tpu.matmul %398, %397, %cst_154 {dimension_numbers = #tpu.dot_dimension_numbers<[1], [1], [0], [0], [0, 0, 1, 0], [], []>} : vector<1x32xf32>, vector<72x32xf32>, vector<1x72xf32> -> vector<1x72xf32>
    %c0_155 = arith.constant 0 : index
    %c0_156 = arith.constant 0 : index
    %400 = vector.load %arg20[%c0_155, %c0_156] : memref<1x1xf32, #tpu.memory_space<vmem>>, vector<1x1xf32>
    %401 = vector.broadcast %400 : vector<1x1xf32> to vector<1x72xf32>
    %402 = arith.addf %399, %401 : vector<1x72xf32>
    %c0_157 = arith.constant 0 : index
    %c0_158 = arith.constant 0 : index
    %c0_159 = arith.constant 0 : index
    %403 = vector.load %arg21[%c0_157, %c0_158, %c0_159] : memref<1x1x72xf32, #tpu.memory_space<vmem>>, vector<1x1x72xf32>
    %404 = vector.shape_cast %403 : vector<1x1x72xf32> to vector<1x72xf32>
    %405 = vector.shape_cast %402 : vector<1x72xf32> to vector<1x1x72xf32>
    tpu.vector_store %arg21[%c0_157, %c0_158, %c0_159], %405 {strides = array<i32>} : memref<1x1x72xf32, #tpu.memory_space<vmem>>, vector<1x1x72xf32>,
    return
  }
  func.func @transform_0(%arg0: i32) -> (i32, i32, i32) {
    %c0_i32 = arith.constant 0 : i32
    %c0_i32_0 = arith.constant 0 : i32
    %c0_i32_1 = arith.constant 0 : i32
    return %arg0, %c0_i32, %c0_i32_0 : i32, i32, i32
  }
  func.func @transform_1(%arg0: i32) -> (i32, i32, i32) {
    %c0_i32 = arith.constant 0 : i32
    %c0_i32_0 = arith.constant 0 : i32
    %c0_i32_1 = arith.constant 0 : i32
    return %arg0, %c0_i32, %c0_i32_0 : i32, i32, i32
  }
  func.func @transform_2(%arg0: i32) -> (i32, i32) {
    %c0_i32 = arith.constant 0 : i32
    %c0_i32_0 = arith.constant 0 : i32
    %c0_i32_1 = arith.constant 0 : i32
    return %c0_i32, %c0_i32_0 : i32, i32
  }
  func.func @transform_3(%arg0: i32) -> (i32, i32) {
    %c0_i32 = arith.constant 0 : i32
    %c0_i32_0 = arith.constant 0 : i32
    %c0_i32_1 = arith.constant 0 : i32
    return %c0_i32, %c0_i32_0 : i32, i32
  }
  func.func @transform_4(%arg0: i32) -> (i32, i32) {
    %c0_i32 = arith.constant 0 : i32
    %c0_i32_0 = arith.constant 0 : i32
    %c0_i32_1 = arith.constant 0 : i32
    return %c0_i32, %c0_i32_0 : i32, i32
  }
  func.func @transform_5(%arg0: i32) -> (i32, i32) {
    %c0_i32 = arith.constant 0 : i32
    %c0_i32_0 = arith.constant 0 : i32
    %c0_i32_1 = arith.constant 0 : i32
    return %c0_i32, %c0_i32_0 : i32, i32
  }
  func.func @transform_6(%arg0: i32) -> (i32, i32, i32) {
    %c0_i32 = arith.constant 0 : i32
    %c0_i32_0 = arith.constant 0 : i32
    %c0_i32_1 = arith.constant 0 : i32
    %c0_i32_2 = arith.constant 0 : i32
    return %c0_i32, %c0_i32_0, %c0_i32_1 : i32, i32, i32
  }
  func.func @transform_7(%arg0: i32) -> (i32, i32, i32) {
    %c0_i32 = arith.constant 0 : i32
    %c0_i32_0 = arith.constant 0 : i32
    %c0_i32_1 = arith.constant 0 : i32
    %c0_i32_2 = arith.constant 0 : i32
    return %c0_i32, %c0_i32_0, %c0_i32_1 : i32, i32, i32
  }
  func.func @transform_8(%arg0: i32) -> (i32, i32, i32) {
    %c0_i32 = arith.constant 0 : i32
    %c0_i32_0 = arith.constant 0 : i32
    %c0_i32_1 = arith.constant 0 : i32
    %c0_i32_2 = arith.constant 0 : i32
    return %c0_i32, %c0_i32_0, %c0_i32_1 : i32, i32, i32
  }
  func.func @transform_9(%arg0: i32) -> (i32, i32, i32) {
    %c0_i32 = arith.constant 0 : i32
    %c0_i32_0 = arith.constant 0 : i32
    %c0_i32_1 = arith.constant 0 : i32
    %c0_i32_2 = arith.constant 0 : i32
    return %c0_i32, %c0_i32_0, %c0_i32_1 : i32, i32, i32
  }
  func.func @transform_10(%arg0: i32) -> (i32, i32, i32) {
    %c0_i32 = arith.constant 0 : i32
    %c0_i32_0 = arith.constant 0 : i32
    %c0_i32_1 = arith.constant 0 : i32
    %c0_i32_2 = arith.constant 0 : i32
    return %c0_i32, %c0_i32_0, %c0_i32_1 : i32, i32, i32
  }
  func.func @transform_11(%arg0: i32) -> (i32, i32, i32) {
    %c0_i32 = arith.constant 0 : i32
    %c0_i32_0 = arith.constant 0 : i32
    %c0_i32_1 = arith.constant 0 : i32
    %c0_i32_2 = arith.constant 0 : i32
    return %c0_i32, %c0_i32_0, %c0_i32_1 : i32, i32, i32
  }
  func.func @transform_12(%arg0: i32) -> (i32, i32, i32) {
    %c0_i32 = arith.constant 0 : i32
    %c0_i32_0 = arith.constant 0 : i32
    %c0_i32_1 = arith.constant 0 : i32
    %c0_i32_2 = arith.constant 0 : i32
    return %c0_i32, %c0_i32_0, %c0_i32_1 : i32, i32, i32
  }
  func.func @transform_13(%arg0: i32) -> (i32, i32, i32) {
    %c0_i32 = arith.constant 0 : i32
    %c0_i32_0 = arith.constant 0 : i32
    %c0_i32_1 = arith.constant 0 : i32
    %c0_i32_2 = arith.constant 0 : i32
    return %c0_i32, %c0_i32_0, %c0_i32_1 : i32, i32, i32
  }
  func.func @transform_14(%arg0: i32) -> (i32, i32, i32) {
    %c0_i32 = arith.constant 0 : i32
    %c0_i32_0 = arith.constant 0 : i32
    %c0_i32_1 = arith.constant 0 : i32
    %c0_i32_2 = arith.constant 0 : i32
    return %c0_i32, %c0_i32_0, %c0_i32_1 : i32, i32, i32
  }
  func.func @transform_15(%arg0: i32) -> (i32, i32, i32) {
    %c0_i32 = arith.constant 0 : i32
    %c0_i32_0 = arith.constant 0 : i32
    %c0_i32_1 = arith.constant 0 : i32
    %c0_i32_2 = arith.constant 0 : i32
    return %c0_i32, %c0_i32_0, %c0_i32_1 : i32, i32, i32
  }
  func.func @transform_16(%arg0: i32) -> (i32, i32, i32) {
    %c0_i32 = arith.constant 0 : i32
    %c0_i32_0 = arith.constant 0 : i32
    %c0_i32_1 = arith.constant 0 : i32
    %c0_i32_2 = arith.constant 0 : i32
    return %c0_i32, %c0_i32_0, %c0_i32_1 : i32, i32, i32
  }
  func.func @transform_17(%arg0: i32) -> (i32, i32, i32) {
    %c0_i32 = arith.constant 0 : i32
    %c0_i32_0 = arith.constant 0 : i32
    %c0_i32_1 = arith.constant 0 : i32
    %c0_i32_2 = arith.constant 0 : i32
    return %c0_i32, %c0_i32_0, %c0_i32_1 : i32, i32, i32
  }
  func.func @transform_18(%arg0: i32) -> (i32, i32) {
    %c0_i32 = arith.constant 0 : i32
    %c0_i32_0 = arith.constant 0 : i32
    %c0_i32_1 = arith.constant 0 : i32
    return %c0_i32, %c0_i32_0 : i32, i32
  }
  func.func @transform_19(%arg0: i32) -> (i32, i32) {
    %c0_i32 = arith.constant 0 : i32
    %c0_i32_0 = arith.constant 0 : i32
    %c0_i32_1 = arith.constant 0 : i32
    return %c0_i32, %c0_i32_0 : i32, i32
  }
  func.func @transform_20(%arg0: i32) -> (i32, i32, i32) {
    %c0_i32 = arith.constant 0 : i32
    %c0_i32_0 = arith.constant 0 : i32
    %c0_i32_1 = arith.constant 0 : i32
    return %arg0, %c0_i32, %c0_i32_0 : i32, i32, i32
  }
}

</mosaic_0001>

<bundles_post_ra>
// kernel: tpu_custom_call.1
= control target key start
LH: loop header
LB: loop body
LE: loop exit
PB: predicated region body
PF: predicated region fallthrough
CT: control target
= control target key end

     0   :  { %s17310_s0 = inlined_call_operand.vmem [shape: f32[1,8,12], index: 0, kind: input, shape index: {}]   ;;  %s17311_s1 = inlined_call_operand.vmem [shape: f32[1,64,6], index: 1, kind: input, shape index: {}]   ;;  %s17312_s2 = inlined_call_operand.vmem [shape: f32[12,32], index: 2, kind: input, shape index: {}]   ;;  %s17313_s3 = inlined_call_operand.vmem [shape: f32[1,32], index: 3, kind: input, shape index: {}]   ;;  %s17314_s4 = inlined_call_operand.vmem [shape: f32[6,32], index: 4, kind: input, shape index: {}]   ;;  %s17315_s5 = inlined_call_operand.vmem [shape: f32[1,32], index: 5, kind: input, shape index: {}]   ;;  %s17316_s6 = inlined_call_operand.vmem [shape: f32[2,1,32], index: 6, kind: input, shape index: {}]   ;;  %s17317_s7 = inlined_call_operand.vmem [shape: f32[2,1,32], index: 7, kind: input, shape index: {}]   ;;  %s17318_s8 = inlined_call_operand.vmem [shape: bf16[2,32,96], index: 8, kind: input, shape index: {}]   ;;  %s17319_s9 = inlined_call_operand.vmem [shape: f32[2,1,96], index: 9, kind: input, shape index: {}]   ;;  %s17320_s10 = inlined_call_operand.vmem [shape: bf16[2,32,32], index: 10, kind: input, shape index: {}]   ;;  %s17321_s11 = inlined_call_operand.vmem [shape: f32[2,1,32], index: 11, kind: input, shape index: {}]   ;;  %s17322_s12 = inlined_call_operand.vmem [shape: f32[2,1,32], index: 12, kind: input, shape index: {}]   ;;  %s17323_s13 = inlined_call_operand.vmem [shape: f32[2,1,32], index: 13, kind: input, shape index: {}]   ;;  %s17324_s14 = inlined_call_operand.vmem [shape: bf16[2,32,2048], index: 14, kind: input, shape index: {}]   ;;  %s17325_s15 = inlined_call_operand.vmem [shape: f32[2,1,2048], index: 15, kind: input, shape index: {}]   ;;  %s17326_s16 = inlined_call_operand.vmem [shape: bf16[2,2048,32], index: 16, kind: input, shape index: {}]   ;;  %s17327_s17 = inlined_call_operand.vmem [shape: f32[2,1,32], index: 17, kind: input, shape index: {}]   ;;  %s17328_s18 = inlined_call_operand.vmem [shape: f32[1,32], index: 18, kind: input, shape index: {}]   ;;  %s17329_s19 = inlined_call_operand.<no memory space> [shape: f32[1,1], index: 19, kind: input, shape index: {}]   ;;  %s17330_s20 = inlined_call_operand.hbm [shape: f32[1,1,72], index: 20, kind: output, shape index: {}]  }
   0x1   :  { %17388 = sst [smem:[#allocation30_spill]] %s17310_s0  ;;  %v25_v0 = vstv %s17329_s19 }
   0x2   :  { %17389 = sst [smem:[#allocation31_spill]] %s17311_s1  ;;  %26 = vst [vmem:[#allocation2] sm:$0x1] %v25_v0 }
   0x3   :  { %17390 = sst [smem:[#allocation32_spill]] %s17312_s2 }
   0x4   :  { %17391 = sst [smem:[#allocation33_spill]] %s17313_s3 }
   0x5   :  { %17392 = sst [smem:[#allocation34_spill]] %s17314_s4 }
   0x6   :  { %s17393_s2 = sld [smem:[#allocation34_spill]]  ;;  %vm198_vm0 = vcmask 1045504   ;;  %s17394_s26 = sld [smem:[#allocation31_spill]]  ;;  %vm173_vm1 = vcmask 48128   ;;  %v17333_v3 = vmov 0.0|0.0   ;;  %vm83_vm2 = vcmask 1043456  }
   0x7   :  { %12311 = vmatprep.subr.bf16.mxu0 %v17333_v3  ;;  %s17395_s4 = sld [smem:[#allocation32_spill]]  ;;  %vm13155_vm3 = vmmov 1   ;;  %vm13156_vm5 = vmmov 0   ;;  %v17337_v9 = vmov 0.0   ;;  %s17396_s24 = sld [smem:[#allocation30_spill]]  ;;  %vm79_vm6 = vcmask 97280  }
   0x8   :  { %vm12313_vm4 = vmpackc.low %vm83_vm2, %vm13155_vm3  ;;  %11889 = vmatprep.mubr.msk.f32.mxu0 %vm13156_vm5, %v17337_v9 }
   0xc   :  { %v165_v1 = vld [vmem:[%s17393_s2] sm:$0x3f]  ;;  %v158_v6 = vld [vmem:[%s17394_s26 + $0x8] sm:$0xff]  ;;  %v159_v8 = vld [vmem:[%s17394_s26 + $0x10] sm:$0xff] }
   0xd   :  { %v157_v2 = vld [vmem:[%s17394_s26] sm:$0xff]  ;;  %11892 = vmatprep.subr.msk.mxu1 %vm198_vm0, %v165_v1  ;;  %v71_v5 = vld [vmem:[%s17395_s4 + $0x8] sm:$0xf]  ;;  %v160_v11 = vld [vmem:[%s17394_s26 + $0x18] sm:$0xff] }
   0xe   :  { %v70_v4 = vld [vmem:[%s17395_s4] sm:$0xff]  ;;  %11893 = vmatpush3.msk.msra.mxu1 %vm198_vm0, %v165_v1  ;;  %11894 = vmatprep.mubr.msk.f32.mxu1 %vm173_vm1, %v157_v2  ;;  %v162_v13 = vld [vmem:[%s17394_s26 + $0x28] sm:$0xff]  ;;  %v163_v14 = vld [vmem:[%s17394_s26 + $0x30] sm:$0xff] }
   0xf   :  { %v12312_v7 = vpack.c.bf16 %v71_v5, %v70_v4  ;;  %11895 = vmatmul.mubr.msk.f32.vlgmr.msra.gmra.mrb[0].mxu1 %vm173_vm1, %v158_v6  ;;  %v69_v10 = vld [vmem:[%s17396_s24] sm:$0xff]  ;;  %v164_v15 = vld [vmem:[%s17394_s26 + $0x38] sm:$0xff] }
  0x10   :  { %11897 = vmatprep.mubr.msk.f32.mxu1 %vm173_vm1, %v159_v8  ;;  %v161_v12 = vld [vmem:[%s17394_s26 + $0x20] sm:$0xff] }
  0x11   :  { %12314 = vmatpush3.bf16.msk.msra.mxu0 %vm12313_vm4, %v12312_v7 }
  0x12   :  { %11906 = vmatprep.subr.bf16.mxu0 %v17337_v9 }
  0x13   :  { %11898 = vmatmul.mubr.msk.f32.gmra.mrb[2].mxu1 %vm173_vm1, %v160_v11 }
  0x14   :  { %11890 = vmatmul.mubr.msk.f32.vlgmr.msra.gmra.mrb[0].mxu0 %vm79_vm6, %v69_v10  ;;  %11900 = vmatprep.mubr.msk.f32.mxu1 %vm173_vm1, %v161_v12 }
  0x15   :  { %11910 = vmatprep.mubr.msk.bf16.mxu0 %vm13156_vm5, %v17337_v9 }
  0x17   :  { %11901 = vmatmul.mubr.msk.f32.gmra.mrb[4].mxu1 %vm173_vm1, %v162_v13 }
  0x18   :  { %11903 = vmatprep.mubr.msk.f32.mxu1 %vm173_vm1, %v163_v14 }
  0x1b   :  { %11904 = vmatmul.mubr.msk.f32.gmra.mrb[6].mxu1 %vm173_vm1, %v164_v15 }
  0x1c   :  { %27 = vsyncpa [#allocation4], 0  ;;  %v9978_v16 = vld [vmem:[%s17315_s5] ss:$0 sm:$0xff]  ;;  %vm611_vm7 = vcmask 261120   ;;  %s17397_s24 = sld [smem:[#allocation33_spill]] }
  0x1d   :  { %s13158_s30 = smov 96   ;;  %s13159_s0 = smov 64   ;;  %vm13508_vm9 = vmpackc.low %vm611_vm7, %vm611_vm7 }
  0x22   :  { %v9975_v20 = vld [vmem:[%s17397_s24] ss:$0 sm:$0xff] }
  0xe2   :  { %v11896_v17 = vpop.f32.mrb[0].mxu1 }
  0xe3   :  { %v13324_v18 = vadd.f32 %v11896_v17, %v9978_v16  ;;  %v268_v19 = vpop.f32.mrb[1].mxu1 }
  0xe4   :  { %v13333_v25 = vadd.f32 %v9978_v16, %v268_v19 }
  0xe5   :  { %v618_v21 = vsel %vm611_vm7, %v13324_v18, 0.0 }
  0xe6   :  { %619 = vadd.xlane.f32.xlu1 %v618_v21  ;;  %v11899_v23 = vpop.f32.mrb[2].mxu1  ;;  %v615_v34 = vsel %vm611_vm7, %v13333_v25, 0.0 }
  0xe7   :  { %v153_v22 = vpop.f32.mrb[0].mxu0  ;;  %v278_v27 = vpop.f32.mrb[3].mxu1  ;;  %v13341_v32 = vadd.f32 %v11899_v23, %v9978_v16 }
  0xe8   :  { %v13331_v24 = vadd.f32 %v9975_v20, %v153_v22  ;;  %v11891_v26 = vpop.f32.mrb[1].mxu0  ;;  %v13335_v28 = vadd.f32 %v9978_v16, %v278_v27 }
  0xe9   :  { %v624_v40 = vsel %vm611_vm7, %v13341_v32, 0.0 }
  0xea   :  { %v612_v29 = vsel %vm611_vm7, %v13331_v24, 0.0  ;;  %v11902_v30 = vpop.f32.mrb[4].mxu1  ;;  %v621_v31 = vsel %vm611_vm7, %v13335_v28, 0.0 }
  0xeb   :  { %613 = vadd.xlane.f32.xlu0 %v612_v29  ;;  %v288_v33 = vpop.f32.mrb[5].mxu1  ;;  %622 = vadd.xlane.f32.xlu1 %v621_v31  ;;  %v13349_v38 = vadd.f32 %v11902_v30, %v9978_v16 }
  0xec   :  { %v13345_v35 = vadd.f32 %v9978_v16, %v288_v33 }
  0xed   :  { %v630_v44 = vsel %vm611_vm7, %v13349_v38, 0.0 }
  0xee   :  { %v11905_v36 = vpop.f32.mrb[6].mxu1  ;;  %v627_v37 = vsel %vm611_vm7, %v13345_v35, 0.0 }
  0xef   :  { %616 = vadd.xlane.f32.xlu0 %v615_v34  ;;  %v298_v39 = vpop.f32.mrb[7].mxu1  ;;  %628 = vadd.xlane.f32.xlu1 %v627_v37  ;;  %v13357_v43 = vadd.f32 %v11905_v36, %v9978_v16  ;;  %v12506_v34 = vld [vmem:[%s17318_s8] sm:$0xff]   ;;  %v12507_v36 = vld [vmem:[%s17318_s8 + $0x8] sm:$0xff]  }
  0xf0   :  { %v13353_v41 = vadd.f32 %v9978_v16, %v298_v39  ;;  %11907 = vmatpush3.bf16.msra.mxu0 %v12506_v34 }
  0xf1   :  { %v636_v45 = vsel %vm611_vm7, %v13357_v43, 0.0  ;;  %11908 = vmatprep.subr.bf16.mxu0 %v17337_v9 }
  0xf2   :  { %v633_v42 = vsel %vm611_vm7, %v13353_v41, 0.0 }
  0xf3   :  { %625 = vadd.xlane.f32.xlu0 %v624_v40  ;;  %634 = vadd.xlane.f32.xlu1 %v633_v42 }
  0xf4   :  { %11909 = vmatpush3.bf16.msra.mxu0 %v12507_v36 }
  0xf7   :  { %631 = vadd.xlane.f32.xlu0 %v630_v44 }
  0xfb   :  { %637 = vadd.xlane.f32.xlu0 %v636_v45 }
 0x173   :  { %v620_v46 = vpop.xlane.xlu1 %619 }
 0x174   :  { %v642_v47 = vmul.f32 0.03125, %v620_v46 }
 0x176   :  { %v13364_v51 = vsub.f32 %v13324_v18, %v642_v47 }
 0x178   :  { %v614_v48 = vpop.xlane.xlu0 %613  ;;  %v623_v50 = vpop.xlane.xlu1 %622  ;;  %v660_v59 = vmul.f32 %v13364_v51, %v13364_v51 }
 0x179   :  { %v640_v49 = vmul.f32 0.03125, %v614_v48  ;;  %v643_v52 = vmul.f32 0.03125, %v623_v50 }
 0x17a   :  { %v673_v4 = vsel %vm611_vm7, %v660_v59, 0.0 }
 0x17b   :  { %v13367_v53 = vsub.f32 %v13331_v24, %v640_v49  ;;  %v13372_v58 = vsub.f32 %v13335_v28, %v643_v52 }
 0x17c   :  { %v617_v54 = vpop.xlane.xlu0 %616  ;;  %v629_v56 = vpop.xlane.xlu1 %628 }
 0x17d   :  { %v641_v55 = vmul.f32 0.03125, %v617_v54  ;;  %v658_v57 = vmul.f32 %v13367_v53, %v13367_v53  ;;  %v645_v61 = vmul.f32 0.03125, %v629_v56  ;;  %v661_v5 = vmul.f32 %v13372_v58, %v13372_v58 }
 0x17f   :  { %v13377_v60 = vsub.f32 %v13333_v25, %v641_v55  ;;  %v667_v62 = vsel %vm611_vm7, %v658_v57, 0.0  ;;  %v13386_v6 = vsub.f32 %v13345_v35, %v645_v61  ;;  %v676_v14 = vsel %vm611_vm7, %v661_v5, 0.0 }
 0x180   :  { %668 = vadd.xlane.f32.xlu1 %v667_v62  ;;  %v626_v63 = vpop.xlane.xlu0 %625  ;;  %v635_v1 = vpop.xlane.xlu1 %634 }
 0x181   :  { %v644_v0 = vmul.f32 0.03125, %v626_v63  ;;  %v659_v2 = vmul.f32 %v13377_v60, %v13377_v60  ;;  %v647_v8 = vmul.f32 0.03125, %v635_v1  ;;  %v663_v19 = vmul.f32 %v13386_v6, %v13386_v6 }
 0x183   :  { %v13389_v7 = vsub.f32 %v13341_v32, %v644_v0  ;;  %v670_v10 = vsel %vm611_vm7, %v659_v2, 0.0  ;;  %v13396_v15 = vsub.f32 %v13353_v41, %v647_v8  ;;  %v682_v26 = vsel %vm611_vm7, %v663_v19, 0.0  ;;  %v10000_v2 = vld [vmem:[%s17316_s6] ss:$0 sm:$0xff] }
 0x184   :  { %674 = vadd.xlane.f32.xlu1 %v673_v4  ;;  %671 = vadd.xlane.f32.xlu0 %v670_v10  ;;  %v632_v11 = vpop.xlane.xlu0 %631 }
 0x185   :  { %v646_v12 = vmul.f32 0.03125, %v632_v11  ;;  %v662_v13 = vmul.f32 %v13389_v7, %v13389_v7  ;;  %v665_v29 = vmul.f32 %v13396_v15, %v13396_v15 }
 0x187   :  { %v13399_v16 = vsub.f32 %v13349_v38, %v646_v12  ;;  %v679_v17 = vsel %vm611_vm7, %v662_v13, 0.0  ;;  %v688_v31 = vsel %vm611_vm7, %v665_v29, 0.0 }
 0x188   :  { %677 = vadd.xlane.f32.xlu0 %v676_v14  ;;  %680 = vadd.xlane.f32.xlu1 %v679_v17  ;;  %v638_v20 = vpop.xlane.xlu0 %637  ;;  %v10001_v14 = vld [vmem:[%s17317_s7] ss:$0 sm:$0xff] }
 0x189   :  { %v648_v21 = vmul.f32 0.03125, %v638_v20  ;;  %v664_v22 = vmul.f32 %v13399_v16, %v13399_v16 }
 0x18b   :  { %v13407_v23 = vsub.f32 %v13357_v43, %v648_v21  ;;  %v685_v27 = vsel %vm611_vm7, %v664_v22, 0.0 }
 0x18c   :  { %683 = vadd.xlane.f32.xlu0 %v682_v26  ;;  %686 = vadd.xlane.f32.xlu1 %v685_v27 }
 0x18d   :  { %v666_v30 = vmul.f32 %v13407_v23, %v13407_v23 }
 0x18f   :  { %v691_v33 = vsel %vm611_vm7, %v666_v30, 0.0 }
 0x190   :  { %689 = vadd.xlane.f32.xlu0 %v688_v31  ;;  %692 = vadd.xlane.f32.xlu1 %v691_v33 }
 0x20d   :  { %v669_v37 = vpop.xlane.xlu1 %668 }
 0x20e   :  { %v694_v39 = vmul.f32 0.03125, %v669_v37 }
 0x210   :  { %v703_v40 = vadd.f32 1e-05, %v694_v39 }
 0x211   :  { %v675_v42 = vpop.xlane.xlu1 %674  ;;  %v672_v44 = vpop.xlane.xlu0 %671 }
 0x212   :  { %12770 = vrsqrt.f32 %v703_v40  ;;  %v696_v45 = vmul.f32 0.03125, %v675_v42  ;;  %v695_v46 = vmul.f32 0.03125, %v672_v44 }
 0x214   :  { %v704_v47 = vadd.f32 1e-05, %v695_v46  ;;  %v705_v48 = vadd.f32 1e-05, %v696_v45 }
 0x215   :  { %v678_v49 = vpop.xlane.xlu0 %677  ;;  %v681_v50 = vpop.xlane.xlu1 %680 }
 0x216   :  { %v697_v52 = vmul.f32 0.03125, %v678_v49  ;;  %12772 = vrsqrt.f32 %v704_v47  ;;  %v698_v55 = vmul.f32 0.03125, %v681_v50 }
 0x217   :  { %12774 = vrsqrt.f32 %v705_v48 }
 0x218   :  { %v706_v54 = vadd.f32 1e-05, %v697_v52  ;;  %v707_v62 = vadd.f32 1e-05, %v698_v55 }
 0x219   :  { %v684_v56 = vpop.xlane.xlu0 %683  ;;  %v687_v1 = vpop.xlane.xlu1 %686 }
 0x21a   :  { %v699_v57 = vmul.f32 0.03125, %v684_v56  ;;  %12776 = vrsqrt.f32 %v706_v54  ;;  %v700_v8 = vmul.f32 0.03125, %v687_v1 }
 0x21c   :  { %v12771_v59 = vpop.eup %12770  ;;  %v708_v61 = vadd.f32 1e-05, %v699_v57  ;;  %v709_v20 = vadd.f32 1e-05, %v700_v8 }
 0x21d   :  { %v690_v63 = vpop.xlane.xlu0 %689  ;;  %v721_v0 = vmul.f32 %v12771_v59, %v13367_v53  ;;  %v693_v17 = vpop.xlane.xlu1 %692 }
 0x21e   :  { %12778 = vrsqrt.f32 %v708_v61  ;;  %v701_v4 = vmul.f32 0.03125, %v690_v63  ;;  %v702_v29 = vmul.f32 0.03125, %v693_v17 }
 0x21f   :  { %12780 = vrsqrt.f32 %v707_v62  ;;  %v736_v10 = vmul.f32 %v10000_v2, %v721_v0  ;;  %v307_v62 = vlaneseq  ;;  %v10002_v0 = vld [vmem:[%s17319_s9] ss:$0 sm:$0xff] }
 0x220   :  { %v12773_v5 = vpop.eup %12772  ;;  %v710_v13 = vadd.f32 1e-05, %v701_v4  ;;  %v711_v36 = vadd.f32 1e-05, %v702_v29 }
 0x221   :  { %v722_v11 = vmul.f32 %v12773_v5, %v13377_v60  ;;  %v12775_v12 = vpop.eup %12774  ;;  %v751_v21 = vadd.f32 %v10001_v14, %v736_v10  ;;  %v13453_v63 = vand.u32 127, %v307_v62 }
 0x222   :  { %v723_v26 = vmul.f32 %v12775_v12, %v13364_v51  ;;  %12782 = vrsqrt.f32 %v710_v13 }
 0x223   :  { %v737_v53 = vmul.f32 %v10000_v2, %v722_v11  ;;  %12784 = vrsqrt.f32 %v709_v20  ;;  %vm310_vm8 = vcmp.lt.s32.totalorder %v13453_v63, 8  ;;  %vm314_vm10 = vcmp.ge.s32.totalorder %v13453_v63, 8 }
 0x224   :  { %v12777_v19 = vpop.eup %12776  ;;  %v738_v33 = vmul.f32 %v10000_v2, %v723_v26  ;;  %12786 = vrsqrt.f32 %v711_v36  ;;  %vm315_vm11 = vcmp.lt.s32.totalorder %v13453_v63, 16  ;;  %vm319_vm13 = vcmp.ge.s32.totalorder %v13453_v63, 16 }
 0x225   :  { %v752_v22 = vadd.f32 %v10001_v14, %v737_v53  ;;  %v724_v27 = vmul.f32 %v12777_v19, %v13372_v58  ;;  %vm316_vm12 = vmand %vm314_vm10, %vm315_vm11  ;;  %vm320_vm14 = vcmp.lt.s32.totalorder %v13453_v63, 24  ;;  %vm324_vm0 = vcmp.ge.s32.totalorder %v13453_v63, 24 }
 0x226   :  { %v753_v51 = vadd.f32 %v10001_v14, %v738_v33  ;;  %vm321_vm15 = vmand %vm319_vm13, %vm320_vm14  ;;  %vm325_vm1 = vcmp.lt.s32.totalorder %v13453_v63, 32  ;;  %vm565_vm3 = vcmp.ge.s32.totalorder %v13453_v63, 32  ;;  %vm568_vm4 = vcmp.ge.s32.totalorder %v13453_v63, 40 }
 0x227   :  { %v760_v30 = vpack.c.bf16 %v752_v22, %v751_v21  ;;  %v739_v60 = vmul.f32 %v10000_v2, %v724_v27  ;;  %vm326_vm2 = vmand %vm324_vm0, %vm325_vm1  ;;  %vm571_vm6 = vcmp.ge.s32.totalorder %v13453_v63, 48  ;;  %vm574_vm11 = vcmp.ge.s32.totalorder %v13453_v63, 56 }
 0x228   :  { %v12779_v31 = vpop.eup %12778 }
 0x229   :  { %11911 = vmatmul.mubr.msk.bf16.vlgmr.msra.gmra.mrb[4].mxu0 %vm611_vm7, %v760_v30  ;;  %v12781_v34 = vpop.eup %12780  ;;  %v754_v37 = vadd.f32 %v10001_v14, %v739_v60  ;;  %v726_v39 = vmul.f32 %v12779_v31, %v13386_v6 }
 0x22a   :  { %11914 = vmatprep.mubr.msk.bf16.mxu0 %vm13156_vm5, %v17337_v9  ;;  %v725_v58 = vmul.f32 %v12781_v34, %v13389_v7 }
 0x22b   :  { %v761_v40 = vpack.c.bf16 %v754_v37, %v753_v51  ;;  %v741_v42 = vmul.f32 %v10000_v2, %v726_v39 }
 0x22c   :  { %v12783_v44 = vpop.eup %12782  ;;  %v740_v45 = vmul.f32 %v10000_v2, %v725_v58 }
 0x22d   :  { %v12785_v46 = vpop.eup %12784  ;;  %v756_v47 = vadd.f32 %v10001_v14, %v741_v42  ;;  %v728_v48 = vmul.f32 %v12783_v44, %v13396_v15 }
 0x22e   :  { %v755_v49 = vadd.f32 %v10001_v14, %v740_v45  ;;  %v727_v6 = vmul.f32 %v12785_v46, %v13399_v16  ;;  %v12787_v7 = vpop.eup %12786 }
 0x22f   :  { %v743_v52 = vmul.f32 %v10000_v2, %v728_v48  ;;  %v729_v56 = vmul.f32 %v12787_v7, %v13407_v23  ;;  %v13459_v23 = vsel %vm310_vm8, 1.0, %v17337_v9 }
 0x230   :  { %v762_v50 = vpack.c.bf16 %v756_v47, %v755_v49  ;;  %v742_v54 = vmul.f32 %v10000_v2, %v727_v6  ;;  %v13465_v1 = vmul.f32 0.35355338, %v13459_v23 }
 0x231   :  { %11915 = vmatmul.mubr.msk.bf16.gmra.mrb[8].mxu0 %vm611_vm7, %v761_v40  ;;  %v758_v55 = vadd.f32 %v10001_v14, %v743_v52  ;;  %v744_v61 = vmul.f32 %v10000_v2, %v729_v56 }
 0x232   :  { %11918 = vmatprep.mubr.msk.bf16.mxu0 %vm13156_vm5, %v17337_v9  ;;  %v757_v57 = vadd.f32 %v10001_v14, %v742_v54  ;;  %17398 = vst [vmem:[#allocation6_spill] sm:$0xff] %v13465_v1 }
 0x233   :  { %v759_v15 = vadd.f32 %v10001_v14, %v744_v61 }
 0x234   :  { %v763_v59 = vpack.c.bf16 %v758_v55, %v757_v57 }
 0x235   :  { %v764_v16 = vpack.c.bf16 %v759_v15, %v759_v15 }
 0x239   :  { %11919 = vmatmul.mubr.msk.bf16.gmra.mrb[12].mxu0 %vm611_vm7, %v762_v50  ;;  %v17399_v50 = vmov 0 }
 0x23a   :  { %11922 = vmatprep.mubr.msk.bf16.mxu0 %vm13156_vm5, %v17337_v9  ;;  %v17400_v50 = vsel %vm13508_vm9, 4294967295, %v17399_v50 }
 0x23b   :  { %17401 = vst [vmem:[#allocation7_spill] sm:$0xff] %v17400_v50 }
 0x241   :  { %11923 = vmatmul.mubr.msk.bf16.gmra.mrb[16].mxu0 %vm611_vm7, %v763_v59 }
 0x242   :  { %11926 = vmatprep.mubr.msk.bf16.mxu0 %vm13156_vm5, %v17337_v9 }
 0x249   :  { %11927 = vmatmul.mubr.msk.bf16.gmra.mrb[20].mxu0 %vm611_vm7, %v764_v16 }
 0x2fc   :  { %v837_v2 = vpop.f32.mrb[4].mxu0 }
 0x2fd   :  { %v13467_v4 = vadd.f32 %v10002_v0, %v837_v2  ;;  %v11912_v5 = vpop.f32.mrb[5].mxu0 }
 0x2fe   :  { %v840_v8 = vpop.f32.mrb[6].mxu0 }
 0x2ff   :  { %v13469_v10 = vadd.f32 %v10002_v0, %v840_v8  ;;  %v11913_v11 = vpop.f32.mrb[7].mxu0  ;;  %v875_v12 = vmul.f32 %v13467_v4, %v13465_v1 }
 0x301   :  { %11948 = vmatprep.mubr.msk.f32.mxu1 %vm611_vm7, %v875_v12  ;;  %v12424_v13 = vpack.i.bf16 %v13469_v10, %v13467_v4 }
 0x303   :  { %12425 = vrot.lane.b32.xlu0 %v12424_v13, %s13158_s30 }
 0x304   :  { %v845_v14 = vpop.f32.mrb[8].mxu0 }
 0x305   :  { %v11916_v53 = vpop.f32.mrb[9].mxu0  ;;  %v13477_v19 = vadd.f32 %v10002_v0, %v845_v14 }
 0x306   :  { %v848_v17 = vpop.f32.mrb[10].mxu0 }
 0x307   :  { %v13479_v20 = vadd.f32 %v10002_v0, %v848_v17  ;;  %v11917_v21 = vpop.f32.mrb[11].mxu0 }
 0x309   :  { %v12429_v22 = vpack.i.bf16 %v13479_v20, %v13477_v19 }
 0x30b   :  { %12430 = vrot.lane.b32.xlu1 %v12429_v22, %s13158_s30 }
 0x30c   :  { %v853_v26 = vpop.f32.mrb[12].mxu0 }
 0x30d   :  { %v11920_v27 = vpop.f32.mrb[13].mxu0  ;;  %v13484_v30 = vadd.f32 %v10002_v0, %v853_v26 }
 0x30e   :  { %v856_v29 = vpop.f32.mrb[14].mxu0 }
 0x30f   :  { %v13486_v60 = vadd.f32 %v10002_v0, %v856_v29  ;;  %v11921_v31 = vpop.f32.mrb[15].mxu0 }
 0x311   :  { %v12434_v33 = vpack.i.bf16 %v13486_v60, %v13484_v30 }
 0x313   :  { %12435 = vrot.lane.b32.xlu1 %v12434_v33, %s13158_s30 }
 0x314   :  { %v861_v34 = vpop.f32.mrb[16].mxu0 }
 0x315   :  { %v11924_v36 = vpop.f32.mrb[17].mxu0  ;;  %v13491_v39 = vadd.f32 %v10002_v0, %v861_v34  ;;  %v877_v34 = vmul.f32 %v13477_v19, %v13465_v1 }
 0x316   :  { %v864_v37 = vpop.f32.mrb[18].mxu0 }
 0x317   :  { %v13493_v51 = vadd.f32 %v10002_v0, %v864_v37  ;;  %v11925_v58 = vpop.f32.mrb[19].mxu0 }
 0x319   :  { %v12439_v40 = vpack.i.bf16 %v13493_v51, %v13491_v39 }
 0x31b   :  { %12440 = vrot.lane.b32.xlu1 %v12439_v40, %s13158_s30 }
 0x31c   :  { %v869_v42 = vpop.f32.mrb[20].mxu0 }
 0x31d   :  { %v13498_v44 = vadd.f32 %v10002_v0, %v869_v42  ;;  %v11928_v45 = vpop.f32.mrb[21].mxu0  ;;  %v879_v42 = vmul.f32 %v13484_v30, %v13465_v1 }
 0x31e   :  { %v872_v46 = vpop.f32.mrb[22].mxu0 }
 0x31f   :  { %12450 = vrot.lane.b32.xlu1 %v12429_v22, %s13159_s0  ;;  %936 = vrot.lane.b32.xlu0 %v13498_v44, %s13158_s30  ;;  %v11929_v47 = vpop.f32.mrb[23].mxu0  ;;  %v880_v46 = vmul.f32 %v13486_v60, %v13465_v1 }
 0x320   :  { %v881_v47 = vmul.f32 %v13491_v39, %v13465_v1 }
 0x323   :  { %12460 = vrot.lane.b32.xlu1 %v12439_v40, %s13159_s0  ;;  %12445 = vrot.lane.b32.xlu0 %v12424_v13, %s13159_s0  ;;  %v878_v40 = vmul.f32 %v13479_v20, %v13465_v1 }
 0x327   :  { %12455 = vrot.lane.b32.xlu0 %v12434_v33, %s13159_s0  ;;  %v876_v33 = vmul.f32 %v13469_v10, %v13465_v1 }
 0x375   :  { %v12426_v48 = vpop.permute.xlu0 %12425 }
 0x376   :  { %v12428_v49 = vunpack.i.h.bf16 %v12426_v48  ;;  %v12427_v6 = vunpack.i.l.bf16 %v12426_v48  ;;  %v13552_v48 = vsel %vm316_vm12, 1.0, %v17337_v9  ;;  %vm577_vm12 = vcmp.ge.s32.totalorder %v13453_v63, 64 }
 0x378   :  { %v12315_v52 = vpack.c.bf16 %v12428_v49, %v12427_v6  ;;  %v882_v49 = vmul.f32 %v13493_v51, %v13465_v1  ;;  %v13559_v6 = vmul.f32 0.35355338, %v13552_v48 }
 0x37a   :  { %12317 = vmatprep.subr.msk.bf16.mxu1 %vm13508_vm9, %v12315_v52  ;;  %17402 = vst [vmem:[#allocation8_spill] sm:$0xff] %v13559_v6 }
 0x37b   :  { %12320 = vmatpush3.bf16.xpose.msk.msra.mxu1 %vm13508_vm9, %v12315_v52  ;;  %v883_v52 = vmul.f32 %v13498_v44, %v13465_v1 }
 0x37d   :  { %v12431_v7 = vpop.permute.xlu1 %12430 }
 0x37e   :  { %v12433_v54 = vunpack.i.h.bf16 %v12431_v7  ;;  %v12432_v55 = vunpack.i.l.bf16 %v12431_v7  ;;  %v884_v7 = vmul.f32 %v13467_v4, %v13559_v6 }
 0x380   :  { %v12321_v56 = vpack.c.bf16 %v12433_v54, %v12432_v55  ;;  %v885_v54 = vmul.f32 %v13469_v10, %v13559_v6  ;;  %v886_v55 = vmul.f32 %v13477_v19, %v13559_v6 }
 0x382   :  { %12323 = vmatprep.subr.msk.bf16.mxu1 %vm13508_vm9, %v12321_v56 }
 0x383   :  { %12326 = vmatpush3.bf16.xpose.msk.msra.mxu1 %vm13508_vm9, %v12321_v56  ;;  %v887_v56 = vmul.f32 %v13479_v20, %v13559_v6 }
 0x385   :  { %v12436_v57 = vpop.permute.xlu1 %12435 }
 0x386   :  { %v12438_v59 = vunpack.i.h.bf16 %v12436_v57  ;;  %v12437_v61 = vunpack.i.l.bf16 %v12436_v57  ;;  %v888_v57 = vmul.f32 %v13484_v30, %v13559_v6 }
 0x388   :  { %v12327_v15 = vpack.c.bf16 %v12438_v59, %v12437_v61  ;;  %v889_v59 = vmul.f32 %v13486_v60, %v13559_v6  ;;  %v13587_v61 = vsel %vm321_vm15, 1.0, %v17337_v9 }
 0x38a   :  { %12329 = vmatprep.subr.msk.bf16.mxu1 %vm13508_vm9, %v12327_v15 }
 0x38b   :  { %12332 = vmatpush3.bf16.xpose.msk.msra.mxu1 %vm13508_vm9, %v12327_v15  ;;  %v890_v15 = vmul.f32 %v13491_v39, %v13559_v6 }
 0x38d   :  { %v12441_v16 = vpop.permute.xlu1 %12440 }
 0x38e   :  { %v12443_v0 = vunpack.i.h.bf16 %v12441_v16  ;;  %v12442_v2 = vunpack.i.l.bf16 %v12441_v16  ;;  %v891_v16 = vmul.f32 %v13493_v51, %v13559_v6 }
 0x390   :  { %v12333_v5 = vpack.c.bf16 %v12443_v0, %v12442_v2  ;;  %v13595_v0 = vmul.f32 0.35355338, %v13587_v61  ;;  %v892_v2 = vmul.f32 %v13498_v44, %v13559_v6 }
 0x391   :  { %v937_v8 = vpop.permute.xlu0 %936  ;;  %v12451_v11 = vpop.permute.xlu1 %12450 }
 0x392   :  { %12335 = vmatprep.subr.msk.bf16.mxu1 %vm13508_vm9, %v12333_v5  ;;  %v12453_v13 = vunpack.i.h.bf16 %v12451_v11  ;;  %v12452_v14 = vunpack.i.l.bf16 %v12451_v11  ;;  %17403 = vst [vmem:[#allocation9_spill] sm:$0xff] %v13595_v0  ;;  %v895_v11 = vmul.f32 %v13477_v19, %v13595_v0 }
 0x393   :  { %12338 = vmatpush3.bf16.xpose.msk.msra.mxu1 %vm13508_vm9, %v12333_v5  ;;  %v893_v5 = vmul.f32 %v13467_v4, %v13595_v0 }
 0x394   :  { %11946 = vmatprep.subr.msk.mxu1 %vm611_vm7, %v937_v8  ;;  %v12343_v29 = vpack.c.bf16 %v12453_v13, %v12452_v14  ;;  %v897_v13 = vmul.f32 %v13484_v30, %v13595_v0  ;;  %v898_v14 = vmul.f32 %v13486_v60, %v13595_v0 }
 0x395   :  { %v12446_v12 = vpop.permute.xlu0 %12445  ;;  %v12461_v31 = vpop.permute.xlu1 %12460 }
 0x396   :  { %v12448_v53 = vunpack.i.h.bf16 %v12446_v12  ;;  %v12447_v17 = vunpack.i.l.bf16 %v12446_v12  ;;  %v12463_v36 = vunpack.i.h.bf16 %v12461_v31  ;;  %v12462_v37 = vunpack.i.l.bf16 %v12461_v31 }
 0x397   :  { %v896_v12 = vmul.f32 %v13479_v20, %v13595_v0 }
 0x398   :  { %v12339_v21 = vpack.c.bf16 %v12448_v53, %v12447_v17  ;;  %v12351_v45 = vpack.c.bf16 %v12463_v36, %v12462_v37  ;;  %v899_v53 = vmul.f32 %v13491_v39, %v13595_v0  ;;  %v13626_v17 = vsel %vm326_vm2, 1.0, %v17337_v9 }
 0x399   :  { %v12456_v22 = vpop.permute.xlu0 %12455 }
 0x39a   :  { %v12458_v26 = vunpack.i.h.bf16 %v12456_v22  ;;  %v12457_v27 = vunpack.i.l.bf16 %v12456_v22  ;;  %12340 = vmatprep.subr.bf16.mxu0 %v12339_v21  ;;  %v13633_v22 = vmul.f32 0.35355338, %v13626_v17 }
 0x39b   :  { %11947 = vmatpush3.xpose.msk.msra.mxu1 %vm611_vm7, %v937_v8  ;;  %12342 = vmatpush3.bf16.msra.mxu0 %v12339_v21  ;;  %v894_v8 = vmul.f32 %v13469_v10, %v13595_v0  ;;  %v900_v21 = vmul.f32 %v13493_v51, %v13595_v0 }
 0x39c   :  { %12344 = vmatprep.subr.bf16.mxu0 %v12343_v29  ;;  %12411 = vmatprep.subr.bf16.mxu1 %v17337_v9  ;;  %v12347_v58 = vpack.c.bf16 %v12458_v26, %v12457_v27  ;;  %17404 = vst [vmem:[#allocation10_spill] sm:$0xff] %v13633_v22  ;;  %v901_v26 = vmul.f32 %v13498_v44, %v13595_v0 }
 0x39d   :  { %v902_v27 = vmul.f32 %v13467_v4, %v13633_v22  ;;  %v904_v31 = vmul.f32 %v13477_v19, %v13633_v22  ;;  %v906_v4 = vmul.f32 %v13484_v30, %v13633_v22  ;;  %v908_v19 = vmul.f32 %v13491_v39, %v13633_v22 }
 0x39e   :  { %11949 = vmatmul.mubr.msk.f32.vlgmr.msra.gmra.mrb[8].mxu1 %vm611_vm7, %v876_v33  ;;  %v905_v33 = vmul.f32 %v13479_v20, %v13633_v22  ;;  %v909_v20 = vmul.f32 %v13493_v51, %v13633_v22  ;;  %v910_v30 = vmul.f32 %v13498_v44, %v13633_v22 }
 0x39f   :  { %11951 = vmatprep.mubr.msk.f32.mxu1 %vm611_vm7, %v877_v34  ;;  %12346 = vmatpush3.bf16.msra.mxu0 %v12343_v29  ;;  %v903_v29 = vmul.f32 %v13469_v10, %v13633_v22  ;;  %v907_v10 = vmul.f32 %v13486_v60, %v13633_v22  ;;  %v17335_v34 = vmov 0  }
 0x3a0   :  { %12348 = vmatprep.subr.bf16.mxu0 %v12347_v58  ;;  %12504 = vset.pattern.permute.xlu1 %v17335_v34  ;;  %v562_v60 = vsel %vm319_vm13, 1, %v17335_v34  ;;  %v563_v39 = vsel %vm324_vm0, 1, %v17335_v34  ;;  %v566_v36 = vsel %vm565_vm3, 1, %v17335_v34  ;;  %vm343_vm13 = vcmp.lt.s32.totalorder %v13453_v63, 72 }
 0x3a1   :  { %12505 = vset.pattern.permute.xlu0 %v17335_v34  ;;  %v564_v51 = vadd.s32 %v563_v39, %v562_v60  ;;  %vm344_vm14 = vmand %vm314_vm10, %vm343_vm13 }
 0x3a2   :  { %11952 = vmatmul.mubr.msk.f32.gmra.mrb[10].mxu1 %vm611_vm7, %v878_v40  ;;  %vm13699_vm15 = vmor %vm310_vm8, %vm344_vm14 }
 0x3a3   :  { %11954 = vmatprep.mubr.msk.f32.mxu1 %vm611_vm7, %v879_v42  ;;  %12350 = vmatpush3.bf16.msra.mxu0 %v12347_v58  ;;  %v567_v37 = vadd.s32 %v566_v36, %v564_v51  ;;  %v569_v58 = vsel %vm568_vm4, 1, %v17335_v34  ;;  %v572_v42 = vsel %vm571_vm6, 1, %v17335_v34  ;;  %vm1309_vm6 = vcmask 588800  }
 0x3a4   :  { %12352 = vmatprep.subr.bf16.mxu0 %v12351_v45 }
 0x3a5   :  { %v570_v40 = vadd.s32 %v569_v58, %v567_v37 }
 0x3a6   :  { %11955 = vmatmul.mubr.msk.f32.gmra.mrb[12].mxu1 %vm611_vm7, %v880_v46  ;;  %v575_v46 = vsel %vm574_vm11, 1, %v17335_v34 }
 0x3a7   :  { %11957 = vmatprep.mubr.msk.f32.mxu1 %vm611_vm7, %v881_v47  ;;  %12354 = vmatpush3.bf16.msra.mxu0 %v12351_v45  ;;  %v573_v45 = vadd.s32 %v572_v42, %v570_v40 }
 0x3a9   :  { %v576_v47 = vadd.s32 %v575_v46, %v573_v45 }
 0x3aa   :  { %11958 = vmatmul.mubr.msk.f32.gmra.mrb[14].mxu1 %vm611_vm7, %v882_v49  ;;  %v578_v49 = vsel %vm577_vm12, 1, %v17335_v34 }
 0x3ab   :  { %11960 = vmatprep.mubr.msk.f32.mxu1 %vm611_vm7, %v883_v52  ;;  %v579_v52 = vadd.s32 %v578_v49, %v576_v47 }
 0x3ae   :  { %11961 = vmatmul.mubr.msk.f32.gmra.mrb[16].mxu1 %vm611_vm7, %v884_v7  ;;  %v580_v7 = vsel %vm314_vm10, %v579_v52, 0 }
 0x3af   :  { %11963 = vmatprep.mubr.msk.f32.mxu1 %vm611_vm7, %v885_v54  ;;  %v581_v54 = vsel %vm310_vm8, %v13453_v63, %v580_v7 }
 0x3b0   :  { %vm9992_vm0 = vcmp.eq.s32.totalorder %v581_v54, 0  ;;  %vm9994_vm3 = vcmp.eq.s32.totalorder %v581_v54, 2  ;;  %vm9993_vm4 = vcmp.eq.s32.totalorder %v581_v54, 1  ;;  %vm9995_vm12 = vcmp.eq.s32.totalorder %v581_v54, 3 }
 0x3b1   :  { %vm592_vm2 = vmand %vm9992_vm0, %vm13699_vm15  ;;  %vm9996_vm13 = vcmp.eq.s32.totalorder %v581_v54, 4 }
 0x3b2   :  { %11964 = vmatmul.mubr.msk.f32.gmra.mrb[18].mxu1 %vm611_vm7, %v886_v55  ;;  %v13695_v55 = vshrl.u32 %v307_v62, 7  ;;  %vm594_vm8 = vmand %vm9994_vm3, %vm13699_vm15 }
 0x3b3   :  { %11966 = vmatprep.mubr.msk.f32.mxu1 %vm611_vm7, %v887_v56  ;;  %vm593_vm11 = vmand %vm9993_vm4, %vm13699_vm15  ;;  %vm9999_vm4 = vcmp.eq.s32.totalorder %v581_v54, 7 }
 0x3b4   :  { %17405 = vst [vmem:[#allocation11_spill] sm:$0xff] %v13695_v55  ;;  %vm582_vm1 = vcmp.eq.s32.totalorder %v13695_v55, %v581_v54  ;;  %vm595_vm14 = vmand %vm9995_vm12, %vm13699_vm15 }
 0x3b5   :  { %vm591_vm10 = vmand %vm582_vm1, %vm13699_vm15  ;;  %vm9997_vm1 = vcmp.eq.s32.totalorder %v581_v54, 5 }
 0x3b6   :  { %11967 = vmatmul.mubr.msk.f32.gmra.mrb[20].mxu1 %vm611_vm7, %v888_v57  ;;  %v13161_v57 = vmov -1e+09   ;;  %vm596_vm0 = vmand %vm9996_vm13, %vm13699_vm15 }
 0x3b7   :  { %11969 = vmatprep.mubr.msk.f32.mxu1 %vm611_vm7, %v889_v59  ;;  %v13708_v59 = vsel %vm592_vm2, 0.0, %v13161_v57  ;;  %v13710_v62 = vsel %vm591_vm10, 0.0, %v13161_v57  ;;  %vm9998_vm2 = vcmp.eq.s32.totalorder %v581_v54, 6  ;;  %vm597_vm10 = vmand %vm9997_vm1, %vm13699_vm15 }
 0x3b8   :  { %17408 = vst [vmem:[#allocation12_spill] sm:$0xff] %v13708_v59  ;;  %17409 = vst [vmem:[#allocation13_spill] sm:$0xff] %v13710_v62 }
 0x3b9   :  { %vm598_vm3 = vmand %vm9998_vm2, %vm13699_vm15 }
 0x3ba   :  { %11970 = vmatmul.mubr.msk.f32.gmra.mrb[22].mxu1 %vm611_vm7, %v890_v15  ;;  %v13762_v39 = vsel %vm598_vm3, 0.0, %v13161_v57 }
 0x3bb   :  { %11972 = vmatprep.mubr.msk.f32.mxu1 %vm611_vm7, %v891_v16  ;;  %17415 = vst [vmem:[#allocation19_spill] sm:$0xff] %v13762_v39 }
 0x3be   :  { %11973 = vmatmul.mubr.msk.f32.gmra.mrb[24].mxu1 %vm611_vm7, %v892_v2 }
 0x3bf   :  { %11975 = vmatprep.mubr.msk.f32.mxu1 %vm611_vm7, %v893_v5  ;;  %v13722_v5 = vsel %vm594_vm8, 0.0, %v13161_v57  ;;  %vm599_vm8 = vmand %vm9999_vm4, %vm13699_vm15 }
 0x3c0   :  { %17410 = vst [vmem:[#allocation14_spill] sm:$0xff] %v13722_v5  ;;  %v13774_v40 = vsel %vm599_vm8, 0.0, %v13161_v57 }
 0x3c1   :  { %17416 = vst [vmem:[#allocation20_spill] sm:$0xff] %v13774_v40 }
 0x3c2   :  { %11976 = vmatmul.mubr.msk.f32.gmra.mrb[26].mxu1 %vm611_vm7, %v894_v8 }
 0x3c3   :  { %11978 = vmatprep.mubr.msk.f32.mxu1 %vm611_vm7, %v895_v11 }
 0x3c6   :  { %11979 = vmatmul.mubr.msk.f32.gmra.mrb[28].mxu1 %vm611_vm7, %v896_v12 }
 0x3c7   :  { %11981 = vmatprep.mubr.msk.f32.mxu1 %vm611_vm7, %v897_v13  ;;  %v13728_v13 = vsel %vm593_vm11, 0.0, %v13161_v57 }
 0x3c8   :  { %17411 = vst [vmem:[#allocation15_spill] sm:$0xff] %v13728_v13 }
 0x3ca   :  { %11982 = vmatmul.mubr.msk.f32.gmra.mrb[30].mxu1 %vm611_vm7, %v898_v14 }
 0x3cb   :  { %11984 = vmatprep.mubr.msk.f32.mxu1 %vm611_vm7, %v899_v53 }
 0x3ce   :  { %11985 = vmatmul.mubr.msk.f32.gmra.mrb[32].mxu1 %vm611_vm7, %v900_v21 }
 0x3cf   :  { %11987 = vmatprep.mubr.msk.f32.mxu1 %vm611_vm7, %v901_v26 }
 0x3d2   :  { %11988 = vmatmul.mubr.msk.f32.gmra.mrb[34].mxu1 %vm611_vm7, %v902_v27  ;;  %v13742_v27 = vsel %vm595_vm14, 0.0, %v13161_v57 }
 0x3d3   :  { %11990 = vmatprep.mubr.msk.f32.mxu1 %vm611_vm7, %v903_v29  ;;  %17412 = vst [vmem:[#allocation16_spill] sm:$0xff] %v13742_v27 }
 0x3d6   :  { %11991 = vmatmul.mubr.msk.f32.gmra.mrb[36].mxu1 %vm611_vm7, %v904_v31  ;;  %v13744_v31 = vsel %vm596_vm0, 0.0, %v13161_v57 }
 0x3d7   :  { %11993 = vmatprep.mubr.msk.f32.mxu1 %vm611_vm7, %v905_v33  ;;  %17413 = vst [vmem:[#allocation17_spill] sm:$0xff] %v13744_v31 }
 0x3da   :  { %11994 = vmatmul.mubr.msk.f32.gmra.mrb[38].mxu1 %vm611_vm7, %v906_v4 }
 0x3db   :  { %11996 = vmatprep.mubr.msk.f32.mxu1 %vm611_vm7, %v907_v10 }
 0x3de   :  { %11997 = vmatmul.mubr.msk.f32.gmra.mrb[40].mxu1 %vm611_vm7, %v908_v19 }
 0x3df   :  { %11999 = vmatprep.mubr.msk.f32.mxu1 %vm611_vm7, %v909_v20  ;;  %v13758_v20 = vsel %vm597_vm10, 0.0, %v13161_v57 }
 0x3e0   :  { %17414 = vst [vmem:[#allocation18_spill] sm:$0xff] %v13758_v20 }
 0x3e2   :  { %12000 = vmatmul.mubr.msk.f32.gmra.mrb[42].mxu1 %vm611_vm7, %v910_v30 }
 0x3e3   :  { %12082 = vmatprep.mubr.msk.bf16.mxu1 %vm13156_vm5, %v17337_v9 }
 0x471   :  { %v11950_v63 = vpop.f32.mrb[8].mxu1 }
 0x472   :  { %v1130_v15 = vpop.f32.mrb[9].mxu1  ;;  %v13715_v16 = vadd.f32 %v11950_v63, %v13708_v59 }
 0x473   :  { %v13720_v2 = vadd.f32 %v1130_v15, %v13710_v62 }
 0x474   :  { %v1313_v8 = vsel %vm1309_vm6, %v13715_v16, -inf }
 0x475   :  { %1314 = vmax.xlane.f32.xlu0 %v1313_v8  ;;  %v11953_v11 = vpop.f32.mrb[10].mxu1  ;;  %v1310_v12 = vsel %vm1309_vm6, %v13720_v2, -inf }
 0x476   :  { %v1140_v14 = vpop.f32.mrb[11].mxu1  ;;  %1311 = vmax.xlane.f32.xlu1 %v1310_v12  ;;  %v13733_v53 = vadd.f32 %v11953_v11, %v13722_v5 }
 0x477   :  { %v13740_v26 = vadd.f32 %v1140_v14, %v13728_v13 }
 0x478   :  { %v1319_v21 = vsel %vm1309_vm6, %v13733_v53, -inf }
 0x479   :  { %1320 = vmax.xlane.f32.xlu0 %v1319_v21  ;;  %v11956_v29 = vpop.f32.mrb[12].mxu1  ;;  %v1316_v10 = vsel %vm1309_vm6, %v13740_v26, -inf }
 0x47a   :  { %v1150_v33 = vpop.f32.mrb[13].mxu1  ;;  %v13756_v19 = vadd.f32 %v11956_v29, %v13744_v31 }
 0x47b   :  { %v13751_v4 = vadd.f32 %v1150_v33, %v13742_v27 }
 0x47c   :  { %v1325_v37 = vsel %vm1309_vm6, %v13756_v19, -inf }
 0x47d   :  { %v11959_v30 = vpop.f32.mrb[14].mxu1  ;;  %1317 = vmax.xlane.f32.xlu0 %v1316_v10  ;;  %v1322_v60 = vsel %vm1309_vm6, %v13751_v4, -inf }
 0x47e   :  { %v1160_v51 = vpop.f32.mrb[15].mxu1  ;;  %1323 = vmax.xlane.f32.xlu1 %v1322_v60  ;;  %v13772_v58 = vadd.f32 %v11959_v30, %v13762_v39 }
 0x47f   :  { %v13767_v36 = vadd.f32 %v1160_v51, %v13758_v20 }
 0x480   :  { %v1331_v49 = vsel %vm1309_vm6, %v13772_v58, -inf }
 0x481   :  { %1326 = vmax.xlane.f32.xlu0 %v1325_v37  ;;  %v11962_v42 = vpop.f32.mrb[16].mxu1  ;;  %v1328_v45 = vsel %vm1309_vm6, %v13767_v36, -inf }
 0x482   :  { %1329 = vmax.xlane.f32.xlu1 %v1328_v45  ;;  %v1170_v46 = vpop.f32.mrb[17].mxu1  ;;  %v13784_v52 = vadd.f32 %v11962_v42, %v13710_v62 }
 0x483   :  { %v13779_v47 = vadd.f32 %v1170_v46, %v13774_v40 }
 0x484   :  { %v1337_v63 = vsel %vm1309_vm6, %v13784_v52, -inf }
 0x485   :  { %1332 = vmax.xlane.f32.xlu0 %v1331_v49  ;;  %v11965_v7 = vpop.f32.mrb[18].mxu1  ;;  %v1334_v54 = vsel %vm1309_vm6, %v13779_v47, -inf }
 0x486   :  { %v1180_v56 = vpop.f32.mrb[19].mxu1  ;;  %1335 = vmax.xlane.f32.xlu1 %v1334_v54  ;;  %v13794_v15 = vadd.f32 %v11965_v7, %v13728_v13 }
 0x487   :  { %v13789_v57 = vadd.f32 %v1180_v56, %v13708_v59 }
 0x488   :  { %v1343_v21 = vsel %vm1309_vm6, %v13794_v15, -inf }
 0x489   :  { %1338 = vmax.xlane.f32.xlu0 %v1337_v63  ;;  %v11968_v8 = vpop.f32.mrb[20].mxu1  ;;  %v1340_v11 = vsel %vm1309_vm6, %v13789_v57, -inf }
 0x48a   :  { %v1190_v12 = vpop.f32.mrb[21].mxu1  ;;  %1341 = vmax.xlane.f32.xlu1 %v1340_v11  ;;  %v13804_v29 = vadd.f32 %v11968_v8, %v13742_v27 }
 0x48b   :  { %v13799_v14 = vadd.f32 %v1190_v12, %v13722_v5 }
 0x48c   :  { %v1349_v51 = vsel %vm1309_vm6, %v13804_v29, -inf }
 0x48d   :  { %1344 = vmax.xlane.f32.xlu0 %v1343_v21  ;;  %v11971_v33 = vpop.f32.mrb[22].mxu1  ;;  %v1346_v10 = vsel %vm1309_vm6, %v13799_v14, -inf }
 0x48e   :  { %v1200_v30 = vpop.f32.mrb[23].mxu1  ;;  %1347 = vmax.xlane.f32.xlu1 %v1346_v10  ;;  %v13814_v37 = vadd.f32 %v11971_v33, %v13758_v20 }
 0x48f   :  { %v13809_v60 = vadd.f32 %v1200_v30, %v13744_v31 }
 0x490   :  { %v1355_v7 = vsel %vm1309_vm6, %v13814_v37, -inf }
 0x491   :  { %1350 = vmax.xlane.f32.xlu0 %v1349_v51  ;;  %v11974_v42 = vpop.f32.mrb[24].mxu1  ;;  %v1352_v45 = vsel %vm1309_vm6, %v13809_v60, -inf }
 0x492   :  { %v1210_v46 = vpop.f32.mrb[25].mxu1  ;;  %1353 = vmax.xlane.f32.xlu1 %v1352_v45  ;;  %v13824_v54 = vadd.f32 %v11974_v42, %v13774_v40 }
 0x493   :  { %v13819_v49 = vadd.f32 %v1210_v46, %v13762_v39 }
 0x494   :  { %v1361_v12 = vsel %vm1309_vm6, %v13824_v54, -inf }
 0x495   :  { %1356 = vmax.xlane.f32.xlu0 %v1355_v7  ;;  %v11977_v56 = vpop.f32.mrb[26].mxu1  ;;  %v1358_v63 = vsel %vm1309_vm6, %v13819_v49, -inf }
 0x496   :  { %v1220_v8 = vpop.f32.mrb[27].mxu1  ;;  %1359 = vmax.xlane.f32.xlu1 %v1358_v63  ;;  %v13834_v21 = vadd.f32 %v11977_v56, %v13708_v59 }
 0x497   :  { %v13829_v11 = vadd.f32 %v1220_v8, %v13710_v62 }
 0x498   :  { %v1367_v42 = vsel %vm1309_vm6, %v13834_v21, -inf }
 0x499   :  { %1362 = vmax.xlane.f32.xlu0 %v1361_v12  ;;  %v11980_v33 = vpop.f32.mrb[28].mxu1  ;;  %v1364_v10 = vsel %vm1309_vm6, %v13829_v11, -inf }
 0x49a   :  { %v1230_v30 = vpop.f32.mrb[29].mxu1  ;;  %1365 = vmax.xlane.f32.xlu1 %v1364_v10  ;;  %v13844_v45 = vadd.f32 %v11980_v33, %v13722_v5 }
 0x49b   :  { %v13839_v51 = vadd.f32 %v1230_v30, %v13728_v13 }
 0x49c   :  { %v1373_v8 = vsel %vm1309_vm6, %v13844_v45, -inf }
 0x49d   :  { %1368 = vmax.xlane.f32.xlu0 %v1367_v42  ;;  %v11983_v46 = vpop.f32.mrb[30].mxu1  ;;  %v1370_v7 = vsel %vm1309_vm6, %v13839_v51, -inf }
 0x49e   :  { %v1240_v56 = vpop.f32.mrb[31].mxu1  ;;  %1371 = vmax.xlane.f32.xlu1 %v1370_v7  ;;  %v13854_v12 = vadd.f32 %v11983_v46, %v13744_v31 }
 0x49f   :  { %v13849_v63 = vadd.f32 %v1240_v56, %v13742_v27 }
 0x4a0   :  { %v1379_v7 = vsel %vm1309_vm6, %v13854_v12, -inf }
 0x4a1   :  { %1374 = vmax.xlane.f32.xlu0 %v1373_v8  ;;  %v11986_v10 = vpop.f32.mrb[32].mxu1  ;;  %v1376_v33 = vsel %vm1309_vm6, %v13849_v63, -inf }
 0x4a2   :  { %v1250_v30 = vpop.f32.mrb[33].mxu1  ;;  %1377 = vmax.xlane.f32.xlu1 %v1376_v33  ;;  %v13864_v56 = vadd.f32 %v11986_v10, %v13762_v39 }
 0x4a3   :  { %v13859_v42 = vadd.f32 %v1250_v30, %v13758_v20 }
 0x4a4   :  { %v1385_v33 = vsel %vm1309_vm6, %v13864_v56, -inf }
 0x4a5   :  { %1380 = vmax.xlane.f32.xlu0 %v1379_v7  ;;  %v11989_v3 = vpop.f32.mrb[34].mxu1  ;;  %v1382_v46 = vsel %vm1309_vm6, %v13859_v42, -inf }
 0x4a6   :  { %v1260_v8 = vpop.f32.mrb[35].mxu1  ;;  %1383 = vmax.xlane.f32.xlu1 %v1382_v46  ;;  %v13874_v30 = vadd.f32 %v11989_v3, %v13710_v62 }
 0x4a7   :  { %v13869_v34 = vadd.f32 %v1260_v8, %v13774_v40 }
 0x4a8   :  { %v1391_v46 = vsel %vm1309_vm6, %v13874_v30, -inf }
 0x4a9   :  { %1386 = vmax.xlane.f32.xlu0 %v1385_v33  ;;  %v11992_v9 = vpop.f32.mrb[36].mxu1  ;;  %v1388_v10 = vsel %vm1309_vm6, %v13869_v34, -inf }
 0x4aa   :  { %v1270_v7 = vpop.f32.mrb[37].mxu1  ;;  %1389 = vmax.xlane.f32.xlu1 %v1388_v10  ;;  %v13884_v8 = vadd.f32 %v11992_v9, %v13728_v13 }
 0x4ab   :  { %v13879_v22 = vadd.f32 %v1270_v7, %v13708_v59 }
 0x4ac   :  { %v1397_v10 = vsel %vm1309_vm6, %v13884_v8, -inf }
 0x4ad   :  { %1392 = vmax.xlane.f32.xlu0 %v1391_v46  ;;  %v11995_v0 = vpop.f32.mrb[38].mxu1  ;;  %v1394_v3 = vsel %vm1309_vm6, %v13879_v22, -inf }
 0x4ae   :  { %v1280_v33 = vpop.f32.mrb[39].mxu1  ;;  %1395 = vmax.xlane.f32.xlu1 %v1394_v3  ;;  %v13894_v7 = vadd.f32 %v11995_v0, %v13742_v27 }
 0x4af   :  { %v13889_v62 = vadd.f32 %v1280_v33, %v13722_v5 }
 0x4b0   :  { %v1403_v3 = vsel %vm1309_vm6, %v13894_v7, -inf }
 0x4b1   :  { %1398 = vmax.xlane.f32.xlu0 %v1397_v10  ;;  %v11998_v59 = vpop.f32.mrb[40].mxu1  ;;  %v1400_v9 = vsel %vm1309_vm6, %v13889_v62, -inf }
 0x4b2   :  { %v1290_v46 = vpop.f32.mrb[41].mxu1  ;;  %1401 = vmax.xlane.f32.xlu1 %v1400_v9  ;;  %v13904_v33 = vadd.f32 %v11998_v59, %v13758_v20 }
 0x4b3   :  { %v13899_v13 = vadd.f32 %v1290_v46, %v13744_v31 }
 0x4b4   :  { %v1409_v9 = vsel %vm1309_vm6, %v13904_v33, -inf }
 0x4b5   :  { %1404 = vmax.xlane.f32.xlu0 %v1403_v3  ;;  %v12001_v5 = vpop.f32.mrb[42].mxu1  ;;  %v1406_v0 = vsel %vm1309_vm6, %v13899_v13, -inf }
 0x4b6   :  { %v1300_v10 = vpop.f32.mrb[43].mxu1  ;;  %1407 = vmax.xlane.f32.xlu1 %v1406_v0  ;;  %v13914_v46 = vadd.f32 %v12001_v5, %v13774_v40 }
 0x4b7   :  { %v13909_v27 = vadd.f32 %v1300_v10, %v13762_v39 }
 0x4b8   :  { %v1415_v3 = vsel %vm1309_vm6, %v13914_v46, -inf }
 0x4b9   :  { %1410 = vmax.xlane.f32.xlu0 %v1409_v9  ;;  %v1412_v59 = vsel %vm1309_vm6, %v13909_v27, -inf }
 0x4ba   :  { %1413 = vmax.xlane.f32.xlu1 %v1412_v59 }
 0x4bd   :  { %1416 = vmax.xlane.f32.xlu0 %v1415_v3 }
 0x502   :  { %v1315_v20 = vpop.xlane.xlu0 %1314 }
 0x503   :  { %v1419_v0 = vsub.f32 %v13715_v16, %v1315_v20  ;;  %v1312_v10 = vpop.xlane.xlu1 %1311 }
 0x504   :  { %v1418_v39 = vsub.f32 %v13720_v2, %v1312_v10 }
 0x505   :  { %v1456_v31 = vmul.f32 1.442695, %v1419_v0 }
 0x506   :  { %v1454_v6 = vmul.f32 1.442695, %v1418_v39  ;;  %v1321_v50 = vpop.xlane.xlu0 %1320 }
 0x507   :  { %12788 = vpow2.f32 %v1456_v31  ;;  %v1421_v5 = vsub.f32 %v13733_v53, %v1321_v50 }
 0x508   :  { %12790 = vpow2.f32 %v1454_v6 }
 0x509   :  { %v1460_v9 = vmul.f32 1.442695, %v1421_v5 }
 0x50a   :  { %v1318_v40 = vpop.xlane.xlu0 %1317 }
 0x50b   :  { %12792 = vpow2.f32 %v1460_v9  ;;  %v1420_v59 = vsub.f32 %v13740_v26, %v1318_v40  ;;  %v1324_v1 = vpop.xlane.xlu1 %1323 }
 0x50c   :  { %v1422_v55 = vsub.f32 %v13751_v4, %v1324_v1 }
 0x50d   :  { %v1458_v3 = vmul.f32 1.442695, %v1420_v59 }
 0x50e   :  { %v1327_v16 = vpop.xlane.xlu0 %1326  ;;  %v1462_v31 = vmul.f32 1.442695, %v1422_v55 }
 0x50f   :  { %12794 = vpow2.f32 %v1458_v3  ;;  %v1423_v2 = vsub.f32 %v13756_v19, %v1327_v16  ;;  %v1330_v20 = vpop.xlane.xlu1 %1329 }
 0x510   :  { %v1424_v50 = vsub.f32 %v13767_v36, %v1330_v20 }
 0x511   :  { %v13926_v39 = vpop.eup %12788  ;;  %v1464_v0 = vmul.f32 1.442695, %v1423_v2 }
 0x512   :  { %v13929_v6 = vpop.eup %12790  ;;  %v1333_v53 = vpop.xlane.xlu0 %1332  ;;  %v1529_v26 = vsel %vm1309_vm6, %v13926_v39, 0.0  ;;  %v1466_v55 = vmul.f32 1.442695, %v1424_v50 }
 0x513   :  { %12796 = vpow2.f32 %v1464_v0  ;;  %v1425_v1 = vsub.f32 %v13772_v58, %v1333_v53  ;;  %1530 = vadd.xlane.f32.xlu0 %v1529_v26  ;;  %v1336_v4 = vpop.xlane.xlu1 %1335  ;;  %v1526_v19 = vsel %vm1309_vm6, %v13929_v6, 0.0 }
 0x514   :  { %1527 = vadd.xlane.f32.xlu1 %v1526_v19  ;;  %12798 = vpow2.f32 %v1462_v31  ;;  %v1426_v3 = vsub.f32 %v13779_v47, %v1336_v4 }
 0x515   :  { %v13936_v40 = vpop.eup %12792  ;;  %v1468_v36 = vmul.f32 1.442695, %v1425_v1 }
 0x516   :  { %v1339_v10 = vpop.xlane.xlu0 %1338  ;;  %v1535_v5 = vsel %vm1309_vm6, %v13936_v40, 0.0  ;;  %v1470_v50 = vmul.f32 1.442695, %v1426_v3 }
 0x517   :  { %12800 = vpow2.f32 %v1468_v36  ;;  %v1427_v9 = vsub.f32 %v13784_v52, %v1339_v10  ;;  %1536 = vadd.xlane.f32.xlu0 %v1535_v5  ;;  %v1342_v58 = vpop.xlane.xlu1 %1341 }
 0x518   :  { %12802 = vpow2.f32 %v1466_v55  ;;  %v1428_v52 = vsub.f32 %v13789_v57, %v1342_v58 }
 0x519   :  { %v13941_v59 = vpop.eup %12794  ;;  %v1472_v16 = vmul.f32 1.442695, %v1427_v9 }
 0x51a   :  { %v1345_v2 = vpop.xlane.xlu0 %1344  ;;  %v1532_v20 = vsel %vm1309_vm6, %v13941_v59, 0.0  ;;  %v1474_v55 = vmul.f32 1.442695, %v1428_v52 }
 0x51b   :  { %v1429_v31 = vsub.f32 %v13794_v15, %v1345_v2  ;;  %1533 = vadd.xlane.f32.xlu1 %v1532_v20  ;;  %12804 = vpow2.f32 %v1472_v16  ;;  %v1348_v26 = vpop.xlane.xlu1 %1347 }
 0x51c   :  { %v1430_v36 = vsub.f32 %v13799_v14, %v1348_v26 }
 0x51d   :  { %v13947_v0 = vpop.eup %12796  ;;  %v1476_v53 = vmul.f32 1.442695, %v1429_v31 }
 0x51e   :  { %v1351_v1 = vpop.xlane.xlu0 %1350  ;;  %v1541_v47 = vsel %vm1309_vm6, %v13947_v0, 0.0  ;;  %v13952_v4 = vpop.eup %12798 }
 0x51f   :  { %12806 = vpow2.f32 %v1476_v53  ;;  %v1431_v19 = vsub.f32 %v13804_v29, %v1351_v1  ;;  %1542 = vadd.xlane.f32.xlu1 %v1541_v47  ;;  %v1538_v9 = vsel %vm1309_vm6, %v13952_v4, 0.0  ;;  %v1354_v3 = vpop.xlane.xlu1 %1353  ;;  %v1478_v29 = vmul.f32 1.442695, %v1430_v36 }
 0x520   :  { %12808 = vpow2.f32 %v1470_v50  ;;  %v1432_v50 = vsub.f32 %v13809_v60, %v1354_v3 }
 0x521   :  { %v13955_v15 = vpop.eup %12800  ;;  %v1480_v10 = vmul.f32 1.442695, %v1431_v19 }
 0x522   :  { %v1357_v57 = vpop.xlane.xlu0 %1356  ;;  %v1547_v5 = vsel %vm1309_vm6, %v13955_v15, 0.0  ;;  %v13962_v58 = vpop.eup %12802  ;;  %v1482_v19 = vmul.f32 1.442695, %v1432_v50 }
 0x523   :  { %12810 = vpow2.f32 %v1480_v10  ;;  %1548 = vadd.xlane.f32.xlu0 %v1547_v5  ;;  %1539 = vadd.xlane.f32.xlu1 %v1538_v9  ;;  %v1433_v16 = vsub.f32 %v13814_v37, %v1357_v57  ;;  %v1544_v14 = vsel %vm1309_vm6, %v13962_v58, 0.0  ;;  %v1360_v53 = vpop.xlane.xlu1 %1359 }
 0x524   :  { %12812 = vpow2.f32 %v1474_v55  ;;  %v1434_v55 = vsub.f32 %v13819_v49, %v1360_v53 }
 0x525   :  { %v13967_v2 = vpop.eup %12804  ;;  %12814 = vpow2.f32 %v1478_v29  ;;  %v1484_v52 = vmul.f32 1.442695, %v1433_v16 }
 0x526   :  { %v13969_v20 = vpop.xlane.xlu0 %1362  ;;  %v1553_v37 = vsel %vm1309_vm6, %v13967_v2, 0.0  ;;  %v1486_v9 = vmul.f32 1.442695, %v1434_v55 }
 0x527   :  { %1545 = vadd.xlane.f32.xlu1 %v1544_v14  ;;  %12816 = vpow2.f32 %v1484_v52  ;;  %v1366_v5 = vpop.xlane.xlu1 %1365 }
 0x528   :  { %12818 = vpow2.f32 %v1482_v19  ;;  %v1436_v14 = vsub.f32 %v13829_v11, %v1366_v5 }
 0x529   :  { %v13971_v31 = vpop.eup %12806  ;;  %12820 = vpow2.f32 %v1486_v9 }
 0x52a   :  { %v1559_v26 = vsel %vm1309_vm6, %v13971_v31, 0.0  ;;  %v13978_v1 = vpop.eup %12808  ;;  %v1369_v36 = vpop.xlane.xlu0 %1368 }
 0x52b   :  { %1560 = vadd.xlane.f32.xlu0 %v1559_v26  ;;  %1554 = vadd.xlane.f32.xlu1 %v1553_v37  ;;  %v1550_v10 = vsel %vm1309_vm6, %v13978_v1, 0.0  ;;  %v1437_v3 = vsub.f32 %v13834_v21, %v1369_v36  ;;  %v1372_v52 = vpop.xlane.xlu1 %1371  ;;  %v1490_v37 = vmul.f32 1.442695, %v1436_v14 }
 0x52c   :  { %v1438_v11 = vsub.f32 %v13839_v51, %v1372_v52 }
 0x52d   :  { %v13980_v47 = vpop.eup %12810  ;;  %v1492_v50 = vmul.f32 1.442695, %v1437_v3 }
 0x52e   :  { %v1565_v60 = vsel %vm1309_vm6, %v13980_v47, 0.0  ;;  %v13987_v57 = vpop.eup %12812  ;;  %v1375_v16 = vpop.xlane.xlu0 %1374 }
 0x52f   :  { %1566 = vadd.xlane.f32.xlu0 %v1565_v60  ;;  %1551 = vadd.xlane.f32.xlu1 %v1550_v10  ;;  %v1556_v29 = vsel %vm1309_vm6, %v13987_v57, 0.0  ;;  %v13992_v49 = vpop.eup %12814  ;;  %12822 = vpow2.f32 %v1492_v50  ;;  %v1439_v21 = vsub.f32 %v13844_v45, %v1375_v16  ;;  %v1378_v60 = vpop.xlane.xlu1 %1377  ;;  %v1494_v45 = vmul.f32 1.442695, %v1438_v11 }
 0x530   :  { %v1562_v53 = vsel %vm1309_vm6, %v13992_v49, 0.0  ;;  %12824 = vpow2.f32 %v1490_v37  ;;  %v1440_v51 = vsub.f32 %v13849_v63, %v1378_v60 }
 0x531   :  { %v13997_v26 = vpop.eup %12816  ;;  %v1496_v10 = vmul.f32 1.442695, %v1439_v21 }
 0x532   :  { %v1381_v19 = vpop.xlane.xlu0 %1380  ;;  %v1571_v55 = vsel %vm1309_vm6, %v13997_v26, 0.0  ;;  %v14002_v36 = vpop.eup %12818 }
 0x533   :  { %1557 = vadd.xlane.f32.xlu1 %v1556_v29  ;;  %v1568_v5 = vsel %vm1309_vm6, %v14002_v36, 0.0  ;;  %v14007_v9 = vpop.eup %12820  ;;  %12826 = vpow2.f32 %v1496_v10  ;;  %v1441_v29 = vsub.f32 %v13854_v12, %v1381_v19  ;;  %v1384_v16 = vpop.xlane.xlu1 %1383  ;;  %v1498_v19 = vmul.f32 1.442695, %v1440_v51 }
 0x534   :  { %v1574_v14 = vsel %vm1309_vm6, %v14007_v9, 0.0  ;;  %12828 = vpow2.f32 %v1494_v45  ;;  %v1435_v45 = vsub.f32 %v13824_v54, %v13969_v20 }
 0x535   :  { %v1500_v52 = vmul.f32 1.442695, %v1441_v29 }
 0x536   :  { %v1387_v3 = vpop.xlane.xlu0 %1386  ;;  %v1488_v51 = vmul.f32 1.442695, %v1435_v45 }
 0x537   :  { %1563 = vadd.xlane.f32.xlu1 %v1562_v53  ;;  %v1390_v12 = vpop.xlane.xlu1 %1389  ;;  %12830 = vpow2.f32 %v1500_v52  ;;  %v1443_v10 = vsub.f32 %v13864_v56, %v1387_v3 }
 0x538   :  { %12832 = vpow2.f32 %v1498_v19  ;;  %v1444_v52 = vsub.f32 %v13869_v34, %v1390_v12 }
 0x539   :  { %v14012_v50 = vpop.eup %12822 }
 0x53a   :  { %v1393_v53 = vpop.xlane.xlu0 %1392  ;;  %v1583_v37 = vsel %vm1309_vm6, %v14012_v50, 0.0  ;;  %v14019_v21 = vpop.eup %12824 }
 0x53b   :  { %1572 = vadd.xlane.f32.xlu1 %v1571_v55  ;;  %v1442_v55 = vsub.f32 %v13859_v42, %v1384_v16  ;;  %v1580_v11 = vsel %vm1309_vm6, %v14019_v21, 0.0  ;;  %v1504_v42 = vmul.f32 1.442695, %v1443_v10  ;;  %v1445_v16 = vsub.f32 %v13874_v30, %v1393_v53 }
 0x53d   :  { %v14024_v63 = vpop.eup %12826  ;;  %v1508_v20 = vmul.f32 1.442695, %v1445_v16 }
 0x53e   :  { %v1399_v60 = vpop.xlane.xlu0 %1398  ;;  %v1589_v29 = vsel %vm1309_vm6, %v14024_v63, 0.0 }
 0x53f   :  { %1569 = vadd.xlane.f32.xlu1 %v1568_v5  ;;  %v1396_v5 = vpop.xlane.xlu1 %1395  ;;  %v1447_v19 = vsub.f32 %v13884_v8, %v1399_v60 }
 0x541   :  { %v1512_v12 = vmul.f32 1.442695, %v1447_v19 }
 0x543   :  { %1575 = vadd.xlane.f32.xlu1 %v1574_v14  ;;  %v14031_v14 = vpop.eup %12828  ;;  %v1402_v54 = vpop.xlane.xlu1 %1401 }
 0x544   :  { %v1586_v56 = vsel %vm1309_vm6, %v14031_v14, 0.0  ;;  %v14037_v3 = vpop.eup %12830  ;;  %v1448_v8 = vsub.f32 %v13889_v62, %v1402_v54 }
 0x545   :  { %1722 = vrot.lane.b32.xlu0 %v13498_v44, %s13159_s0  ;;  %v1502_v44 = vmul.f32 1.442695, %v1442_v55  ;;  %v1506_v55 = vmul.f32 1.442695, %v1444_v52  ;;  %v1595_v30 = vsel %vm1309_vm6, %v14037_v3, 0.0  ;;  %v14043_v34 = vpop.eup %12832 }
 0x546   :  { %v1592_v60 = vsel %vm1309_vm6, %v14043_v34, 0.0 }
 0x547   :  { %1584 = vadd.xlane.f32.xlu1 %v1583_v37  ;;  %12834 = vpow2.f32 %v1502_v44  ;;  %v1405_v37 = vpop.xlane.xlu0 %1404  ;;  %v1408_v10 = vpop.xlane.xlu1 %1407 }
 0x548   :  { %12836 = vpow2.f32 %v1504_v42  ;;  %v1449_v44 = vsub.f32 %v13894_v7, %v1405_v37  ;;  %v1514_v42 = vmul.f32 1.442695, %v1448_v8  ;;  %v1450_v16 = vsub.f32 %v13899_v13, %v1408_v10 }
 0x549   :  { %12838 = vpow2.f32 %v1488_v51 }
 0x54a   :  { %12840 = vpow2.f32 %v1508_v20 }
 0x54b   :  { %1581 = vadd.xlane.f32.xlu1 %v1580_v11  ;;  %v1446_v11 = vsub.f32 %v13879_v22, %v1396_v5  ;;  %v1411_v53 = vpop.xlane.xlu0 %1410  ;;  %12842 = vpow2.f32 %v1506_v55  ;;  %v1516_v5 = vmul.f32 1.442695, %v1449_v44  ;;  %v1414_v62 = vpop.xlane.xlu1 %1413 }
 0x54c   :  { %12844 = vpow2.f32 %v1512_v12  ;;  %v1452_v20 = vsub.f32 %v13909_v27, %v1414_v62 }
 0x54d   :  { %v1510_v45 = vmul.f32 1.442695, %v1446_v11 }
 0x54f   :  { %1590 = vadd.xlane.f32.xlu1 %v1589_v29  ;;  %v1451_v29 = vsub.f32 %v13904_v33, %v1411_v53  ;;  %12846 = vpow2.f32 %v1510_v45  ;;  %v1417_v7 = vpop.xlane.xlu0 %1416  ;;  %v1518_v33 = vmul.f32 1.442695, %v1450_v16 }
 0x550   :  { %12848 = vpow2.f32 %v1516_v5  ;;  %v1453_v54 = vsub.f32 %v13914_v46, %v1417_v7  ;;  %v1522_v46 = vmul.f32 1.442695, %v1452_v20 }
 0x551   :  { %v14049_v22 = vpop.eup %12834  ;;  %12850 = vpow2.f32 %v1514_v42 }
 0x552   :  { %v1598_v51 = vsel %vm1309_vm6, %v14049_v22, 0.0  ;;  %v14055_v52 = vpop.eup %12836 }
 0x553   :  { %1587 = vadd.xlane.f32.xlu1 %v1586_v56  ;;  %v14057_v37 = vpop.eup %12838  ;;  %v1520_v56 = vmul.f32 1.442695, %v1451_v29  ;;  %v1601_v13 = vsel %vm1309_vm6, %v14055_v52, 0.0 }
 0x554   :  { %v14063_v19 = vpop.eup %12840  ;;  %v1577_v55 = vsel %vm1309_vm6, %v14057_v37, 0.0 }
 0x555   :  { %v14067_v11 = vpop.eup %12842  ;;  %12852 = vpow2.f32 %v1520_v56  ;;  %v1607_v53 = vsel %vm1309_vm6, %v14063_v19, 0.0 }
 0x556   :  { %12854 = vpow2.f32 %v1518_v33  ;;  %v14071_v27 = vpop.eup %12844  ;;  %v1604_v12 = vsel %vm1309_vm6, %v14067_v11, 0.0 }
 0x557   :  { %1596 = vadd.xlane.f32.xlu1 %v1595_v30  ;;  %v1524_v30 = vmul.f32 1.442695, %v1453_v54  ;;  %v1613_v10 = vsel %vm1309_vm6, %v14071_v27, 0.0 }
 0x559   :  { %v14075_v44 = vpop.eup %12846  ;;  %12856 = vpow2.f32 %v1524_v30 }
 0x55a   :  { %12858 = vpow2.f32 %v1522_v46  ;;  %v14079_v45 = vpop.eup %12848  ;;  %v1610_v8 = vsel %vm1309_vm6, %v14075_v44, 0.0 }
 0x55b   :  { %1593 = vadd.xlane.f32.xlu1 %v1592_v60  ;;  %v14083_v60 = vpop.eup %12850  ;;  %v1619_v5 = vsel %vm1309_vm6, %v14079_v45, 0.0 }
 0x55c   :  { %v1616_v42 = vsel %vm1309_vm6, %v14083_v60, 0.0 }
 0x55f   :  { %1599 = vadd.xlane.f32.xlu1 %v1598_v51  ;;  %v14087_v29 = vpop.eup %12852 }
 0x560   :  { %v14091_v16 = vpop.eup %12854  ;;  %v1625_v7 = vsel %vm1309_vm6, %v14087_v29, 0.0 }
 0x561   :  { %v1622_v62 = vsel %vm1309_vm6, %v14091_v16, 0.0 }
 0x563   :  { %1602 = vadd.xlane.f32.xlu1 %v1601_v13  ;;  %v14095_v51 = vpop.eup %12856 }
 0x564   :  { %1578 = vadd.xlane.f32.xlu0 %v1577_v55  ;;  %v14099_v56 = vpop.eup %12858  ;;  %v1631_v54 = vsel %vm1309_vm6, %v14095_v51, 0.0 }
 0x565   :  { %v1628_v33 = vsel %vm1309_vm6, %v14099_v56, 0.0 }
 0x567   :  { %1608 = vadd.xlane.f32.xlu1 %v1607_v53 }
 0x568   :  { %1605 = vadd.xlane.f32.xlu0 %v1604_v12 }
 0x56b   :  { %1614 = vadd.xlane.f32.xlu1 %v1613_v10 }
 0x56c   :  { %1611 = vadd.xlane.f32.xlu0 %v1610_v8 }
 0x56f   :  { %1620 = vadd.xlane.f32.xlu1 %v1619_v5 }
 0x570   :  { %1617 = vadd.xlane.f32.xlu0 %v1616_v42 }
 0x573   :  { %1626 = vadd.xlane.f32.xlu1 %v1625_v7 }
 0x574   :  { %1623 = vadd.xlane.f32.xlu0 %v1622_v62 }
 0x577   :  { %1632 = vadd.xlane.f32.xlu1 %v1631_v54 }
 0x578   :  { %1629 = vadd.xlane.f32.xlu0 %v1628_v33 }
 0x5a0   :  { %v1531_v55 = vpop.xlane.xlu0 %1530 }
 0x5a1   :  { %v1528_v20 = vpop.xlane.xlu1 %1527 }
 0x5a2   :  { %12860 = vrcp.f32 %v1528_v20 }
 0x5a3   :  { %12862 = vrcp.f32 %v1531_v55 }
 0x5a4   :  { %v1537_v12 = vpop.xlane.xlu0 %1536 }
 0x5a8   :  { %v1534_v13 = vpop.xlane.xlu1 %1533 }
 0x5a9   :  { %12864 = vrcp.f32 %v1534_v13 }
 0x5aa   :  { %12866 = vrcp.f32 %v1537_v12 }
 0x5ac   :  { %v12861_v30 = vpop.eup %12860  ;;  %v1543_v46 = vpop.xlane.xlu1 %1542 }
 0x5ad   :  { %v1670_v53 = vmul.f32 %v12861_v30, %v13929_v6  ;;  %v12863_v33 = vpop.eup %12862 }
 0x5af   :  { %12020 = vmatprep.mubr.msk.f32.mxu0 %vm1309_vm6, %v1670_v53  ;;  %v1671_v53 = vmul.f32 %v12863_v33, %v13926_v39 }
 0x5b0   :  { %v1540_v10 = vpop.xlane.xlu1 %1539  ;;  %v1549_v8 = vpop.xlane.xlu0 %1548 }
 0x5b1   :  { %12868 = vrcp.f32 %v1540_v10 }
 0x5b2   :  { %12870 = vrcp.f32 %v1543_v46  ;;  %v17417_v46 = vmov 0.0  }
 0x5b3   :  { %v12865_v20 = vpop.eup %12864 }
 0x5b4   :  { %v1546_v5 = vpop.xlane.xlu1 %1545  ;;  %v12867_v55 = vpop.eup %12866  ;;  %v1672_v13 = vmul.f32 %v12865_v20, %v13941_v59 }
 0x5b5   :  { %12872 = vrcp.f32 %v1546_v5 }
 0x5b6   :  { %12874 = vrcp.f32 %v1549_v8  ;;  %v1673_v8 = vmul.f32 %v12867_v55, %v13936_v40 }
 0x5b8   :  { %v1561_v42 = vpop.xlane.xlu0 %1560  ;;  %v1555_v7 = vpop.xlane.xlu1 %1554 }
 0x5bb   :  { %v12869_v12 = vpop.eup %12868 }
 0x5bc   :  { %v1567_v62 = vpop.xlane.xlu0 %1566  ;;  %v1552_v54 = vpop.xlane.xlu1 %1551  ;;  %v1674_v39 = vmul.f32 %v12869_v12, %v13952_v4 }
 0x5bd   :  { %12876 = vrcp.f32 %v1552_v54  ;;  %v12871_v5 = vpop.eup %12870 }
 0x5be   :  { %12878 = vrcp.f32 %v1555_v7  ;;  %v1675_v33 = vmul.f32 %v12871_v5, %v13947_v0 }
 0x5bf   :  { %v12873_v54 = vpop.eup %12872 }
 0x5c0   :  { %v1723_v6 = vpop.permute.xlu0 %1722  ;;  %v1558_v30 = vpop.xlane.xlu1 %1557  ;;  %v1676_v20 = vmul.f32 %v12873_v54, %v13962_v58 }
 0x5c1   :  { %12018 = vmatprep.subr.mxu0 %v1723_v6  ;;  %12880 = vrcp.f32 %v1558_v30  ;;  %v12875_v7 = vpop.eup %12874 }
 0x5c2   :  { %12019 = vmatpush3.msra.mxu0 %v1723_v6  ;;  %12882 = vrcp.f32 %v1561_v42  ;;  %v1677_v4 = vmul.f32 %v12875_v7, %v13955_v15 }
 0x5c3   :  { %12021 = vmatmul.mubr.msk.f32.vlgmr.msra.gmra.mrb[2].mxu0 %vm1309_vm6, %v1671_v53  ;;  %12074 = vmatprep.subr.bf16.mxu0 %v17417_v46 }
 0x5c4   :  { %12023 = vmatprep.mubr.msk.f32.mxu0 %vm1309_vm6, %v1672_v13  ;;  %v1564_v10 = vpop.xlane.xlu1 %1563 }
 0x5c5   :  { %12884 = vrcp.f32 %v1564_v10 }
 0x5c6   :  { %12886 = vrcp.f32 %v1567_v62 }
 0x5c7   :  { %12024 = vmatmul.mubr.msk.f32.gmra.mrb[24].mxu0 %vm1309_vm6, %v1673_v8  ;;  %v12877_v6 = vpop.eup %12876 }
 0x5c8   :  { %12026 = vmatprep.mubr.msk.f32.mxu0 %vm1309_vm6, %v1674_v39  ;;  %v1573_v59 = vpop.xlane.xlu1 %1572  ;;  %v12879_v42 = vpop.eup %12878  ;;  %v1678_v30 = vmul.f32 %v12877_v6, %v13978_v1 }
 0x5c9   :  { %v1679_v58 = vmul.f32 %v12879_v42, %v13967_v2 }
 0x5cb   :  { %12027 = vmatmul.mubr.msk.f32.gmra.mrb[26].mxu0 %vm1309_vm6, %v1675_v33  ;;  %v12881_v53 = vpop.eup %12880 }
 0x5cc   :  { %12029 = vmatprep.mubr.msk.f32.mxu0 %vm1309_vm6, %v1676_v20  ;;  %v1570_v40 = vpop.xlane.xlu1 %1569  ;;  %v12883_v62 = vpop.eup %12882  ;;  %v1680_v55 = vmul.f32 %v12881_v53, %v13987_v57 }
 0x5cd   :  { %12888 = vrcp.f32 %v1570_v40  ;;  %v1681_v1 = vmul.f32 %v12883_v62, %v13971_v31 }
 0x5ce   :  { %12890 = vrcp.f32 %v1573_v59 }
 0x5cf   :  { %12030 = vmatmul.mubr.msk.f32.gmra.mrb[28].mxu0 %vm1309_vm6, %v1677_v4  ;;  %v12885_v13 = vpop.eup %12884 }
 0x5d0   :  { %12032 = vmatprep.mubr.msk.f32.mxu0 %vm1309_vm6, %v1678_v30  ;;  %v1576_v0 = vpop.xlane.xlu1 %1575  ;;  %v12887_v12 = vpop.eup %12886  ;;  %v1682_v10 = vmul.f32 %v12885_v13, %v13992_v49 }
 0x5d1   :  { %12892 = vrcp.f32 %v1576_v0  ;;  %v1683_v5 = vmul.f32 %v12887_v12, %v13980_v47 }
 0x5d3   :  { %12033 = vmatmul.mubr.msk.f32.gmra.mrb[30].mxu0 %vm1309_vm6, %v1679_v58 }
 0x5d4   :  { %12035 = vmatprep.mubr.msk.f32.mxu0 %vm1309_vm6, %v1680_v55  ;;  %v1585_v15 = vpop.xlane.xlu1 %1584 }
 0x5d7   :  { %v12889_v8 = vpop.eup %12888  ;;  %12036 = vmatmul.mubr.msk.f32.gmra.mrb[32].mxu0 %vm1309_vm6, %v1681_v1 }
 0x5d8   :  { %12038 = vmatprep.mubr.msk.f32.mxu0 %vm1309_vm6, %v1682_v10  ;;  %v1582_v2 = vpop.xlane.xlu1 %1581  ;;  %v12891_v57 = vpop.eup %12890  ;;  %v1684_v39 = vmul.f32 %v12889_v8, %v14002_v36 }
 0x5d9   :  { %v1685_v59 = vmul.f32 %v12891_v57, %v13997_v26  ;;  %12894 = vrcp.f32 %v1582_v2 }
 0x5db   :  { %v12893_v54 = vpop.eup %12892  ;;  %12039 = vmatmul.mubr.msk.f32.gmra.mrb[34].mxu0 %vm1309_vm6, %v1683_v5 }
 0x5dc   :  { %12041 = vmatprep.mubr.msk.f32.mxu0 %vm1309_vm6, %v1684_v39  ;;  %v1591_v31 = vpop.xlane.xlu1 %1590  ;;  %v1686_v49 = vmul.f32 %v12893_v54, %v14007_v9 }
 0x5df   :  { %12042 = vmatmul.mubr.msk.f32.gmra.mrb[36].mxu0 %vm1309_vm6, %v1685_v59 }
 0x5e0   :  { %12044 = vmatprep.mubr.msk.f32.mxu0 %vm1309_vm6, %v1686_v49  ;;  %v1588_v33 = vpop.xlane.xlu1 %1587 }
 0x5e3   :  { %v12895_v4 = vpop.eup %12894 }
 0x5e4   :  { %v1597_v7 = vpop.xlane.xlu1 %1596  ;;  %v1688_v0 = vmul.f32 %v12895_v4, %v14019_v21 }
 0x5e8   :  { %v1594_v47 = vpop.xlane.xlu1 %1593 }
 0x5ec   :  { %v1600_v20 = vpop.xlane.xlu1 %1599 }
 0x5f0   :  { %v1603_v6 = vpop.xlane.xlu1 %1602 }
 0x5f1   :  { %v1579_v36 = vpop.xlane.xlu0 %1578 }
 0x5f2   :  { %12896 = vrcp.f32 %v1579_v36 }
 0x5f3   :  { %12898 = vrcp.f32 %v1585_v15 }
 0x5f4   :  { %12900 = vrcp.f32 %v1588_v33  ;;  %v1609_v26 = vpop.xlane.xlu1 %1608 }
 0x5f5   :  { %v1606_v40 = vpop.xlane.xlu0 %1605  ;;  %12902 = vrcp.f32 %v1591_v31 }
 0x5f6   :  { %12904 = vrcp.f32 %v1594_v47 }
 0x5f7   :  { %12906 = vrcp.f32 %v1597_v7 }
 0x5f8   :  { %12908 = vrcp.f32 %v1600_v20  ;;  %v1615_v62 = vpop.xlane.xlu1 %1614 }
 0x5f9   :  { %v1612_v42 = vpop.xlane.xlu0 %1611  ;;  %12910 = vrcp.f32 %v1603_v6 }
 0x5fa   :  { %12912 = vrcp.f32 %v1606_v40 }
 0x5fb   :  { %12914 = vrcp.f32 %v1609_v26 }
 0x5fc   :  { %v12897_v9 = vpop.eup %12896  ;;  %12916 = vrcp.f32 %v1612_v42  ;;  %v1621_v21 = vpop.xlane.xlu1 %1620 }
 0x5fd   :  { %v1687_v30 = vmul.f32 %v12897_v9, %v14057_v37  ;;  %v12899_v53 = vpop.eup %12898  ;;  %v1618_v15 = vpop.xlane.xlu0 %1617  ;;  %12918 = vrcp.f32 %v1615_v62 }
 0x5fe   :  { %v12901_v58 = vpop.eup %12900  ;;  %v1689_v55 = vmul.f32 %v12899_v53, %v14012_v50  ;;  %12920 = vrcp.f32 %v1618_v15 }
 0x5ff   :  { %12045 = vmatmul.mubr.msk.f32.gmra.mrb[38].mxu0 %vm1309_vm6, %v1687_v30  ;;  %v12903_v13 = vpop.eup %12902  ;;  %v1690_v1 = vmul.f32 %v12901_v58, %v14031_v14  ;;  %12922 = vrcp.f32 %v1621_v21 }
 0x600   :  { %12047 = vmatprep.mubr.msk.f32.mxu0 %vm1309_vm6, %v1688_v0  ;;  %v12905_v12 = vpop.eup %12904  ;;  %v1691_v37 = vmul.f32 %v12903_v13, %v14024_v63  ;;  %v1627_v54 = vpop.xlane.xlu1 %1626 }
 0x601   :  { %v12907_v10 = vpop.eup %12906  ;;  %v1692_v8 = vmul.f32 %v12905_v12, %v14043_v34  ;;  %v1624_v50 = vpop.xlane.xlu0 %1623 }
 0x602   :  { %v12909_v2 = vpop.eup %12908  ;;  %v1693_v14 = vmul.f32 %v12907_v10, %v14037_v3  ;;  %12924 = vrcp.f32 %v1624_v50 }
 0x603   :  { %12048 = vmatmul.mubr.msk.f32.gmra.mrb[40].mxu0 %vm1309_vm6, %v1689_v55  ;;  %v12911_v5 = vpop.eup %12910  ;;  %v1694_v57 = vmul.f32 %v12909_v2, %v14049_v22  ;;  %12926 = vrcp.f32 %v1627_v54 }
 0x604   :  { %12050 = vmatprep.mubr.msk.f32.mxu0 %vm1309_vm6, %v1690_v1  ;;  %v12913_v39 = vpop.eup %12912  ;;  %v1695_v63 = vmul.f32 %v12911_v5, %v14055_v52  ;;  %v1633_v3 = vpop.xlane.xlu1 %1632 }
 0x605   :  { %v12915_v34 = vpop.eup %12914  ;;  %v1630_v31 = vpop.xlane.xlu0 %1629  ;;  %v1696_v59 = vmul.f32 %v12913_v39, %v14067_v11 }
 0x606   :  { %v12917_v49 = vpop.eup %12916  ;;  %12928 = vrcp.f32 %v1630_v31  ;;  %v1697_v22 = vmul.f32 %v12915_v34, %v14063_v19 }
 0x607   :  { %12051 = vmatmul.mubr.msk.f32.gmra.mrb[42].mxu0 %vm1309_vm6, %v1691_v37  ;;  %v12919_v33 = vpop.eup %12918  ;;  %v1698_v7 = vmul.f32 %v12917_v49, %v14075_v44  ;;  %12930 = vrcp.f32 %v1633_v3 }
 0x608   :  { %12053 = vmatprep.mubr.msk.f32.mxu0 %vm1309_vm6, %v1692_v8  ;;  %v12921_v47 = vpop.eup %12920  ;;  %v1699_v52 = vmul.f32 %v12919_v33, %v14071_v27 }
 0x609   :  { %v12923_v11 = vpop.eup %12922  ;;  %v1700_v20 = vmul.f32 %v12921_v47, %v14083_v60 }
 0x60a   :  { %v1701_v19 = vmul.f32 %v12923_v11, %v14079_v45  ;;  %v12508_v45 = vld [vmem:[%s17320_s10] sm:$0xff]  }
 0x60b   :  { %12054 = vmatmul.mubr.msk.f32.gmra.mrb[44].mxu0 %vm1309_vm6, %v1693_v14  ;;  %12413 = vmatpush3.bf16.msra.mxu1 %v12508_v45 }
 0x60c   :  { %12056 = vmatprep.mubr.msk.f32.mxu0 %vm1309_vm6, %v1694_v57  ;;  %v12925_v36 = vpop.eup %12924  ;;  %12075 = vmatpush3.bf16.msra.mxu0 %v12508_v45 }
 0x60d   :  { %v12927_v6 = vpop.eup %12926  ;;  %v1702_v44 = vmul.f32 %v12925_v36, %v14091_v16  ;;  %12076 = vmatprep.subr.bf16.mxu0 %v17417_v46  ;;  %12412 = vmatprep.subr.bf16.mxu1 %v17417_v46 }
 0x60e   :  { %v1703_v27 = vmul.f32 %v12927_v6, %v14087_v29  ;;  %v12509_v29 = vld [vmem:[%s17320_s10 + $0x8] sm:$0xff]  }
 0x60f   :  { %12057 = vmatmul.mubr.msk.f32.gmra.mrb[46].mxu0 %vm1309_vm6, %v1695_v63  ;;  %12414 = vmatpush3.bf16.msra.mxu1 %v12509_v29 }
 0x610   :  { %12059 = vmatprep.mubr.msk.f32.mxu0 %vm1309_vm6, %v1696_v59  ;;  %v12929_v40 = vpop.eup %12928  ;;  %12077 = vmatpush3.bf16.msra.mxu0 %v12509_v29 }
 0x611   :  { %v12931_v26 = vpop.eup %12930  ;;  %v1704_v60 = vmul.f32 %v12929_v40, %v14099_v56 }
 0x612   :  { %v1705_v4 = vmul.f32 %v12931_v26, %v14095_v51 }
 0x613   :  { %12060 = vmatmul.mubr.msk.f32.gmra.mrb[48].mxu0 %vm1309_vm6, %v1697_v22 }
 0x614   :  { %12062 = vmatprep.mubr.msk.f32.mxu0 %vm1309_vm6, %v1698_v7 }
 0x617   :  { %12063 = vmatmul.mubr.msk.f32.gmra.mrb[50].mxu0 %vm1309_vm6, %v1699_v52 }
 0x618   :  { %12065 = vmatprep.mubr.msk.f32.mxu0 %vm1309_vm6, %v1700_v20 }
 0x61b   :  { %12066 = vmatmul.mubr.msk.f32.gmra.mrb[52].mxu0 %vm1309_vm6, %v1701_v19 }
 0x61c   :  { %12068 = vmatprep.mubr.msk.f32.mxu0 %vm1309_vm6, %v1702_v44 }
 0x61f   :  { %12069 = vmatmul.mubr.msk.f32.gmra.mrb[54].mxu0 %vm1309_vm6, %v1703_v27 }
 0x620   :  { %12071 = vmatprep.mubr.msk.f32.mxu0 %vm1309_vm6, %v1704_v60 }
 0x623   :  { %12072 = vmatmul.mubr.msk.f32.gmra.mrb[56].mxu0 %vm1309_vm6, %v1705_v4 }
 0x624   :  { %12078 = vmatprep.mubr.msk.bf16.mxu0 %vm13156_vm5, %v17417_v46 }
 0x696   :  { %v12022_v16 = vpop.f32.mrb[2].mxu0 }
 0x697   :  { %v1907_v51 = vpop.f32.mrb[3].mxu0  ;;  %v2087_v10 = vmul.f32 %v12022_v16, %v13459_v23 }
 0x698   :  { %v2086_v62 = vmul.f32 %v13459_v23, %v1907_v51 }
 0x69a   :  { %v12025_v56 = vpop.f32.mrb[24].mxu0 }
 0x69b   :  { %v1917_v9 = vpop.f32.mrb[25].mxu0  ;;  %v2089_v54 = vmul.f32 %v12025_v56, %v13459_v23 }
 0x69c   :  { %v2088_v12 = vmul.f32 %v13459_v23, %v1917_v9 }
 0x69e   :  { %v12028_v42 = vpop.f32.mrb[26].mxu0 }
 0x69f   :  { %v1927_v30 = vpop.f32.mrb[27].mxu0  ;;  %v2091_v33 = vmul.f32 %v12028_v42, %v13459_v23 }
 0x6a0   :  { %v2090_v5 = vmul.f32 %v13459_v23, %v1927_v30 }
 0x6a2   :  { %v12031_v53 = vpop.f32.mrb[28].mxu0 }
 0x6a3   :  { %v1937_v0 = vpop.f32.mrb[29].mxu0  ;;  %v2093_v6 = vmul.f32 %v12031_v53, %v13459_v23 }
 0x6a4   :  { %v2092_v49 = vmul.f32 %v13459_v23, %v1937_v0 }
 0x6a6   :  { %v12034_v58 = vpop.f32.mrb[30].mxu0 }
 0x6a7   :  { %v2095_v55 = vmul.f32 %v12034_v58, %v13552_v48  ;;  %v1947_v13 = vpop.f32.mrb[31].mxu0 }
 0x6a8   :  { %v2094_v20 = vmul.f32 %v13459_v23, %v1947_v13 }
 0x6a9   :  { %v2104_v15 = vadd.f32 %v2095_v55, %v2086_v62 }
 0x6aa   :  { %v12037_v1 = vpop.f32.mrb[32].mxu0 }
 0x6ab   :  { %v2097_v21 = vmul.f32 %v12037_v1, %v13552_v48  ;;  %v1957_v37 = vpop.f32.mrb[33].mxu0 }
 0x6ac   :  { %v2096_v8 = vmul.f32 %v13552_v48, %v1957_v37 }
 0x6ad   :  { %v2106_v2 = vadd.f32 %v2097_v21, %v2088_v12 }
 0x6ae   :  { %v2105_v50 = vadd.f32 %v2096_v8, %v2087_v10  ;;  %v12040_v14 = vpop.f32.mrb[34].mxu0 }
 0x6af   :  { %v2099_v57 = vmul.f32 %v12040_v14, %v13552_v48  ;;  %v1967_v39 = vpop.f32.mrb[35].mxu0 }
 0x6b0   :  { %v2098_v63 = vmul.f32 %v13552_v48, %v1967_v39 }
 0x6b1   :  { %v2108_v34 = vadd.f32 %v2099_v57, %v2090_v5 }
 0x6b2   :  { %v2107_v31 = vadd.f32 %v2098_v63, %v2089_v54  ;;  %v12043_v59 = vpop.f32.mrb[36].mxu0 }
 0x6b3   :  { %v2101_v3 = vmul.f32 %v12043_v59, %v13552_v48  ;;  %v1977_v22 = vpop.f32.mrb[37].mxu0 }
 0x6b4   :  { %v2100_v7 = vmul.f32 %v13552_v48, %v1977_v22 }
 0x6b5   :  { %v2110_v47 = vadd.f32 %v2101_v3, %v2092_v49 }
 0x6b6   :  { %v2109_v52 = vadd.f32 %v2100_v7, %v2091_v33 }
 0x6d2   :  { %v12046_v11 = vpop.f32.mrb[38].mxu0 }
 0x6d3   :  { %v2103_v36 = vmul.f32 %v12046_v11, %v13552_v48  ;;  %v1987_v19 = vpop.f32.mrb[39].mxu0 }
 0x6d4   :  { %v2102_v44 = vmul.f32 %v13552_v48, %v1987_v19 }
 0x6d5   :  { %v2112_v40 = vadd.f32 %v2103_v36, %v2094_v20 }
 0x6d6   :  { %v2111_v27 = vadd.f32 %v2102_v44, %v2093_v6  ;;  %v12049_v26 = vpop.f32.mrb[40].mxu0  ;;  %v17418_v6 = vmov 0  }
 0x6d7   :  { %v2114_v60 = vmul.f32 %v12049_v26, %v13587_v61  ;;  %v1997_v4 = vpop.f32.mrb[41].mxu0 }
 0x6d8   :  { %v2113_v45 = vmul.f32 %v13587_v61, %v1997_v4 }
 0x6d9   :  { %v2123_v29 = vadd.f32 %v2114_v60, %v2105_v50 }
 0x6da   :  { %v2122_v16 = vadd.f32 %v2113_v45, %v2104_v15  ;;  %v12052_v51 = vpop.f32.mrb[42].mxu0 }
 0x6db   :  { %v2116_v56 = vmul.f32 %v12052_v51, %v13587_v61  ;;  %v2007_v9 = vpop.f32.mrb[43].mxu0 }
 0x6dc   :  { %v2115_v42 = vmul.f32 %v13587_v61, %v2007_v9 }
 0x6dd   :  { %v2125_v30 = vadd.f32 %v2116_v56, %v2107_v31 }
 0x6de   :  { %v2124_v53 = vadd.f32 %v2115_v42, %v2106_v2  ;;  %v12055_v0 = vpop.f32.mrb[44].mxu0 }
 0x6df   :  { %v2118_v58 = vmul.f32 %v12055_v0, %v13587_v61  ;;  %v2017_v62 = vpop.f32.mrb[45].mxu0 }
 0x6e0   :  { %v2117_v55 = vmul.f32 %v13587_v61, %v2017_v62 }
 0x6e1   :  { %v2127_v13 = vadd.f32 %v2118_v58, %v2109_v52 }
 0x6e2   :  { %v2126_v1 = vadd.f32 %v2117_v55, %v2108_v34  ;;  %v12058_v12 = vpop.f32.mrb[46].mxu0 }
 0x6e3   :  { %v2120_v21 = vmul.f32 %v12058_v12, %v13587_v61  ;;  %v2027_v15 = vpop.f32.mrb[47].mxu0 }
 0x6e4   :  { %v2119_v37 = vmul.f32 %v13587_v61, %v2027_v15 }
 0x6e5   :  { %v2129_v10 = vadd.f32 %v2120_v21, %v2111_v27 }
 0x6e6   :  { %v2128_v8 = vadd.f32 %v2119_v37, %v2110_v47  ;;  %v12061_v50 = vpop.f32.mrb[48].mxu0 }
 0x6e7   :  { %v2131_v14 = vmul.f32 %v12061_v50, %v13626_v17  ;;  %v2037_v2 = vpop.f32.mrb[49].mxu0 }
 0x6e8   :  { %v2121_v5 = vmul.f32 %v13587_v61, %v2037_v2 }
 0x6e9   :  { %v2140_v57 = vadd.f32 %v2131_v14, %v2122_v16 }
 0x6ea   :  { %v12064_v39 = vpop.f32.mrb[50].mxu0  ;;  %v2130_v54 = vadd.f32 %v2121_v5, %v2112_v40 }
 0x6eb   :  { %v2133_v63 = vmul.f32 %v12064_v39, %v13626_v17  ;;  %v2047_v34 = vpop.f32.mrb[51].mxu0 }
 0x6ec   :  { %v2132_v31 = vmul.f32 %v13626_v17, %v2047_v34 }
 0x6ed   :  { %v2142_v59 = vadd.f32 %v2133_v63, %v2124_v53  ;;  %v10098_v53 = vld [vmem:[%s17321_s11] ss:$0 sm:$0xff] }
 0x6ee   :  { %v2141_v49 = vadd.f32 %v2132_v31, %v2123_v29  ;;  %v12067_v3 = vpop.f32.mrb[52].mxu0 }
 0x6ef   :  { %v2135_v22 = vmul.f32 %v12067_v3, %v13626_v17  ;;  %v2057_v33 = vpop.f32.mrb[53].mxu0 }
 0x6f0   :  { %v2149_v7 = vpack.c.bf16 %v2141_v49, %v2140_v57  ;;  %v2134_v47 = vmul.f32 %v13626_v17, %v2057_v33 }
 0x6f1   :  { %v2144_v52 = vadd.f32 %v2135_v22, %v2126_v1 }
 0x6f2   :  { %v2143_v11 = vadd.f32 %v2134_v47, %v2125_v30  ;;  %v12070_v20 = vpop.f32.mrb[54].mxu0  ;;  %12079 = vmatmul.mubr.msk.bf16.vlgmr.msra.gmra.mrb[60].mxu0 %vm611_vm7, %v2149_v7 }
 0x6f3   :  { %v2137_v36 = vmul.f32 %v12070_v20, %v13626_v17  ;;  %v2067_v19 = vpop.f32.mrb[55].mxu0  ;;  %2759 = vmatprep.mubr.bf16.mxu0 %v17418_v6 }
 0x6f4   :  { %v2150_v44 = vpack.c.bf16 %v2143_v11, %v2142_v59  ;;  %v2136_v40 = vmul.f32 %v13626_v17, %v2067_v19 }
 0x6f5   :  { %v2146_v27 = vadd.f32 %v2137_v36, %v2128_v8 }
 0x6f6   :  { %v2145_v26 = vadd.f32 %v2136_v40, %v2127_v13  ;;  %v12073_v60 = vpop.f32.mrb[56].mxu0  ;;  %12083 = vmatmul.mubr.msk.bf16.vlgmr.msra.gmra.mrb[44].mxu1 %vm611_vm7, %v2150_v44 }
 0x6f7   :  { %v2139_v4 = vmul.f32 %v12073_v60, %v13626_v17  ;;  %v2077_v45 = vpop.f32.mrb[57].mxu0  ;;  %12086 = vmatprep.mubr.msk.bf16.mxu1 %vm13156_vm5, %v17417_v46  ;;  %v2437_v60 = vld [vmem:[%s17324_s14 + $0x8] sm:$0xff] }
 0x6f8   :  { %v2138_v29 = vmul.f32 %v13626_v17, %v2077_v45  ;;  %v2151_v16 = vpack.c.bf16 %v2145_v26, %v2144_v52 }
 0x6f9   :  { %v2148_v51 = vadd.f32 %v2139_v4, %v2130_v54  ;;  %v2445_v4 = vld [vmem:[%s17324_s14 + $0x48] sm:$0xff] }
 0x6fa   :  { %v2147_v56 = vadd.f32 %v2138_v29, %v2129_v10  ;;  %v10103_v45 = vcombine.low %v2437_v60, %v2445_v4  ;;  %v10104_v29 = vcombine.high %v2437_v60, %v2445_v4  ;;  %v2436_v60 = vld [vmem:[%s17324_s14] sm:$0xff] }
 0x6fb   :  { %v2153_v42 = vpack.c.bf16 %v2148_v51, %v2148_v51  ;;  %v2444_v4 = vld [vmem:[%s17324_s14 + $0x40] sm:$0xff] }
 0x6fc   :  { %v2152_v9 = vpack.c.bf16 %v2147_v56, %v2146_v27  ;;  %2808 = vmatprep.subr.bf16.mxu1 %v10104_v29  ;;  %v10101_v29 = vcombine.low %v2436_v60, %v2444_v4 }
 0x6fd   :  { %2809 = vmatpush1.bf16.msra.mxu1 %v10103_v45  ;;  %v10102_v45 = vcombine.high %v2436_v60, %v2444_v4 }
 0x6fe   :  { %12087 = vmatmul.mubr.msk.bf16.gmra.mrb[48].mxu1 %vm611_vm7, %v2151_v16 }
 0x6ff   :  { %12090 = vmatprep.mubr.msk.bf16.mxu1 %vm13156_vm5, %v17417_v46  ;;  %2727 = vmatprep.subr.bf16.mxu0 %v10102_v45 }
 0x700   :  { %2728 = vmatpush1.bf16.msra.mxu0 %v10101_v29 }
 0x706   :  { %12091 = vmatmul.mubr.msk.bf16.gmra.mrb[52].mxu1 %vm611_vm7, %v2152_v9 }
 0x707   :  { %12094 = vmatprep.mubr.msk.bf16.mxu1 %vm13156_vm5, %v17417_v46 }
 0x70e   :  { %12095 = vmatmul.mubr.msk.bf16.gmra.mrb[56].mxu1 %vm611_vm7, %v2153_v42 }
 0x70f   :  { %2840 = vmatprep.mubr.bf16.mxu1 %v17418_v6 }
 0x7c5   :  { %v2219_v30 = vpop.f32.mrb[60].mxu0 }
 0x7c6   :  { %v2257_v0 = vadd.f32 %v2219_v30, %v13331_v24  ;;  %v12080_v58 = vpop.f32.mrb[61].mxu0 }
 0x7c7   :  { %v2222_v62 = vpop.f32.mrb[62].mxu0 }
 0x7c8   :  { %v2258_v55 = vadd.f32 %v2222_v62, %v13333_v25  ;;  %v12081_v13 = vpop.f32.mrb[63].mxu0  ;;  %v14242_v1 = vadd.f32 %v10098_v53, %v2257_v0 }
 0x7c9   :  { %v2227_v12 = vpop.f32.mrb[44].mxu1 }
 0x7ca   :  { %v14244_v21 = vadd.f32 %v10098_v53, %v2258_v55  ;;  %v2259_v15 = vadd.f32 %v2227_v12, %v13324_v18  ;;  %v12084_v37 = vpop.f32.mrb[45].mxu1  ;;  %v2284_v10 = vsel %vm611_vm7, %v14242_v1, 0.0 }
 0x7cb   :  { %v2230_v8 = vpop.f32.mrb[46].mxu1  ;;  %2285 = vadd.xlane.f32.xlu0 %v2284_v10 }
 0x7cc   :  { %v2260_v24 = vadd.f32 %v2230_v8, %v13335_v28  ;;  %v12085_v50 = vpop.f32.mrb[47].mxu1  ;;  %v2287_v25 = vsel %vm611_vm7, %v14244_v21, 0.0  ;;  %v14252_v14 = vadd.f32 %v10098_v53, %v2259_v15 }
 0x7cd   :  { %2288 = vadd.xlane.f32.xlu1 %v2287_v25 }
 0x7ce   :  { %v14254_v2 = vadd.f32 %v10098_v53, %v2260_v24  ;;  %v2290_v18 = vsel %vm611_vm7, %v14252_v14, 0.0 }
 0x7cf   :  { %2291 = vadd.xlane.f32.xlu0 %v2290_v18 }
 0x7d0   :  { %v2293_v5 = vsel %vm611_vm7, %v14254_v2, 0.0 }
 0x7d1   :  { %v2235_v57 = vpop.f32.mrb[48].mxu1  ;;  %2294 = vadd.xlane.f32.xlu1 %v2293_v5 }
 0x7d2   :  { %v2261_v28 = vadd.f32 %v2235_v57, %v13341_v32  ;;  %v12088_v39 = vpop.f32.mrb[49].mxu1 }
 0x7d3   :  { %v2238_v54 = vpop.f32.mrb[50].mxu1 }
 0x7d4   :  { %v2262_v63 = vadd.f32 %v2238_v54, %v13345_v35  ;;  %v12089_v34 = vpop.f32.mrb[51].mxu1  ;;  %v14262_v31 = vadd.f32 %v10098_v53, %v2261_v28 }
 0x7d6   :  { %v14264_v59 = vadd.f32 %v10098_v53, %v2262_v63  ;;  %v2296_v49 = vsel %vm611_vm7, %v14262_v31, 0.0 }
 0x7d7   :  { %2297 = vadd.xlane.f32.xlu0 %v2296_v49 }
 0x7d8   :  { %v2299_v3 = vsel %vm611_vm7, %v14264_v59, 0.0 }
 0x7d9   :  { %2300 = vadd.xlane.f32.xlu1 %v2299_v3  ;;  %v2243_v22 = vpop.f32.mrb[52].mxu1 }
 0x7da   :  { %v2263_v32 = vadd.f32 %v2243_v22, %v13349_v38  ;;  %v12092_v33 = vpop.f32.mrb[53].mxu1 }
 0x7db   :  { %v2246_v7 = vpop.f32.mrb[54].mxu1 }
 0x7dc   :  { %v2264_v35 = vadd.f32 %v2246_v7, %v13353_v41  ;;  %v12093_v47 = vpop.f32.mrb[55].mxu1  ;;  %v14272_v52 = vadd.f32 %v10098_v53, %v2263_v32 }
 0x7de   :  { %v14274_v11 = vadd.f32 %v10098_v53, %v2264_v35  ;;  %v2302_v20 = vsel %vm611_vm7, %v14272_v52, 0.0 }
 0x7df   :  { %2303 = vadd.xlane.f32.xlu0 %v2302_v20 }
 0x7e0   :  { %v2305_v36 = vsel %vm611_vm7, %v14274_v11, 0.0 }
 0x7e1   :  { %2306 = vadd.xlane.f32.xlu1 %v2305_v36  ;;  %v2251_v19 = vpop.f32.mrb[56].mxu1 }
 0x7e2   :  { %v2265_v38 = vadd.f32 %v2251_v19, %v13357_v43  ;;  %v12096_v44 = vpop.f32.mrb[57].mxu1 }
 0x7e3   :  { %v2254_v40 = vpop.f32.mrb[58].mxu1 }
 0x7e4   :  { %v12097_v27 = vpop.f32.mrb[59].mxu1  ;;  %v14281_v41 = vadd.f32 %v10098_v53, %v2265_v38 }
 0x7e6   :  { %v2308_v26 = vsel %vm611_vm7, %v14281_v41, 0.0 }
 0x7e7   :  { %2309 = vadd.xlane.f32.xlu0 %v2308_v26 }
 0x858   :  { %v2286_v43 = vpop.xlane.xlu0 %2285 }
 0x859   :  { %v2311_v16 = vmul.f32 0.03125, %v2286_v43  ;;  %v2453_v43 = vld [vmem:[%s17324_s14 + $0x88] sm:$0xff] }
 0x85a   :  { %v2289_v51 = vpop.xlane.xlu1 %2288 }
 0x85b   :  { %v14292_v56 = vsub.f32 %v14242_v1, %v2311_v16  ;;  %v2312_v9 = vmul.f32 0.03125, %v2289_v51  ;;  %v2461_v16 = vld [vmem:[%s17324_s14 + $0xc8] sm:$0xff]  ;;  %v2452_v51 = vld [vmem:[%s17324_s14 + $0x80] sm:$0xff] }
 0x85c   :  { %v2292_v42 = vpop.xlane.xlu0 %2291 }
 0x85d   :  { %v14295_v30 = vsub.f32 %v14244_v21, %v2312_v9  ;;  %v2313_v53 = vmul.f32 0.03125, %v2292_v42  ;;  %v2329_v0 = vmul.f32 %v14292_v56, %v14292_v56  ;;  %v10120_v9 = vcombine.high %v2453_v43, %v2461_v16  ;;  %v2460_v42 = vld [vmem:[%s17324_s14 + $0xc0] sm:$0xff] }
 0x85e   :  { %v2295_v58 = vpop.xlane.xlu1 %2294 }
 0x85f   :  { %v14300_v62 = vsub.f32 %v14252_v14, %v2313_v53  ;;  %v2314_v55 = vmul.f32 0.03125, %v2295_v58  ;;  %v2338_v13 = vsel %vm611_vm7, %v2329_v0, 0.0  ;;  %v2330_v12 = vmul.f32 %v14295_v30, %v14295_v30  ;;  %2810 = vmatprep.subr.bf16.mxu1 %v10120_v9 }
 0x860   :  { %2339 = vadd.xlane.f32.xlu1 %v2338_v13  ;;  %v10119_v53 = vcombine.low %v2453_v43, %v2461_v16  ;;  %v10117_v0 = vcombine.low %v2452_v51, %v2460_v42  ;;  %v10118_v58 = vcombine.high %v2452_v51, %v2460_v42  ;;  %v14371_v13 = vld [vmem:[%s17324_s14 + $0x50] sm:$0xff]  ;;  %v14402_v16 = vld [vmem:[%s17323_s13] ss:$0 sm:$0xff] }
 0x861   :  { %v14306_v15 = vsub.f32 %v14254_v2, %v2314_v55  ;;  %v2341_v37 = vsel %vm611_vm7, %v2330_v12, 0.0  ;;  %v2331_v10 = vmul.f32 %v14300_v62, %v14300_v62  ;;  %v14366_v55 = vld [vmem:[%s17324_s14 + $0x10] sm:$0xff]  ;;  %v14376_v12 = vld [vmem:[%s17324_s14 + $0x18] sm:$0xff] }
 0x862   :  { %2342 = vadd.xlane.f32.xlu0 %v2341_v37  ;;  %2811 = vmatpush1.bf16.msra.mxu1 %v10119_v53  ;;  %v10105_v37 = vcombine.low %v14366_v55, %v14371_v13 }
 0x863   :  { %v2344_v8 = vsel %vm611_vm7, %v2331_v10, 0.0  ;;  %v2332_v24 = vmul.f32 %v14306_v15, %v14306_v15  ;;  %2729 = vmatprep.subr.bf16.mxu0 %v10118_v58  ;;  %v10106_v10 = vcombine.high %v14366_v55, %v14371_v13 }
 0x864   :  { %v2298_v50 = vpop.xlane.xlu0 %2297  ;;  %2345 = vadd.xlane.f32.xlu1 %v2344_v8  ;;  %2730 = vmatpush1.bf16.msra.mxu0 %v10117_v0  ;;  %v14385_v8 = vld [vmem:[%s17324_s14 + $0x58] sm:$0xff] }
 0x865   :  { %v2315_v25 = vmul.f32 0.03125, %v2298_v50  ;;  %v2347_v18 = vsel %vm611_vm7, %v2332_v24, 0.0  ;;  %v10107_v24 = vcombine.low %v14376_v12, %v14385_v8  ;;  %v10108_v50 = vcombine.high %v14376_v12, %v14385_v8  ;;  %2889 = vmatprep.subr.bf16.mxu0 %v10106_v10 }
 0x866   :  { %v2301_v5 = vpop.xlane.xlu1 %2300  ;;  %2348 = vadd.xlane.f32.xlu0 %v2347_v18 }
 0x867   :  { %v14316_v57 = vsub.f32 %v14262_v31, %v2315_v25  ;;  %v2316_v28 = vmul.f32 0.03125, %v2301_v5  ;;  %2970 = vmatprep.subr.bf16.mxu1 %v10108_v50 }
 0x869   :  { %v14319_v39 = vsub.f32 %v14264_v59, %v2316_v28  ;;  %v2333_v54 = vmul.f32 %v14316_v57, %v14316_v57 }
 0x86b   :  { %v2350_v63 = vsel %vm611_vm7, %v2333_v54, 0.0  ;;  %v2334_v34 = vmul.f32 %v14319_v39, %v14319_v39 }
 0x86c   :  { %v2304_v49 = vpop.xlane.xlu0 %2303  ;;  %2351 = vadd.xlane.f32.xlu1 %v2350_v63 }
 0x86d   :  { %v2317_v3 = vmul.f32 0.03125, %v2304_v49  ;;  %v2353_v22 = vsel %vm611_vm7, %v2334_v34, 0.0 }
 0x86e   :  { %v2307_v32 = vpop.xlane.xlu1 %2306  ;;  %2354 = vadd.xlane.f32.xlu0 %v2353_v22 }
 0x86f   :  { %v14328_v33 = vsub.f32 %v14272_v52, %v2317_v3  ;;  %v2318_v7 = vmul.f32 0.03125, %v2307_v32 }
 0x871   :  { %v14331_v35 = vsub.f32 %v14274_v11, %v2318_v7  ;;  %v2335_v47 = vmul.f32 %v14328_v33, %v14328_v33 }
 0x873   :  { %v2356_v20 = vsel %vm611_vm7, %v2335_v47, 0.0  ;;  %v2336_v36 = vmul.f32 %v14331_v35, %v14331_v35 }
 0x874   :  { %2357 = vadd.xlane.f32.xlu1 %v2356_v20  ;;  %v2310_v19 = vpop.xlane.xlu0 %2309 }
 0x875   :  { %v2319_v38 = vmul.f32 0.03125, %v2310_v19  ;;  %v2359_v44 = vsel %vm611_vm7, %v2336_v36, 0.0 }
 0x876   :  { %2360 = vadd.xlane.f32.xlu0 %v2359_v44 }
 0x877   :  { %v14340_v40 = vsub.f32 %v14281_v41, %v2319_v38  ;;  %v14394_v38 = vld [vmem:[%s17322_s12] ss:$0 sm:$0xff] }
 0x879   :  { %v2337_v27 = vmul.f32 %v14340_v40, %v14340_v40 }
 0x87b   :  { %v2362_v26 = vsel %vm611_vm7, %v2337_v27, 0.0 }
 0x87c   :  { %2363 = vadd.xlane.f32.xlu1 %v2362_v26 }
 0x8ed   :  { %v2340_v25 = vpop.xlane.xlu1 %2339 }
 0x8ee   :  { %v2365_v18 = vmul.f32 0.03125, %v2340_v25  ;;  %v2462_v25 = vld [vmem:[%s17324_s14 + $0xd0] sm:$0xff] }
 0x8ef   :  { %v2343_v5 = vpop.xlane.xlu0 %2342 }
 0x8f0   :  { %v2374_v28 = vadd.f32 1e-05, %v2365_v18  ;;  %v2366_v54 = vmul.f32 0.03125, %v2343_v5  ;;  %v2455_v18 = vld [vmem:[%s17324_s14 + $0x98] sm:$0xff] }
 0x8f1   :  { %v2346_v63 = vpop.xlane.xlu1 %2345  ;;  %v2463_v5 = vld [vmem:[%s17324_s14 + $0xd8] sm:$0xff] }
 0x8f2   :  { %12932 = vrsqrt.f32 %v2374_v28  ;;  %v2375_v34 = vadd.f32 1e-05, %v2366_v54  ;;  %v2367_v49 = vmul.f32 0.03125, %v2346_v63 }
 0x8f3   :  { %v2349_v3 = vpop.xlane.xlu0 %2348 }
 0x8f4   :  { %12934 = vrsqrt.f32 %v2375_v34  ;;  %v2376_v22 = vadd.f32 1e-05, %v2367_v49  ;;  %v2368_v32 = vmul.f32 0.03125, %v2349_v3  ;;  %v10124_v49 = vcombine.high %v2455_v18, %v2463_v5  ;;  %v14427_v3 = vld [vmem:[%s17324_s14 + $0x20] sm:$0xff] }
 0x8f6   :  { %12936 = vrsqrt.f32 %v2376_v22  ;;  %v2377_v7 = vadd.f32 1e-05, %v2368_v32  ;;  %v14432_v22 = vld [vmem:[%s17324_s14 + $0x60] sm:$0xff] }
 0x8f8   :  { %12938 = vrsqrt.f32 %v2377_v7  ;;  %v14442_v7 = vld [vmem:[%s17324_s14 + $0x28] sm:$0xff] }
 0x8f9   :  { %v2352_v47 = vpop.xlane.xlu1 %2351 }
 0x8fa   :  { %v2369_v20 = vmul.f32 0.03125, %v2352_v47  ;;  %v14447_v47 = vld [vmem:[%s17324_s14 + $0x68] sm:$0xff] }
 0x8fb   :  { %v2355_v36 = vpop.xlane.xlu0 %2354  ;;  %v10112_v55 = vcombine.high %v14442_v7, %v14447_v47 }
 0x8fc   :  { %v12933_v19 = vpop.eup %12932  ;;  %v2378_v44 = vadd.f32 1e-05, %v2369_v20  ;;  %v2370_v27 = vmul.f32 0.03125, %v2355_v36 }
 0x8fd   :  { %v2392_v26 = vmul.f32 %v12933_v19, %v14292_v56  ;;  %v2454_v56 = vld [vmem:[%s17324_s14 + $0x90] sm:$0xff] }
 0x8fe   :  { %v12935_v60 = vpop.eup %12934  ;;  %12940 = vrsqrt.f32 %v2378_v44  ;;  %v2379_v4 = vadd.f32 1e-05, %v2370_v27  ;;  %v10122_v34 = vcombine.high %v2454_v56, %v2462_v25  ;;  %v10121_v36 = vcombine.low %v2454_v56, %v2462_v25 }
 0x8ff   :  { %v2407_v45 = vmul.f32 %v14394_v38, %v2392_v26  ;;  %v2393_v29 = vmul.f32 %v12935_v60, %v14295_v30  ;;  %v10123_v27 = vcombine.low %v2455_v18, %v2463_v5  ;;  %v10110_v26 = vcombine.high %v14427_v3, %v14432_v22  ;;  %v2465_v5 = vld [vmem:[%s17324_s14 + $0xe8] sm:$0xff] }
 0x900   :  { %v12937_v43 = vpop.eup %12936  ;;  %12942 = vrsqrt.f32 %v2379_v4 }
 0x901   :  { %v2408_v51 = vmul.f32 %v14394_v38, %v2393_v29  ;;  %v2358_v9 = vpop.xlane.xlu1 %2357  ;;  %v2422_v0 = vadd.f32 %v14402_v16, %v2407_v45  ;;  %v2394_v58 = vmul.f32 %v12937_v43, %v14300_v62 }
 0x902   :  { %v12939_v42 = vpop.eup %12938  ;;  %v2371_v53 = vmul.f32 0.03125, %v2358_v9 }
 0x903   :  { %v2423_v30 = vadd.f32 %v14402_v16, %v2408_v51  ;;  %v2395_v10 = vmul.f32 %v12939_v42, %v14306_v15  ;;  %v2361_v50 = vpop.xlane.xlu0 %2360  ;;  %v2409_v32 = vmul.f32 %v14394_v38, %v2394_v58 }
 0x904   :  { %v2380_v28 = vadd.f32 1e-05, %v2371_v53  ;;  %v2372_v54 = vmul.f32 0.03125, %v2361_v50 }
 0x905   :  { %v14421_v63 = vpack.c.bf16 %v2423_v30, %v2422_v0  ;;  %v2410_v62 = vmul.f32 %v14394_v38, %v2395_v10  ;;  %v2424_v13 = vadd.f32 %v14402_v16, %v2409_v32 }
 0x906   :  { %12944 = vrsqrt.f32 %v2380_v28  ;;  %v2381_v15 = vadd.f32 1e-05, %v2372_v54  ;;  %v10109_v28 = vcombine.low %v14427_v3, %v14432_v22  ;;  %v10111_v54 = vcombine.low %v14442_v7, %v14447_v47  ;;  %v2443_v3 = vld [vmem:[%s17324_s14 + $0x38] sm:$0xff] }
 0x907   :  { %10133 = vmatmul.mubr.msk.bf16.vlgmr.msra.gmra.mrb[64].mxu0 %vm611_vm7, %v14421_v63  ;;  %10138 = vmatmul.mubr.msk.bf16.vlgmr.msra.gmra.mrb[60].mxu1 %vm611_vm7, %v14421_v63  ;;  %v2425_v19 = vadd.f32 %v14402_v16, %v2410_v62  ;;  %v2451_v22 = vld [vmem:[%s17324_s14 + $0x78] sm:$0xff] }
 0x908   :  { %v12941_v20 = vpop.eup %12940  ;;  %12946 = vrsqrt.f32 %v2381_v15  ;;  %2890 = vmatpush1.bf16.msra.mxu0 %v10105_v37  ;;  %2769 = vmatprep.mubr.bf16.mxu0 %v17418_v6 }
 0x909   :  { %v2364_v44 = vpop.xlane.xlu1 %2363  ;;  %2850 = vmatprep.mubr.bf16.mxu1 %v17418_v6  ;;  %2971 = vmatpush1.bf16.msra.mxu1 %v10107_v24  ;;  %v2396_v37 = vmul.f32 %v12941_v20, %v14316_v57  ;;  %v14465_v12 = vpack.c.bf16 %v2425_v19, %v2424_v13  ;;  %v10116_v20 = vcombine.high %v2443_v3, %v2451_v22  ;;  %v2466_v19 = vld [vmem:[%s17324_s14 + $0xf0] sm:$0xff] }
 0x90a   :  { %v12943_v60 = vpop.eup %12942  ;;  %v2373_v4 = vmul.f32 0.03125, %v2364_v44  ;;  %2891 = vmatprep.subr.bf16.mxu0 %v10122_v34  ;;  %2972 = vmatprep.subr.bf16.mxu1 %v10124_v49  ;;  %v2442_v34 = vld [vmem:[%s17324_s14 + $0x30] sm:$0xff]  ;;  %v2459_v44 = vld [vmem:[%s17324_s14 + $0xb8] sm:$0xff] }
 0x90b   :  { %v2397_v45 = vmul.f32 %v12943_v60, %v14319_v39  ;;  %v2411_v24 = vmul.f32 %v14394_v38, %v2396_v37  ;;  %v2450_v49 = vld [vmem:[%s17324_s14 + $0x70] sm:$0xff]  ;;  %v10115_v60 = vcombine.low %v2443_v3, %v2451_v22  ;;  %v12541_v3 = vld [vmem:[%s17326_s16 + $0xb8] sm:$0xff]   ;;  %v12544_v22 = vld [vmem:[%s17326_s16 + $0x1c0] sm:$0xff]  }
 0x90c   :  { %v2382_v29 = vadd.f32 1e-05, %v2373_v4  ;;  %2892 = vmatpush1.bf16.msra.mxu0 %v10121_v36  ;;  %v10114_v47 = vcombine.high %v2442_v34, %v2450_v49  ;;  %v2458_v36 = vld [vmem:[%s17324_s14 + $0xb0] sm:$0xff] }
 0x90d   :  { %v2412_v8 = vmul.f32 %v14394_v38, %v2397_v45  ;;  %2973 = vmatpush1.bf16.msra.mxu1 %v10123_v27  ;;  %3051 = vmatprep.subr.bf16.mxu0 %v10110_v26  ;;  %v2426_v51 = vadd.f32 %v14402_v16, %v2411_v24  ;;  %v2467_v27 = vld [vmem:[%s17324_s14 + $0xf8] sm:$0xff]  ;;  %v10113_v26 = vcombine.low %v2442_v34, %v2450_v49  ;;  %v12510_v45 = vld [vmem:[%s17326_s16 + $0x40] sm:$0xff]  }
 0x90e   :  { %12948 = vrsqrt.f32 %v2382_v29  ;;  %3132 = vmatprep.subr.bf16.mxu1 %v10112_v55  ;;  %v10130_v4 = vcombine.high %v2458_v36, %v2466_v19  ;;  %v10132_v55 = vcombine.high %v2459_v44, %v2467_v27  ;;  %v10129_v13 = vcombine.low %v2458_v36, %v2466_v19  ;;  %v12512_v29 = vld [vmem:[%s17326_s16 + $0xc0] sm:$0xff]   ;;  %v12539_v34 = vld [vmem:[%s17326_s16 + $0xf8] sm:$0xff]  }
 0x90f   :  { %10134 = vmatmul.mubr.msk.bf16.gmra.mrb[68].mxu0 %vm611_vm7, %v14465_v12  ;;  %10139 = vmatmul.mubr.msk.bf16.gmra.mrb[64].mxu1 %vm611_vm7, %v14465_v12  ;;  %v2427_v39 = vadd.f32 %v14402_v16, %v2412_v8  ;;  %v10131_v37 = vcombine.low %v2459_v44, %v2467_v27  ;;  %v12511_v8 = vld [vmem:[%s17326_s16] sm:$0xff]   ;;  %v12540_v49 = vld [vmem:[%s17326_s16 + $0x38] sm:$0xff]  }
 0x910   :  { %v12945_v57 = vpop.eup %12944  ;;  %2779 = vmatprep.mubr.bf16.mxu0 %v17418_v6  ;;  %2860 = vmatprep.mubr.bf16.mxu1 %v17418_v6  ;;  %v12513_v24 = vld [vmem:[%s17326_s16 + $0x80] sm:$0xff]  }
 0x911   :  { %v2398_v9 = vmul.f32 %v12945_v57, %v14328_v33  ;;  %v14479_v53 = vpack.c.bf16 %v2427_v39, %v2426_v51  ;;  %v12514_v57 = vld [vmem:[%s17326_s16 + $0x48] sm:$0xff]  }
 0x912   :  { %v12947_v43 = vpop.eup %12946  ;;  %v12516_v39 = vld [vmem:[%s17326_s16 + $0xc8] sm:$0xff]  }
 0x913   :  { %v2399_v42 = vmul.f32 %v12947_v43, %v14331_v35  ;;  %v2413_v0 = vmul.f32 %v14394_v38, %v2398_v9  ;;  %v12515_v43 = vld [vmem:[%s17326_s16 + $0x8] sm:$0xff]   ;;  %v12520_v9 = vld [vmem:[%s17326_s16 + $0xd0] sm:$0xff]  }
 0x914   :  { %v12517_v51 = vld [vmem:[%s17326_s16 + $0x88] sm:$0xff]  }
 0x915   :  { %v2414_v56 = vmul.f32 %v14394_v38, %v2399_v42  ;;  %v2428_v58 = vadd.f32 %v14402_v16, %v2413_v0  ;;  %v12519_v42 = vld [vmem:[%s17326_s16 + $0x10] sm:$0xff]   ;;  %v12522_v0 = vld [vmem:[%s17326_s16 + $0x58] sm:$0xff]  }
 0x917   :  { %10135 = vmatmul.mubr.msk.bf16.gmra.mrb[72].mxu0 %vm611_vm7, %v14479_v53  ;;  %10140 = vmatmul.mubr.msk.bf16.gmra.mrb[68].mxu1 %vm611_vm7, %v14479_v53  ;;  %v2429_v33 = vadd.f32 %v14402_v16, %v2414_v56  ;;  %v12521_v56 = vld [vmem:[%s17326_s16 + $0x90] sm:$0xff]  }
 0x918   :  { %v12949_v30 = vpop.eup %12948  ;;  %2789 = vmatprep.mubr.bf16.mxu0 %v17418_v6  ;;  %2870 = vmatprep.mubr.bf16.mxu1 %v17418_v6 }
 0x919   :  { %v2400_v35 = vmul.f32 %v12949_v30, %v14340_v40  ;;  %v14492_v10 = vpack.c.bf16 %v2429_v33, %v2428_v58  ;;  %v2456_v40 = vld [vmem:[%s17324_s14 + $0xa0] sm:$0xff]  ;;  %v12524_v30 = vld [vmem:[%s17326_s16 + $0xd8] sm:$0xff]  }
 0x91a   :  { %v12523_v33 = vld [vmem:[%s17326_s16 + $0x18] sm:$0xff]   ;;  %v12527_v58 = vld [vmem:[%s17326_s16 + $0xe0] sm:$0xff]  }
 0x91b   :  { %v2415_v50 = vmul.f32 %v14394_v38, %v2400_v35  ;;  %v2464_v38 = vld [vmem:[%s17324_s14 + $0xe0] sm:$0xff]  ;;  %v12525_v35 = vld [vmem:[%s17326_s16 + $0x98] sm:$0xff]  }
 0x91c   :  { %v10126_v62 = vcombine.high %v2456_v40, %v2464_v38  ;;  %v10125_v32 = vcombine.low %v2456_v40, %v2464_v38  ;;  %v12530_v40 = vld [vmem:[%s17326_s16 + $0x68] sm:$0xff]  }
 0x91d   :  { %v2430_v25 = vadd.f32 %v14402_v16, %v2415_v50  ;;  %v2457_v16 = vld [vmem:[%s17324_s14 + $0xa8] sm:$0xff]  ;;  %v12528_v50 = vld [vmem:[%s17326_s16 + $0x20] sm:$0xff]  }
 0x91e   :  { %v10128_v15 = vcombine.high %v2457_v16, %v2465_v5  ;;  %v10127_v7 = vcombine.low %v2457_v16, %v2465_v5  ;;  %v12531_v38 = vld [vmem:[%s17326_s16 + $0xe8] sm:$0xff]  }
 0x91f   :  { %10136 = vmatmul.mubr.msk.bf16.gmra.mrb[76].mxu0 %vm611_vm7, %v14492_v10  ;;  %10141 = vmatmul.mubr.msk.bf16.gmra.mrb[72].mxu1 %vm611_vm7, %v14492_v10  ;;  %v14502_v18 = vpack.c.bf16 %v2430_v25, %v2430_v25  ;;  %v12529_v25 = vld [vmem:[%s17326_s16 + $0xa0] sm:$0xff]   ;;  %v12532_v16 = vld [vmem:[%s17326_s16 + $0x28] sm:$0xff]  }
 0x920   :  { %2799 = vmatprep.mubr.bf16.mxu0 %v17418_v6  ;;  %2880 = vmatprep.mubr.bf16.mxu1 %v17418_v6  ;;  %v12533_v5 = vld [vmem:[%s17326_s16 + $0xa8] sm:$0xff]  }
 0x927   :  { %10137 = vmatmul.mubr.msk.bf16.gmra.mrb[80].mxu0 %vm611_vm7, %v14502_v18  ;;  %10142 = vmatmul.mubr.msk.bf16.gmra.mrb[76].mxu1 %vm611_vm7, %v14502_v18 }
 0x928   :  { %2921 = vmatprep.mubr.bf16.mxu0 %v17418_v6  ;;  %3002 = vmatprep.mubr.bf16.mxu1 %v17418_v6 }
 0x92f   :  { %10143 = vmatmul.mubr.msk.bf16.vlgmr.msra.gmra.mrb[84].mxu0 %vm611_vm7, %v14421_v63  ;;  %10148 = vmatmul.mubr.msk.bf16.vlgmr.msra.gmra.mrb[80].mxu1 %vm611_vm7, %v14421_v63 }
 0x930   :  { %3052 = vmatpush1.bf16.msra.mxu0 %v10109_v28  ;;  %2931 = vmatprep.mubr.bf16.mxu0 %v17418_v6  ;;  %v12535_v28 = vld [vmem:[%s17326_s16 + $0xf0] sm:$0xff]  }
 0x931   :  { %3012 = vmatprep.mubr.bf16.mxu1 %v17418_v6  ;;  %3133 = vmatpush1.bf16.msra.mxu1 %v10111_v54  ;;  %v12536_v54 = vld [vmem:[%s17326_s16 + $0x30] sm:$0xff]  }
 0x932   :  { %3053 = vmatprep.subr.bf16.mxu0 %v10126_v62  ;;  %3134 = vmatprep.subr.bf16.mxu1 %v10128_v15  ;;  %v12537_v62 = vld [vmem:[%s17326_s16 + $0xb0] sm:$0xff]   ;;  %v12538_v15 = vld [vmem:[%s17326_s16 + $0x78] sm:$0xff]  }
 0x934   :  { %3054 = vmatpush1.bf16.msra.mxu0 %v10125_v32  ;;  %v17419_v32 = vld [vmem:[#allocation11_spill] sm:$0xff] }
 0x935   :  { %3135 = vmatpush1.bf16.msra.mxu1 %v10127_v7  ;;  %3213 = vmatprep.subr.bf16.mxu0 %v10114_v47  ;;  %v14741_v7 = vsub.s32 0, %v17419_v32  ;;  %v14744_v47 = vsub.s32 2, %v17419_v32  ;;  %v14752_v36 = vsub.s32 1, %v17419_v32  ;;  %v14755_v19 = vsub.s32 3, %v17419_v32 }
 0x936   :  { %3294 = vmatprep.subr.bf16.mxu1 %v10116_v20  ;;  %v14749_v20 = vld [vmem:[%s17325_s15] sm:$0xff] }
 0x937   :  { %10144 = vmatmul.mubr.msk.bf16.gmra.mrb[88].mxu0 %vm611_vm7, %v14465_v12  ;;  %10149 = vmatmul.mubr.msk.bf16.gmra.mrb[84].mxu1 %vm611_vm7, %v14465_v12  ;;  %17420 = vst [vmem:[#allocation11_spill] sm:$0xff] %v14741_v7  ;;  %17421 = vst [vmem:[#allocation21_spill] sm:$0xff] %v14744_v47  ;;  %v14763_v44 = vrot.slane %v14749_v20, %v14744_v47  ;;  %v14767_v27 = vrot.slane %v14749_v20, %v14752_v36 }
 0x938   :  { %2941 = vmatprep.mubr.bf16.mxu0 %v17418_v6  ;;  %3022 = vmatprep.mubr.bf16.mxu1 %v17418_v6  ;;  %17422 = vst [vmem:[#allocation22_spill] sm:$0xff] %v14752_v36  ;;  %17423 = vst [vmem:[#allocation23_spill] sm:$0xff] %v14755_v19 }
 0x93f   :  { %10145 = vmatmul.mubr.msk.bf16.gmra.mrb[92].mxu0 %vm611_vm7, %v14479_v53  ;;  %10150 = vmatmul.mubr.msk.bf16.gmra.mrb[88].mxu1 %vm611_vm7, %v14479_v53 }
 0x940   :  { %2951 = vmatprep.mubr.bf16.mxu0 %v17418_v6  ;;  %3032 = vmatprep.mubr.bf16.mxu1 %v17418_v6 }
 0x947   :  { %10146 = vmatmul.mubr.msk.bf16.gmra.mrb[96].mxu0 %vm611_vm7, %v14492_v10  ;;  %10151 = vmatmul.mubr.msk.bf16.gmra.mrb[92].mxu1 %vm611_vm7, %v14492_v10 }
 0x948   :  { %2961 = vmatprep.mubr.bf16.mxu0 %v17418_v6  ;;  %3042 = vmatprep.mubr.bf16.mxu1 %v17418_v6 }
 0x94f   :  { %10147 = vmatmul.mubr.msk.bf16.gmra.mrb[100].mxu0 %vm611_vm7, %v14502_v18  ;;  %10152 = vmatmul.mubr.msk.bf16.gmra.mrb[96].mxu1 %vm611_vm7, %v14502_v18 }
 0x950   :  { %3083 = vmatprep.mubr.bf16.mxu0 %v17418_v6  ;;  %3164 = vmatprep.mubr.bf16.mxu1 %v17418_v6 }
 0x957   :  { %10153 = vmatmul.mubr.msk.bf16.vlgmr.msra.gmra.mrb[104].mxu0 %vm611_vm7, %v14421_v63  ;;  %10158 = vmatmul.mubr.msk.bf16.vlgmr.msra.gmra.mrb[100].mxu1 %vm611_vm7, %v14421_v63 }
 0x958   :  { %3214 = vmatpush1.bf16.msra.mxu0 %v10113_v26  ;;  %3093 = vmatprep.mubr.bf16.mxu0 %v17418_v6  ;;  %v14771_v26 = vrot.slane %v14749_v20, %v14755_v19 }
 0x959   :  { %3174 = vmatprep.mubr.bf16.mxu1 %v17418_v6  ;;  %3295 = vmatpush1.bf16.msra.mxu1 %v10115_v60 }
 0x95a   :  { %3215 = vmatprep.subr.bf16.mxu0 %v10130_v4  ;;  %3296 = vmatprep.subr.bf16.mxu1 %v10132_v55 }
 0x95c   :  { %3216 = vmatpush1.bf16.msra.mxu0 %v10129_v13 }
 0x95d   :  { %3297 = vmatpush1.bf16.msra.mxu1 %v10131_v37  ;;  %11035 = vmatprep.subr.bf16.mxu0 %v12510_v45 }
 0x95e   :  { %11081 = vmatprep.subr.bf16.mxu1 %v12512_v29 }
 0x95f   :  { %10154 = vmatmul.mubr.msk.bf16.gmra.mrb[108].mxu0 %vm611_vm7, %v14465_v12  ;;  %10159 = vmatmul.mubr.msk.bf16.gmra.mrb[104].mxu1 %vm611_vm7, %v14465_v12 }
 0x960   :  { %3103 = vmatprep.mubr.bf16.mxu0 %v17418_v6  ;;  %3184 = vmatprep.mubr.bf16.mxu1 %v17418_v6 }
 0x967   :  { %10155 = vmatmul.mubr.msk.bf16.gmra.mrb[112].mxu0 %vm611_vm7, %v14479_v53  ;;  %10160 = vmatmul.mubr.msk.bf16.gmra.mrb[108].mxu1 %vm611_vm7, %v14479_v53 }
 0x968   :  { %3113 = vmatprep.mubr.bf16.mxu0 %v17418_v6  ;;  %3194 = vmatprep.mubr.bf16.mxu1 %v17418_v6 }
 0x96f   :  { %10156 = vmatmul.mubr.msk.bf16.gmra.mrb[116].mxu0 %vm611_vm7, %v14492_v10  ;;  %10161 = vmatmul.mubr.msk.bf16.gmra.mrb[112].mxu1 %vm611_vm7, %v14492_v10 }
 0x970   :  { %3123 = vmatprep.mubr.bf16.mxu0 %v17418_v6  ;;  %3204 = vmatprep.mubr.bf16.mxu1 %v17418_v6 }
 0x977   :  { %10157 = vmatmul.mubr.msk.bf16.gmra.mrb[120].mxu0 %vm611_vm7, %v14502_v18  ;;  %10162 = vmatmul.mubr.msk.bf16.gmra.mrb[116].mxu1 %vm611_vm7, %v14502_v18 }
 0x978   :  { %3245 = vmatprep.mubr.bf16.mxu0 %v17418_v6  ;;  %3326 = vmatprep.mubr.bf16.mxu1 %v17418_v6 }
 0x97f   :  { %10163 = vmatmul.mubr.msk.bf16.vlgmr.msra.gmra.mrb[124].mxu0 %vm611_vm7, %v14421_v63  ;;  %10168 = vmatmul.mubr.msk.bf16.vlgmr.msra.gmra.mrb[120].mxu1 %vm611_vm7, %v14421_v63  ;;  %v12518_v63 = vld [vmem:[%s17326_s16 + $0x50] sm:$0xff]  }
 0x980   :  { %3255 = vmatprep.mubr.bf16.mxu0 %v17418_v6  ;;  %3336 = vmatprep.mubr.bf16.mxu1 %v17418_v6 }
 0x981   :  { %11036 = vmatpush3.bf16.msra.mxu0 %v12511_v8  ;;  %11082 = vmatpush3.bf16.msra.mxu1 %v12513_v24 }
 0x982   :  { %11037 = vmatprep.subr.bf16.mxu0 %v12514_v57  ;;  %11083 = vmatprep.subr.bf16.mxu1 %v12516_v39 }
 0x985   :  { %11038 = vmatpush3.bf16.msra.mxu0 %v12515_v43  ;;  %11084 = vmatpush3.bf16.msra.mxu1 %v12517_v51 }
 0x986   :  { %11039 = vmatprep.subr.bf16.mxu0 %v12518_v63  ;;  %11085 = vmatprep.subr.bf16.mxu1 %v12520_v9 }
 0x987   :  { %10164 = vmatmul.mubr.msk.bf16.gmra.mrb[128].mxu0 %vm611_vm7, %v14465_v12  ;;  %10169 = vmatmul.mubr.msk.bf16.gmra.mrb[124].mxu1 %vm611_vm7, %v14465_v12  ;;  %v12526_v12 = vld [vmem:[%s17326_s16 + $0x60] sm:$0xff]  }
 0x988   :  { %3265 = vmatprep.mubr.bf16.mxu0 %v17418_v6  ;;  %3346 = vmatprep.mubr.bf16.mxu1 %v17418_v6 }
 0x989   :  { %11040 = vmatpush3.bf16.msra.mxu0 %v12519_v42  ;;  %11086 = vmatpush3.bf16.msra.mxu1 %v12521_v56 }
 0x98a   :  { %11041 = vmatprep.subr.bf16.mxu0 %v12522_v0  ;;  %11087 = vmatprep.subr.bf16.mxu1 %v12524_v30 }
 0x98d   :  { %11042 = vmatpush3.bf16.msra.mxu0 %v12523_v33  ;;  %11088 = vmatpush3.bf16.msra.mxu1 %v12525_v35 }
 0x98e   :  { %11043 = vmatprep.subr.bf16.mxu0 %v12526_v12  ;;  %11089 = vmatprep.subr.bf16.mxu1 %v12527_v58 }
 0x98f   :  { %10165 = vmatmul.mubr.msk.bf16.gmra.mrb[132].mxu0 %vm611_vm7, %v14479_v53  ;;  %10170 = vmatmul.mubr.msk.bf16.gmra.mrb[128].mxu1 %vm611_vm7, %v14479_v53  ;;  %v12534_v53 = vld [vmem:[%s17326_s16 + $0x70] sm:$0xff]  }
 0x990   :  { %3275 = vmatprep.mubr.bf16.mxu0 %v17418_v6  ;;  %3356 = vmatprep.mubr.bf16.mxu1 %v17418_v6 }
 0x991   :  { %11044 = vmatpush3.bf16.msra.mxu0 %v12528_v50  ;;  %11090 = vmatpush3.bf16.msra.mxu1 %v12529_v25 }
 0x992   :  { %11045 = vmatprep.subr.bf16.mxu0 %v12530_v40  ;;  %11091 = vmatprep.subr.bf16.mxu1 %v12531_v38 }
 0x995   :  { %11046 = vmatpush3.bf16.msra.mxu0 %v12532_v16  ;;  %11092 = vmatpush3.bf16.msra.mxu1 %v12533_v5 }
 0x996   :  { %11047 = vmatprep.subr.bf16.mxu0 %v12534_v53  ;;  %11093 = vmatprep.subr.bf16.mxu1 %v12535_v28  ;;  %v12543_v28 = vld [vmem:[%s17326_s16 + $0x100] sm:$0xff]  }
 0x997   :  { %10166 = vmatmul.mubr.msk.bf16.gmra.mrb[136].mxu0 %vm611_vm7, %v14492_v10  ;;  %10171 = vmatmul.mubr.msk.bf16.gmra.mrb[132].mxu1 %vm611_vm7, %v14492_v10  ;;  %v12542_v10 = vld [vmem:[%s17326_s16 + $0x140] sm:$0xff]  }
 0x998   :  { %3285 = vmatprep.mubr.bf16.mxu0 %v17418_v6  ;;  %3366 = vmatprep.mubr.bf16.mxu1 %v17418_v6 }
 0x999   :  { %11048 = vmatpush3.bf16.msra.mxu0 %v12536_v54  ;;  %11094 = vmatpush3.bf16.msra.mxu1 %v12537_v62  ;;  %v12545_v54 = vld [vmem:[%s17326_s16 + $0x180] sm:$0xff]  }
 0x99a   :  { %11049 = vmatprep.subr.bf16.mxu0 %v12538_v15  ;;  %11095 = vmatprep.subr.bf16.mxu1 %v12539_v34 }
 0x99d   :  { %11050 = vmatpush3.bf16.msra.mxu0 %v12540_v49  ;;  %11096 = vmatpush3.bf16.msra.mxu1 %v12541_v3  ;;  %v12546_v3 = vld [vmem:[%s17326_s16 + $0x148] sm:$0xff]  }
 0x99e   :  { %11127 = vmatprep.subr.bf16.mxu0 %v12542_v10  ;;  %11173 = vmatprep.subr.bf16.mxu1 %v12544_v22  ;;  %v12548_v10 = vld [vmem:[%s17326_s16 + $0x1c8] sm:$0xff]  }
 0x99f   :  { %10167 = vmatmul.mubr.msk.bf16.gmra.mrb[140].mxu0 %vm611_vm7, %v14502_v18  ;;  %10172 = vmatmul.mubr.msk.bf16.gmra.mrb[136].mxu1 %vm611_vm7, %v14502_v18  ;;  %v14759_v18 = vrot.slane %v14749_v20, %v14741_v7 }
 0x9da   :  { %v2761_v60 = vpop.f32.mrb[64].mxu0  ;;  %v2842_v4 = vpop.f32.mrb[60].mxu1 }
 0x9db   :  { %v2762_v55 = vadd.f32 %v2761_v60, %v14759_v18  ;;  %v2843_v13 = vadd.f32 %v2842_v4, %v14763_v44  ;;  %v2763_v37 = vpop.f32.mrb[65].mxu0  ;;  %v2844_v45 = vpop.f32.mrb[61].mxu1 }
 0x9dc   :  { %v2764_v29 = vadd.f32 %v2763_v37, %v14767_v27  ;;  %v2845_v8 = vadd.f32 %v2844_v45, %v14771_v26  ;;  %v2765_v24 = vpop.f32.mrb[66].mxu0  ;;  %v2846_v57 = vpop.f32.mrb[62].mxu1 }
 0x9dd   :  { %v2766_v39 = vadd.f32 %v2765_v24, %v14759_v18  ;;  %v2847_v43 = vadd.f32 %v2846_v57, %v14763_v44  ;;  %v2767_v51 = vpop.f32.mrb[67].mxu0  ;;  %v2848_v63 = vpop.f32.mrb[63].mxu1  ;;  %v3375_v56 = vmax.f32 %v2762_v55, 0.0  ;;  %v3377_v0 = vmax.f32 %v2843_v13, 0.0  ;;  %v12547_v57 = vld [vmem:[%s17326_s16 + $0x108] sm:$0xff]  }
 0x9de   :  { %v2768_v9 = vadd.f32 %v2767_v51, %v14767_v27  ;;  %v2849_v42 = vadd.f32 %v2848_v63, %v14771_v26  ;;  %v3376_v35 = vmax.f32 %v2764_v29, 0.0  ;;  %v3378_v12 = vmax.f32 %v2845_v8, 0.0 }
 0x9df   :  { %v3391_v30 = vmax.f32 %v2766_v39, 0.0  ;;  %v3393_v33 = vmax.f32 %v2847_v43, 0.0  ;;  %v12549_v39 = vld [vmem:[%s17326_s16 + $0x188] sm:$0xff]  }
 0x9e0   :  { %v3392_v58 = vmax.f32 %v2768_v9, 0.0  ;;  %v3394_v50 = vmax.f32 %v2849_v42, 0.0  ;;  %v12550_v42 = vld [vmem:[%s17326_s16 + $0x150] sm:$0xff]  }
 0x9e1   :  { %v3519_v25 = vpack.c.bf16 %v3391_v30, %v3375_v56  ;;  %v3521_v40 = vpack.c.bf16 %v3393_v33, %v3377_v0  ;;  %v12552_v56 = vld [vmem:[%s17326_s16 + $0x1d0] sm:$0xff]  }
 0x9e2   :  { %v2771_v38 = vpop.f32.mrb[68].mxu0  ;;  %v2852_v16 = vpop.f32.mrb[64].mxu1  ;;  %v3520_v5 = vpack.c.bf16 %v3392_v58, %v3376_v35  ;;  %v3522_v53 = vpack.c.bf16 %v3394_v50, %v3378_v12 }
 0x9e3   :  { %v2772_v62 = vadd.f32 %v2771_v38, %v14759_v18  ;;  %v2853_v15 = vadd.f32 %v2852_v16, %v14763_v44  ;;  %v2773_v34 = vpop.f32.mrb[69].mxu0  ;;  %v2854_v49 = vpop.f32.mrb[65].mxu1  ;;  %v12551_v16 = vld [vmem:[%s17326_s16 + $0x110] sm:$0xff]  }
 0x9e4   :  { %v2774_v22 = vadd.f32 %v2773_v34, %v14767_v27  ;;  %v2855_v60 = vadd.f32 %v2854_v49, %v14771_v26  ;;  %v2775_v4 = vpop.f32.mrb[70].mxu0  ;;  %v2856_v55 = vpop.f32.mrb[66].mxu1  ;;  %4655 = vmatprep.mubr.bf16.mxu0 %v3520_v5  ;;  %4727 = vmatprep.mubr.bf16.mxu1 %v3522_v53  ;;  %v12553_v5 = vld [vmem:[%s17326_s16 + $0x190] sm:$0xff]   ;;  %v12556_v34 = vld [vmem:[%s17326_s16 + $0x1d8] sm:$0xff]  }
 0x9e5   :  { %v2776_v13 = vadd.f32 %v2775_v4, %v14759_v18  ;;  %v2857_v37 = vadd.f32 %v2856_v55, %v14763_v44  ;;  %v2777_v45 = vpop.f32.mrb[71].mxu0  ;;  %v2858_v29 = vpop.f32.mrb[67].mxu1  ;;  %4656 = vmatmul.mubr.bf16.vlgmr.msra.gmra.mrb[144].mxu0 %v3519_v25  ;;  %4728 = vmatmul.mubr.bf16.vlgmr.msra.gmra.mrb[140].mxu1 %v3521_v40  ;;  %v3407_v43 = vmax.f32 %v2772_v62, 0.0  ;;  %v3409_v51 = vmax.f32 %v2853_v15, 0.0  ;;  %v12554_v15 = vld [vmem:[%s17326_s16 + $0x158] sm:$0xff]  }
 0x9e6   :  { %v2778_v8 = vadd.f32 %v2777_v45, %v14767_v27  ;;  %v2859_v24 = vadd.f32 %v2858_v29, %v14771_v26  ;;  %11128 = vmatpush3.bf16.msra.mxu0 %v12543_v28  ;;  %11174 = vmatpush3.bf16.msra.mxu1 %v12545_v54  ;;  %v3408_v0 = vmax.f32 %v2774_v22, 0.0  ;;  %v3410_v30 = vmax.f32 %v2855_v60, 0.0  ;;  %v12555_v29 = vld [vmem:[%s17326_s16 + $0x118] sm:$0xff]  }
 0x9e7   :  { %v3423_v63 = vmax.f32 %v2776_v13, 0.0  ;;  %v3425_v9 = vmax.f32 %v2857_v37, 0.0  ;;  %11129 = vmatprep.subr.bf16.mxu0 %v12546_v3  ;;  %11175 = vmatprep.subr.bf16.mxu1 %v12548_v10 }
 0x9e8   :  { %v3424_v33 = vmax.f32 %v2778_v8, 0.0  ;;  %v3426_v35 = vmax.f32 %v2859_v24, 0.0  ;;  %v12557_v8 = vld [vmem:[%s17326_s16 + $0x198] sm:$0xff]  }
 0x9e9   :  { %v3535_v12 = vpack.c.bf16 %v3423_v63, %v3407_v43  ;;  %v3537_v58 = vpack.c.bf16 %v3425_v9, %v3409_v51  ;;  %v12558_v51 = vld [vmem:[%s17326_s16 + $0x160] sm:$0xff]  }
 0x9ea   :  { %v2781_v50 = vpop.f32.mrb[72].mxu0  ;;  %v2862_v25 = vpop.f32.mrb[68].mxu1  ;;  %v3536_v40 = vpack.c.bf16 %v3424_v33, %v3408_v0  ;;  %v3538_v38 = vpack.c.bf16 %v3426_v35, %v3410_v30  ;;  %11130 = vmatpush3.bf16.msra.mxu0 %v12547_v57  ;;  %11176 = vmatpush3.bf16.msra.mxu1 %v12549_v39  ;;  %v12559_v63 = vld [vmem:[%s17326_s16 + $0x1e0] sm:$0xff]  }
 0x9eb   :  { %v2782_v53 = vadd.f32 %v2781_v50, %v14759_v18  ;;  %v2863_v28 = vadd.f32 %v2862_v25, %v14763_v44  ;;  %v2783_v54 = vpop.f32.mrb[73].mxu0  ;;  %v2864_v62 = vpop.f32.mrb[69].mxu1  ;;  %11131 = vmatprep.subr.bf16.mxu0 %v12550_v42  ;;  %11177 = vmatprep.subr.bf16.mxu1 %v12552_v56  ;;  %v12560_v25 = vld [vmem:[%s17326_s16 + $0x120] sm:$0xff]  }
 0x9ec   :  { %v2784_v49 = vadd.f32 %v2783_v54, %v14767_v27  ;;  %v2865_v3 = vadd.f32 %v2864_v62, %v14771_v26  ;;  %v2785_v10 = vpop.f32.mrb[74].mxu0  ;;  %v2866_v22 = vpop.f32.mrb[70].mxu1  ;;  %4663 = vmatprep.mubr.bf16.mxu0 %v3536_v40  ;;  %4735 = vmatprep.mubr.bf16.mxu1 %v3538_v38  ;;  %v12561_v40 = vld [vmem:[%s17326_s16 + $0x1a0] sm:$0xff]   ;;  %v12563_v54 = vld [vmem:[%s17326_s16 + $0x1e8] sm:$0xff]  }
 0x9ed   :  { %v2786_v60 = vadd.f32 %v2785_v10, %v14759_v18  ;;  %v2867_v4 = vadd.f32 %v2866_v22, %v14763_v44  ;;  %v2787_v55 = vpop.f32.mrb[75].mxu0  ;;  %v2868_v13 = vpop.f32.mrb[71].mxu1  ;;  %4664 = vmatmul.mubr.bf16.gmra.mrb[148].mxu0 %v3535_v12  ;;  %4736 = vmatmul.mubr.bf16.gmra.mrb[144].mxu1 %v3537_v58  ;;  %v3439_v24 = vmax.f32 %v2782_v53, 0.0  ;;  %v3441_v57 = vmax.f32 %v2863_v28, 0.0  ;;  %v12562_v28 = vld [vmem:[%s17326_s16 + $0x168] sm:$0xff]  }
 0x9ee   :  { %v2788_v37 = vadd.f32 %v2787_v55, %v14767_v27  ;;  %v2869_v45 = vadd.f32 %v2868_v13, %v14771_v26  ;;  %11132 = vmatpush3.bf16.msra.mxu0 %v12551_v16  ;;  %11178 = vmatpush3.bf16.msra.mxu1 %v12553_v5  ;;  %v3440_v9 = vmax.f32 %v2784_v49, 0.0  ;;  %v3442_v42 = vmax.f32 %v2865_v3, 0.0  ;;  %v12564_v13 = vld [vmem:[%s17326_s16 + $0x128] sm:$0xff]  }
 0x9ef   :  { %v3455_v39 = vmax.f32 %v2786_v60, 0.0  ;;  %v3457_v43 = vmax.f32 %v2867_v4, 0.0  ;;  %11133 = vmatprep.subr.bf16.mxu0 %v12554_v15  ;;  %11179 = vmatprep.subr.bf16.mxu1 %v12556_v34 }
 0x9f0   :  { %v3456_v56 = vmax.f32 %v2788_v37, 0.0  ;;  %v3458_v0 = vmax.f32 %v2869_v45, 0.0  ;;  %v12565_v37 = vld [vmem:[%s17326_s16 + $0x1a8] sm:$0xff]  }
 0x9f1   :  { %v3551_v30 = vpack.c.bf16 %v3455_v39, %v3439_v24  ;;  %v3553_v33 = vpack.c.bf16 %v3457_v43, %v3441_v57  ;;  %v12566_v57 = vld [vmem:[%s17326_s16 + $0x170] sm:$0xff]  }
 0x9f2   :  { %v2791_v35 = vpop.f32.mrb[76].mxu0  ;;  %v2872_v12 = vpop.f32.mrb[72].mxu1  ;;  %v3552_v58 = vpack.c.bf16 %v3456_v56, %v3440_v9  ;;  %v3554_v50 = vpack.c.bf16 %v3458_v0, %v3442_v42  ;;  %11134 = vmatpush3.bf16.msra.mxu0 %v12555_v29  ;;  %11180 = vmatpush3.bf16.msra.mxu1 %v12557_v8  ;;  %v12567_v39 = vld [vmem:[%s17326_s16 + $0x1f0] sm:$0xff]  }
 0x9f3   :  { %v2792_v38 = vadd.f32 %v2791_v35, %v14759_v18  ;;  %v2873_v16 = vadd.f32 %v2872_v12, %v14763_v44  ;;  %v2793_v5 = vpop.f32.mrb[77].mxu0  ;;  %v2874_v53 = vpop.f32.mrb[73].mxu1  ;;  %11135 = vmatprep.subr.bf16.mxu0 %v12558_v51  ;;  %11181 = vmatprep.subr.bf16.mxu1 %v12559_v63  ;;  %v12568_v12 = vld [vmem:[%s17326_s16 + $0x130] sm:$0xff]  }
 0x9f4   :  { %v2794_v62 = vadd.f32 %v2793_v5, %v14767_v27  ;;  %v2875_v15 = vadd.f32 %v2874_v53, %v14771_v26  ;;  %v2795_v34 = vpop.f32.mrb[78].mxu0  ;;  %v2876_v49 = vpop.f32.mrb[74].mxu1  ;;  %4671 = vmatprep.mubr.bf16.mxu0 %v3552_v58  ;;  %4743 = vmatprep.mubr.bf16.mxu1 %v3554_v50  ;;  %v12569_v58 = vld [vmem:[%s17326_s16 + $0x1b0] sm:$0xff]   ;;  %v14889_v5 = vsub.s32 6, %v17419_v32  ;;  %v12570_v53 = vld [vmem:[%s17326_s16 + $0x178] sm:$0xff]  }
 0x9f5   :  { %v2796_v3 = vadd.f32 %v2795_v34, %v14759_v18  ;;  %v2877_v10 = vadd.f32 %v2876_v49, %v14763_v44  ;;  %v2797_v22 = vpop.f32.mrb[79].mxu0  ;;  %v2878_v60 = vpop.f32.mrb[75].mxu1  ;;  %4672 = vmatmul.mubr.bf16.gmra.mrb[152].mxu0 %v3551_v30  ;;  %4744 = vmatmul.mubr.bf16.gmra.mrb[148].mxu1 %v3553_v33  ;;  %v3471_v45 = vmax.f32 %v2792_v38, 0.0  ;;  %v3473_v29 = vmax.f32 %v2873_v16, 0.0 }
 0x9f6   :  { %v2798_v4 = vadd.f32 %v2797_v22, %v14767_v27  ;;  %v2879_v55 = vadd.f32 %v2878_v60, %v14771_v26  ;;  %11136 = vmatpush3.bf16.msra.mxu0 %v12560_v25  ;;  %11182 = vmatpush3.bf16.msra.mxu1 %v12561_v40  ;;  %v3472_v43 = vmax.f32 %v2794_v62, 0.0  ;;  %v3474_v51 = vmax.f32 %v2875_v15, 0.0  ;;  %17425 = vst [vmem:[#allocation25_spill] sm:$0xff] %v14889_v5 }
 0x9f7   :  { %v3487_v8 = vmax.f32 %v2796_v3, 0.0  ;;  %v3489_v24 = vmax.f32 %v2877_v10, 0.0  ;;  %11137 = vmatprep.subr.bf16.mxu0 %v12562_v28  ;;  %11183 = vmatprep.subr.bf16.mxu1 %v12563_v54  ;;  %v14886_v16 = vsub.s32 4, %v17419_v32  ;;  %v14900_v15 = vsub.s32 5, %v17419_v32 }
 0x9f8   :  { %v3488_v63 = vmax.f32 %v2798_v4, 0.0  ;;  %v3490_v9 = vmax.f32 %v2879_v55, 0.0  ;;  %v14903_v34 = vsub.s32 7, %v17419_v32  ;;  %v14911_v4 = vrot.slane %v14749_v20, %v14889_v5  ;;  %v12572_v32 = vld [vmem:[%s17326_s16 + $0x138] sm:$0xff]  }
 0x9f9   :  { %v3567_v42 = vpack.c.bf16 %v3487_v8, %v3471_v45  ;;  %v3569_v56 = vpack.c.bf16 %v3489_v24, %v3473_v29  ;;  %17424 = vst [vmem:[#allocation24_spill] sm:$0xff] %v14886_v16  ;;  %17426 = vst [vmem:[#allocation26_spill] sm:$0xff] %v14900_v15  ;;  %v12573_v55 = vld [vmem:[%s17326_s16 + $0x1b8] sm:$0xff]   ;;  %v14921_v45 = vrot.slane %v14749_v20, %v14900_v15  ;;  %v12574_v8 = vld [vmem:[%s17326_s16 + $0x240] sm:$0xff]  }
 0x9fa   :  { %v2801_v0 = vpop.f32.mrb[80].mxu0  ;;  %v2882_v30 = vpop.f32.mrb[76].mxu1  ;;  %v3568_v33 = vpack.c.bf16 %v3488_v63, %v3472_v43  ;;  %v3570_v35 = vpack.c.bf16 %v3490_v9, %v3474_v51  ;;  %11138 = vmatpush3.bf16.msra.mxu0 %v12564_v13  ;;  %11184 = vmatpush3.bf16.msra.mxu1 %v12565_v37  ;;  %17427 = vst [vmem:[#allocation27_spill] sm:$0xff] %v14903_v34  ;;  %v12576_v24 = vld [vmem:[%s17326_s16 + $0x2c0] sm:$0xff]  }
 0x9fb   :  { %v2802_v50 = vadd.f32 %v2801_v0, %v14759_v18  ;;  %v2883_v25 = vadd.f32 %v2882_v30, %v14763_v44  ;;  %v2803_v40 = vpop.f32.mrb[81].mxu0  ;;  %v2884_v38 = vpop.f32.mrb[77].mxu1  ;;  %11139 = vmatprep.subr.bf16.mxu0 %v12566_v57  ;;  %11185 = vmatprep.subr.bf16.mxu1 %v12567_v39  ;;  %v12571_v18 = vld [vmem:[%s17326_s16 + $0x1f8] sm:$0xff]   ;;  %v14925_v29 = vrot.slane %v14749_v20, %v14903_v34 }
 0x9fc   :  { %v2804_v44 = vadd.f32 %v2803_v40, %v14767_v27  ;;  %v2885_v28 = vadd.f32 %v2884_v38, %v14771_v26  ;;  %v2805_v54 = vpop.f32.mrb[82].mxu0  ;;  %v2886_v62 = vpop.f32.mrb[78].mxu1  ;;  %4679 = vmatprep.mubr.bf16.mxu0 %v3568_v33  ;;  %4751 = vmatprep.mubr.bf16.mxu1 %v3570_v35  ;;  %v14907_v26 = vrot.slane %v14749_v20, %v14886_v16 }
 0x9fd   :  { %v2806_v49 = vpop.f32.mrb[83].mxu0  ;;  %v2887_v3 = vpop.f32.mrb[79].mxu1  ;;  %4680 = vmatmul.mubr.bf16.gmra.mrb[156].mxu0 %v3567_v42  ;;  %4752 = vmatmul.mubr.bf16.gmra.mrb[152].mxu1 %v3569_v56  ;;  %v3503_v10 = vmax.f32 %v2802_v50, 0.0  ;;  %v3505_v27 = vmax.f32 %v2883_v25, 0.0 }
 0x9fe   :  { %v3504_v22 = vmax.f32 %v2804_v44, 0.0  ;;  %v3506_v60 = vmax.f32 %v2885_v28, 0.0  ;;  %11140 = vmatpush3.bf16.msra.mxu0 %v12568_v12  ;;  %11186 = vmatpush3.bf16.msra.mxu1 %v12569_v58 }
 0x9ff   :  { %11141 = vmatprep.subr.bf16.mxu0 %v12570_v53  ;;  %11187 = vmatprep.subr.bf16.mxu1 %v12571_v18  ;;  %v3583_v43 = vpack.c.bf16 %v3503_v10, %v3503_v10  ;;  %v3585_v42 = vpack.c.bf16 %v3505_v27, %v3505_v27 }
 0xa00   :  { %v3584_v13 = vpack.c.bf16 %v3504_v22, %v3504_v22  ;;  %v3586_v37 = vpack.c.bf16 %v3506_v60, %v3506_v60 }
 0xa02   :  { %v2923_v57 = vpop.f32.mrb[84].mxu0  ;;  %v3004_v39 = vpop.f32.mrb[80].mxu1  ;;  %4687 = vmatprep.mubr.bf16.mxu0 %v3584_v13  ;;  %4759 = vmatprep.mubr.bf16.mxu1 %v3586_v37  ;;  %v12577_v13 = vld [vmem:[%s17326_s16 + $0x280] sm:$0xff]  }
 0xa03   :  { %v2924_v51 = vadd.f32 %v2923_v57, %v14907_v26  ;;  %v3005_v63 = vadd.f32 %v3004_v39, %v14911_v4  ;;  %v2925_v9 = vpop.f32.mrb[85].mxu0  ;;  %v3006_v20 = vpop.f32.mrb[81].mxu1  ;;  %11142 = vmatpush3.bf16.msra.mxu0 %v12572_v32  ;;  %11188 = vmatpush3.bf16.msra.mxu1 %v12573_v55  ;;  %v12575_v55 = vld [vmem:[%s17326_s16 + $0x200] sm:$0xff]   ;;  %v12578_v39 = vld [vmem:[%s17326_s16 + $0x248] sm:$0xff]  }
 0xa04   :  { %v2926_v56 = vadd.f32 %v2925_v9, %v14921_v45  ;;  %v3007_v0 = vadd.f32 %v3006_v20, %v14925_v29  ;;  %v2927_v30 = vpop.f32.mrb[86].mxu0  ;;  %v3008_v33 = vpop.f32.mrb[82].mxu1  ;;  %11219 = vmatprep.subr.bf16.mxu0 %v12574_v8  ;;  %11265 = vmatprep.subr.bf16.mxu1 %v12576_v24 }
 0xa05   :  { %v2928_v35 = vadd.f32 %v2927_v30, %v14907_v26  ;;  %v3009_v12 = vadd.f32 %v3008_v33, %v14911_v4  ;;  %v2929_v58 = vpop.f32.mrb[87].mxu0  ;;  %v3010_v50 = vpop.f32.mrb[83].mxu1  ;;  %4688 = vmatmul.mubr.bf16.gmra.mrb[160].mxu0 %v3583_v43  ;;  %4760 = vmatmul.mubr.bf16.gmra.mrb[156].mxu1 %v3585_v42  ;;  %v3379_v38 = vmax.f32 %v2924_v51, 0.0  ;;  %v3381_v53 = vmax.f32 %v3005_v63, 0.0  ;;  %v12580_v43 = vld [vmem:[%s17326_s16 + $0x2c8] sm:$0xff]  }
 0xa06   :  { %v2930_v25 = vadd.f32 %v2929_v58, %v14921_v45  ;;  %v3011_v40 = vadd.f32 %v3010_v50, %v14925_v29  ;;  %v3380_v28 = vmax.f32 %v2926_v56, 0.0  ;;  %v3382_v54 = vmax.f32 %v3007_v0, 0.0  ;;  %v12581_v58 = vld [vmem:[%s17326_s16 + $0x288] sm:$0xff]  }
 0xa07   :  { %v3395_v18 = vmax.f32 %v2928_v35, 0.0  ;;  %v3397_v44 = vmax.f32 %v3009_v12, 0.0  ;;  %v12579_v12 = vld [vmem:[%s17326_s16 + $0x208] sm:$0xff]  }
 0xa08   :  { %v3396_v62 = vmax.f32 %v2930_v25, 0.0  ;;  %v3398_v49 = vmax.f32 %v3011_v40, 0.0 }
 0xa09   :  { %v3523_v3 = vpack.c.bf16 %v3395_v18, %v3379_v38  ;;  %v3525_v10 = vpack.c.bf16 %v3397_v44, %v3381_v53  ;;  %v12582_v53 = vld [vmem:[%s17326_s16 + $0x250] sm:$0xff]  }
 0xa0a   :  { %v2933_v22 = vpop.f32.mrb[88].mxu0  ;;  %v3014_v60 = vpop.f32.mrb[84].mxu1  ;;  %v3524_v27 = vpack.c.bf16 %v3396_v62, %v3380_v28  ;;  %v3526_v32 = vpack.c.bf16 %v3398_v49, %v3382_v54  ;;  %v12584_v18 = vld [vmem:[%s17326_s16 + $0x2d0] sm:$0xff]  }
 0xa0b   :  { %v2934_v37 = vadd.f32 %v2933_v22, %v14907_v26  ;;  %v3015_v8 = vadd.f32 %v3014_v60, %v14911_v4  ;;  %v2935_v24 = vpop.f32.mrb[89].mxu0  ;;  %v3016_v57 = vpop.f32.mrb[85].mxu1 }
 0xa0c   :  { %v2936_v51 = vadd.f32 %v2935_v24, %v14921_v45  ;;  %v3017_v63 = vadd.f32 %v3016_v57, %v14925_v29  ;;  %v2937_v9 = vpop.f32.mrb[90].mxu0  ;;  %v3018_v20 = vpop.f32.mrb[86].mxu1  ;;  %4799 = vmatprep.mubr.bf16.mxu0 %v3524_v27  ;;  %4871 = vmatprep.mubr.bf16.mxu1 %v3526_v32  ;;  %v12583_v32 = vld [vmem:[%s17326_s16 + $0x210] sm:$0xff]   ;;  %v12586_v57 = vld [vmem:[%s17326_s16 + $0x258] sm:$0xff]  }
 0xa0d   :  { %v2938_v42 = vadd.f32 %v2937_v9, %v14907_v26  ;;  %v3019_v56 = vadd.f32 %v3018_v20, %v14911_v4  ;;  %v2939_v0 = vpop.f32.mrb[91].mxu0  ;;  %v3020_v30 = vpop.f32.mrb[87].mxu1  ;;  %4800 = vmatmul.mubr.bf16.vlgmr.msra.gmra.mrb[164].mxu0 %v3523_v3  ;;  %4872 = vmatmul.mubr.bf16.vlgmr.msra.gmra.mrb[160].mxu1 %v3525_v10  ;;  %v3411_v50 = vmax.f32 %v2934_v37, 0.0  ;;  %v3413_v25 = vmax.f32 %v3015_v8, 0.0 }
 0xa0e   :  { %v2940_v33 = vadd.f32 %v2939_v0, %v14921_v45  ;;  %v3021_v35 = vadd.f32 %v3020_v30, %v14925_v29  ;;  %11220 = vmatpush3.bf16.msra.mxu0 %v12575_v55  ;;  %11266 = vmatpush3.bf16.msra.mxu1 %v12577_v13  ;;  %v3412_v44 = vmax.f32 %v2936_v51, 0.0  ;;  %v3414_v28 = vmax.f32 %v3017_v63, 0.0  ;;  %v12585_v55 = vld [vmem:[%s17326_s16 + $0x290] sm:$0xff]  }
 0xa0f   :  { %v3427_v40 = vmax.f32 %v2938_v42, 0.0  ;;  %v3429_v38 = vmax.f32 %v3019_v56, 0.0  ;;  %11221 = vmatprep.subr.bf16.mxu0 %v12578_v39  ;;  %11267 = vmatprep.subr.bf16.mxu1 %v12580_v43  ;;  %v12588_v39 = vld [vmem:[%s17326_s16 + $0x2d8] sm:$0xff]  }
 0xa10   :  { %v3428_v54 = vmax.f32 %v2940_v33, 0.0  ;;  %v3430_v62 = vmax.f32 %v3021_v35, 0.0  ;;  %v12587_v35 = vld [vmem:[%s17326_s16 + $0x218] sm:$0xff]  }
 0xa11   :  { %v3539_v49 = vpack.c.bf16 %v3427_v40, %v3411_v50  ;;  %v3541_v3 = vpack.c.bf16 %v3429_v38, %v3413_v25  ;;  %v12590_v38 = vld [vmem:[%s17326_s16 + $0x260] sm:$0xff]  }
 0xa12   :  { %v2943_v10 = vpop.f32.mrb[92].mxu0  ;;  %v3024_v22 = vpop.f32.mrb[88].mxu1  ;;  %v3540_v60 = vpack.c.bf16 %v3428_v54, %v3412_v44  ;;  %v3542_v27 = vpack.c.bf16 %v3430_v62, %v3414_v28  ;;  %11222 = vmatpush3.bf16.msra.mxu0 %v12579_v12  ;;  %11268 = vmatpush3.bf16.msra.mxu1 %v12581_v58  ;;  %v12589_v12 = vld [vmem:[%s17326_s16 + $0x298] sm:$0xff]  }
 0xa13   :  { %v2944_v13 = vadd.f32 %v2943_v10, %v14907_v26  ;;  %v3025_v37 = vadd.f32 %v3024_v22, %v14911_v4  ;;  %v2945_v8 = vpop.f32.mrb[93].mxu0  ;;  %v3026_v24 = vpop.f32.mrb[89].mxu1  ;;  %11223 = vmatprep.subr.bf16.mxu0 %v12582_v53  ;;  %11269 = vmatprep.subr.bf16.mxu1 %v12584_v18  ;;  %v12591_v53 = vld [vmem:[%s17326_s16 + $0x2e0] sm:$0xff]  }
 0xa14   :  { %v2946_v43 = vadd.f32 %v2945_v8, %v14921_v45  ;;  %v3027_v51 = vadd.f32 %v3026_v24, %v14925_v29  ;;  %v2947_v63 = vpop.f32.mrb[94].mxu0  ;;  %v3028_v9 = vpop.f32.mrb[90].mxu1  ;;  %4807 = vmatprep.mubr.bf16.mxu0 %v3540_v60  ;;  %4879 = vmatprep.mubr.bf16.mxu1 %v3542_v27  ;;  %v12592_v27 = vld [vmem:[%s17326_s16 + $0x220] sm:$0xff]   ;;  %v12594_v24 = vld [vmem:[%s17326_s16 + $0x268] sm:$0xff]  }
 0xa15   :  { %v2948_v20 = vadd.f32 %v2947_v63, %v14907_v26  ;;  %v3029_v42 = vadd.f32 %v3028_v9, %v14911_v4  ;;  %v2949_v56 = vpop.f32.mrb[95].mxu0  ;;  %v3030_v0 = vpop.f32.mrb[91].mxu1  ;;  %4808 = vmatmul.mubr.bf16.gmra.mrb[168].mxu0 %v3539_v49  ;;  %4880 = vmatmul.mubr.bf16.gmra.mrb[164].mxu1 %v3541_v3  ;;  %v3443_v58 = vmax.f32 %v2944_v13, 0.0  ;;  %v3445_v50 = vmax.f32 %v3025_v37, 0.0 }
 0xa16   :  { %v2950_v30 = vadd.f32 %v2949_v56, %v14921_v45  ;;  %v3031_v33 = vadd.f32 %v3030_v0, %v14925_v29  ;;  %11224 = vmatpush3.bf16.msra.mxu0 %v12583_v32  ;;  %11270 = vmatpush3.bf16.msra.mxu1 %v12585_v55  ;;  %v3444_v18 = vmax.f32 %v2946_v43, 0.0  ;;  %v3446_v44 = vmax.f32 %v3027_v51, 0.0  ;;  %v12593_v32 = vld [vmem:[%s17326_s16 + $0x2a0] sm:$0xff]  }
 0xa17   :  { %v3459_v25 = vmax.f32 %v2948_v20, 0.0  ;;  %v3461_v40 = vmax.f32 %v3029_v42, 0.0  ;;  %11225 = vmatprep.subr.bf16.mxu0 %v12586_v57  ;;  %11271 = vmatprep.subr.bf16.mxu1 %v12588_v39  ;;  %v12595_v57 = vld [vmem:[%s17326_s16 + $0x2e8] sm:$0xff]  }
 0xa18   :  { %v3460_v28 = vmax.f32 %v2950_v30, 0.0  ;;  %v3462_v54 = vmax.f32 %v3031_v33, 0.0  ;;  %v12596_v33 = vld [vmem:[%s17326_s16 + $0x228] sm:$0xff]  }
 0xa19   :  { %v3555_v62 = vpack.c.bf16 %v3459_v25, %v3443_v58  ;;  %v3557_v49 = vpack.c.bf16 %v3461_v40, %v3445_v50  ;;  %v12598_v40 = vld [vmem:[%s17326_s16 + $0x270] sm:$0xff]  }
 0xa1a   :  { %v2953_v3 = vpop.f32.mrb[96].mxu0  ;;  %v3034_v10 = vpop.f32.mrb[92].mxu1  ;;  %v3556_v22 = vpack.c.bf16 %v3460_v28, %v3444_v18  ;;  %v3558_v60 = vpack.c.bf16 %v3462_v54, %v3446_v44  ;;  %11226 = vmatpush3.bf16.msra.mxu0 %v12587_v35  ;;  %11272 = vmatpush3.bf16.msra.mxu1 %v12589_v12  ;;  %v12597_v35 = vld [vmem:[%s17326_s16 + $0x2a8] sm:$0xff]  }
 0xa1b   :  { %v2954_v55 = vadd.f32 %v2953_v3, %v14907_v26  ;;  %v3035_v13 = vadd.f32 %v3034_v10, %v14911_v4  ;;  %v2955_v37 = vpop.f32.mrb[97].mxu0  ;;  %v3036_v8 = vpop.f32.mrb[93].mxu1  ;;  %11227 = vmatprep.subr.bf16.mxu0 %v12590_v38  ;;  %11273 = vmatprep.subr.bf16.mxu1 %v12591_v53  ;;  %v12599_v38 = vld [vmem:[%s17326_s16 + $0x2f0] sm:$0xff]  }
 0xa1c   :  { %v2956_v39 = vadd.f32 %v2955_v37, %v14921_v45  ;;  %v3037_v43 = vadd.f32 %v3036_v8, %v14925_v29  ;;  %v2957_v51 = vpop.f32.mrb[98].mxu0  ;;  %v3038_v63 = vpop.f32.mrb[94].mxu1  ;;  %4815 = vmatprep.mubr.bf16.mxu0 %v3556_v22  ;;  %4887 = vmatprep.mubr.bf16.mxu1 %v3558_v60  ;;  %v12600_v60 = vld [vmem:[%s17326_s16 + $0x230] sm:$0xff]   ;;  %v12602_v8 = vld [vmem:[%s17326_s16 + $0x278] sm:$0xff]  }
 0xa1d   :  { %v2958_v9 = vadd.f32 %v2957_v51, %v14907_v26  ;;  %v3039_v20 = vadd.f32 %v3038_v63, %v14911_v4  ;;  %v2959_v42 = vpop.f32.mrb[99].mxu0  ;;  %v3040_v56 = vpop.f32.mrb[95].mxu1  ;;  %4816 = vmatmul.mubr.bf16.gmra.mrb[172].mxu0 %v3555_v62  ;;  %4888 = vmatmul.mubr.bf16.gmra.mrb[168].mxu1 %v3557_v49  ;;  %v3475_v12 = vmax.f32 %v2954_v55, 0.0  ;;  %v3477_v58 = vmax.f32 %v3035_v13, 0.0 }
 0xa1e   :  { %v2960_v0 = vadd.f32 %v2959_v42, %v14921_v45  ;;  %v3041_v30 = vadd.f32 %v3040_v56, %v14925_v29  ;;  %11228 = vmatpush3.bf16.msra.mxu0 %v12592_v27  ;;  %11274 = vmatpush3.bf16.msra.mxu1 %v12593_v32  ;;  %v3476_v53 = vmax.f32 %v2956_v39, 0.0  ;;  %v3478_v18 = vmax.f32 %v3037_v43, 0.0  ;;  %v12601_v27 = vld [vmem:[%s17326_s16 + $0x2b0] sm:$0xff]  }
 0xa1f   :  { %v3491_v50 = vmax.f32 %v2958_v9, 0.0  ;;  %v3493_v25 = vmax.f32 %v3039_v20, 0.0  ;;  %11229 = vmatprep.subr.bf16.mxu0 %v12594_v24  ;;  %11275 = vmatprep.subr.bf16.mxu1 %v12595_v57  ;;  %v12603_v24 = vld [vmem:[%s17326_s16 + $0x2f8] sm:$0xff]  }
 0xa20   :  { %v3492_v44 = vmax.f32 %v2960_v0, 0.0  ;;  %v3494_v28 = vmax.f32 %v3041_v30, 0.0  ;;  %v12604_v0 = vld [vmem:[%s17326_s16 + $0x238] sm:$0xff]  }
 0xa21   :  { %v3571_v54 = vpack.c.bf16 %v3491_v50, %v3475_v12  ;;  %v3573_v62 = vpack.c.bf16 %v3493_v25, %v3477_v58  ;;  %v12605_v30 = vld [vmem:[%s17326_s16 + $0x2b8] sm:$0xff]   ;;  %v12606_v50 = vld [vmem:[%s17326_s16 + $0x340] sm:$0xff]  }
 0xa22   :  { %v2963_v49 = vpop.f32.mrb[100].mxu0  ;;  %v3044_v3 = vpop.f32.mrb[96].mxu1  ;;  %v3572_v10 = vpack.c.bf16 %v3492_v44, %v3476_v53  ;;  %v3574_v22 = vpack.c.bf16 %v3494_v28, %v3478_v18  ;;  %11230 = vmatpush3.bf16.msra.mxu0 %v12596_v33  ;;  %11276 = vmatpush3.bf16.msra.mxu1 %v12597_v35  ;;  %v12608_v25 = vld [vmem:[%s17326_s16 + $0x3c0] sm:$0xff]  }
 0xa23   :  { %v2964_v32 = vadd.f32 %v2963_v49, %v14907_v26  ;;  %v3045_v55 = vadd.f32 %v3044_v3, %v14911_v4  ;;  %v2965_v13 = vpop.f32.mrb[101].mxu0  ;;  %v3046_v37 = vpop.f32.mrb[97].mxu1  ;;  %11231 = vmatprep.subr.bf16.mxu0 %v12598_v40  ;;  %11277 = vmatprep.subr.bf16.mxu1 %v12599_v38  ;;  %v15056_v4 = vld [vmem:[%s17325_s15 + $0x8] sm:$0xff] }
 0xa24   :  { %v2966_v57 = vadd.f32 %v2965_v13, %v14921_v45  ;;  %v3047_v39 = vadd.f32 %v3046_v37, %v14925_v29  ;;  %v2967_v43 = vpop.f32.mrb[102].mxu0  ;;  %v3048_v26 = vpop.f32.mrb[98].mxu1  ;;  %4823 = vmatprep.mubr.bf16.mxu0 %v3572_v10  ;;  %4895 = vmatprep.mubr.bf16.mxu1 %v3574_v22  ;;  %v15060_v29 = vrot.slane %v15056_v4, %v14741_v7 }
 0xa25   :  { %v2968_v51 = vpop.f32.mrb[103].mxu0  ;;  %v3049_v63 = vpop.f32.mrb[99].mxu1  ;;  %4824 = vmatmul.mubr.bf16.gmra.mrb[176].mxu0 %v3571_v54  ;;  %4896 = vmatmul.mubr.bf16.gmra.mrb[172].mxu1 %v3573_v62  ;;  %v3507_v9 = vmax.f32 %v2964_v32, 0.0  ;;  %v3509_v45 = vmax.f32 %v3045_v55, 0.0  ;;  %v15064_v56 = vrot.slane %v15056_v4, %v14744_v47  ;;  %v15074_v12 = vrot.slane %v15056_v4, %v14752_v36 }
 0xa26   :  { %v3508_v20 = vmax.f32 %v2966_v57, 0.0  ;;  %v3510_v42 = vmax.f32 %v3047_v39, 0.0  ;;  %11232 = vmatpush3.bf16.msra.mxu0 %v12600_v60  ;;  %11278 = vmatpush3.bf16.msra.mxu1 %v12601_v27  ;;  %v15078_v58 = vrot.slane %v15056_v4, %v14755_v19 }
 0xa27   :  { %11233 = vmatprep.subr.bf16.mxu0 %v12602_v8  ;;  %11279 = vmatprep.subr.bf16.mxu1 %v12603_v24  ;;  %v3587_v53 = vpack.c.bf16 %v3507_v9, %v3507_v9  ;;  %v3589_v62 = vpack.c.bf16 %v3509_v45, %v3509_v45 }
 0xa28   :  { %v3588_v33 = vpack.c.bf16 %v3508_v20, %v3508_v20  ;;  %v3590_v35 = vpack.c.bf16 %v3510_v42, %v3510_v42 }
 0xa2a   :  { %v3085_v40 = vpop.f32.mrb[104].mxu0  ;;  %v3166_v38 = vpop.f32.mrb[100].mxu1  ;;  %4831 = vmatprep.mubr.bf16.mxu0 %v3588_v33  ;;  %4903 = vmatprep.mubr.bf16.mxu1 %v3590_v35  ;;  %v12607_v33 = vld [vmem:[%s17326_s16 + $0x300] sm:$0xff]  }
 0xa2b   :  { %v3086_v18 = vadd.f32 %v3085_v40, %v15060_v29  ;;  %v3167_v44 = vadd.f32 %v3166_v38, %v15064_v56  ;;  %v3087_v28 = vpop.f32.mrb[105].mxu0  ;;  %v3168_v54 = vpop.f32.mrb[101].mxu1  ;;  %11234 = vmatpush3.bf16.msra.mxu0 %v12604_v0  ;;  %11280 = vmatpush3.bf16.msra.mxu1 %v12605_v30  ;;  %v12609_v35 = vld [vmem:[%s17326_s16 + $0x380] sm:$0xff]  }
 0xa2c   :  { %v3088_v49 = vadd.f32 %v3087_v28, %v15074_v12  ;;  %v3169_v3 = vadd.f32 %v3168_v54, %v15078_v58  ;;  %v3089_v10 = vpop.f32.mrb[106].mxu0  ;;  %v3170_v22 = vpop.f32.mrb[102].mxu1  ;;  %11311 = vmatprep.subr.bf16.mxu0 %v12606_v50  ;;  %11357 = vmatprep.subr.bf16.mxu1 %v12608_v25 }
 0xa2d   :  { %v3090_v60 = vadd.f32 %v3089_v10, %v15060_v29  ;;  %v3171_v27 = vadd.f32 %v3170_v22, %v15064_v56  ;;  %v3091_v32 = vpop.f32.mrb[107].mxu0  ;;  %v3172_v55 = vpop.f32.mrb[103].mxu1  ;;  %4832 = vmatmul.mubr.bf16.gmra.mrb[180].mxu0 %v3587_v53  ;;  %4904 = vmatmul.mubr.bf16.gmra.mrb[176].mxu1 %v3589_v62  ;;  %v3383_v8 = vmax.f32 %v3086_v18, 0.0  ;;  %v3385_v24 = vmax.f32 %v3167_v44, 0.0  ;;  %v12610_v53 = vld [vmem:[%s17326_s16 + $0x348] sm:$0xff]  }
 0xa2e   :  { %v3092_v13 = vadd.f32 %v3091_v32, %v15074_v12  ;;  %v3173_v37 = vadd.f32 %v3172_v55, %v15078_v58  ;;  %v3384_v43 = vmax.f32 %v3088_v49, 0.0  ;;  %v3386_v26 = vmax.f32 %v3169_v3, 0.0  ;;  %v12612_v18 = vld [vmem:[%s17326_s16 + $0x3c8] sm:$0xff]  }
 0xa2f   :  { %v3399_v57 = vmax.f32 %v3090_v60, 0.0  ;;  %v3401_v39 = vmax.f32 %v3171_v27, 0.0  ;;  %v12611_v32 = vld [vmem:[%s17326_s16 + $0x308] sm:$0xff]  }
 0xa30   :  { %v3400_v51 = vmax.f32 %v3092_v13, 0.0  ;;  %v3402_v63 = vmax.f32 %v3173_v37, 0.0  ;;  %v12613_v55 = vld [vmem:[%s17326_s16 + $0x388] sm:$0xff]  }
 0xa31   :  { %v3527_v9 = vpack.c.bf16 %v3399_v57, %v3383_v8  ;;  %v3529_v20 = vpack.c.bf16 %v3401_v39, %v3385_v24  ;;  %v12614_v57 = vld [vmem:[%s17326_s16 + $0x350] sm:$0xff]  }
 0xa32   :  { %v3095_v42 = vpop.f32.mrb[108].mxu0  ;;  %v3176_v45 = vpop.f32.mrb[104].mxu1  ;;  %v3528_v0 = vpack.c.bf16 %v3400_v51, %v3384_v43  ;;  %v3530_v30 = vpack.c.bf16 %v3402_v63, %v3386_v26  ;;  %v12616_v39 = vld [vmem:[%s17326_s16 + $0x3d0] sm:$0xff]  }
 0xa33   :  { %v3096_v50 = vadd.f32 %v3095_v42, %v15060_v29  ;;  %v3177_v25 = vadd.f32 %v3176_v45, %v15064_v56  ;;  %v3097_v40 = vpop.f32.mrb[109].mxu0  ;;  %v3178_v38 = vpop.f32.mrb[105].mxu1 }
 0xa34   :  { %v3098_v44 = vadd.f32 %v3097_v40, %v15074_v12  ;;  %v3179_v28 = vadd.f32 %v3178_v38, %v15078_v58  ;;  %v3099_v54 = vpop.f32.mrb[110].mxu0  ;;  %v3180_v62 = vpop.f32.mrb[106].mxu1  ;;  %4943 = vmatprep.mubr.bf16.mxu0 %v3528_v0  ;;  %5015 = vmatprep.mubr.bf16.mxu1 %v3530_v30 }
 0xa35   :  { %v3100_v49 = vadd.f32 %v3099_v54, %v15060_v29  ;;  %v3181_v3 = vadd.f32 %v3180_v62, %v15064_v56  ;;  %v3101_v10 = vpop.f32.mrb[111].mxu0  ;;  %v3182_v22 = vpop.f32.mrb[107].mxu1  ;;  %4944 = vmatmul.mubr.bf16.vlgmr.msra.gmra.mrb[184].mxu0 %v3527_v9  ;;  %5016 = vmatmul.mubr.bf16.vlgmr.msra.gmra.mrb[180].mxu1 %v3529_v20  ;;  %v3415_v13 = vmax.f32 %v3096_v50, 0.0  ;;  %v3417_v37 = vmax.f32 %v3177_v25, 0.0 }
 0xa36   :  { %v3102_v60 = vadd.f32 %v3101_v10, %v15074_v12  ;;  %v3183_v27 = vadd.f32 %v3182_v22, %v15078_v58  ;;  %11312 = vmatpush3.bf16.msra.mxu0 %v12607_v33  ;;  %11358 = vmatpush3.bf16.msra.mxu1 %v12609_v35  ;;  %v3416_v43 = vmax.f32 %v3098_v44, 0.0  ;;  %v3418_v26 = vmax.f32 %v3179_v28, 0.0  ;;  %v12615_v33 = vld [vmem:[%s17326_s16 + $0x310] sm:$0xff]  }
 0xa37   :  { %v3431_v8 = vmax.f32 %v3100_v49, 0.0  ;;  %v3433_v24 = vmax.f32 %v3181_v3, 0.0  ;;  %11313 = vmatprep.subr.bf16.mxu0 %v12610_v53  ;;  %11359 = vmatprep.subr.bf16.mxu1 %v12612_v18  ;;  %v12617_v35 = vld [vmem:[%s17326_s16 + $0x390] sm:$0xff]   ;;  %v12618_v53 = vld [vmem:[%s17326_s16 + $0x358] sm:$0xff]  }
 0xa38   :  { %v3432_v51 = vmax.f32 %v3102_v60, 0.0  ;;  %v3434_v63 = vmax.f32 %v3183_v27, 0.0  ;;  %v12620_v18 = vld [vmem:[%s17326_s16 + $0x3d8] sm:$0xff]  }
 0xa39   :  { %v3543_v9 = vpack.c.bf16 %v3431_v8, %v3415_v13  ;;  %v3545_v20 = vpack.c.bf16 %v3433_v24, %v3417_v37 }
 0xa3a   :  { %v3105_v42 = vpop.f32.mrb[112].mxu0  ;;  %v3186_v45 = vpop.f32.mrb[108].mxu1  ;;  %v3544_v0 = vpack.c.bf16 %v3432_v51, %v3416_v43  ;;  %v3546_v30 = vpack.c.bf16 %v3434_v63, %v3418_v26  ;;  %11314 = vmatpush3.bf16.msra.mxu0 %v12611_v32  ;;  %11360 = vmatpush3.bf16.msra.mxu1 %v12613_v55  ;;  %v12619_v32 = vld [vmem:[%s17326_s16 + $0x318] sm:$0xff]  }
 0xa3b   :  { %v3106_v50 = vadd.f32 %v3105_v42, %v15060_v29  ;;  %v3187_v25 = vadd.f32 %v3186_v45, %v15064_v56  ;;  %v3107_v40 = vpop.f32.mrb[113].mxu0  ;;  %v3188_v38 = vpop.f32.mrb[109].mxu1  ;;  %11315 = vmatprep.subr.bf16.mxu0 %v12614_v57  ;;  %11361 = vmatprep.subr.bf16.mxu1 %v12616_v39  ;;  %v12621_v55 = vld [vmem:[%s17326_s16 + $0x398] sm:$0xff]   ;;  %v12622_v57 = vld [vmem:[%s17326_s16 + $0x360] sm:$0xff]  }
 0xa3c   :  { %v3108_v44 = vadd.f32 %v3107_v40, %v15074_v12  ;;  %v3189_v28 = vadd.f32 %v3188_v38, %v15078_v58  ;;  %v3109_v54 = vpop.f32.mrb[114].mxu0  ;;  %v3190_v62 = vpop.f32.mrb[110].mxu1  ;;  %4951 = vmatprep.mubr.bf16.mxu0 %v3544_v0  ;;  %5023 = vmatprep.mubr.bf16.mxu1 %v3546_v30  ;;  %v12623_v39 = vld [vmem:[%s17326_s16 + $0x3e0] sm:$0xff]  }
 0xa3d   :  { %v3110_v49 = vadd.f32 %v3109_v54, %v15060_v29  ;;  %v3191_v3 = vadd.f32 %v3190_v62, %v15064_v56  ;;  %v3111_v10 = vpop.f32.mrb[115].mxu0  ;;  %v3192_v22 = vpop.f32.mrb[111].mxu1  ;;  %4952 = vmatmul.mubr.bf16.gmra.mrb[188].mxu0 %v3543_v9  ;;  %5024 = vmatmul.mubr.bf16.gmra.mrb[184].mxu1 %v3545_v20  ;;  %v3447_v13 = vmax.f32 %v3106_v50, 0.0  ;;  %v3449_v37 = vmax.f32 %v3187_v25, 0.0 }
 0xa3e   :  { %v3112_v60 = vadd.f32 %v3111_v10, %v15074_v12  ;;  %v3193_v27 = vadd.f32 %v3192_v22, %v15078_v58  ;;  %11316 = vmatpush3.bf16.msra.mxu0 %v12615_v33  ;;  %11362 = vmatpush3.bf16.msra.mxu1 %v12617_v35  ;;  %v3448_v43 = vmax.f32 %v3108_v44, 0.0  ;;  %v3450_v26 = vmax.f32 %v3189_v28, 0.0  ;;  %v12624_v33 = vld [vmem:[%s17326_s16 + $0x320] sm:$0xff]  }
 0xa3f   :  { %v3463_v8 = vmax.f32 %v3110_v49, 0.0  ;;  %v3465_v24 = vmax.f32 %v3191_v3, 0.0  ;;  %11317 = vmatprep.subr.bf16.mxu0 %v12618_v53  ;;  %11363 = vmatprep.subr.bf16.mxu1 %v12620_v18  ;;  %v12625_v35 = vld [vmem:[%s17326_s16 + $0x3a0] sm:$0xff]   ;;  %v12626_v53 = vld [vmem:[%s17326_s16 + $0x368] sm:$0xff]  }
 0xa40   :  { %v3464_v51 = vmax.f32 %v3112_v60, 0.0  ;;  %v3466_v63 = vmax.f32 %v3193_v27, 0.0  ;;  %v12627_v18 = vld [vmem:[%s17326_s16 + $0x3e8] sm:$0xff]  }
 0xa41   :  { %v3559_v9 = vpack.c.bf16 %v3463_v8, %v3447_v13  ;;  %v3561_v20 = vpack.c.bf16 %v3465_v24, %v3449_v37 }
 0xa42   :  { %v3115_v42 = vpop.f32.mrb[116].mxu0  ;;  %v3196_v45 = vpop.f32.mrb[112].mxu1  ;;  %v3560_v0 = vpack.c.bf16 %v3464_v51, %v3448_v43  ;;  %v3562_v30 = vpack.c.bf16 %v3466_v63, %v3450_v26  ;;  %11318 = vmatpush3.bf16.msra.mxu0 %v12619_v32  ;;  %11364 = vmatpush3.bf16.msra.mxu1 %v12621_v55  ;;  %v12628_v32 = vld [vmem:[%s17326_s16 + $0x328] sm:$0xff]  }
 0xa43   :  { %v3116_v50 = vadd.f32 %v3115_v42, %v15060_v29  ;;  %v3197_v25 = vadd.f32 %v3196_v45, %v15064_v56  ;;  %v3117_v40 = vpop.f32.mrb[117].mxu0  ;;  %v3198_v38 = vpop.f32.mrb[113].mxu1  ;;  %11319 = vmatprep.subr.bf16.mxu0 %v12622_v57  ;;  %11365 = vmatprep.subr.bf16.mxu1 %v12623_v39  ;;  %v12629_v55 = vld [vmem:[%s17326_s16 + $0x3a8] sm:$0xff]   ;;  %v12630_v57 = vld [vmem:[%s17326_s16 + $0x370] sm:$0xff]  }
 0xa44   :  { %v3118_v44 = vadd.f32 %v3117_v40, %v15074_v12  ;;  %v3199_v28 = vadd.f32 %v3198_v38, %v15078_v58  ;;  %v3119_v54 = vpop.f32.mrb[118].mxu0  ;;  %v3200_v62 = vpop.f32.mrb[114].mxu1  ;;  %4959 = vmatprep.mubr.bf16.mxu0 %v3560_v0  ;;  %5031 = vmatprep.mubr.bf16.mxu1 %v3562_v30  ;;  %v12631_v39 = vld [vmem:[%s17326_s16 + $0x3f0] sm:$0xff]  }
 0xa45   :  { %v3120_v49 = vadd.f32 %v3119_v54, %v15060_v29  ;;  %v3201_v3 = vadd.f32 %v3200_v62, %v15064_v56  ;;  %v3121_v10 = vpop.f32.mrb[119].mxu0  ;;  %v3202_v22 = vpop.f32.mrb[115].mxu1  ;;  %4960 = vmatmul.mubr.bf16.gmra.mrb[192].mxu0 %v3559_v9  ;;  %5032 = vmatmul.mubr.bf16.gmra.mrb[188].mxu1 %v3561_v20  ;;  %v3479_v13 = vmax.f32 %v3116_v50, 0.0  ;;  %v3481_v37 = vmax.f32 %v3197_v25, 0.0 }
 0xa46   :  { %v3122_v60 = vadd.f32 %v3121_v10, %v15074_v12  ;;  %v3203_v27 = vadd.f32 %v3202_v22, %v15078_v58  ;;  %11320 = vmatpush3.bf16.msra.mxu0 %v12624_v33  ;;  %11366 = vmatpush3.bf16.msra.mxu1 %v12625_v35  ;;  %v3480_v43 = vmax.f32 %v3118_v44, 0.0  ;;  %v3482_v26 = vmax.f32 %v3199_v28, 0.0  ;;  %v12632_v33 = vld [vmem:[%s17326_s16 + $0x330] sm:$0xff]  }
 0xa47   :  { %v3495_v8 = vmax.f32 %v3120_v49, 0.0  ;;  %v3497_v24 = vmax.f32 %v3201_v3, 0.0  ;;  %11321 = vmatprep.subr.bf16.mxu0 %v12626_v53  ;;  %11367 = vmatprep.subr.bf16.mxu1 %v12627_v18  ;;  %v12633_v35 = vld [vmem:[%s17326_s16 + $0x3b0] sm:$0xff]   ;;  %v12634_v53 = vld [vmem:[%s17326_s16 + $0x378] sm:$0xff]  }
 0xa48   :  { %v3496_v51 = vmax.f32 %v3122_v60, 0.0  ;;  %v3498_v63 = vmax.f32 %v3203_v27, 0.0  ;;  %v12635_v18 = vld [vmem:[%s17326_s16 + $0x3f8] sm:$0xff]   ;;  %v15208_v60 = vrot.slane %v15056_v4, %v14886_v16 }
 0xa49   :  { %v3575_v9 = vpack.c.bf16 %v3495_v8, %v3479_v13  ;;  %v3577_v20 = vpack.c.bf16 %v3497_v24, %v3481_v37  ;;  %v12637_v27 = vld [vmem:[%s17326_s16 + $0x3b8] sm:$0xff]   ;;  %v15222_v13 = vrot.slane %v15056_v4, %v14900_v15  ;;  %v15226_v37 = vrot.slane %v15056_v4, %v14903_v34 }
 0xa4a   :  { %v3125_v42 = vpop.f32.mrb[120].mxu0  ;;  %v3206_v45 = vpop.f32.mrb[116].mxu1  ;;  %v3576_v0 = vpack.c.bf16 %v3496_v51, %v3480_v43  ;;  %v3578_v30 = vpack.c.bf16 %v3498_v63, %v3482_v26  ;;  %11322 = vmatpush3.bf16.msra.mxu0 %v12628_v32  ;;  %11368 = vmatpush3.bf16.msra.mxu1 %v12629_v55 }
 0xa4b   :  { %v3126_v50 = vadd.f32 %v3125_v42, %v15060_v29  ;;  %v3207_v25 = vadd.f32 %v3206_v45, %v15064_v56  ;;  %v3127_v40 = vpop.f32.mrb[121].mxu0  ;;  %v3208_v38 = vpop.f32.mrb[117].mxu1  ;;  %11323 = vmatprep.subr.bf16.mxu0 %v12630_v57  ;;  %11369 = vmatprep.subr.bf16.mxu1 %v12631_v39 }
 0xa4c   :  { %v3128_v44 = vadd.f32 %v3127_v40, %v15074_v12  ;;  %v3209_v28 = vadd.f32 %v3208_v38, %v15078_v58  ;;  %v3129_v54 = vpop.f32.mrb[122].mxu0  ;;  %v3210_v29 = vpop.f32.mrb[118].mxu1  ;;  %4967 = vmatprep.mubr.bf16.mxu0 %v3576_v0  ;;  %5039 = vmatprep.mubr.bf16.mxu1 %v3578_v30  ;;  %v15212_v12 = vrot.slane %v15056_v4, %v14889_v5  ;;  %v12636_v58 = vld [vmem:[%s17326_s16 + $0x338] sm:$0xff]  }
 0xa4d   :  { %v3130_v56 = vpop.f32.mrb[123].mxu0  ;;  %v3211_v62 = vpop.f32.mrb[119].mxu1  ;;  %4968 = vmatmul.mubr.bf16.gmra.mrb[196].mxu0 %v3575_v9  ;;  %5040 = vmatmul.mubr.bf16.gmra.mrb[192].mxu1 %v3577_v20  ;;  %v3511_v49 = vmax.f32 %v3126_v50, 0.0  ;;  %v3513_v22 = vmax.f32 %v3207_v25, 0.0 }
 0xa4e   :  { %v3512_v3 = vmax.f32 %v3128_v44, 0.0  ;;  %v3514_v10 = vmax.f32 %v3209_v28, 0.0  ;;  %11324 = vmatpush3.bf16.msra.mxu0 %v12632_v33  ;;  %11370 = vmatpush3.bf16.msra.mxu1 %v12633_v35 }
 0xa4f   :  { %11325 = vmatprep.subr.bf16.mxu0 %v12634_v53  ;;  %11371 = vmatprep.subr.bf16.mxu1 %v12635_v18  ;;  %v3591_v57 = vpack.c.bf16 %v3511_v49, %v3511_v49  ;;  %v3593_v63 = vpack.c.bf16 %v3513_v22, %v3513_v22 }
 0xa50   :  { %v3592_v32 = vpack.c.bf16 %v3512_v3, %v3512_v3  ;;  %v3594_v55 = vpack.c.bf16 %v3514_v10, %v3514_v10 }
 0xa52   :  { %v3247_v8 = vpop.f32.mrb[124].mxu0  ;;  %v3328_v24 = vpop.f32.mrb[120].mxu1  ;;  %4975 = vmatprep.mubr.bf16.mxu0 %v3592_v32  ;;  %5047 = vmatprep.mubr.bf16.mxu1 %v3594_v55 }
 0xa53   :  { %v3248_v39 = vadd.f32 %v3247_v8, %v15208_v60  ;;  %v3329_v43 = vadd.f32 %v3328_v24, %v15212_v12  ;;  %v3249_v26 = vpop.f32.mrb[125].mxu0  ;;  %v3330_v51 = vpop.f32.mrb[121].mxu1  ;;  %11326 = vmatpush3.bf16.msra.mxu0 %v12636_v58  ;;  %11372 = vmatpush3.bf16.msra.mxu1 %v12637_v27 }
 0xa54   :  { %v3250_v9 = vadd.f32 %v3249_v26, %v15222_v13  ;;  %v3331_v20 = vadd.f32 %v3330_v51, %v15226_v37  ;;  %v3251_v4 = vpop.f32.mrb[126].mxu0  ;;  %v3332_v42 = vpop.f32.mrb[122].mxu1  ;;  %12098 = vmatprep.subr.bf16.mxu0 %v17417_v46 }
 0xa55   :  { %v3252_v45 = vadd.f32 %v3251_v4, %v15208_v60  ;;  %v3333_v0 = vadd.f32 %v3332_v42, %v15212_v12  ;;  %v3253_v30 = vpop.f32.mrb[127].mxu0  ;;  %v3334_v33 = vpop.f32.mrb[123].mxu1  ;;  %4976 = vmatmul.mubr.bf16.gmra.mrb[200].mxu0 %v3591_v57  ;;  %5048 = vmatmul.mubr.bf16.gmra.mrb[196].mxu1 %v3593_v63  ;;  %v3387_v25 = vmax.f32 %v3248_v39, 0.0  ;;  %v3389_v40 = vmax.f32 %v3329_v43, 0.0 }
 0xa56   :  { %v3254_v35 = vadd.f32 %v3253_v30, %v15222_v13  ;;  %v3335_v50 = vadd.f32 %v3334_v33, %v15226_v37  ;;  %v3388_v18 = vmax.f32 %v3250_v9, 0.0  ;;  %v3390_v44 = vmax.f32 %v3331_v20, 0.0 }
 0xa57   :  { %v3403_v38 = vmax.f32 %v3252_v45, 0.0  ;;  %v3405_v53 = vmax.f32 %v3333_v0, 0.0 }
 0xa58   :  { %v3404_v28 = vmax.f32 %v3254_v35, 0.0  ;;  %v3406_v54 = vmax.f32 %v3335_v50, 0.0 }
 0xa59   :  { %v3531_v29 = vpack.c.bf16 %v3403_v38, %v3387_v25  ;;  %v3533_v56 = vpack.c.bf16 %v3405_v53, %v3389_v40 }
 0xa5a   :  { %v3257_v62 = vpop.f32.mrb[128].mxu0  ;;  %v3338_v49 = vpop.f32.mrb[124].mxu1  ;;  %v3532_v3 = vpack.c.bf16 %v3404_v28, %v3388_v18  ;;  %v3534_v10 = vpack.c.bf16 %v3406_v54, %v3390_v44 }
 0xa5b   :  { %v3258_v22 = vadd.f32 %v3257_v62, %v15208_v60  ;;  %v3339_v58 = vadd.f32 %v3338_v49, %v15212_v12  ;;  %v3259_v27 = vpop.f32.mrb[129].mxu0  ;;  %v3340_v32 = vpop.f32.mrb[125].mxu1 }
 0xa5c   :  { %v3260_v55 = vadd.f32 %v3259_v27, %v15222_v13  ;;  %v3341_v8 = vadd.f32 %v3340_v32, %v15226_v37  ;;  %v3261_v24 = vpop.f32.mrb[130].mxu0  ;;  %v3342_v57 = vpop.f32.mrb[126].mxu1  ;;  %5087 = vmatprep.mubr.bf16.mxu0 %v3532_v3  ;;  %5159 = vmatprep.mubr.bf16.mxu1 %v3534_v10 }
 0xa5d   :  { %v3262_v39 = vadd.f32 %v3261_v24, %v15208_v60  ;;  %v3343_v43 = vadd.f32 %v3342_v57, %v15212_v12  ;;  %v3263_v26 = vpop.f32.mrb[131].mxu0  ;;  %v3344_v51 = vpop.f32.mrb[127].mxu1  ;;  %5088 = vmatmul.mubr.bf16.vlgmr.msra.gmra.mrb[204].mxu0 %v3531_v29  ;;  %5160 = vmatmul.mubr.bf16.vlgmr.msra.gmra.mrb[200].mxu1 %v3533_v56  ;;  %v3419_v20 = vmax.f32 %v3258_v22, 0.0  ;;  %v3421_v4 = vmax.f32 %v3339_v58, 0.0 }
 0xa5e   :  { %v3264_v63 = vadd.f32 %v3263_v26, %v15222_v13  ;;  %v3345_v9 = vadd.f32 %v3344_v51, %v15226_v37  ;;  %v3420_v0 = vmax.f32 %v3260_v55, 0.0  ;;  %v3422_v30 = vmax.f32 %v3341_v8, 0.0 }
 0xa5f   :  { %v3435_v42 = vmax.f32 %v3262_v39, 0.0  ;;  %v3437_v45 = vmax.f32 %v3343_v43, 0.0 }
 0xa60   :  { %v3436_v33 = vmax.f32 %v3264_v63, 0.0  ;;  %v3438_v35 = vmax.f32 %v3345_v9, 0.0 }
 0xa61   :  { %v3547_v50 = vpack.c.bf16 %v3435_v42, %v3419_v20  ;;  %v3549_v25 = vpack.c.bf16 %v3437_v45, %v3421_v4 }
 0xa62   :  { %v3267_v40 = vpop.f32.mrb[132].mxu0  ;;  %v3348_v38 = vpop.f32.mrb[128].mxu1  ;;  %v3548_v53 = vpack.c.bf16 %v3436_v33, %v3420_v0  ;;  %v3550_v18 = vpack.c.bf16 %v3438_v35, %v3422_v30 }
 0xa63   :  { %v3268_v44 = vadd.f32 %v3267_v40, %v15208_v60  ;;  %v3349_v28 = vadd.f32 %v3348_v38, %v15212_v12  ;;  %v3269_v54 = vpop.f32.mrb[133].mxu0  ;;  %v3350_v29 = vpop.f32.mrb[129].mxu1 }
 0xa64   :  { %v3270_v56 = vadd.f32 %v3269_v54, %v15222_v13  ;;  %v3351_v62 = vadd.f32 %v3350_v29, %v15226_v37  ;;  %v3271_v49 = vpop.f32.mrb[134].mxu0  ;;  %v3352_v3 = vpop.f32.mrb[130].mxu1  ;;  %5095 = vmatprep.mubr.bf16.mxu0 %v3548_v53  ;;  %5167 = vmatprep.mubr.bf16.mxu1 %v3550_v18 }
 0xa65   :  { %v3272_v10 = vadd.f32 %v3271_v49, %v15208_v60  ;;  %v3353_v22 = vadd.f32 %v3352_v3, %v15212_v12  ;;  %v3273_v58 = vpop.f32.mrb[135].mxu0  ;;  %v3354_v27 = vpop.f32.mrb[131].mxu1  ;;  %5096 = vmatmul.mubr.bf16.gmra.mrb[208].mxu0 %v3547_v50  ;;  %5168 = vmatmul.mubr.bf16.gmra.mrb[204].mxu1 %v3549_v25  ;;  %v3451_v8 = vmax.f32 %v3268_v44, 0.0  ;;  %v3453_v24 = vmax.f32 %v3349_v28, 0.0 }
 0xa66   :  { %v3274_v32 = vadd.f32 %v3273_v58, %v15222_v13  ;;  %v3355_v55 = vadd.f32 %v3354_v27, %v15226_v37  ;;  %v3452_v43 = vmax.f32 %v3270_v56, 0.0  ;;  %v3454_v26 = vmax.f32 %v3351_v62, 0.0 }
 0xa67   :  { %v3467_v57 = vmax.f32 %v3272_v10, 0.0  ;;  %v3469_v39 = vmax.f32 %v3353_v22, 0.0 }
 0xa68   :  { %v3468_v51 = vmax.f32 %v3274_v32, 0.0  ;;  %v3470_v63 = vmax.f32 %v3355_v55, 0.0 }
 0xa69   :  { %v3563_v9 = vpack.c.bf16 %v3467_v57, %v3451_v8  ;;  %v3565_v20 = vpack.c.bf16 %v3469_v39, %v3453_v24 }
 0xa6a   :  { %v3277_v4 = vpop.f32.mrb[136].mxu0  ;;  %v3358_v42 = vpop.f32.mrb[132].mxu1  ;;  %v3564_v45 = vpack.c.bf16 %v3468_v51, %v3452_v43  ;;  %v3566_v0 = vpack.c.bf16 %v3470_v63, %v3454_v26 }
 0xa6b   :  { %v3278_v30 = vadd.f32 %v3277_v4, %v15208_v60  ;;  %v3359_v33 = vadd.f32 %v3358_v42, %v15212_v12  ;;  %v3279_v35 = vpop.f32.mrb[137].mxu0  ;;  %v3360_v50 = vpop.f32.mrb[133].mxu1 }
 0xa6c   :  { %v3280_v25 = vadd.f32 %v3279_v35, %v15222_v13  ;;  %v3361_v40 = vadd.f32 %v3360_v50, %v15226_v37  ;;  %v3281_v38 = vpop.f32.mrb[138].mxu0  ;;  %v3362_v53 = vpop.f32.mrb[134].mxu1  ;;  %5103 = vmatprep.mubr.bf16.mxu0 %v3564_v45  ;;  %5175 = vmatprep.mubr.bf16.mxu1 %v3566_v0 }
 0xa6d   :  { %v3282_v18 = vadd.f32 %v3281_v38, %v15208_v60  ;;  %v3363_v44 = vadd.f32 %v3362_v53, %v15212_v12  ;;  %v3283_v28 = vpop.f32.mrb[139].mxu0  ;;  %v3364_v54 = vpop.f32.mrb[135].mxu1  ;;  %5104 = vmatmul.mubr.bf16.gmra.mrb[212].mxu0 %v3563_v9  ;;  %5176 = vmatmul.mubr.bf16.gmra.mrb[208].mxu1 %v3565_v20  ;;  %v3483_v62 = vmax.f32 %v3278_v30, 0.0  ;;  %v3485_v49 = vmax.f32 %v3359_v33, 0.0 }
 0xa6e   :  { %v3284_v29 = vadd.f32 %v3283_v28, %v15222_v13  ;;  %v3365_v56 = vadd.f32 %v3364_v54, %v15226_v37  ;;  %v3484_v22 = vmax.f32 %v3280_v25, 0.0  ;;  %v3486_v58 = vmax.f32 %v3361_v40, 0.0 }
 0xa6f   :  { %v3499_v3 = vmax.f32 %v3282_v18, 0.0  ;;  %v3501_v10 = vmax.f32 %v3363_v44, 0.0 }
 0xa70   :  { %v3500_v27 = vmax.f32 %v3284_v29, 0.0  ;;  %v3502_v32 = vmax.f32 %v3365_v56, 0.0 }
 0xa71   :  { %v3579_v55 = vpack.c.bf16 %v3499_v3, %v3483_v62  ;;  %v3581_v8 = vpack.c.bf16 %v3501_v10, %v3485_v49 }
 0xa72   :  { %v3287_v24 = vpop.f32.mrb[140].mxu0  ;;  %v3368_v57 = vpop.f32.mrb[136].mxu1  ;;  %v3580_v39 = vpack.c.bf16 %v3500_v27, %v3484_v22  ;;  %v3582_v43 = vpack.c.bf16 %v3502_v32, %v3486_v58 }
 0xa73   :  { %v3288_v26 = vadd.f32 %v3287_v24, %v15208_v60  ;;  %v3369_v51 = vadd.f32 %v3368_v57, %v15212_v12  ;;  %v3289_v63 = vpop.f32.mrb[141].mxu0  ;;  %v3370_v9 = vpop.f32.mrb[137].mxu1 }
 0xa74   :  { %v3290_v20 = vadd.f32 %v3289_v63, %v15222_v13  ;;  %v3371_v4 = vadd.f32 %v3370_v9, %v15226_v37  ;;  %v3291_v42 = vpop.f32.mrb[142].mxu0  ;;  %v3372_v45 = vpop.f32.mrb[138].mxu1  ;;  %5111 = vmatprep.mubr.bf16.mxu0 %v3580_v39  ;;  %5183 = vmatprep.mubr.bf16.mxu1 %v3582_v43 }
 0xa75   :  { %v3292_v0 = vpop.f32.mrb[143].mxu0  ;;  %v3373_v30 = vpop.f32.mrb[139].mxu1  ;;  %5112 = vmatmul.mubr.bf16.gmra.mrb[216].mxu0 %v3579_v55  ;;  %5184 = vmatmul.mubr.bf16.gmra.mrb[212].mxu1 %v3581_v8  ;;  %v3515_v50 = vmax.f32 %v3288_v26, 0.0  ;;  %v3517_v60 = vmax.f32 %v3369_v51, 0.0 }
 0xa76   :  { %v3516_v33 = vmax.f32 %v3290_v20, 0.0  ;;  %v3518_v35 = vmax.f32 %v3371_v4, 0.0 }
 0xa77   :  { %v3595_v40 = vpack.c.bf16 %v3515_v50, %v3515_v50  ;;  %v3597_v13 = vpack.c.bf16 %v3517_v60, %v3517_v60 }
 0xa78   :  { %v3596_v25 = vpack.c.bf16 %v3516_v33, %v3516_v33  ;;  %v3598_v12 = vpack.c.bf16 %v3518_v35, %v3518_v35 }
 0xa7a   :  { %5119 = vmatprep.mubr.bf16.mxu0 %v3596_v25  ;;  %5191 = vmatprep.mubr.bf16.mxu1 %v3598_v12 }
 0xa7d   :  { %5120 = vmatmul.mubr.bf16.gmra.mrb[220].mxu0 %v3595_v40  ;;  %5192 = vmatmul.mubr.bf16.gmra.mrb[216].mxu1 %v3597_v13 }
 0xa7e   :  { %12102 = vmatprep.mubr.msk.bf16.mxu0 %vm13156_vm5, %v17417_v46 }
 0xab8   :  { %v11051_v37 = vpop.f32.mrb[144].mxu0  ;;  %v11097_v38 = vpop.f32.mrb[140].mxu1 }
 0xab9   :  { %v11052_v53 = vpop.f32.mrb[145].mxu0  ;;  %v11098_v18 = vpop.f32.mrb[141].mxu1 }
 0xaba   :  { %v11053_v44 = vadd.f32 %v11052_v53, %v11051_v37  ;;  %v11099_v28 = vadd.f32 %v11098_v18, %v11097_v38  ;;  %v11054_v54 = vpop.f32.mrb[146].mxu0  ;;  %v11100_v29 = vpop.f32.mrb[142].mxu1 }
 0xabb   :  { %v11055_v56 = vpop.f32.mrb[147].mxu0  ;;  %v11101_v62 = vpop.f32.mrb[143].mxu1 }
 0xabc   :  { %v15267_v49 = vadd.f32 %v11099_v28, %v11053_v44  ;;  %v11056_v3 = vadd.f32 %v11055_v56, %v11054_v54  ;;  %v11102_v10 = vadd.f32 %v11101_v62, %v11100_v29 }
 0xabe   :  { %v15269_v22 = vadd.f32 %v11102_v10, %v11056_v3 }
 0xac0   :  { %v11057_v58 = vpop.f32.mrb[148].mxu0  ;;  %v11103_v27 = vpop.f32.mrb[144].mxu1 }
 0xac1   :  { %v11058_v32 = vpop.f32.mrb[149].mxu0  ;;  %v11104_v55 = vpop.f32.mrb[145].mxu1 }
 0xac2   :  { %v11059_v8 = vadd.f32 %v11058_v32, %v11057_v58  ;;  %v11105_v24 = vadd.f32 %v11104_v55, %v11103_v27  ;;  %v11060_v57 = vpop.f32.mrb[150].mxu0  ;;  %v11106_v39 = vpop.f32.mrb[146].mxu1 }
 0xac3   :  { %v11061_v43 = vpop.f32.mrb[151].mxu0  ;;  %v11107_v26 = vpop.f32.mrb[147].mxu1 }
 0xac4   :  { %v15271_v51 = vadd.f32 %v11105_v24, %v11059_v8  ;;  %v11062_v63 = vadd.f32 %v11061_v43, %v11060_v57  ;;  %v11108_v9 = vadd.f32 %v11107_v26, %v11106_v39 }
 0xac6   :  { %v15273_v20 = vadd.f32 %v11108_v9, %v11062_v63 }
 0xac8   :  { %v11063_v4 = vpop.f32.mrb[152].mxu0  ;;  %v11109_v42 = vpop.f32.mrb[148].mxu1 }
 0xac9   :  { %v11064_v45 = vpop.f32.mrb[153].mxu0  ;;  %v11110_v0 = vpop.f32.mrb[149].mxu1 }
 0xaca   :  { %v11065_v30 = vadd.f32 %v11064_v45, %v11063_v4  ;;  %v11111_v33 = vadd.f32 %v11110_v0, %v11109_v42  ;;  %v11066_v35 = vpop.f32.mrb[154].mxu0  ;;  %v11112_v50 = vpop.f32.mrb[150].mxu1 }
 0xacb   :  { %v11067_v60 = vpop.f32.mrb[155].mxu0  ;;  %v11113_v25 = vpop.f32.mrb[151].mxu1 }
 0xacc   :  { %v15275_v12 = vadd.f32 %v11111_v33, %v11065_v30  ;;  %v11068_v40 = vadd.f32 %v11067_v60, %v11066_v35  ;;  %v11114_v13 = vadd.f32 %v11113_v25, %v11112_v50 }
 0xace   :  { %v15277_v37 = vadd.f32 %v11114_v13, %v11068_v40 }
 0xad0   :  { %v11069_v38 = vpop.f32.mrb[156].mxu0  ;;  %v11115_v53 = vpop.f32.mrb[152].mxu1 }
 0xad1   :  { %v11070_v18 = vpop.f32.mrb[157].mxu0  ;;  %v11116_v44 = vpop.f32.mrb[153].mxu1 }
 0xad2   :  { %v11071_v28 = vadd.f32 %v11070_v18, %v11069_v38  ;;  %v11117_v54 = vadd.f32 %v11116_v44, %v11115_v53  ;;  %v11072_v29 = vpop.f32.mrb[158].mxu0  ;;  %v11118_v56 = vpop.f32.mrb[154].mxu1 }
 0xad3   :  { %v11073_v62 = vpop.f32.mrb[159].mxu0  ;;  %v11119_v3 = vpop.f32.mrb[155].mxu1 }
 0xad4   :  { %v15279_v10 = vadd.f32 %v11117_v54, %v11071_v28  ;;  %v11074_v58 = vadd.f32 %v11073_v62, %v11072_v29  ;;  %v11120_v27 = vadd.f32 %v11119_v3, %v11118_v56 }
 0xad6   :  { %v15281_v32 = vadd.f32 %v11120_v27, %v11074_v58 }
 0xad8   :  { %v11075_v55 = vpop.f32.mrb[160].mxu0  ;;  %v11121_v8 = vpop.f32.mrb[156].mxu1 }
 0xad9   :  { %v11076_v24 = vpop.f32.mrb[161].mxu0  ;;  %v11122_v57 = vpop.f32.mrb[157].mxu1 }
 0xada   :  { %v11077_v39 = vadd.f32 %v11076_v24, %v11075_v55  ;;  %v11123_v43 = vadd.f32 %v11122_v57, %v11121_v8  ;;  %v11078_v26 = vpop.f32.mrb[162].mxu0  ;;  %v11124_v63 = vpop.f32.mrb[158].mxu1 }
 0xadb   :  { %v11079_v9 = vpop.f32.mrb[163].mxu0  ;;  %v11125_v4 = vpop.f32.mrb[159].mxu1 }
 0xadc   :  { %v15283_v42 = vadd.f32 %v11123_v43, %v11077_v39 }
 0xae0   :  { %v11143_v45 = vpop.f32.mrb[164].mxu0  ;;  %v11189_v0 = vpop.f32.mrb[160].mxu1 }
 0xae1   :  { %v11144_v30 = vpop.f32.mrb[165].mxu0  ;;  %v11190_v33 = vpop.f32.mrb[161].mxu1 }
 0xae2   :  { %v11145_v35 = vadd.f32 %v11144_v30, %v11143_v45  ;;  %v11191_v50 = vadd.f32 %v11190_v33, %v11189_v0  ;;  %v11146_v60 = vpop.f32.mrb[166].mxu0  ;;  %v11192_v25 = vpop.f32.mrb[162].mxu1 }
 0xae3   :  { %v11147_v40 = vpop.f32.mrb[167].mxu0  ;;  %v11193_v13 = vpop.f32.mrb[163].mxu1 }
 0xae4   :  { %v4802_v38 = vadd.f32 %v11145_v35, %v15267_v49  ;;  %v11148_v53 = vadd.f32 %v11147_v40, %v11146_v60  ;;  %v11194_v18 = vadd.f32 %v11193_v13, %v11192_v25 }
 0xae6   :  { %v15286_v44 = vadd.f32 %v11191_v50, %v4802_v38  ;;  %v4805_v28 = vadd.f32 %v11148_v53, %v15269_v22 }
 0xae8   :  { %v15289_v54 = vadd.f32 %v11194_v18, %v4805_v28  ;;  %v11149_v29 = vpop.f32.mrb[168].mxu0  ;;  %v11195_v56 = vpop.f32.mrb[164].mxu1 }
 0xae9   :  { %v11150_v62 = vpop.f32.mrb[169].mxu0  ;;  %v11196_v3 = vpop.f32.mrb[165].mxu1 }
 0xaea   :  { %v11151_v58 = vadd.f32 %v11150_v62, %v11149_v29  ;;  %v11197_v27 = vadd.f32 %v11196_v3, %v11195_v56  ;;  %v11152_v55 = vpop.f32.mrb[170].mxu0  ;;  %v11198_v8 = vpop.f32.mrb[166].mxu1 }
 0xaeb   :  { %v11153_v24 = vpop.f32.mrb[171].mxu0  ;;  %v11199_v57 = vpop.f32.mrb[167].mxu1 }
 0xaec   :  { %v4810_v49 = vadd.f32 %v11151_v58, %v15271_v51  ;;  %v11154_v39 = vadd.f32 %v11153_v24, %v11152_v55  ;;  %v11200_v43 = vadd.f32 %v11199_v57, %v11198_v8 }
 0xaee   :  { %v4813_v26 = vadd.f32 %v11154_v39, %v15273_v20  ;;  %v15293_v63 = vadd.f32 %v11197_v27, %v4810_v49 }
 0xaf0   :  { %v11155_v22 = vpop.f32.mrb[172].mxu0  ;;  %v11201_v9 = vpop.f32.mrb[168].mxu1  ;;  %v15295_v4 = vadd.f32 %v11200_v43, %v4813_v26 }
 0xaf1   :  { %v11156_v45 = vpop.f32.mrb[173].mxu0  ;;  %v11202_v0 = vpop.f32.mrb[169].mxu1 }
 0xaf2   :  { %v11157_v30 = vadd.f32 %v11156_v45, %v11155_v22  ;;  %v11203_v33 = vadd.f32 %v11202_v0, %v11201_v9  ;;  %v11158_v35 = vpop.f32.mrb[174].mxu0  ;;  %v11204_v50 = vpop.f32.mrb[170].mxu1 }
 0xaf3   :  { %v11159_v60 = vpop.f32.mrb[175].mxu0  ;;  %v11205_v25 = vpop.f32.mrb[171].mxu1 }
 0xaf4   :  { %v4818_v51 = vadd.f32 %v11157_v30, %v15275_v12  ;;  %v11160_v40 = vadd.f32 %v11159_v60, %v11158_v35  ;;  %v11206_v13 = vadd.f32 %v11205_v25, %v11204_v50 }
 0xaf6   :  { %v4821_v20 = vadd.f32 %v11160_v40, %v15277_v37  ;;  %v15299_v38 = vadd.f32 %v11203_v33, %v4818_v51 }
 0xaf8   :  { %v11161_v53 = vpop.f32.mrb[176].mxu0  ;;  %v11207_v18 = vpop.f32.mrb[172].mxu1  ;;  %v15301_v28 = vadd.f32 %v11206_v13, %v4821_v20 }
 0xaf9   :  { %v11162_v29 = vpop.f32.mrb[177].mxu0  ;;  %v11208_v56 = vpop.f32.mrb[173].mxu1 }
 0xafa   :  { %v11163_v62 = vadd.f32 %v11162_v29, %v11161_v53  ;;  %v11209_v3 = vadd.f32 %v11208_v56, %v11207_v18  ;;  %v11164_v58 = vpop.f32.mrb[178].mxu0  ;;  %v11210_v27 = vpop.f32.mrb[174].mxu1 }
 0xafb   :  { %v11165_v55 = vpop.f32.mrb[179].mxu0  ;;  %v11211_v8 = vpop.f32.mrb[175].mxu1 }
 0xafc   :  { %v4826_v12 = vadd.f32 %v11163_v62, %v15279_v10  ;;  %v11166_v24 = vadd.f32 %v11165_v55, %v11164_v58  ;;  %v11212_v57 = vadd.f32 %v11211_v8, %v11210_v27 }
 0xafe   :  { %v4829_v37 = vadd.f32 %v11166_v24, %v15281_v32  ;;  %v15305_v49 = vadd.f32 %v11209_v3, %v4826_v12 }
 0xb00   :  { %v11167_v39 = vpop.f32.mrb[180].mxu0  ;;  %v11213_v43 = vpop.f32.mrb[176].mxu1  ;;  %v15307_v26 = vadd.f32 %v11212_v57, %v4829_v37 }
 0xb01   :  { %v11168_v22 = vpop.f32.mrb[181].mxu0  ;;  %v11214_v9 = vpop.f32.mrb[177].mxu1 }
 0xb02   :  { %v11169_v45 = vadd.f32 %v11168_v22, %v11167_v39  ;;  %v11215_v0 = vadd.f32 %v11214_v9, %v11213_v43  ;;  %v11170_v30 = vpop.f32.mrb[182].mxu0  ;;  %v11216_v33 = vpop.f32.mrb[178].mxu1 }
 0xb03   :  { %v11171_v35 = vpop.f32.mrb[183].mxu0  ;;  %v11217_v50 = vpop.f32.mrb[179].mxu1 }
 0xb04   :  { %v4834_v10 = vadd.f32 %v11169_v45, %v15283_v42 }
 0xb06   :  { %v15310_v60 = vadd.f32 %v11215_v0, %v4834_v10 }
 0xb08   :  { %v11235_v25 = vpop.f32.mrb[184].mxu0  ;;  %v11281_v32 = vpop.f32.mrb[180].mxu1 }
 0xb09   :  { %v11236_v51 = vpop.f32.mrb[185].mxu0  ;;  %v11282_v40 = vpop.f32.mrb[181].mxu1 }
 0xb0a   :  { %v11237_v13 = vadd.f32 %v11236_v51, %v11235_v25  ;;  %v11283_v20 = vadd.f32 %v11282_v40, %v11281_v32  ;;  %v11238_v53 = vpop.f32.mrb[186].mxu0  ;;  %v11284_v18 = vpop.f32.mrb[182].mxu1 }
 0xb0b   :  { %v11239_v29 = vpop.f32.mrb[187].mxu0  ;;  %v11285_v56 = vpop.f32.mrb[183].mxu1 }
 0xb0c   :  { %v4946_v62 = vadd.f32 %v11237_v13, %v15286_v44  ;;  %v11240_v3 = vadd.f32 %v11239_v29, %v11238_v53  ;;  %v11286_v58 = vadd.f32 %v11285_v56, %v11284_v18 }
 0xb0e   :  { %v15313_v27 = vadd.f32 %v11283_v20, %v4946_v62  ;;  %v4949_v42 = vadd.f32 %v11240_v3, %v15289_v54 }
 0xb10   :  { %v15316_v55 = vadd.f32 %v11286_v58, %v4949_v42  ;;  %v11241_v8 = vpop.f32.mrb[188].mxu0  ;;  %v11287_v12 = vpop.f32.mrb[184].mxu1 }
 0xb11   :  { %v11242_v24 = vpop.f32.mrb[189].mxu0  ;;  %v11288_v57 = vpop.f32.mrb[185].mxu1 }
 0xb12   :  { %v11243_v37 = vadd.f32 %v11242_v24, %v11241_v8  ;;  %v11289_v39 = vadd.f32 %v11288_v57, %v11287_v12  ;;  %v11244_v43 = vpop.f32.mrb[190].mxu0  ;;  %v11290_v22 = vpop.f32.mrb[186].mxu1 }
 0xb13   :  { %v11245_v9 = vpop.f32.mrb[191].mxu0  ;;  %v11291_v45 = vpop.f32.mrb[187].mxu1 }
 0xb14   :  { %v4954_v44 = vadd.f32 %v11243_v37, %v15293_v63  ;;  %v11246_v0 = vadd.f32 %v11245_v9, %v11244_v43  ;;  %v11292_v30 = vadd.f32 %v11291_v45, %v11290_v22 }
 0xb16   :  { %v15319_v33 = vadd.f32 %v11289_v39, %v4954_v44  ;;  %v4957_v54 = vadd.f32 %v11246_v0, %v15295_v4 }
 0xb18   :  { %v15322_v35 = vadd.f32 %v11292_v30, %v4957_v54  ;;  %v11247_v50 = vpop.f32.mrb[192].mxu0  ;;  %v11293_v10 = vpop.f32.mrb[188].mxu1 }
 0xb19   :  { %v11248_v25 = vpop.f32.mrb[193].mxu0  ;;  %v11294_v32 = vpop.f32.mrb[189].mxu1 }
 0xb1a   :  { %v11249_v51 = vadd.f32 %v11248_v25, %v11247_v50  ;;  %v11295_v40 = vadd.f32 %v11294_v32, %v11293_v10  ;;  %v11250_v13 = vpop.f32.mrb[194].mxu0  ;;  %v11296_v20 = vpop.f32.mrb[190].mxu1 }
 0xb1b   :  { %v11251_v53 = vpop.f32.mrb[195].mxu0  ;;  %v11297_v18 = vpop.f32.mrb[191].mxu1 }
 0xb1c   :  { %v4962_v63 = vadd.f32 %v11249_v51, %v15299_v38  ;;  %v11252_v29 = vadd.f32 %v11251_v53, %v11250_v13  ;;  %v11298_v56 = vadd.f32 %v11297_v18, %v11296_v20 }
 0xb1e   :  { %v15325_v62 = vadd.f32 %v11295_v40, %v4962_v63  ;;  %v4965_v4 = vadd.f32 %v11252_v29, %v15301_v28 }
 0xb20   :  { %v15328_v3 = vadd.f32 %v11298_v56, %v4965_v4  ;;  %v11253_v58 = vpop.f32.mrb[196].mxu0  ;;  %v11299_v42 = vpop.f32.mrb[192].mxu1 }
 0xb21   :  { %v11254_v8 = vpop.f32.mrb[197].mxu0  ;;  %v11300_v12 = vpop.f32.mrb[193].mxu1 }
 0xb22   :  { %v11255_v24 = vadd.f32 %v11254_v8, %v11253_v58  ;;  %v11301_v57 = vadd.f32 %v11300_v12, %v11299_v42  ;;  %v11256_v37 = vpop.f32.mrb[198].mxu0  ;;  %v11302_v39 = vpop.f32.mrb[194].mxu1 }
 0xb23   :  { %v11257_v43 = vpop.f32.mrb[199].mxu0  ;;  %v11303_v22 = vpop.f32.mrb[195].mxu1 }
 0xb24   :  { %v4970_v38 = vadd.f32 %v11255_v24, %v15305_v49  ;;  %v11258_v9 = vadd.f32 %v11257_v43, %v11256_v37  ;;  %v11304_v45 = vadd.f32 %v11303_v22, %v11302_v39 }
 0xb26   :  { %v15331_v44 = vadd.f32 %v11301_v57, %v4970_v38  ;;  %v4973_v28 = vadd.f32 %v11258_v9, %v15307_v26 }
 0xb28   :  { %v15334_v0 = vadd.f32 %v11304_v45, %v4973_v28  ;;  %v11259_v30 = vpop.f32.mrb[200].mxu0  ;;  %v11305_v54 = vpop.f32.mrb[196].mxu1 }
 0xb29   :  { %v11260_v50 = vpop.f32.mrb[201].mxu0  ;;  %v11306_v10 = vpop.f32.mrb[197].mxu1 }
 0xb2a   :  { %v11261_v25 = vadd.f32 %v11260_v50, %v11259_v30  ;;  %v11307_v32 = vadd.f32 %v11306_v10, %v11305_v54  ;;  %v11262_v51 = vpop.f32.mrb[202].mxu0  ;;  %v11308_v40 = vpop.f32.mrb[198].mxu1 }
 0xb2b   :  { %v11263_v13 = vpop.f32.mrb[203].mxu0  ;;  %v11309_v20 = vpop.f32.mrb[199].mxu1 }
 0xb2c   :  { %v4978_v49 = vadd.f32 %v11261_v25, %v15310_v60  ;;  %v15344_v60 = vld [vmem:[%s17327_s17] ss:$0 sm:$0xff] }
 0xb2e   :  { %v15337_v53 = vadd.f32 %v11307_v32, %v4978_v49 }
 0xb30   :  { %v11327_v18 = vpop.f32.mrb[204].mxu0  ;;  %v11373_v63 = vpop.f32.mrb[200].mxu1 }
 0xb31   :  { %v11328_v29 = vpop.f32.mrb[205].mxu0  ;;  %v11374_v26 = vpop.f32.mrb[201].mxu1 }
 0xb32   :  { %v11329_v56 = vadd.f32 %v11328_v29, %v11327_v18  ;;  %v11375_v4 = vadd.f32 %v11374_v26, %v11373_v63  ;;  %v11330_v58 = vpop.f32.mrb[206].mxu0  ;;  %v11376_v42 = vpop.f32.mrb[202].mxu1 }
 0xb33   :  { %v11331_v8 = vpop.f32.mrb[207].mxu0  ;;  %v11377_v12 = vpop.f32.mrb[203].mxu1 }
 0xb34   :  { %v5090_v24 = vadd.f32 %v11329_v56, %v15313_v27  ;;  %v11332_v57 = vadd.f32 %v11331_v8, %v11330_v58  ;;  %v11378_v37 = vadd.f32 %v11377_v12, %v11376_v42 }
 0xb36   :  { %v5162_v39 = vadd.f32 %v11375_v4, %v5090_v24  ;;  %v5093_v43 = vadd.f32 %v11332_v57, %v15316_v55 }
 0xb38   :  { %v5199_v22 = vadd.f32 %v5162_v39, %v14242_v1  ;;  %v5165_v38 = vadd.f32 %v11378_v37, %v5093_v43  ;;  %v11333_v9 = vpop.f32.mrb[208].mxu0  ;;  %v11379_v45 = vpop.f32.mrb[204].mxu1 }
 0xb39   :  { %v11334_v28 = vpop.f32.mrb[209].mxu0  ;;  %v11380_v30 = vpop.f32.mrb[205].mxu1 }
 0xb3a   :  { %v5200_v54 = vadd.f32 %v5165_v38, %v14244_v21  ;;  %v11335_v27 = vadd.f32 %v11334_v28, %v11333_v9  ;;  %v11381_v50 = vadd.f32 %v11380_v30, %v11379_v45  ;;  %v11336_v10 = vpop.f32.mrb[210].mxu0  ;;  %v11382_v25 = vpop.f32.mrb[206].mxu1  ;;  %v15349_v55 = vadd.f32 %v15344_v60, %v5199_v22 }
 0xb3b   :  { %v11337_v32 = vpop.f32.mrb[211].mxu0  ;;  %v11383_v51 = vpop.f32.mrb[207].mxu1 }
 0xb3c   :  { %v5098_v40 = vadd.f32 %v11335_v27, %v15319_v33  ;;  %v11338_v13 = vadd.f32 %v11337_v32, %v11336_v10  ;;  %v11384_v1 = vadd.f32 %v11383_v51, %v11382_v25  ;;  %v5228_v20 = vsel %vm611_vm7, %v15349_v55, 0.0 }
 0xb3d   :  { %5229 = vadd.xlane.f32.xlu0 %v5228_v20  ;;  %v15355_v49 = vadd.f32 %v15344_v60, %v5200_v54 }
 0xb3e   :  { %v5170_v21 = vadd.f32 %v11381_v50, %v5098_v40  ;;  %v5101_v18 = vadd.f32 %v11338_v13, %v15322_v35 }
 0xb3f   :  { %v5231_v63 = vsel %vm611_vm7, %v15355_v49, 0.0 }
 0xb40   :  { %v5201_v29 = vadd.f32 %v5170_v21, %v14252_v14  ;;  %v5173_v26 = vadd.f32 %v11384_v1, %v5101_v18  ;;  %5232 = vadd.xlane.f32.xlu1 %v5231_v63  ;;  %v11339_v33 = vpop.f32.mrb[212].mxu0  ;;  %v11385_v56 = vpop.f32.mrb[208].mxu1 }
 0xb41   :  { %v11340_v4 = vpop.f32.mrb[213].mxu0  ;;  %v11386_v58 = vpop.f32.mrb[209].mxu1 }
 0xb42   :  { %v5202_v42 = vadd.f32 %v5173_v26, %v14254_v2  ;;  %v11341_v8 = vadd.f32 %v11340_v4, %v11339_v33  ;;  %v11387_v12 = vadd.f32 %v11386_v58, %v11385_v56  ;;  %v11342_v24 = vpop.f32.mrb[214].mxu0  ;;  %v11388_v57 = vpop.f32.mrb[210].mxu1  ;;  %v15363_v37 = vadd.f32 %v15344_v60, %v5201_v29 }
 0xb43   :  { %v11343_v35 = vpop.f32.mrb[215].mxu0  ;;  %v11389_v39 = vpop.f32.mrb[211].mxu1 }
 0xb44   :  { %v5106_v43 = vadd.f32 %v11341_v8, %v15325_v62  ;;  %v11344_v14 = vadd.f32 %v11343_v35, %v11342_v24  ;;  %v11390_v22 = vadd.f32 %v11389_v39, %v11388_v57  ;;  %v5234_v38 = vsel %vm611_vm7, %v15363_v37, 0.0 }
 0xb45   :  { %5235 = vadd.xlane.f32.xlu0 %v5234_v38  ;;  %v15369_v9 = vadd.f32 %v15344_v60, %v5202_v42 }
 0xb46   :  { %v5178_v2 = vadd.f32 %v11387_v12, %v5106_v43  ;;  %v5109_v45 = vadd.f32 %v11344_v14, %v15328_v3 }
 0xb47   :  { %v5237_v28 = vsel %vm611_vm7, %v15369_v9, 0.0 }
 0xb48   :  { %v5203_v30 = vadd.f32 %v5178_v2, %v14262_v31  ;;  %v5181_v54 = vadd.f32 %v11390_v22, %v5109_v45  ;;  %5238 = vadd.xlane.f32.xlu1 %v5237_v28  ;;  %v11345_v62 = vpop.f32.mrb[216].mxu0  ;;  %v11391_v27 = vpop.f32.mrb[212].mxu1 }
 0xb49   :  { %v11346_v50 = vpop.f32.mrb[217].mxu0  ;;  %v11392_v10 = vpop.f32.mrb[213].mxu1 }
 0xb4a   :  { %v5204_v25 = vadd.f32 %v5181_v54, %v14264_v59  ;;  %v11347_v32 = vadd.f32 %v11346_v50, %v11345_v62  ;;  %v11393_v51 = vadd.f32 %v11392_v10, %v11391_v27  ;;  %v11348_v40 = vpop.f32.mrb[218].mxu0  ;;  %v11394_v13 = vpop.f32.mrb[214].mxu1  ;;  %v15377_v1 = vadd.f32 %v15344_v60, %v5203_v30  ;;  %v12638_v30 = vld [vmem:[%s17318_s8 + $0x10] sm:$0xff]  }
 0xb4b   :  { %v11349_v3 = vpop.f32.mrb[219].mxu0  ;;  %v11395_v20 = vpop.f32.mrb[215].mxu1  ;;  %12099 = vmatpush3.bf16.msra.mxu0 %v12638_v30 }
 0xb4c   :  { %v5114_v21 = vadd.f32 %v11347_v32, %v15331_v44  ;;  %v11350_v31 = vadd.f32 %v11349_v3, %v11348_v40  ;;  %v11396_v18 = vadd.f32 %v11395_v20, %v11394_v13  ;;  %v5240_v63 = vsel %vm611_vm7, %v15377_v1, 0.0  ;;  %12100 = vmatprep.subr.bf16.mxu0 %v17417_v46 }
 0xb4d   :  { %5241 = vadd.xlane.f32.xlu0 %v5240_v63  ;;  %v15383_v29 = vadd.f32 %v15344_v60, %v5204_v25 }
 0xb4e   :  { %v5186_v59 = vadd.f32 %v11393_v51, %v5114_v21  ;;  %v5117_v26 = vadd.f32 %v11350_v31, %v15334_v0 }
 0xb4f   :  { %v5243_v33 = vsel %vm611_vm7, %v15383_v29, 0.0 }
 0xb50   :  { %v5205_v56 = vadd.f32 %v5186_v59, %v14272_v52  ;;  %v5189_v4 = vadd.f32 %v11396_v18, %v5117_v26  ;;  %5244 = vadd.xlane.f32.xlu1 %v5243_v33  ;;  %v11351_v44 = vpop.f32.mrb[220].mxu0  ;;  %v11397_v58 = vpop.f32.mrb[216].mxu1 }
 0xb51   :  { %v11352_v42 = vpop.f32.mrb[221].mxu0  ;;  %v11398_v8 = vpop.f32.mrb[217].mxu1 }
 0xb52   :  { %v5206_v12 = vadd.f32 %v5189_v4, %v14274_v11  ;;  %v11353_v24 = vadd.f32 %v11352_v42, %v11351_v44  ;;  %v11399_v57 = vadd.f32 %v11398_v8, %v11397_v58  ;;  %v11354_v35 = vpop.f32.mrb[222].mxu0  ;;  %v11400_v39 = vpop.f32.mrb[218].mxu1  ;;  %v15391_v43 = vadd.f32 %v15344_v60, %v5205_v56 }
 0xb53   :  { %v11355_v0 = vpop.f32.mrb[223].mxu0  ;;  %v11401_v14 = vpop.f32.mrb[219].mxu1 }
 0xb54   :  { %v5122_v22 = vadd.f32 %v11353_v24, %v15337_v53  ;;  %v5246_v52 = vsel %vm611_vm7, %v15391_v43, 0.0  ;;  %v15397_v38 = vadd.f32 %v15344_v60, %v5206_v12 }
 0xb55   :  { %5247 = vadd.xlane.f32.xlu0 %v5246_v52 }
 0xb56   :  { %17428 = vst [vmem:[#allocation28_spill] sm:$0xff] %v15397_v38  ;;  %v5194_v2 = vadd.f32 %v11399_v57, %v5122_v22  ;;  %v5249_v11 = vsel %vm611_vm7, %v15397_v38, 0.0 }
 0xb57   :  { %5250 = vadd.xlane.f32.xlu1 %v5249_v11 }
 0xb58   :  { %v5207_v45 = vadd.f32 %v5194_v2, %v14281_v41 }
 0xb5a   :  { %v15403_v28 = vadd.f32 %v15344_v60, %v5207_v45 }
 0xb5c   :  { %17429 = vst [vmem:[#allocation29_spill] sm:$0xff] %v15403_v28  ;;  %v5252_v53 = vsel %vm611_vm7, %v15403_v28, 0.0 }
 0xb5d   :  { %5253 = vadd.xlane.f32.xlu0 %v5252_v53 }
 0xbca   :  { %v5230_v54 = vpop.xlane.xlu0 %5229 }
 0xbcb   :  { %v5255_v62 = vmul.f32 0.03125, %v5230_v54 }
 0xbcd   :  { %v15412_v27 = vsub.f32 %v15349_v55, %v5255_v62  ;;  %v5233_v41 = vpop.xlane.xlu1 %5232 }
 0xbce   :  { %v5256_v50 = vmul.f32 0.03125, %v5233_v41 }
 0xbcf   :  { %v5273_v60 = vmul.f32 %v15412_v27, %v15412_v27 }
 0xbd0   :  { %v15417_v10 = vsub.f32 %v15355_v49, %v5256_v50 }
 0xbd1   :  { %v5282_v25 = vsel %vm611_vm7, %v5273_v60, 0.0  ;;  %v12639_v60 = vld [vmem:[%s17318_s8 + $0x18] sm:$0xff]  }
 0xbd2   :  { %5283 = vadd.xlane.f32.xlu1 %v5282_v25  ;;  %v5236_v32 = vpop.xlane.xlu0 %5235  ;;  %v5274_v51 = vmul.f32 %v15417_v10, %v15417_v10  ;;  %12101 = vmatpush3.bf16.msra.mxu0 %v12639_v60 }
 0xbd3   :  { %v5257_v40 = vmul.f32 0.03125, %v5236_v32 }
 0xbd4   :  { %v5285_v13 = vsel %vm611_vm7, %v5274_v51, 0.0 }
 0xbd5   :  { %v15424_v3 = vsub.f32 %v15363_v37, %v5257_v40  ;;  %v5239_v20 = vpop.xlane.xlu1 %5238  ;;  %5286 = vadd.xlane.f32.xlu0 %v5285_v13 }
 0xbd6   :  { %v5258_v21 = vmul.f32 0.03125, %v5239_v20 }
 0xbd7   :  { %v5275_v31 = vmul.f32 %v15424_v3, %v15424_v3 }
 0xbd8   :  { %v15429_v18 = vsub.f32 %v15369_v9, %v5258_v21 }
 0xbd9   :  { %v5288_v63 = vsel %vm611_vm7, %v5275_v31, 0.0 }
 0xbda   :  { %5289 = vadd.xlane.f32.xlu1 %v5288_v63  ;;  %v5242_v59 = vpop.xlane.xlu0 %5241  ;;  %v5276_v26 = vmul.f32 %v15429_v18, %v15429_v18 }
 0xbdb   :  { %v5259_v33 = vmul.f32 0.03125, %v5242_v59 }
 0xbdc   :  { %v5291_v56 = vsel %vm611_vm7, %v5276_v26, 0.0 }
 0xbdd   :  { %v15436_v4 = vsub.f32 %v15377_v1, %v5259_v33  ;;  %v5245_v44 = vpop.xlane.xlu1 %5244  ;;  %5292 = vadd.xlane.f32.xlu0 %v5291_v56 }
 0xbde   :  { %v5260_v58 = vmul.f32 0.03125, %v5245_v44  ;;  %v15471_v44 = vld [vmem:[%s17316_s6 + $0x1] ss:$0 sm:$0xff] }
 0xbdf   :  { %v5277_v42 = vmul.f32 %v15436_v4, %v15436_v4 }
 0xbe0   :  { %v15441_v8 = vsub.f32 %v15383_v29, %v5260_v58 }
 0xbe1   :  { %v5294_v12 = vsel %vm611_vm7, %v5277_v42, 0.0 }
 0xbe2   :  { %5295 = vadd.xlane.f32.xlu1 %v5294_v12  ;;  %v5248_v24 = vpop.xlane.xlu0 %5247  ;;  %v5278_v57 = vmul.f32 %v15441_v8, %v15441_v8 }
 0xbe3   :  { %v5261_v35 = vmul.f32 0.03125, %v5248_v24 }
 0xbe4   :  { %v5251_v39 = vpop.xlane.xlu1 %5250  ;;  %v5297_v0 = vsel %vm611_vm7, %v5278_v57, 0.0 }
 0xbe5   :  { %v15448_v14 = vsub.f32 %v15391_v43, %v5261_v35  ;;  %v5262_v22 = vmul.f32 0.03125, %v5251_v39  ;;  %5298 = vadd.xlane.f32.xlu0 %v5297_v0 }
 0xbe7   :  { %v15451_v52 = vsub.f32 %v15397_v38, %v5262_v22  ;;  %v5279_v2 = vmul.f32 %v15448_v14, %v15448_v14  ;;  %v10305_v22 = vld [vmem:[%s17317_s7 + $0x1] ss:$0 sm:$0xff] }
 0xbe9   :  { %v5300_v11 = vsel %vm611_vm7, %v5279_v2, 0.0  ;;  %v5280_v45 = vmul.f32 %v15451_v52, %v15451_v52 }
 0xbea   :  { %5301 = vadd.xlane.f32.xlu1 %v5300_v11  ;;  %v5254_v53 = vpop.xlane.xlu0 %5253 }
 0xbeb   :  { %v5263_v30 = vmul.f32 0.03125, %v5254_v53  ;;  %v5303_v54 = vsel %vm611_vm7, %v5280_v45, 0.0 }
 0xbec   :  { %5304 = vadd.xlane.f32.xlu0 %v5303_v54 }
 0xbed   :  { %v15460_v62 = vsub.f32 %v15403_v28, %v5263_v30 }
 0xbef   :  { %v5281_v41 = vmul.f32 %v15460_v62, %v15460_v62 }
 0xbf1   :  { %v5306_v50 = vsel %vm611_vm7, %v5281_v41, 0.0 }
 0xbf2   :  { %5307 = vadd.xlane.f32.xlu1 %v5306_v50 }
 0xc5f   :  { %v5284_v25 = vpop.xlane.xlu1 %5283 }
 0xc60   :  { %v5309_v32 = vmul.f32 0.03125, %v5284_v25 }
 0xc62   :  { %v5318_v51 = vadd.f32 1e-05, %v5309_v32  ;;  %v5287_v40 = vpop.xlane.xlu0 %5286 }
 0xc63   :  { %v5310_v13 = vmul.f32 0.03125, %v5287_v40 }
 0xc64   :  { %12950 = vrsqrt.f32 %v5318_v51 }
 0xc65   :  { %v5319_v20 = vadd.f32 1e-05, %v5310_v13 }
 0xc67   :  { %12952 = vrsqrt.f32 %v5319_v20  ;;  %v5290_v21 = vpop.xlane.xlu1 %5289 }
 0xc68   :  { %v5311_v31 = vmul.f32 0.03125, %v5290_v21 }
 0xc6a   :  { %v5320_v63 = vadd.f32 1e-05, %v5311_v31  ;;  %v5293_v59 = vpop.xlane.xlu0 %5292 }
 0xc6b   :  { %v5312_v26 = vmul.f32 0.03125, %v5293_v59 }
 0xc6c   :  { %12954 = vrsqrt.f32 %v5320_v63 }
 0xc6d   :  { %v5321_v33 = vadd.f32 1e-05, %v5312_v26 }
 0xc6e   :  { %v12951_v56 = vpop.eup %12950 }
 0xc6f   :  { %v5336_v58 = vmul.f32 %v12951_v56, %v15412_v27  ;;  %12956 = vrsqrt.f32 %v5321_v33  ;;  %v5296_v42 = vpop.xlane.xlu1 %5295 }
 0xc70   :  { %v5313_v12 = vmul.f32 0.03125, %v5296_v42 }
 0xc71   :  { %v12953_v24 = vpop.eup %12952  ;;  %v5351_v57 = vmul.f32 %v15471_v44, %v5336_v58 }
 0xc72   :  { %v5337_v35 = vmul.f32 %v12953_v24, %v15417_v10  ;;  %v5322_v39 = vadd.f32 1e-05, %v5313_v12  ;;  %v5299_v0 = vpop.xlane.xlu0 %5298 }
 0xc73   :  { %v5314_v2 = vmul.f32 0.03125, %v5299_v0  ;;  %v5366_v53 = vadd.f32 %v10305_v22, %v5351_v57 }
 0xc74   :  { %v5352_v11 = vmul.f32 %v15471_v44, %v5337_v35  ;;  %12958 = vrsqrt.f32 %v5322_v39 }
 0xc75   :  { %v5323_v45 = vadd.f32 1e-05, %v5314_v2 }
 0xc76   :  { %v12955_v27 = vpop.eup %12954  ;;  %v5367_v30 = vadd.f32 %v10305_v22, %v5352_v11 }
 0xc77   :  { %12960 = vrsqrt.f32 %v5323_v45  ;;  %v5302_v54 = vpop.xlane.xlu1 %5301  ;;  %v5338_v41 = vmul.f32 %v12955_v27, %v15424_v3 }
 0xc78   :  { %v5315_v50 = vmul.f32 0.03125, %v5302_v54  ;;  %v5375_v10 = vpack.c.bf16 %v5367_v30, %v5366_v53 }
 0xc79   :  { %v12957_v60 = vpop.eup %12956  ;;  %v5305_v25 = vpop.xlane.xlu0 %5304  ;;  %v5353_v13 = vmul.f32 %v15471_v44, %v5338_v41 }
 0xc7a   :  { %v5339_v32 = vmul.f32 %v12957_v60, %v15429_v18  ;;  %v5324_v51 = vadd.f32 1e-05, %v5315_v50  ;;  %12103 = vmatmul.mubr.msk.bf16.vlgmr.msra.gmra.mrb[224].mxu0 %vm611_vm7, %v5375_v10  ;;  %v5316_v40 = vmul.f32 0.03125, %v5305_v25  ;;  %v10311_v10 = vld [vmem:[%s17319_s9 + $0x1] ss:$0 sm:$0xff]  ;;  %s13162_s9 = smov [#allocation3]  }
 0xc7b   :  { %12106 = vmatprep.mubr.msk.bf16.mxu0 %vm13156_vm5, %v17417_v46  ;;  %v5368_v31 = vadd.f32 %v10305_v22, %v5353_v13 }
 0xc7c   :  { %12962 = vrsqrt.f32 %v5324_v51  ;;  %v5325_v20 = vadd.f32 1e-05, %v5316_v40  ;;  %v5354_v21 = vmul.f32 %v15471_v44, %v5339_v32  ;;  %v17430_v40 = vld [vmem:[#allocation6_spill] sm:$0xff] }
 0xc7e   :  { %v12959_v3 = vpop.eup %12958  ;;  %12964 = vrsqrt.f32 %v5325_v20  ;;  %v5369_v63 = vadd.f32 %v10305_v22, %v5354_v21 }
 0xc7f   :  { %v5308_v59 = vpop.xlane.xlu1 %5307  ;;  %v5340_v18 = vmul.f32 %v12959_v3, %v15436_v4 }
 0xc80   :  { %v5317_v26 = vmul.f32 0.03125, %v5308_v59  ;;  %v5376_v33 = vpack.c.bf16 %v5369_v63, %v5368_v31 }
 0xc81   :  { %v12961_v56 = vpop.eup %12960  ;;  %v5355_v12 = vmul.f32 %v15471_v44, %v5340_v18 }
 0xc82   :  { %v5341_v58 = vmul.f32 %v12961_v56, %v15441_v8  ;;  %v5326_v42 = vadd.f32 1e-05, %v5317_v26  ;;  %12107 = vmatmul.mubr.msk.bf16.gmra.mrb[228].mxu0 %vm611_vm7, %v5376_v33 }
 0xc83   :  { %12110 = vmatprep.mubr.msk.bf16.mxu0 %vm13156_vm5, %v17417_v46  ;;  %v5370_v35 = vadd.f32 %v10305_v22, %v5355_v12 }
 0xc84   :  { %12966 = vrsqrt.f32 %v5326_v42  ;;  %v5356_v24 = vmul.f32 %v15471_v44, %v5341_v58 }
 0xc86   :  { %v12963_v57 = vpop.eup %12962  ;;  %v5371_v39 = vadd.f32 %v10305_v22, %v5356_v24 }
 0xc87   :  { %v5342_v4 = vmul.f32 %v12963_v57, %v15448_v14 }
 0xc88   :  { %v12965_v0 = vpop.eup %12964  ;;  %v5377_v2 = vpack.c.bf16 %v5371_v39, %v5370_v35 }
 0xc89   :  { %v5343_v8 = vmul.f32 %v12965_v0, %v15451_v52  ;;  %v5357_v11 = vmul.f32 %v15471_v44, %v5342_v4 }
 0xc8a   :  { %12111 = vmatmul.mubr.msk.bf16.gmra.mrb[232].mxu0 %vm611_vm7, %v5377_v2 }
 0xc8b   :  { %12114 = vmatprep.mubr.msk.bf16.mxu0 %vm13156_vm5, %v17417_v46  ;;  %v5358_v45 = vmul.f32 %v15471_v44, %v5343_v8  ;;  %v5372_v27 = vadd.f32 %v10305_v22, %v5357_v11 }
 0xc8d   :  { %v5373_v53 = vadd.f32 %v10305_v22, %v5358_v45 }
 0xc8e   :  { %v12967_v30 = vpop.eup %12966 }
 0xc8f   :  { %v5378_v54 = vpack.c.bf16 %v5373_v53, %v5372_v27  ;;  %v5344_v41 = vmul.f32 %v12967_v30, %v15460_v62 }
 0xc91   :  { %v5359_v14 = vmul.f32 %v15471_v44, %v5344_v41 }
 0xc92   :  { %12115 = vmatmul.mubr.msk.bf16.gmra.mrb[236].mxu0 %vm611_vm7, %v5378_v54 }
 0xc93   :  { %12118 = vmatprep.mubr.msk.bf16.mxu0 %vm13156_vm5, %v17417_v46  ;;  %v5374_v52 = vadd.f32 %v10305_v22, %v5359_v14 }
 0xc95   :  { %v5379_v50 = vpack.c.bf16 %v5374_v52, %v5374_v52 }
 0xc9a   :  { %12119 = vmatmul.mubr.msk.bf16.gmra.mrb[240].mxu0 %vm611_vm7, %v5379_v50 }
 0xd4d   :  { %v5454_v60 = vpop.f32.mrb[224].mxu0 }
 0xd4e   :  { %v15510_v25 = vadd.f32 %v10311_v10, %v5454_v60  ;;  %v12104_v32 = vpop.f32.mrb[225].mxu0 }
 0xd4f   :  { %v5457_v62 = vpop.f32.mrb[226].mxu0 }
 0xd50   :  { %v15512_v51 = vadd.f32 %v10311_v10, %v5457_v62  ;;  %v12105_v44 = vpop.f32.mrb[227].mxu0  ;;  %v5492_v13 = vmul.f32 %v15510_v25, %v17430_v40 }
 0xd52   :  { %12140 = vmatprep.mubr.msk.f32.mxu1 %vm611_vm7, %v5492_v13  ;;  %v12464_v22 = vpack.i.bf16 %v15512_v51, %v15510_v25 }
 0xd54   :  { %12465 = vrot.lane.b32.xlu0 %v12464_v22, %s13158_s30 }
 0xd55   :  { %v5462_v20 = vpop.f32.mrb[228].mxu0 }
 0xd56   :  { %v12108_v21 = vpop.f32.mrb[229].mxu0  ;;  %v15520_v31 = vadd.f32 %v10311_v10, %v5462_v20 }
 0xd57   :  { %v5465_v3 = vpop.f32.mrb[230].mxu0 }
 0xd58   :  { %v15522_v63 = vadd.f32 %v10311_v10, %v5465_v3  ;;  %v12109_v59 = vpop.f32.mrb[231].mxu0 }
 0xd5a   :  { %v12469_v18 = vpack.i.bf16 %v15522_v63, %v15520_v31 }
 0xd5c   :  { %12470 = vrot.lane.b32.xlu1 %v12469_v18, %s13158_s30 }
 0xd5d   :  { %v5470_v26 = vpop.f32.mrb[232].mxu0 }
 0xd5e   :  { %v12112_v33 = vpop.f32.mrb[233].mxu0  ;;  %v15527_v58 = vadd.f32 %v10311_v10, %v5470_v26 }
 0xd5f   :  { %v5473_v56 = vpop.f32.mrb[234].mxu0 }
 0xd60   :  { %v15529_v42 = vadd.f32 %v10311_v10, %v5473_v56  ;;  %v12113_v12 = vpop.f32.mrb[235].mxu0 }
 0xd62   :  { %v12474_v24 = vpack.i.bf16 %v15529_v42, %v15527_v58 }
 0xd64   :  { %12475 = vrot.lane.b32.xlu1 %v12474_v24, %s13158_s30 }
 0xd65   :  { %v5478_v57 = vpop.f32.mrb[236].mxu0 }
 0xd66   :  { %v12116_v35 = vpop.f32.mrb[237].mxu0  ;;  %v15534_v4 = vadd.f32 %v10311_v10, %v5478_v57 }
 0xd67   :  { %v5481_v39 = vpop.f32.mrb[238].mxu0 }
 0xd68   :  { %v15536_v0 = vadd.f32 %v10311_v10, %v5481_v39  ;;  %v12117_v2 = vpop.f32.mrb[239].mxu0 }
 0xd6a   :  { %v12479_v8 = vpack.i.bf16 %v15536_v0, %v15534_v4 }
 0xd6c   :  { %12480 = vrot.lane.b32.xlu0 %v12479_v8, %s13158_s30 }
 0xd6d   :  { %v5486_v11 = vpop.f32.mrb[240].mxu0 }
 0xd6e   :  { %v15541_v45 = vadd.f32 %v10311_v10, %v5486_v11  ;;  %v12120_v27 = vpop.f32.mrb[241].mxu0 }
 0xd6f   :  { %v5489_v53 = vpop.f32.mrb[242].mxu0 }
 0xd70   :  { %12485 = vrot.lane.b32.xlu0 %v12464_v22, %s13159_s0  ;;  %5553 = vrot.lane.b32.xlu1 %v15541_v45, %s13158_s30  ;;  %v12121_v30 = vpop.f32.mrb[243].mxu0  ;;  %s9967_s30 = sshll.u32 %s13162_s9, 4  ;;  %s9968_s30 = int_to_ptr.vmem [resolvable:$true] %s9967_s30 }
 0xd71   :  { %p13135_p1 = scmp.lt.s32.totalorder %s9968_s30, %s9968_s30 }
 0xd74   :  { %12495 = vrot.lane.b32.xlu0 %v12474_v24, %s13159_s0  ;;  %12490 = vrot.lane.b32.xlu1 %v12469_v18, %s13159_s0 }
 0xd78   :  { %12500 = vrot.lane.b32.xlu1 %v12479_v8, %s13159_s0 }
 0xdc6   :  { %v12466_v54 = vpop.permute.xlu0 %12465 }
 0xdc7   :  { %v12468_v41 = vunpack.i.h.bf16 %v12466_v54  ;;  %v12467_v14 = vunpack.i.l.bf16 %v12466_v54 }
 0xdc9   :  { %v12355_v52 = vpack.c.bf16 %v12468_v41, %v12467_v14  ;;  %v5493_v14 = vmul.f32 %v15512_v51, %v17430_v40 }
 0xdcb   :  { %12357 = vmatprep.subr.msk.bf16.mxu1 %vm13508_vm9, %v12355_v52 }
 0xdcc   :  { %12360 = vmatpush3.bf16.xpose.msk.msra.mxu1 %vm13508_vm9, %v12355_v52  ;;  %v5494_v52 = vmul.f32 %v15520_v31, %v17430_v40 }
 0xdce   :  { %v12471_v10 = vpop.permute.xlu1 %12470 }
 0xdcf   :  { %v12473_v60 = vunpack.i.h.bf16 %v12471_v10  ;;  %v12472_v32 = vunpack.i.l.bf16 %v12471_v10 }
 0xdd1   :  { %v12361_v62 = vpack.c.bf16 %v12473_v60, %v12472_v32  ;;  %v5495_v60 = vmul.f32 %v15522_v63, %v17430_v40  ;;  %v5496_v32 = vmul.f32 %v15527_v58, %v17430_v40 }
 0xdd3   :  { %12363 = vmatprep.subr.msk.bf16.mxu1 %vm13508_vm9, %v12361_v62 }
 0xdd4   :  { %12366 = vmatpush3.bf16.xpose.msk.msra.mxu1 %vm13508_vm9, %v12361_v62  ;;  %v5497_v62 = vmul.f32 %v15529_v42, %v17430_v40 }
 0xdd6   :  { %v12476_v44 = vpop.permute.xlu1 %12475 }
 0xdd7   :  { %v12478_v13 = vunpack.i.h.bf16 %v12476_v44  ;;  %v12477_v22 = vunpack.i.l.bf16 %v12476_v44  ;;  %v5498_v44 = vmul.f32 %v15534_v4, %v17430_v40 }
 0xdd9   :  { %v12367_v20 = vpack.c.bf16 %v12478_v13, %v12477_v22  ;;  %v5499_v13 = vmul.f32 %v15536_v0, %v17430_v40  ;;  %v5500_v22 = vmul.f32 %v15541_v45, %v17430_v40 }
 0xddb   :  { %12369 = vmatprep.subr.msk.bf16.mxu1 %vm13508_vm9, %v12367_v20 }
 0xddc   :  { %12372 = vmatpush3.bf16.xpose.msk.msra.mxu1 %vm13508_vm9, %v12367_v20  ;;  %v17432_v20 = vld [vmem:[#allocation8_spill] sm:$0xff] }
 0xddd   :  { %v5504_v40 = vmul.f32 %v15522_v63, %v17432_v20 }
 0xdde   :  { %v12481_v21 = vpop.permute.xlu0 %12480 }
 0xddf   :  { %v12483_v3 = vunpack.i.h.bf16 %v12481_v21  ;;  %v12482_v59 = vunpack.i.l.bf16 %v12481_v21  ;;  %v5501_v21 = vmul.f32 %v15510_v25, %v17432_v20 }
 0xde1   :  { %v12373_v18 = vpack.c.bf16 %v12483_v3, %v12482_v59  ;;  %v5502_v3 = vmul.f32 %v15512_v51, %v17432_v20  ;;  %v5503_v59 = vmul.f32 %v15520_v31, %v17432_v20 }
 0xde2   :  { %v5554_v26 = vpop.permute.xlu1 %5553  ;;  %v12486_v33 = vpop.permute.xlu0 %12485 }
 0xde3   :  { %v12488_v56 = vunpack.i.h.bf16 %v12486_v33  ;;  %v12487_v12 = vunpack.i.l.bf16 %v12486_v33  ;;  %12375 = vmatprep.subr.msk.bf16.mxu1 %vm13508_vm9, %v12373_v18  ;;  %v5507_v33 = vmul.f32 %v15534_v4, %v17432_v20 }
 0xde4   :  { %12378 = vmatpush3.bf16.xpose.msk.msra.mxu1 %vm13508_vm9, %v12373_v18  ;;  %v5505_v18 = vmul.f32 %v15527_v58, %v17432_v20 }
 0xde5   :  { %v12379_v24 = vpack.c.bf16 %v12488_v56, %v12487_v12  ;;  %12138 = vmatprep.subr.msk.mxu1 %vm611_vm7, %v5554_v26  ;;  %v5508_v56 = vmul.f32 %v15536_v0, %v17432_v20  ;;  %v5509_v12 = vmul.f32 %v15541_v45, %v17432_v20 }
 0xde6   :  { %v12491_v57 = vpop.permute.xlu1 %12490  ;;  %v12496_v35 = vpop.permute.xlu0 %12495 }
 0xde7   :  { %v12493_v39 = vunpack.i.h.bf16 %v12491_v57  ;;  %v12492_v2 = vunpack.i.l.bf16 %v12491_v57  ;;  %v12498_v8 = vunpack.i.h.bf16 %v12496_v35  ;;  %v12497_v11 = vunpack.i.l.bf16 %v12496_v35  ;;  %12380 = vmatprep.subr.bf16.mxu0 %v12379_v24 }
 0xde8   :  { %12382 = vmatpush3.bf16.msra.mxu0 %v12379_v24  ;;  %v17433_v24 = vld [vmem:[#allocation9_spill] sm:$0xff] }
 0xde9   :  { %v12383_v27 = vpack.c.bf16 %v12493_v39, %v12492_v2  ;;  %v12387_v30 = vpack.c.bf16 %v12498_v8, %v12497_v11  ;;  %v5510_v57 = vmul.f32 %v15510_v25, %v17433_v24  ;;  %v5511_v35 = vmul.f32 %v15512_v51, %v17433_v24 }
 0xdea   :  { %v12501_v53 = vpop.permute.xlu1 %12500  ;;  %v5512_v39 = vmul.f32 %v15520_v31, %v17433_v24  ;;  %v5513_v2 = vmul.f32 %v15522_v63, %v17433_v24  ;;  %v5514_v8 = vmul.f32 %v15527_v58, %v17433_v24  ;;  %v5515_v11 = vmul.f32 %v15529_v42, %v17433_v24 }
 0xdeb   :  { %v12503_v54 = vunpack.i.h.bf16 %v12501_v53  ;;  %v12502_v41 = vunpack.i.l.bf16 %v12501_v53  ;;  %12384 = vmatprep.subr.bf16.mxu0 %v12383_v27  ;;  %v5517_v53 = vmul.f32 %v15536_v0, %v17433_v24 }
 0xdec   :  { %12139 = vmatpush3.xpose.msk.msra.mxu1 %vm611_vm7, %v5554_v26  ;;  %12386 = vmatpush3.bf16.msra.mxu0 %v12383_v27  ;;  %v5506_v26 = vmul.f32 %v15529_v42, %v17432_v20  ;;  %v5516_v27 = vmul.f32 %v15534_v4, %v17433_v24  ;;  %v17437_v20 = vld [vmem:[#allocation14_spill] sm:$0xff] }
 0xded   :  { %12388 = vmatprep.subr.bf16.mxu0 %v12387_v30  ;;  %12266 = vmatprep.subr.bf16.mxu1 %v17417_v46  ;;  %v12391_v10 = vpack.c.bf16 %v12503_v54, %v12502_v41  ;;  %v17434_v54 = vld [vmem:[#allocation10_spill] sm:$0xff] }
 0xdee   :  { %v5519_v41 = vmul.f32 %v15510_v25, %v17434_v54  ;;  %v5523_v25 = vmul.f32 %v15527_v58, %v17434_v54  ;;  %v5527_v58 = vmul.f32 %v15541_v45, %v17434_v54 }
 0xdef   :  { %12141 = vmatmul.mubr.msk.f32.vlgmr.msra.gmra.mrb[220].mxu1 %vm611_vm7, %v5493_v14  ;;  %v5520_v14 = vmul.f32 %v15512_v51, %v17434_v54  ;;  %v5524_v51 = vmul.f32 %v15529_v42, %v17434_v54 }
 0xdf0   :  { %12143 = vmatprep.mubr.msk.f32.mxu1 %vm611_vm7, %v5494_v52  ;;  %12390 = vmatpush3.bf16.msra.mxu0 %v12387_v30  ;;  %v5518_v30 = vmul.f32 %v15541_v45, %v17433_v24  ;;  %v5521_v52 = vmul.f32 %v15520_v31, %v17434_v54  ;;  %v5525_v31 = vmul.f32 %v15534_v4, %v17434_v54  ;;  %v17440_v24 = vld [vmem:[#allocation17_spill] sm:$0xff] }
 0xdf1   :  { %12392 = vmatprep.subr.bf16.mxu0 %v12391_v10 }
 0xdf3   :  { %12144 = vmatmul.mubr.msk.f32.gmra.mrb[222].mxu1 %vm611_vm7, %v5495_v60  ;;  %v17435_v60 = vld [vmem:[#allocation12_spill] sm:$0xff] }
 0xdf4   :  { %12146 = vmatprep.mubr.msk.f32.mxu1 %vm611_vm7, %v5496_v32  ;;  %12394 = vmatpush3.bf16.msra.mxu0 %v12391_v10  ;;  %v5522_v10 = vmul.f32 %v15522_v63, %v17434_v54  ;;  %v5526_v63 = vmul.f32 %v15536_v0, %v17434_v54 }
 0xdf7   :  { %12147 = vmatmul.mubr.msk.f32.gmra.mrb[224].mxu1 %vm611_vm7, %v5497_v62  ;;  %v17436_v62 = vld [vmem:[#allocation13_spill] sm:$0xff] }
 0xdf8   :  { %12149 = vmatprep.mubr.msk.f32.mxu1 %vm611_vm7, %v5498_v44 }
 0xdfb   :  { %12150 = vmatmul.mubr.msk.f32.gmra.mrb[226].mxu1 %vm611_vm7, %v5499_v13 }
 0xdfc   :  { %12152 = vmatprep.mubr.msk.f32.mxu1 %vm611_vm7, %v5500_v22 }
 0xdff   :  { %12153 = vmatmul.mubr.msk.f32.gmra.mrb[228].mxu1 %vm611_vm7, %v5501_v21 }
 0xe00   :  { %12155 = vmatprep.mubr.msk.f32.mxu1 %vm611_vm7, %v5502_v3 }
 0xe03   :  { %12156 = vmatmul.mubr.msk.f32.gmra.mrb[230].mxu1 %vm611_vm7, %v5503_v59 }
 0xe04   :  { %12158 = vmatprep.mubr.msk.f32.mxu1 %vm611_vm7, %v5504_v40  ;;  %v17438_v40 = vld [vmem:[#allocation15_spill] sm:$0xff] }
 0xe07   :  { %12159 = vmatmul.mubr.msk.f32.gmra.mrb[232].mxu1 %vm611_vm7, %v5505_v18 }
 0xe08   :  { %12161 = vmatprep.mubr.msk.f32.mxu1 %vm611_vm7, %v5506_v26 }
 0xe0b   :  { %12162 = vmatmul.mubr.msk.f32.gmra.mrb[234].mxu1 %vm611_vm7, %v5507_v33 }
 0xe0c   :  { %12164 = vmatprep.mubr.msk.f32.mxu1 %vm611_vm7, %v5508_v56  ;;  %v17439_v56 = vld [vmem:[#allocation16_spill] sm:$0xff] }
 0xe0f   :  { %12165 = vmatmul.mubr.msk.f32.gmra.mrb[236].mxu1 %vm611_vm7, %v5509_v12 }
 0xe10   :  { %12167 = vmatprep.mubr.msk.f32.mxu1 %vm611_vm7, %v5510_v57 }
 0xe13   :  { %12168 = vmatmul.mubr.msk.f32.gmra.mrb[238].mxu1 %vm611_vm7, %v5511_v35 }
 0xe14   :  { %12170 = vmatprep.mubr.msk.f32.mxu1 %vm611_vm7, %v5512_v39 }
 0xe17   :  { %12171 = vmatmul.mubr.msk.f32.gmra.mrb[240].mxu1 %vm611_vm7, %v5513_v2 }
 0xe18   :  { %12173 = vmatprep.mubr.msk.f32.mxu1 %vm611_vm7, %v5514_v8 }
 0xe1b   :  { %12174 = vmatmul.mubr.msk.f32.gmra.mrb[242].mxu1 %vm611_vm7, %v5515_v11  ;;  %v17441_v11 = vld [vmem:[#allocation18_spill] sm:$0xff] }
 0xe1c   :  { %12176 = vmatprep.mubr.msk.f32.mxu1 %vm611_vm7, %v5516_v27 }
 0xe1f   :  { %12177 = vmatmul.mubr.msk.f32.gmra.mrb[244].mxu1 %vm611_vm7, %v5517_v53  ;;  %v17442_v53 = vld [vmem:[#allocation19_spill] sm:$0xff] }
 0xe20   :  { %12179 = vmatprep.mubr.msk.f32.mxu1 %vm611_vm7, %v5518_v30 }
 0xe23   :  { %12180 = vmatmul.mubr.msk.f32.gmra.mrb[246].mxu1 %vm611_vm7, %v5519_v41 }
 0xe24   :  { %12182 = vmatprep.mubr.msk.f32.mxu1 %vm611_vm7, %v5520_v14 }
 0xe27   :  { %12183 = vmatmul.mubr.msk.f32.gmra.mrb[248].mxu1 %vm611_vm7, %v5521_v52 }
 0xe28   :  { %12185 = vmatprep.mubr.msk.f32.mxu1 %vm611_vm7, %v5522_v10  ;;  %v17443_v10 = vld [vmem:[#allocation20_spill] sm:$0xff] }
 0xe2b   :  { %12186 = vmatmul.mubr.msk.f32.gmra.mrb[250].mxu1 %vm611_vm7, %v5523_v25 }
 0xe2c   :  { %12188 = vmatprep.mubr.msk.f32.mxu1 %vm611_vm7, %v5524_v51 }
 0xe2f   :  { %12189 = vmatmul.mubr.msk.f32.gmra.mrb[252].mxu1 %vm611_vm7, %v5525_v31 }
 0xe30   :  { %12191 = vmatprep.mubr.msk.f32.mxu1 %vm611_vm7, %v5526_v63 }
 0xe33   :  { %12192 = vmatmul.mubr.msk.f32.gmra.mrb[254].mxu1 %vm611_vm7, %v5527_v58 }
 0xe34   :  { %12270 = vmatprep.mubr.msk.bf16.mxu1 %vm13156_vm5, %v17417_v46 }
 0xec2   :  { %v12142_v42 = vpop.f32.mrb[220].mxu1 }
 0xec3   :  { %v15676_v32 = vadd.f32 %v12142_v42, %v17435_v60  ;;  %v5747_v4 = vpop.f32.mrb[221].mxu1 }
 0xec4   :  { %v15679_v44 = vadd.f32 %v5747_v4, %v17436_v62 }
 0xec5   :  { %v5929_v0 = vsel %vm1309_vm6, %v15676_v32, -inf }
 0xec6   :  { %5930 = vmax.xlane.f32.xlu1 %v5929_v0  ;;  %v12145_v13 = vpop.f32.mrb[222].mxu1  ;;  %v5926_v22 = vsel %vm1309_vm6, %v15679_v44, -inf }
 0xec7   :  { %v15686_v21 = vadd.f32 %v12145_v13, %v17437_v20  ;;  %v5757_v3 = vpop.f32.mrb[223].mxu1  ;;  %5927 = vmax.xlane.f32.xlu0 %v5926_v22 }
 0xec8   :  { %v15691_v18 = vadd.f32 %v5757_v3, %v17438_v40 }
 0xec9   :  { %v5935_v59 = vsel %vm1309_vm6, %v15686_v21, -inf }
 0xeca   :  { %v12148_v26 = vpop.f32.mrb[224].mxu1  ;;  %v5932_v2 = vsel %vm1309_vm6, %v15691_v18, -inf }
 0xecb   :  { %v5767_v33 = vpop.f32.mrb[225].mxu1  ;;  %5936 = vmax.xlane.f32.xlu0 %v5935_v59  ;;  %v15697_v57 = vadd.f32 %v12148_v26, %v17440_v24 }
 0xecc   :  { %v15694_v12 = vadd.f32 %v5767_v33, %v17439_v56 }
 0xecd   :  { %v5941_v14 = vsel %vm1309_vm6, %v15697_v57, -inf }
 0xece   :  { %v12151_v35 = vpop.f32.mrb[226].mxu1  ;;  %v5938_v39 = vsel %vm1309_vm6, %v15694_v12, -inf }
 0xecf   :  { %v5777_v8 = vpop.f32.mrb[227].mxu1  ;;  %5939 = vmax.xlane.f32.xlu1 %v5938_v39  ;;  %5933 = vmax.xlane.f32.xlu0 %v5932_v2  ;;  %v15707_v30 = vadd.f32 %v12151_v35, %v17442_v53 }
 0xed0   :  { %v15704_v27 = vadd.f32 %v5777_v8, %v17441_v11 }
 0xed1   :  { %v5947_v58 = vsel %vm1309_vm6, %v15707_v30, -inf }
 0xed2   :  { %v12154_v54 = vpop.f32.mrb[228].mxu1  ;;  %v5944_v41 = vsel %vm1309_vm6, %v15704_v27, -inf }
 0xed3   :  { %v5787_v52 = vpop.f32.mrb[229].mxu1  ;;  %5945 = vmax.xlane.f32.xlu1 %v5944_v41  ;;  %5942 = vmax.xlane.f32.xlu0 %v5941_v14  ;;  %v15717_v51 = vadd.f32 %v12154_v54, %v17436_v62 }
 0xed4   :  { %v15714_v25 = vadd.f32 %v5787_v52, %v17443_v10 }
 0xed5   :  { %v5953_v3 = vsel %vm1309_vm6, %v15717_v51, -inf }
 0xed6   :  { %v12157_v31 = vpop.f32.mrb[230].mxu1  ;;  %v5950_v63 = vsel %vm1309_vm6, %v15714_v25, -inf }
 0xed7   :  { %v5797_v42 = vpop.f32.mrb[231].mxu1  ;;  %5951 = vmax.xlane.f32.xlu1 %v5950_v63  ;;  %5948 = vmax.xlane.f32.xlu0 %v5947_v58  ;;  %v15727_v0 = vadd.f32 %v12157_v31, %v17438_v40 }
 0xed8   :  { %v15724_v4 = vadd.f32 %v5797_v42, %v17435_v60 }
 0xed9   :  { %v5959_v2 = vsel %vm1309_vm6, %v15727_v0, -inf }
 0xeda   :  { %v12160_v13 = vpop.f32.mrb[232].mxu1  ;;  %v5956_v22 = vsel %vm1309_vm6, %v15724_v4, -inf }
 0xedb   :  { %v5807_v59 = vpop.f32.mrb[233].mxu1  ;;  %5957 = vmax.xlane.f32.xlu1 %v5956_v22  ;;  %5954 = vmax.xlane.f32.xlu0 %v5953_v3  ;;  %v15737_v33 = vadd.f32 %v12160_v13, %v17439_v56 }
 0xedc   :  { %v15734_v26 = vadd.f32 %v5807_v59, %v17437_v20 }
 0xedd   :  { %v5965_v31 = vsel %vm1309_vm6, %v15737_v33, -inf }
 0xede   :  { %v12163_v35 = vpop.f32.mrb[234].mxu1  ;;  %v5962_v39 = vsel %vm1309_vm6, %v15734_v26, -inf }
 0xedf   :  { %v5817_v8 = vpop.f32.mrb[235].mxu1  ;;  %5963 = vmax.xlane.f32.xlu1 %v5962_v39  ;;  %5960 = vmax.xlane.f32.xlu0 %v5959_v2  ;;  %v15747_v41 = vadd.f32 %v12163_v35, %v17441_v11 }
 0xee0   :  { %v15744_v54 = vadd.f32 %v5817_v8, %v17440_v24 }
 0xee1   :  { %v5971_v3 = vsel %vm1309_vm6, %v15747_v41, -inf }
 0xee2   :  { %v12166_v14 = vpop.f32.mrb[236].mxu1  ;;  %v5968_v52 = vsel %vm1309_vm6, %v15744_v54, -inf }
 0xee3   :  { %v5827_v63 = vpop.f32.mrb[237].mxu1  ;;  %5969 = vmax.xlane.f32.xlu1 %v5968_v52  ;;  %5966 = vmax.xlane.f32.xlu0 %v5965_v31  ;;  %v15757_v42 = vadd.f32 %v12166_v14, %v17443_v10 }
 0xee4   :  { %v15754_v58 = vadd.f32 %v5827_v63, %v17442_v53 }
 0xee5   :  { %v5977_v14 = vsel %vm1309_vm6, %v15757_v42, -inf }
 0xee6   :  { %v12169_v13 = vpop.f32.mrb[238].mxu1  ;;  %v5974_v22 = vsel %vm1309_vm6, %v15754_v58, -inf }
 0xee7   :  { %v5837_v59 = vpop.f32.mrb[239].mxu1  ;;  %5975 = vmax.xlane.f32.xlu1 %v5974_v22  ;;  %5972 = vmax.xlane.f32.xlu0 %v5971_v3  ;;  %v15767_v39 = vadd.f32 %v12169_v13, %v17435_v60 }
 0xee8   :  { %v15764_v35 = vadd.f32 %v5837_v59, %v17436_v62 }
 0xee9   :  { %v5983_v3 = vsel %vm1309_vm6, %v15767_v39, -inf }
 0xeea   :  { %v12172_v2 = vpop.f32.mrb[240].mxu1  ;;  %v5980_v8 = vsel %vm1309_vm6, %v15764_v35, -inf }
 0xeeb   :  { %v5847_v52 = vpop.f32.mrb[241].mxu1  ;;  %5981 = vmax.xlane.f32.xlu1 %v5980_v8  ;;  %5978 = vmax.xlane.f32.xlu0 %v5977_v14  ;;  %v15777_v63 = vadd.f32 %v12172_v2, %v17437_v20 }
 0xeec   :  { %v15774_v31 = vadd.f32 %v5847_v52, %v17438_v40 }
 0xeed   :  { %v5989_v52 = vsel %vm1309_vm6, %v15777_v63, -inf }
 0xeee   :  { %v12175_v22 = vpop.f32.mrb[242].mxu1  ;;  %v5986_v13 = vsel %vm1309_vm6, %v15774_v31, -inf }
 0xeef   :  { %v5857_v59 = vpop.f32.mrb[243].mxu1  ;;  %5987 = vmax.xlane.f32.xlu1 %v5986_v13  ;;  %5984 = vmax.xlane.f32.xlu0 %v5983_v3  ;;  %v15787_v8 = vadd.f32 %v12175_v22, %v17440_v24 }
 0xef0   :  { %v15784_v50 = vadd.f32 %v5857_v59, %v17439_v56 }
 0xef1   :  { %v5995_v59 = vsel %vm1309_vm6, %v15787_v8, -inf }
 0xef2   :  { %v12178_v14 = vpop.f32.mrb[244].mxu1  ;;  %v5992_v2 = vsel %vm1309_vm6, %v15784_v50, -inf }
 0xef3   :  { %v5867_v34 = vpop.f32.mrb[245].mxu1  ;;  %5993 = vmax.xlane.f32.xlu1 %v5992_v2  ;;  %5990 = vmax.xlane.f32.xlu0 %v5989_v52  ;;  %v15797_v13 = vadd.f32 %v12178_v14, %v17442_v53 }
 0xef4   :  { %v15794_v15 = vadd.f32 %v5867_v34, %v17441_v11 }
 0xef5   :  { %v6001_v52 = vsel %vm1309_vm6, %v15797_v13, -inf }
 0xef6   :  { %v12181_v3 = vpop.f32.mrb[246].mxu1  ;;  %v5998_v22 = vsel %vm1309_vm6, %v15794_v15, -inf }
 0xef7   :  { %v5877_v5 = vpop.f32.mrb[247].mxu1  ;;  %5999 = vmax.xlane.f32.xlu1 %v5998_v22  ;;  %5996 = vmax.xlane.f32.xlu0 %v5995_v59  ;;  %v15807_v2 = vadd.f32 %v12181_v3, %v17436_v62 }
 0xef8   :  { %v15804_v16 = vadd.f32 %v5877_v5, %v17443_v10 }
 0xef9   :  { %v6007_v3 = vsel %vm1309_vm6, %v15807_v2, -inf }
 0xefa   :  { %v12184_v34 = vpop.f32.mrb[248].mxu1  ;;  %v6004_v14 = vsel %vm1309_vm6, %v15804_v16, -inf }
 0xefb   :  { %v5887_v19 = vpop.f32.mrb[249].mxu1  ;;  %6005 = vmax.xlane.f32.xlu1 %v6004_v14  ;;  %6002 = vmax.xlane.f32.xlu0 %v6001_v52  ;;  %v15817_v22 = vadd.f32 %v12184_v34, %v17438_v40 }
 0xefc   :  { %v15814_v36 = vadd.f32 %v5887_v19, %v17435_v60 }
 0xefd   :  { %v6013_v40 = vsel %vm1309_vm6, %v15817_v22, -inf }
 0xefe   :  { %v12187_v5 = vpop.f32.mrb[250].mxu1  ;;  %v6010_v62 = vsel %vm1309_vm6, %v15814_v36, -inf }
 0xeff   :  { %v5897_v59 = vpop.f32.mrb[251].mxu1  ;;  %6011 = vmax.xlane.f32.xlu1 %v6010_v62  ;;  %6008 = vmax.xlane.f32.xlu0 %v6007_v3  ;;  %v15827_v14 = vadd.f32 %v12187_v5, %v17439_v56 }
 0xf00   :  { %v15824_v47 = vadd.f32 %v5897_v59, %v17437_v20 }
 0xf01   :  { %v6019_v5 = vsel %vm1309_vm6, %v15827_v14, -inf }
 0xf02   :  { %v12190_v19 = vpop.f32.mrb[252].mxu1  ;;  %v6016_v60 = vsel %vm1309_vm6, %v15824_v47, -inf }
 0xf03   :  { %v5907_v34 = vpop.f32.mrb[253].mxu1  ;;  %6017 = vmax.xlane.f32.xlu1 %v6016_v60  ;;  %6014 = vmax.xlane.f32.xlu0 %v6013_v40  ;;  %v15837_v62 = vadd.f32 %v12190_v19, %v17441_v11 }
 0xf04   :  { %v15834_v52 = vadd.f32 %v5907_v34, %v17440_v24 }
 0xf05   :  { %v6025_v11 = vsel %vm1309_vm6, %v15837_v62, -inf }
 0xf06   :  { %v12193_v20 = vpop.f32.mrb[254].mxu1  ;;  %v6022_v56 = vsel %vm1309_vm6, %v15834_v52, -inf }
 0xf07   :  { %v5917_v3 = vpop.f32.mrb[255].mxu1  ;;  %6023 = vmax.xlane.f32.xlu1 %v6022_v56  ;;  %6020 = vmax.xlane.f32.xlu0 %v6019_v5  ;;  %v15847_v60 = vadd.f32 %v12193_v20, %v17443_v10 }
 0xf08   :  { %v15844_v59 = vadd.f32 %v5917_v3, %v17442_v53 }
 0xf09   :  { %v6031_v19 = vsel %vm1309_vm6, %v15847_v60, -inf }
 0xf0a   :  { %v6028_v24 = vsel %vm1309_vm6, %v15844_v59, -inf }
 0xf0b   :  { %6029 = vmax.xlane.f32.xlu1 %v6028_v24  ;;  %6026 = vmax.xlane.f32.xlu0 %v6025_v11 }
 0xf0f   :  { %6032 = vmax.xlane.f32.xlu0 %v6031_v19 }
 0xf53   :  { %v5931_v40 = vpop.xlane.xlu1 %5930 }
 0xf54   :  { %v6035_v34 = vsub.f32 %v15676_v32, %v5931_v40  ;;  %v5928_v53 = vpop.xlane.xlu0 %5927 }
 0xf55   :  { %v6034_v56 = vsub.f32 %v15679_v44, %v5928_v53 }
 0xf56   :  { %v6072_v10 = vmul.f32 1.442695, %v6035_v34 }
 0xf57   :  { %v6070_v20 = vmul.f32 1.442695, %v6034_v56 }
 0xf58   :  { %12968 = vpow2.f32 %v6072_v10  ;;  %v5937_v5 = vpop.xlane.xlu0 %5936 }
 0xf59   :  { %12970 = vpow2.f32 %v6070_v20  ;;  %v6037_v3 = vsub.f32 %v15686_v21, %v5937_v5 }
 0xf5b   :  { %v6076_v7 = vmul.f32 1.442695, %v6037_v3 }
 0xf5c   :  { %v5940_v24 = vpop.xlane.xlu1 %5939  ;;  %v5934_v11 = vpop.xlane.xlu0 %5933 }
 0xf5d   :  { %12972 = vpow2.f32 %v6076_v7  ;;  %v6036_v28 = vsub.f32 %v15691_v18, %v5934_v11  ;;  %v6038_v38 = vsub.f32 %v15694_v12, %v5940_v24 }
 0xf5f   :  { %v6074_v19 = vmul.f32 1.442695, %v6036_v28  ;;  %v6078_v10 = vmul.f32 1.442695, %v6038_v38 }
 0xf60   :  { %v5946_v32 = vpop.xlane.xlu1 %5945  ;;  %v5943_v40 = vpop.xlane.xlu0 %5942 }
 0xf61   :  { %v6039_v44 = vsub.f32 %v15697_v57, %v5943_v40  ;;  %12974 = vpow2.f32 %v6074_v19  ;;  %v6040_v7 = vsub.f32 %v15704_v27, %v5946_v32 }
 0xf62   :  { %v15861_v34 = vpop.eup %12968 }
 0xf63   :  { %v15863_v53 = vpop.eup %12970  ;;  %v6080_v56 = vmul.f32 1.442695, %v6039_v44  ;;  %v6145_v21 = vsel %vm1309_vm6, %v15861_v34, 0.0  ;;  %v6082_v3 = vmul.f32 1.442695, %v6040_v7 }
 0xf64   :  { %v5952_v18 = vpop.xlane.xlu1 %5951  ;;  %6146 = vadd.xlane.f32.xlu0 %v6145_v21  ;;  %v5949_v28 = vpop.xlane.xlu0 %5948  ;;  %v6142_v12 = vsel %vm1309_vm6, %v15863_v53, 0.0 }
 0xf65   :  { %v6041_v57 = vsub.f32 %v15707_v30, %v5949_v28  ;;  %6143 = vadd.xlane.f32.xlu1 %v6142_v12  ;;  %12976 = vpow2.f32 %v6080_v56  ;;  %v6042_v30 = vsub.f32 %v15714_v25, %v5952_v18 }
 0xf66   :  { %12978 = vpow2.f32 %v6078_v10 }
 0xf67   :  { %v15871_v20 = vpop.eup %12972  ;;  %v6084_v5 = vmul.f32 1.442695, %v6041_v57 }
 0xf68   :  { %v5958_v24 = vpop.xlane.xlu1 %5957  ;;  %v5955_v11 = vpop.xlane.xlu0 %5954  ;;  %v6151_v38 = vsel %vm1309_vm6, %v15871_v20, 0.0 }
 0xf69   :  { %v6043_v27 = vsub.f32 %v15717_v51, %v5955_v11  ;;  %6152 = vadd.xlane.f32.xlu0 %v6151_v38  ;;  %12980 = vpow2.f32 %v6084_v5  ;;  %v6086_v51 = vmul.f32 1.442695, %v6042_v30  ;;  %v6044_v28 = vsub.f32 %v15724_v4, %v5958_v24 }
 0xf6a   :  { %12982 = vpow2.f32 %v6082_v3 }
 0xf6b   :  { %v15876_v19 = vpop.eup %12974  ;;  %v6088_v32 = vmul.f32 1.442695, %v6043_v27  ;;  %v6090_v11 = vmul.f32 1.442695, %v6044_v28 }
 0xf6c   :  { %v5964_v40 = vpop.xlane.xlu1 %5963  ;;  %v5961_v44 = vpop.xlane.xlu0 %5960  ;;  %v6148_v21 = vsel %vm1309_vm6, %v15876_v19, 0.0 }
 0xf6d   :  { %v6045_v56 = vsub.f32 %v15727_v0, %v5961_v44  ;;  %6149 = vadd.xlane.f32.xlu1 %v6148_v21  ;;  %12984 = vpow2.f32 %v6088_v32  ;;  %v6046_v38 = vsub.f32 %v15734_v26, %v5964_v40 }
 0xf6f   :  { %v6092_v10 = vmul.f32 1.442695, %v6045_v56  ;;  %v15882_v7 = vpop.eup %12976  ;;  %v6094_v32 = vmul.f32 1.442695, %v6046_v38 }
 0xf70   :  { %v5967_v12 = vpop.xlane.xlu0 %5966  ;;  %v5970_v57 = vpop.xlane.xlu1 %5969  ;;  %v6157_v18 = vsel %vm1309_vm6, %v15882_v7, 0.0 }
 0xf71   :  { %v6047_v25 = vsub.f32 %v15737_v33, %v5967_v12  ;;  %v15888_v5 = vpop.eup %12978  ;;  %12986 = vpow2.f32 %v6092_v10  ;;  %6158 = vadd.xlane.f32.xlu1 %v6157_v18  ;;  %v6048_v10 = vsub.f32 %v15744_v54, %v5970_v57 }
 0xf72   :  { %12988 = vpow2.f32 %v6086_v51  ;;  %v6154_v24 = vsel %vm1309_vm6, %v15888_v5, 0.0 }
 0xf73   :  { %v6096_v0 = vmul.f32 1.442695, %v6047_v25  ;;  %v15890_v3 = vpop.eup %12980 }
 0xf74   :  { %v5973_v4 = vpop.xlane.xlu0 %5972  ;;  %v6163_v33 = vsel %vm1309_vm6, %v15890_v3, 0.0  ;;  %v15897_v27 = vpop.eup %12982 }
 0xf75   :  { %12990 = vpow2.f32 %v6096_v0  ;;  %6155 = vadd.xlane.f32.xlu1 %v6154_v24  ;;  %6164 = vadd.xlane.f32.xlu0 %v6163_v33  ;;  %v15899_v30 = vpop.xlane.xlu1 %5975  ;;  %v6049_v44 = vsub.f32 %v15747_v41, %v5973_v4  ;;  %v6160_v26 = vsel %vm1309_vm6, %v15897_v27, 0.0  ;;  %v6098_v0 = vmul.f32 1.442695, %v6048_v10 }
 0xf76   :  { %12992 = vpow2.f32 %v6090_v11 }
 0xf77   :  { %v15904_v40 = vpop.eup %12984  ;;  %12994 = vpow2.f32 %v6094_v32  ;;  %v6100_v51 = vmul.f32 1.442695, %v6049_v44 }
 0xf78   :  { %v5979_v56 = vpop.xlane.xlu0 %5978  ;;  %v6169_v12 = vsel %vm1309_vm6, %v15904_v40, 0.0 }
 0xf79   :  { %6161 = vadd.xlane.f32.xlu1 %v6160_v26  ;;  %v5982_v28 = vpop.xlane.xlu1 %5981  ;;  %12996 = vpow2.f32 %v6100_v51  ;;  %v6051_v11 = vsub.f32 %v15757_v42, %v5979_v56 }
 0xf7a   :  { %12998 = vpow2.f32 %v6098_v0  ;;  %v6052_v26 = vsub.f32 %v15764_v35, %v5982_v28 }
 0xf7b   :  { %v15906_v21 = vpop.eup %12986  ;;  %v6104_v33 = vmul.f32 1.442695, %v6051_v11 }
 0xf7c   :  { %v6175_v41 = vsel %vm1309_vm6, %v15906_v21, 0.0  ;;  %v15913_v25 = vpop.eup %12988  ;;  %v5985_v38 = vpop.xlane.xlu0 %5984  ;;  %v6106_v0 = vmul.f32 1.442695, %v6052_v26 }
 0xf7d   :  { %6170 = vadd.xlane.f32.xlu1 %v6169_v12  ;;  %6176 = vadd.xlane.f32.xlu0 %v6175_v41  ;;  %v6166_v54 = vsel %vm1309_vm6, %v15913_v25, 0.0  ;;  %v5988_v24 = vpop.xlane.xlu1 %5987  ;;  %v6053_v32 = vsub.f32 %v15767_v39, %v5985_v38  ;;  %13000 = vpow2.f32 %v6104_v33 }
 0xf7e   :  { %v6054_v28 = vsub.f32 %v15774_v31, %v5988_v24 }
 0xf7f   :  { %v15915_v18 = vpop.eup %12990  ;;  %v6108_v56 = vmul.f32 1.442695, %v6053_v32 }
 0xf80   :  { %v6181_v57 = vsel %vm1309_vm6, %v15915_v18, 0.0  ;;  %v15922_v4 = vpop.eup %12992  ;;  %v5991_v51 = vpop.xlane.xlu0 %5990 }
 0xf81   :  { %6167 = vadd.xlane.f32.xlu1 %v6166_v54  ;;  %6182 = vadd.xlane.f32.xlu0 %v6181_v57  ;;  %v6172_v44 = vsel %vm1309_vm6, %v15922_v4, 0.0  ;;  %v15927_v42 = vpop.eup %12994  ;;  %v5994_v10 = vpop.xlane.xlu1 %5993  ;;  %13002 = vpow2.f32 %v6108_v56  ;;  %v6055_v39 = vsub.f32 %v15777_v63, %v5991_v51 }
 0xf82   :  { %v6178_v12 = vsel %vm1309_vm6, %v15927_v42, 0.0  ;;  %13004 = vpow2.f32 %v6106_v0  ;;  %v6056_v31 = vsub.f32 %v15784_v50, %v5994_v10 }
 0xf83   :  { %v15932_v41 = vpop.eup %12996  ;;  %v6112_v54 = vmul.f32 1.442695, %v6055_v39 }
 0xf84   :  { %v6187_v11 = vsel %vm1309_vm6, %v15932_v41, 0.0  ;;  %v15937_v38 = vpop.eup %12998  ;;  %v5997_v57 = vpop.xlane.xlu0 %5996 }
 0xf85   :  { %6173 = vadd.xlane.f32.xlu1 %v6172_v44  ;;  %v6000_v35 = vpop.xlane.xlu1 %5999  ;;  %v6184_v33 = vsel %vm1309_vm6, %v15937_v38, 0.0  ;;  %v6110_v44 = vmul.f32 1.442695, %v6054_v28  ;;  %13006 = vpow2.f32 %v6112_v54  ;;  %v6057_v63 = vsub.f32 %v15787_v8, %v5997_v57 }
 0xf86   :  { %v6058_v28 = vsub.f32 %v15794_v15, %v6000_v35 }
 0xf87   :  { %v15942_v32 = vpop.eup %13000  ;;  %13008 = vpow2.f32 %v6110_v44  ;;  %v6116_v24 = vmul.f32 1.442695, %v6057_v63 }
 0xf88   :  { %v6193_v56 = vsel %vm1309_vm6, %v15942_v32, 0.0 }
 0xf89   :  { %6179 = vadd.xlane.f32.xlu1 %v6178_v12  ;;  %v6006_v26 = vpop.xlane.xlu1 %6005  ;;  %v6003_v12 = vpop.xlane.xlu0 %6002  ;;  %13010 = vpow2.f32 %v6116_v24 }
 0xf8a   :  { %v6060_v57 = vsub.f32 %v15804_v16, %v6006_v26 }
 0xf8b   :  { %v15947_v51 = vpop.eup %13002 }
 0xf8c   :  { %v6199_v0 = vsel %vm1309_vm6, %v15947_v51, 0.0  ;;  %v15954_v39 = vpop.eup %13004  ;;  %v6122_v35 = vmul.f32 1.442695, %v6060_v57 }
 0xf8d   :  { %6188 = vadd.xlane.f32.xlu1 %v6187_v11  ;;  %v6012_v8 = vpop.xlane.xlu1 %6011  ;;  %v6114_v11 = vmul.f32 1.442695, %v6056_v31  ;;  %v6196_v54 = vsel %vm1309_vm6, %v15954_v39, 0.0  ;;  %v6009_v10 = vpop.xlane.xlu0 %6008 }
 0xf8f   :  { %v15959_v50 = vpop.eup %13006  ;;  %13012 = vpow2.f32 %v6114_v11 }
 0xf90   :  { %v6205_v63 = vsel %vm1309_vm6, %v15959_v50, 0.0 }
 0xf91   :  { %6185 = vadd.xlane.f32.xlu1 %v6184_v33  ;;  %v6050_v33 = vsub.f32 %v15754_v58, %v15899_v30  ;;  %v6018_v44 = vpop.xlane.xlu1 %6017  ;;  %v15966_v15 = vpop.eup %13008 }
 0xf92   :  { %v6015_v31 = vpop.xlane.xlu0 %6014  ;;  %v6202_v16 = vsel %vm1309_vm6, %v15966_v15, 0.0  ;;  %v6064_v11 = vsub.f32 %v15824_v47, %v6018_v44 }
 0xf93   :  { %v6102_v24 = vmul.f32 1.442695, %v6050_v33  ;;  %v15972_v26 = vpop.eup %13010  ;;  %v6063_v33 = vsub.f32 %v15817_v22, %v6015_v31 }
 0xf95   :  { %6194 = vadd.xlane.f32.xlu1 %v6193_v56  ;;  %v6062_v56 = vsub.f32 %v15814_v36, %v6012_v8  ;;  %v6024_v58 = vpop.xlane.xlu1 %6023  ;;  %v6211_v36 = vsel %vm1309_vm6, %v15972_v26, 0.0 }
 0xf97   :  { %6338 = vrot.lane.b32.xlu0 %v15541_v45, %s13159_s0  ;;  %v6118_v45 = vmul.f32 1.442695, %v6058_v28  ;;  %v6126_v30 = vmul.f32 1.442695, %v6062_v56  ;;  %v6128_v56 = vmul.f32 1.442695, %v6063_v33 }
 0xf98   :  { %s13134_s0 = scalar_lea.vmem %s9968_s30, 32 }
 0xf99   :  { %6200 = vadd.xlane.f32.xlu1 %v6199_v0  ;;  %13014 = vpow2.f32 %v6118_v45  ;;  %v6059_v0 = vsub.f32 %v15797_v13, %v6003_v12  ;;  %v15978_v8 = vpop.eup %13012  ;;  %v6021_v13 = vpop.xlane.xlu0 %6020  ;;  %v6130_v12 = vmul.f32 1.442695, %v6064_v11  ;;  %v6066_v45 = vsub.f32 %v15834_v52, %v6024_v58 }
 0xf9a   :  { %13016 = vpow2.f32 %v6122_v35  ;;  %v6030_v47 = vpop.xlane.xlu1 %6029  ;;  %v6208_v44 = vsel %vm1309_vm6, %v15978_v8, 0.0  ;;  %v6065_v52 = vsub.f32 %v15827_v14, %v6021_v13 }
 0xf9b   :  { %13018 = vpow2.f32 %v6102_v24  ;;  %v6120_v28 = vmul.f32 1.442695, %v6059_v0 }
 0xf9c   :  { %13020 = vpow2.f32 %v6126_v30 }
 0xf9d   :  { %6197 = vadd.xlane.f32.xlu1 %v6196_v54  ;;  %v6061_v54 = vsub.f32 %v15807_v2, %v6009_v10  ;;  %13022 = vpow2.f32 %v6120_v28  ;;  %v6134_v10 = vmul.f32 1.442695, %v6066_v45  ;;  %v6027_v35 = vpop.xlane.xlu0 %6026 }
 0xf9e   :  { %13024 = vpow2.f32 %v6130_v12  ;;  %v6067_v58 = vsub.f32 %v15837_v62, %v6027_v35 }
 0xf9f   :  { %v6124_v57 = vmul.f32 1.442695, %v6061_v54 }
 0xfa0   :  { %v6136_v54 = vmul.f32 1.442695, %v6067_v58 }
 0xfa1   :  { %6206 = vadd.xlane.f32.xlu1 %v6205_v63  ;;  %v6068_v63 = vsub.f32 %v15844_v59, %v6030_v47  ;;  %13026 = vpow2.f32 %v6124_v57  ;;  %v6033_v14 = vpop.xlane.xlu0 %6032 }
 0xfa2   :  { %13028 = vpow2.f32 %v6134_v10 }
 0xfa3   :  { %v15984_v2 = vpop.eup %13014  ;;  %v6138_v0 = vmul.f32 1.442695, %v6068_v63  ;;  %13030 = vpow2.f32 %v6128_v56 }
 0xfa4   :  { %v6214_v24 = vsel %vm1309_vm6, %v15984_v2, 0.0  ;;  %v15990_v22 = vpop.eup %13016 }
 0xfa5   :  { %6203 = vadd.xlane.f32.xlu1 %v6202_v16  ;;  %v15992_v31 = vpop.eup %13018  ;;  %v6132_v16 = vmul.f32 1.442695, %v6065_v52  ;;  %v6220_v59 = vsel %vm1309_vm6, %v15990_v22, 0.0  ;;  %13032 = vpow2.f32 %v6138_v0 }
 0xfa6   :  { %v15997_v30 = vpop.eup %13020  ;;  %v6190_v11 = vsel %vm1309_vm6, %v15992_v31, 0.0 }
 0xfa7   :  { %v16001_v28 = vpop.eup %13022  ;;  %13034 = vpow2.f32 %v6132_v16  ;;  %v6226_v62 = vsel %vm1309_vm6, %v15997_v30, 0.0 }
 0xfa8   :  { %v16006_v13 = vpop.eup %13024  ;;  %v6217_v12 = vsel %vm1309_vm6, %v16001_v28, 0.0  ;;  %13036 = vpow2.f32 %v6136_v54 }
 0xfa9   :  { %6212 = vadd.xlane.f32.xlu1 %v6211_v36  ;;  %v6069_v36 = vsub.f32 %v15847_v60, %v6033_v14  ;;  %v6232_v33 = vsel %vm1309_vm6, %v16006_v13, 0.0 }
 0xfab   :  { %v16010_v45 = vpop.eup %13026  ;;  %v6140_v57 = vmul.f32 1.442695, %v6069_v36 }
 0xfac   :  { %v16014_v47 = vpop.eup %13028  ;;  %v6223_v60 = vsel %vm1309_vm6, %v16010_v45, 0.0 }
 0xfad   :  { %6209 = vadd.xlane.f32.xlu1 %v6208_v44  ;;  %v16018_v44 = vpop.eup %13030  ;;  %13038 = vpow2.f32 %v6140_v57  ;;  %v6238_v10 = vsel %vm1309_vm6, %v16014_v47, 0.0 }
 0xfae   :  { %v6229_v35 = vsel %vm1309_vm6, %v16018_v44, 0.0 }
 0xfaf   :  { %v16022_v63 = vpop.eup %13032 }
 0xfb0   :  { %v6244_v52 = vsel %vm1309_vm6, %v16022_v63, 0.0 }
 0xfb1   :  { %6215 = vadd.xlane.f32.xlu1 %v6214_v24  ;;  %v16026_v56 = vpop.eup %13034 }
 0xfb2   :  { %v6235_v24 = vsel %vm1309_vm6, %v16026_v56, 0.0  ;;  %v16032_v0 = vpop.eup %13036 }
 0xfb3   :  { %v6241_v16 = vsel %vm1309_vm6, %v16032_v0, 0.0 }
 0xfb5   :  { %6221 = vadd.xlane.f32.xlu1 %v6220_v59 }
 0xfb6   :  { %6191 = vadd.xlane.f32.xlu0 %v6190_v11 }
 0xfb7   :  { %v16036_v58 = vpop.eup %13038 }
 0xfb8   :  { %v6247_v59 = vsel %vm1309_vm6, %v16036_v58, 0.0 }
 0xfb9   :  { %6227 = vadd.xlane.f32.xlu1 %v6226_v62 }
 0xfba   :  { %6218 = vadd.xlane.f32.xlu0 %v6217_v12 }
 0xfbd   :  { %6233 = vadd.xlane.f32.xlu1 %v6232_v33 }
 0xfbe   :  { %6224 = vadd.xlane.f32.xlu0 %v6223_v60 }
 0xfc1   :  { %6239 = vadd.xlane.f32.xlu1 %v6238_v10 }
 0xfc2   :  { %6230 = vadd.xlane.f32.xlu0 %v6229_v35 }
 0xfc5   :  { %6245 = vadd.xlane.f32.xlu1 %v6244_v52 }
 0xfc6   :  { %6236 = vadd.xlane.f32.xlu0 %v6235_v24 }
 0xfca   :  { %6242 = vadd.xlane.f32.xlu0 %v6241_v16 }
 0xfce   :  { %6248 = vadd.xlane.f32.xlu0 %v6247_v59 }
 0xff1   :  { %v6147_v36 = vpop.xlane.xlu0 %6146 }
 0xff2   :  { %v6144_v14 = vpop.xlane.xlu1 %6143 }
 0xff3   :  { %13040 = vrcp.f32 %v6144_v14 }
 0xff4   :  { %13042 = vrcp.f32 %v6147_v36 }
 0xff6   :  { %v6153_v57 = vpop.xlane.xlu0 %6152 }
 0xffa   :  { %v6150_v11 = vpop.xlane.xlu1 %6149 }
 0xffb   :  { %13044 = vrcp.f32 %v6150_v11 }
 0xffc   :  { %13046 = vrcp.f32 %v6153_v57 }
 0xffd   :  { %v13041_v54 = vpop.eup %13040 }
 0xffe   :  { %v6286_v62 = vmul.f32 %v13041_v54, %v15863_v53  ;;  %v6159_v12 = vpop.xlane.xlu1 %6158  ;;  %v13043_v59 = vpop.eup %13042 }
0x1000   :  { %12212 = vmatprep.mubr.msk.f32.mxu0 %vm1309_vm6, %v6286_v62  ;;  %v6287_v62 = vmul.f32 %v13043_v59, %v15861_v34 }
0x1002   :  { %v6156_v33 = vpop.xlane.xlu1 %6155  ;;  %v6165_v60 = vpop.xlane.xlu0 %6164 }
0x1003   :  { %13048 = vrcp.f32 %v6156_v33 }
0x1004   :  { %13050 = vrcp.f32 %v6159_v12 }
0x1005   :  { %v13045_v14 = vpop.eup %13044 }
0x1006   :  { %v6162_v10 = vpop.xlane.xlu1 %6161  ;;  %v13047_v36 = vpop.eup %13046  ;;  %v6288_v11 = vmul.f32 %v13045_v14, %v15876_v19 }
0x1007   :  { %13052 = vrcp.f32 %v6162_v10  ;;  %v6289_v33 = vmul.f32 %v13047_v36, %v15871_v20 }
0x1008   :  { %13054 = vrcp.f32 %v6165_v60 }
0x100a   :  { %v6171_v35 = vpop.xlane.xlu1 %6170  ;;  %v6177_v52 = vpop.xlane.xlu0 %6176 }
0x100d   :  { %v13049_v57 = vpop.eup %13048 }
0x100e   :  { %v6168_v24 = vpop.xlane.xlu1 %6167  ;;  %v6183_v16 = vpop.xlane.xlu0 %6182  ;;  %v6290_v10 = vmul.f32 %v13049_v57, %v15888_v5 }
0x100f   :  { %13056 = vrcp.f32 %v6168_v24  ;;  %v13051_v60 = vpop.eup %13050 }
0x1010   :  { %13058 = vrcp.f32 %v6171_v35  ;;  %v6291_v19 = vmul.f32 %v13051_v60, %v15882_v7 }
0x1011   :  { %v13053_v34 = vpop.eup %13052 }
0x1012   :  { %v6174_v53 = vpop.xlane.xlu1 %6173  ;;  %v6339_v54 = vpop.permute.xlu0 %6338  ;;  %v6292_v59 = vmul.f32 %v13053_v34, %v15897_v27 }
0x1013   :  { %12210 = vmatprep.subr.mxu0 %v6339_v54  ;;  %13060 = vrcp.f32 %v6174_v53  ;;  %v13055_v35 = vpop.eup %13054 }
0x1014   :  { %12211 = vmatpush3.msra.mxu0 %v6339_v54  ;;  %13062 = vrcp.f32 %v6177_v52  ;;  %v6293_v5 = vmul.f32 %v13055_v35, %v15890_v3 }
0x1015   :  { %12213 = vmatmul.mubr.msk.f32.vlgmr.msra.gmra.mrb[58].mxu0 %vm1309_vm6, %v6287_v62 }
0x1016   :  { %v6180_v12 = vpop.xlane.xlu1 %6179  ;;  %12215 = vmatprep.mubr.msk.f32.mxu0 %vm1309_vm6, %v6288_v11 }
0x1017   :  { %13064 = vrcp.f32 %v6180_v12 }
0x1018   :  { %13066 = vrcp.f32 %v6183_v16 }
0x1019   :  { %12216 = vmatmul.mubr.msk.f32.gmra.mrb[244].mxu0 %vm1309_vm6, %v6289_v33  ;;  %v13057_v14 = vpop.eup %13056 }
0x101a   :  { %v6189_v24 = vpop.xlane.xlu1 %6188  ;;  %12218 = vmatprep.mubr.msk.f32.mxu0 %vm1309_vm6, %v6290_v10  ;;  %v13059_v52 = vpop.eup %13058  ;;  %v6294_v53 = vmul.f32 %v13057_v14, %v15913_v25 }
0x101b   :  { %v6295_v27 = vmul.f32 %v13059_v52, %v15904_v40 }
0x101d   :  { %12219 = vmatmul.mubr.msk.f32.gmra.mrb[246].mxu0 %vm1309_vm6, %v6291_v19  ;;  %v13061_v54 = vpop.eup %13060 }
0x101e   :  { %v6186_v20 = vpop.xlane.xlu1 %6185  ;;  %12221 = vmatprep.mubr.msk.f32.mxu0 %vm1309_vm6, %v6292_v59  ;;  %v13063_v62 = vpop.eup %13062  ;;  %v6296_v16 = vmul.f32 %v13061_v54, %v15922_v4 }
0x101f   :  { %13068 = vrcp.f32 %v6186_v20  ;;  %v6297_v3 = vmul.f32 %v13063_v62, %v15906_v21 }
0x1020   :  { %13070 = vrcp.f32 %v6189_v24 }
0x1021   :  { %12222 = vmatmul.mubr.msk.f32.gmra.mrb[248].mxu0 %vm1309_vm6, %v6293_v5  ;;  %v13065_v36 = vpop.eup %13064 }
0x1022   :  { %v6195_v7 = vpop.xlane.xlu1 %6194  ;;  %12224 = vmatprep.mubr.msk.f32.mxu0 %vm1309_vm6, %v6294_v53  ;;  %v13067_v25 = vpop.eup %13066  ;;  %v6298_v57 = vmul.f32 %v13065_v36, %v15927_v42 }
0x1023   :  { %v6299_v40 = vmul.f32 %v13067_v25, %v15915_v18  ;;  %13072 = vrcp.f32 %v6195_v7 }
0x1025   :  { %12225 = vmatmul.mubr.msk.f32.gmra.mrb[250].mxu0 %vm1309_vm6, %v6295_v27 }
0x1026   :  { %v6201_v11 = vpop.xlane.xlu1 %6200  ;;  %12227 = vmatprep.mubr.msk.f32.mxu0 %vm1309_vm6, %v6296_v16 }
0x1029   :  { %v13069_v12 = vpop.eup %13068  ;;  %12228 = vmatmul.mubr.msk.f32.gmra.mrb[252].mxu0 %vm1309_vm6, %v6297_v3 }
0x102a   :  { %v6198_v33 = vpop.xlane.xlu1 %6197  ;;  %12230 = vmatprep.mubr.msk.f32.mxu0 %vm1309_vm6, %v6298_v57  ;;  %v13071_v4 = vpop.eup %13070  ;;  %v6300_v60 = vmul.f32 %v13069_v12, %v15937_v38 }
0x102b   :  { %v6301_v21 = vmul.f32 %v13071_v4, %v15932_v41  ;;  %13074 = vrcp.f32 %v6198_v33 }
0x102d   :  { %12231 = vmatmul.mubr.msk.f32.gmra.mrb[254].mxu0 %vm1309_vm6, %v6299_v40  ;;  %v13073_v59 = vpop.eup %13072 }
0x102e   :  { %v6207_v10 = vpop.xlane.xlu1 %6206  ;;  %12233 = vmatprep.mubr.msk.f32.mxu0 %vm1309_vm6, %v6300_v60  ;;  %v6303_v53 = vmul.f32 %v13073_v59, %v15942_v32 }
0x1031   :  { %12234 = vmatmul.mubr.msk.f32.gmra.mrb[0].mxu0 %vm1309_vm6, %v6301_v21 }
0x1032   :  { %v6204_v42 = vpop.xlane.xlu1 %6203 }
0x1035   :  { %v13075_v20 = vpop.eup %13074 }
0x1036   :  { %v6213_v34 = vpop.xlane.xlu1 %6212  ;;  %v6304_v7 = vmul.f32 %v13075_v20, %v15954_v39 }
0x103a   :  { %v6210_v24 = vpop.xlane.xlu1 %6209 }
0x103e   :  { %v6216_v19 = vpop.xlane.xlu1 %6215 }
0x1042   :  { %v6222_v38 = vpop.xlane.xlu1 %6221 }
0x1043   :  { %v6192_v35 = vpop.xlane.xlu0 %6191 }
0x1044   :  { %13076 = vrcp.f32 %v6192_v35 }
0x1045   :  { %13078 = vrcp.f32 %v6201_v11 }
0x1046   :  { %13080 = vrcp.f32 %v6204_v42  ;;  %v6228_v5 = vpop.xlane.xlu1 %6227 }
0x1047   :  { %v6219_v18 = vpop.xlane.xlu0 %6218  ;;  %13082 = vrcp.f32 %v6207_v10 }
0x1048   :  { %13084 = vrcp.f32 %v6210_v24 }
0x1049   :  { %13086 = vrcp.f32 %v6213_v34 }
0x104a   :  { %13088 = vrcp.f32 %v6216_v19 }
0x104b   :  { %v6225_v14 = vpop.xlane.xlu0 %6224  ;;  %13090 = vrcp.f32 %v6219_v18 }
0x104c   :  { %13092 = vrcp.f32 %v6222_v38 }
0x104d   :  { %13094 = vrcp.f32 %v6225_v14 }
0x104e   :  { %v13077_v41 = vpop.eup %13076  ;;  %13096 = vrcp.f32 %v6228_v5 }
0x104f   :  { %v6302_v52 = vmul.f32 %v13077_v41, %v15992_v31  ;;  %v13079_v54 = vpop.eup %13078  ;;  %v6231_v62 = vpop.xlane.xlu0 %6230 }
0x1050   :  { %v13081_v27 = vpop.eup %13080  ;;  %v6305_v16 = vmul.f32 %v13079_v54, %v15947_v51  ;;  %v6234_v31 = vpop.xlane.xlu1 %6233  ;;  %13098 = vrcp.f32 %v6231_v62 }
0x1051   :  { %12236 = vmatprep.mubr.msk.f32.mxu0 %vm1309_vm6, %v6302_v52  ;;  %v13083_v36 = vpop.eup %13082  ;;  %v6306_v32 = vmul.f32 %v13081_v27, %v15966_v15  ;;  %13100 = vrcp.f32 %v6234_v31 }
0x1052   :  { %12237 = vmatmul.mubr.msk.f32.gmra.mrb[4].mxu0 %vm1309_vm6, %v6303_v53  ;;  %v13085_v11 = vpop.eup %13084  ;;  %v6307_v39 = vmul.f32 %v13083_v36, %v15959_v50 }
0x1053   :  { %12239 = vmatprep.mubr.msk.f32.mxu0 %vm1309_vm6, %v6304_v7  ;;  %v6237_v3 = vpop.xlane.xlu0 %6236  ;;  %v13087_v25 = vpop.eup %13086  ;;  %v6308_v57 = vmul.f32 %v13085_v11, %v15978_v8 }
0x1054   :  { %v13089_v12 = vpop.eup %13088  ;;  %v6240_v51 = vpop.xlane.xlu1 %6239  ;;  %v6309_v15 = vmul.f32 %v13087_v25, %v15972_v26  ;;  %13102 = vrcp.f32 %v6237_v3 }
0x1055   :  { %v13091_v33 = vpop.eup %13090  ;;  %v6310_v40 = vmul.f32 %v13089_v12, %v15984_v2  ;;  %13104 = vrcp.f32 %v6240_v51 }
0x1056   :  { %12240 = vmatmul.mubr.msk.f32.gmra.mrb[6].mxu0 %vm1309_vm6, %v6305_v16  ;;  %v13093_v4 = vpop.eup %13092  ;;  %v6311_v8 = vmul.f32 %v13091_v33, %v16001_v28 }
0x1057   :  { %12242 = vmatprep.mubr.msk.f32.mxu0 %vm1309_vm6, %v6306_v32  ;;  %v6243_v50 = vpop.xlane.xlu0 %6242  ;;  %v13095_v60 = vpop.eup %13094  ;;  %v6312_v21 = vmul.f32 %v13093_v4, %v15990_v22 }
0x1058   :  { %v6246_v10 = vpop.xlane.xlu1 %6245  ;;  %v13097_v42 = vpop.eup %13096  ;;  %13106 = vrcp.f32 %v6243_v50  ;;  %v6313_v26 = vmul.f32 %v13095_v60, %v16010_v45 }
0x1059   :  { %13108 = vrcp.f32 %v6246_v10  ;;  %v6314_v24 = vmul.f32 %v13097_v42, %v15997_v30 }
0x105a   :  { %12243 = vmatmul.mubr.msk.f32.gmra.mrb[8].mxu0 %vm1309_vm6, %v6307_v39  ;;  %v13099_v34 = vpop.eup %13098 }
0x105b   :  { %12245 = vmatprep.mubr.msk.f32.mxu0 %vm1309_vm6, %v6308_v57  ;;  %v6249_v2 = vpop.xlane.xlu0 %6248  ;;  %v13101_v19 = vpop.eup %13100  ;;  %v6315_v22 = vmul.f32 %v13099_v34, %v16018_v44 }
0x105c   :  { %13110 = vrcp.f32 %v6249_v2  ;;  %v6316_v35 = vmul.f32 %v13101_v19, %v16006_v13 }
0x105e   :  { %12246 = vmatmul.mubr.msk.f32.gmra.mrb[10].mxu0 %vm1309_vm6, %v6309_v15  ;;  %v13103_v28 = vpop.eup %13102 }
0x105f   :  { %12248 = vmatprep.mubr.msk.f32.mxu0 %vm1309_vm6, %v6310_v40  ;;  %v13105_v18 = vpop.eup %13104  ;;  %v6317_v45 = vmul.f32 %v13103_v28, %v16026_v56 }
0x1060   :  { %v6318_v30 = vmul.f32 %v13105_v18, %v16014_v47  ;;  %v12640_v47 = vld [vmem:[%s17320_s10 + $0x10] sm:$0xff]  }
0x1061   :  { %12267 = vmatpush3.bf16.msra.mxu1 %v12640_v47 }
0x1062   :  { %12249 = vmatmul.mubr.msk.f32.gmra.mrb[12].mxu0 %vm1309_vm6, %v6311_v8  ;;  %v13107_v38 = vpop.eup %13106  ;;  %12268 = vmatprep.subr.bf16.mxu1 %v17417_v46 }
0x1063   :  { %12251 = vmatprep.mubr.msk.f32.mxu0 %vm1309_vm6, %v6312_v21  ;;  %v13109_v59 = vpop.eup %13108  ;;  %v6319_v44 = vmul.f32 %v13107_v38, %v16032_v0 }
0x1064   :  { %v6320_v13 = vmul.f32 %v13109_v59, %v16022_v63  ;;  %v12641_v63 = vld [vmem:[%s17320_s10 + $0x18] sm:$0xff]  }
0x1065   :  { %12269 = vmatpush3.bf16.msra.mxu1 %v12641_v63 }
0x1066   :  { %12252 = vmatmul.mubr.msk.f32.gmra.mrb[14].mxu0 %vm1309_vm6, %v6313_v26  ;;  %v13111_v14 = vpop.eup %13110 }
0x1067   :  { %12254 = vmatprep.mubr.msk.f32.mxu0 %vm1309_vm6, %v6314_v24  ;;  %v6321_v20 = vmul.f32 %v13111_v14, %v16036_v58 }
0x106a   :  { %12255 = vmatmul.mubr.msk.f32.gmra.mrb[16].mxu0 %vm1309_vm6, %v6315_v22 }
0x106b   :  { %12257 = vmatprep.mubr.msk.f32.mxu0 %vm1309_vm6, %v6316_v35 }
0x106e   :  { %12258 = vmatmul.mubr.msk.f32.gmra.mrb[18].mxu0 %vm1309_vm6, %v6317_v45 }
0x106f   :  { %12260 = vmatprep.mubr.msk.f32.mxu0 %vm1309_vm6, %v6318_v30 }
0x1072   :  { %12261 = vmatmul.mubr.msk.f32.gmra.mrb[20].mxu0 %vm1309_vm6, %v6319_v44 }
0x1073   :  { %12263 = vmatprep.mubr.msk.f32.mxu0 %vm1309_vm6, %v6320_v13 }
0x1076   :  { %12264 = vmatmul.mubr.msk.f32.gmra.mrb[22].mxu0 %vm1309_vm6, %v6321_v20 }
0x1077   :  { %7381 = vmatprep.mubr.bf16.mxu0 %v17418_v6 }
0x10e8   :  { %v12214_v56 = vpop.f32.mrb[58].mxu0 }
0x10e9   :  { %v6523_v0 = vpop.f32.mrb[59].mxu0  ;;  %v6703_v3 = vmul.f32 %v12214_v56, %v13459_v23 }
0x10ea   :  { %v6702_v27 = vmul.f32 %v13459_v23, %v6523_v0 }
0x10ec   :  { %v12217_v41 = vpop.f32.mrb[244].mxu0 }
0x10ed   :  { %v6533_v58 = vpop.f32.mrb[245].mxu0  ;;  %v6705_v4 = vmul.f32 %v12217_v41, %v13459_v23 }
0x10ee   :  { %v6704_v32 = vmul.f32 %v13459_v23, %v6533_v58 }
0x10f0   :  { %v12220_v5 = vpop.f32.mrb[246].mxu0 }
0x10f1   :  { %v6543_v52 = vpop.f32.mrb[247].mxu0  ;;  %v6707_v2 = vmul.f32 %v12220_v5, %v13459_v23 }
0x10f2   :  { %v6706_v15 = vmul.f32 %v13459_v23, %v6543_v52 }
0x10f4   :  { %v12223_v53 = vpop.f32.mrb[248].mxu0 }
0x10f5   :  { %v6553_v54 = vpop.f32.mrb[249].mxu0  ;;  %v6709_v45 = vmul.f32 %v12223_v53, %v13459_v23 }
0x10f6   :  { %v6708_v21 = vmul.f32 %v13459_v23, %v6553_v54 }
0x10f8   :  { %v12226_v7 = vpop.f32.mrb[250].mxu0 }
0x10f9   :  { %v6711_v62 = vmul.f32 %v12226_v7, %v13552_v48  ;;  %v6563_v16 = vpop.f32.mrb[251].mxu0 }
0x10fa   :  { %v6710_v28 = vmul.f32 %v13459_v23, %v6563_v16 }
0x10fb   :  { %v6720_v36 = vadd.f32 %v6711_v62, %v6702_v27 }
0x10fc   :  { %v12229_v31 = vpop.f32.mrb[252].mxu0 }
0x10fd   :  { %v6713_v11 = vmul.f32 %v12229_v31, %v13552_v48  ;;  %v6573_v39 = vpop.f32.mrb[253].mxu0 }
0x10fe   :  { %v6712_v25 = vmul.f32 %v13552_v48, %v6573_v39 }
0x10ff   :  { %v6722_v57 = vadd.f32 %v6713_v11, %v6704_v32 }
0x1100   :  { %v6721_v12 = vadd.f32 %v6712_v25, %v6703_v3  ;;  %v12232_v51 = vpop.f32.mrb[254].mxu0 }
0x1101   :  { %v6715_v33 = vmul.f32 %v12232_v51, %v13552_v48  ;;  %v6583_v40 = vpop.f32.mrb[255].mxu0 }
0x1102   :  { %v6714_v50 = vmul.f32 %v13552_v48, %v6583_v40 }
0x1103   :  { %v6724_v8 = vadd.f32 %v6715_v33, %v6706_v15 }
0x1104   :  { %v6723_v60 = vadd.f32 %v6714_v50, %v6705_v4  ;;  %v12235_v10 = vpop.f32.mrb[0].mxu0 }
0x1105   :  { %v6717_v42 = vmul.f32 %v12235_v10, %v13552_v48  ;;  %v6593_v26 = vpop.f32.mrb[1].mxu0 }
0x1106   :  { %v6716_v34 = vmul.f32 %v13552_v48, %v6593_v26 }
0x1107   :  { %v6726_v24 = vadd.f32 %v6717_v42, %v6708_v21 }
0x1108   :  { %v6725_v19 = vadd.f32 %v6716_v34, %v6707_v2 }
0x1125   :  { %v12238_v22 = vpop.f32.mrb[4].mxu0 }
0x1126   :  { %v6719_v35 = vmul.f32 %v12238_v22, %v13552_v48  ;;  %v6603_v18 = vpop.f32.mrb[5].mxu0 }
0x1127   :  { %v6718_v38 = vmul.f32 %v13552_v48, %v6603_v18 }
0x1128   :  { %v6728_v30 = vadd.f32 %v6719_v35, %v6710_v28 }
0x1129   :  { %v6727_v59 = vadd.f32 %v6718_v38, %v6709_v45  ;;  %v12241_v44 = vpop.f32.mrb[6].mxu0 }
0x112a   :  { %v6730_v14 = vmul.f32 %v12241_v44, %v13587_v61  ;;  %v6613_v13 = vpop.f32.mrb[7].mxu0 }
0x112b   :  { %v6729_v20 = vmul.f32 %v13587_v61, %v6613_v13 }
0x112c   :  { %v6739_v47 = vadd.f32 %v6730_v14, %v6721_v12 }
0x112d   :  { %v6738_v63 = vadd.f32 %v6729_v20, %v6720_v36  ;;  %v12244_v56 = vpop.f32.mrb[8].mxu0 }
0x112e   :  { %v6732_v0 = vmul.f32 %v12244_v56, %v13587_v61  ;;  %v6623_v41 = vpop.f32.mrb[9].mxu0 }
0x112f   :  { %v6731_v58 = vmul.f32 %v13587_v61, %v6623_v41 }
0x1130   :  { %v6741_v5 = vadd.f32 %v6732_v0, %v6723_v60 }
0x1131   :  { %v6740_v23 = vadd.f32 %v6731_v58, %v6722_v57  ;;  %v12247_v52 = vpop.f32.mrb[10].mxu0 }
0x1132   :  { %v6734_v48 = vmul.f32 %v12247_v52, %v13587_v61  ;;  %v6633_v53 = vpop.f32.mrb[11].mxu0 }
0x1133   :  { %v6733_v54 = vmul.f32 %v13587_v61, %v6633_v53 }
0x1134   :  { %v6743_v7 = vadd.f32 %v6734_v48, %v6725_v19 }
0x1135   :  { %v6742_v27 = vadd.f32 %v6733_v54, %v6724_v8  ;;  %v12250_v62 = vpop.f32.mrb[12].mxu0 }
0x1136   :  { %v6736_v16 = vmul.f32 %v12250_v62, %v13587_v61  ;;  %v6643_v36 = vpop.f32.mrb[13].mxu0 }
0x1137   :  { %v6735_v31 = vmul.f32 %v13587_v61, %v6643_v36 }
0x1138   :  { %v6745_v32 = vadd.f32 %v6736_v16, %v6727_v59 }
0x1139   :  { %v6744_v11 = vadd.f32 %v6735_v31, %v6726_v24  ;;  %v12253_v39 = vpop.f32.mrb[14].mxu0 }
0x113a   :  { %v6747_v3 = vmul.f32 %v12253_v39, %v13626_v17  ;;  %v6653_v25 = vpop.f32.mrb[15].mxu0 }
0x113b   :  { %v6737_v57 = vmul.f32 %v13587_v61, %v6653_v25 }
0x113c   :  { %v6756_v12 = vadd.f32 %v6747_v3, %v6738_v63  ;;  %v10412_v63 = vld [vmem:[%s17321_s11 + $0x1] ss:$0 sm:$0xff] }
0x113d   :  { %v6746_v51 = vadd.f32 %v6737_v57, %v6728_v30  ;;  %v12256_v15 = vpop.f32.mrb[16].mxu0 }
0x113e   :  { %v6749_v33 = vmul.f32 %v12256_v15, %v13626_v17  ;;  %v6663_v40 = vpop.f32.mrb[17].mxu0 }
0x113f   :  { %v6748_v4 = vmul.f32 %v13626_v17, %v6663_v40 }
0x1140   :  { %v6758_v50 = vadd.f32 %v6749_v33, %v6740_v23 }
0x1141   :  { %v6757_v8 = vadd.f32 %v6748_v4, %v6739_v47  ;;  %v12259_v60 = vpop.f32.mrb[18].mxu0 }
0x1142   :  { %v6751_v10 = vmul.f32 %v12259_v60, %v13626_v17  ;;  %v6673_v21 = vpop.f32.mrb[19].mxu0 }
0x1143   :  { %v6765_v42 = vpack.c.bf16 %v6757_v8, %v6756_v12  ;;  %v6750_v26 = vmul.f32 %v13626_v17, %v6673_v21  ;;  %v17444_v8 = vld [vmem:[#allocation28_spill] sm:$0xff] }
0x1144   :  { %v6760_v2 = vadd.f32 %v6751_v10, %v6742_v27 }
0x1145   :  { %v6759_v34 = vadd.f32 %v6750_v26, %v6741_v5  ;;  %v12262_v61 = vpop.f32.mrb[20].mxu0  ;;  %12271 = vmatmul.mubr.msk.bf16.vlgmr.msra.gmra.mrb[0].mxu1 %vm611_vm7, %v6765_v42 }
0x1146   :  { %v6753_v24 = vmul.f32 %v12262_v61, %v13626_v17  ;;  %v6683_v19 = vpop.f32.mrb[21].mxu0  ;;  %12274 = vmatprep.mubr.msk.bf16.mxu1 %vm13156_vm5, %v17417_v46 }
0x1147   :  { %v6766_v22 = vpack.c.bf16 %v6759_v34, %v6758_v50  ;;  %v6752_v28 = vmul.f32 %v13626_v17, %v6683_v19 }
0x1148   :  { %v6762_v35 = vadd.f32 %v6753_v24, %v6744_v11 }
0x1149   :  { %v6761_v18 = vadd.f32 %v6752_v28, %v6743_v7  ;;  %v12265_v45 = vpop.f32.mrb[22].mxu0  ;;  %v10417_v28 = vld [vmem:[%s17324_s14 + $0x100] sm:$0xff] }
0x114a   :  { %v6755_v38 = vmul.f32 %v12265_v45, %v13626_v17  ;;  %v6693_v30 = vpop.f32.mrb[23].mxu0 }
0x114b   :  { %v6767_v59 = vpack.c.bf16 %v6761_v18, %v6760_v2  ;;  %v6754_v44 = vmul.f32 %v13626_v17, %v6693_v30  ;;  %v17445_v2 = vld [vmem:[#allocation29_spill] sm:$0xff]  ;;  %v10418_v18 = vld [vmem:[%s17324_s14 + $0x108] sm:$0xff] }
0x114c   :  { %v6764_v14 = vadd.f32 %v6755_v38, %v6746_v51  ;;  %v10426_v30 = vld [vmem:[%s17324_s14 + $0x148] sm:$0xff] }
0x114d   :  { %v6763_v13 = vadd.f32 %v6754_v44, %v6745_v32  ;;  %12275 = vmatmul.mubr.msk.bf16.gmra.mrb[4].mxu1 %vm611_vm7, %v6766_v22  ;;  %v10441_v44 = vld [vmem:[%s17324_s14 + $0x1c0] sm:$0xff] }
0x114e   :  { %12278 = vmatprep.mubr.msk.bf16.mxu1 %vm13156_vm5, %v17417_v46  ;;  %v6769_v47 = vpack.c.bf16 %v6764_v14, %v6764_v14  ;;  %v10453_v14 = vcombine.low %v10418_v18, %v10426_v30 }
0x114f   :  { %v6768_v20 = vpack.c.bf16 %v6763_v13, %v6762_v35  ;;  %v10425_v35 = vld [vmem:[%s17324_s14 + $0x140] sm:$0xff]  ;;  %v10454_v13 = vcombine.high %v10418_v18, %v10426_v30  ;;  %v10442_v30 = vld [vmem:[%s17324_s14 + $0x1c8] sm:$0xff] }
0x1150   :  { %v10451_v45 = vcombine.low %v10417_v28, %v10425_v35  ;;  %v10452_v38 = vcombine.high %v10417_v28, %v10425_v35 }
0x1151   :  { %7430 = vmatprep.subr.bf16.mxu1 %v10454_v13  ;;  %v16304_v13 = vld [vmem:[%s17324_s14 + $0x150] sm:$0xff] }
0x1152   :  { %7349 = vmatprep.subr.bf16.mxu0 %v10452_v38  ;;  %7431 = vmatpush1.bf16.msra.mxu1 %v10453_v14  ;;  %v10434_v38 = vld [vmem:[%s17324_s14 + $0x188] sm:$0xff]  ;;  %v16299_v14 = vld [vmem:[%s17324_s14 + $0x110] sm:$0xff] }
0x1153   :  { %7350 = vmatpush1.bf16.msra.mxu0 %v10451_v45 }
0x1155   :  { %12279 = vmatmul.mubr.msk.bf16.gmra.mrb[8].mxu1 %vm611_vm7, %v6767_v59  ;;  %v10433_v59 = vld [vmem:[%s17324_s14 + $0x180] sm:$0xff] }
0x1156   :  { %12282 = vmatprep.mubr.msk.bf16.mxu1 %vm13156_vm5, %v17417_v46 }
0x115d   :  { %12283 = vmatmul.mubr.msk.bf16.gmra.mrb[12].mxu1 %vm611_vm7, %v6768_v20  ;;  %v10468_v20 = vcombine.high %v10433_v59, %v10441_v44 }
0x115e   :  { %12286 = vmatprep.mubr.msk.bf16.mxu1 %vm13156_vm5, %v17417_v46 }
0x115f   :  { %7351 = vmatprep.subr.bf16.mxu0 %v10468_v20  ;;  %v16309_v20 = vld [vmem:[%s17324_s14 + $0x118] sm:$0xff] }
0x1165   :  { %12287 = vmatmul.mubr.msk.bf16.gmra.mrb[16].mxu1 %vm611_vm7, %v6769_v47  ;;  %v10467_v47 = vcombine.low %v10433_v59, %v10441_v44  ;;  %v10470_v59 = vcombine.high %v10434_v38, %v10442_v30  ;;  %v10469_v44 = vcombine.low %v10434_v38, %v10442_v30 }
0x1166   :  { %7462 = vmatprep.mubr.bf16.mxu1 %v17418_v6 }
0x1167   :  { %7352 = vmatpush1.bf16.msra.mxu0 %v10467_v47  ;;  %7432 = vmatprep.subr.bf16.mxu1 %v10470_v59  ;;  %v10455_v47 = vcombine.low %v16299_v14, %v16304_v13 }
0x1168   :  { %7433 = vmatpush1.bf16.msra.mxu1 %v10469_v44 }
0x1218   :  { %v6836_v17 = vpop.f32.mrb[0].mxu1 }
0x1219   :  { %v6874_v56 = vadd.f32 %v6836_v17, %v15349_v55  ;;  %v12272_v0 = vpop.f32.mrb[1].mxu1 }
0x121a   :  { %v6839_v41 = vpop.f32.mrb[2].mxu1 }
0x121b   :  { %v16174_v58 = vadd.f32 %v10412_v63, %v6874_v56  ;;  %v6875_v5 = vadd.f32 %v6839_v41, %v15355_v49  ;;  %v12273_v23 = vpop.f32.mrb[3].mxu1 }
0x121d   :  { %v16177_v52 = vadd.f32 %v10412_v63, %v6875_v5  ;;  %v6904_v48 = vsel %vm611_vm7, %v16174_v58, 0.0 }
0x121e   :  { %6905 = vadd.xlane.f32.xlu1 %v6904_v48 }
0x121f   :  { %v6907_v53 = vsel %vm611_vm7, %v16177_v52, 0.0 }
0x1220   :  { %6908 = vadd.xlane.f32.xlu0 %v6907_v53  ;;  %v6844_v54 = vpop.f32.mrb[4].mxu1 }
0x1221   :  { %v6876_v55 = vadd.f32 %v6844_v54, %v15363_v37  ;;  %v12276_v7 = vpop.f32.mrb[5].mxu1 }
0x1222   :  { %v6847_v27 = vpop.f32.mrb[6].mxu1 }
0x1223   :  { %v16184_v62 = vadd.f32 %v10412_v63, %v6876_v55  ;;  %v6877_v49 = vadd.f32 %v6847_v27, %v15369_v9  ;;  %v12277_v16 = vpop.f32.mrb[7].mxu1 }
0x1225   :  { %v16187_v36 = vadd.f32 %v10412_v63, %v6877_v49  ;;  %v6910_v31 = vsel %vm611_vm7, %v16184_v62, 0.0 }
0x1226   :  { %6911 = vadd.xlane.f32.xlu1 %v6910_v31 }
0x1227   :  { %v6913_v32 = vsel %vm611_vm7, %v16187_v36, 0.0 }
0x1228   :  { %6914 = vadd.xlane.f32.xlu0 %v6913_v32  ;;  %v6852_v11 = vpop.f32.mrb[8].mxu1 }
0x1229   :  { %v6878_v37 = vadd.f32 %v6852_v11, %v15377_v1  ;;  %v12280_v39 = vpop.f32.mrb[9].mxu1 }
0x122a   :  { %v6855_v3 = vpop.f32.mrb[10].mxu1 }
0x122b   :  { %v16194_v25 = vadd.f32 %v10412_v63, %v6878_v37  ;;  %v6879_v9 = vadd.f32 %v6855_v3, %v15383_v29  ;;  %v12281_v57 = vpop.f32.mrb[11].mxu1 }
0x122d   :  { %v16197_v12 = vadd.f32 %v10412_v63, %v6879_v9  ;;  %v6916_v51 = vsel %vm611_vm7, %v16194_v25, 0.0 }
0x122e   :  { %6917 = vadd.xlane.f32.xlu1 %v6916_v51 }
0x122f   :  { %v6919_v15 = vsel %vm611_vm7, %v16197_v12, 0.0 }
0x1230   :  { %6920 = vadd.xlane.f32.xlu0 %v6919_v15  ;;  %v6860_v33 = vpop.f32.mrb[12].mxu1 }
0x1231   :  { %v6880_v1 = vadd.f32 %v6860_v33, %v15391_v43  ;;  %v12284_v40 = vpop.f32.mrb[13].mxu1 }
0x1232   :  { %v6863_v4 = vpop.f32.mrb[14].mxu1 }
0x1233   :  { %v16204_v50 = vadd.f32 %v10412_v63, %v6880_v1  ;;  %v6881_v29 = vadd.f32 %v6863_v4, %v17444_v8  ;;  %v12285_v60 = vpop.f32.mrb[15].mxu1 }
0x1235   :  { %v16207_v10 = vadd.f32 %v10412_v63, %v6881_v29  ;;  %v6922_v21 = vsel %vm611_vm7, %v16204_v50, 0.0 }
0x1236   :  { %6923 = vadd.xlane.f32.xlu1 %v6922_v21 }
0x1237   :  { %v6925_v42 = vsel %vm611_vm7, %v16207_v10, 0.0 }
0x1238   :  { %6926 = vadd.xlane.f32.xlu0 %v6925_v42  ;;  %v6868_v26 = vpop.f32.mrb[16].mxu1 }
0x1239   :  { %v6882_v43 = vadd.f32 %v6868_v26, %v17445_v2  ;;  %v12288_v34 = vpop.f32.mrb[17].mxu1 }
0x123a   :  { %v6871_v61 = vpop.f32.mrb[18].mxu1 }
0x123b   :  { %v16214_v24 = vadd.f32 %v10412_v63, %v6882_v43  ;;  %v12289_v19 = vpop.f32.mrb[19].mxu1 }
0x123d   :  { %v6928_v22 = vsel %vm611_vm7, %v16214_v24, 0.0 }
0x123e   :  { %6929 = vadd.xlane.f32.xlu1 %v6928_v22 }
0x12ab   :  { %v6906_v17 = vpop.xlane.xlu1 %6905 }
0x12ac   :  { %v6931_v63 = vmul.f32 0.03125, %v6906_v17  ;;  %v10456_v17 = vcombine.high %v16299_v14, %v16304_v13 }
0x12ad   :  { %v6909_v56 = vpop.xlane.xlu0 %6908 }
0x12ae   :  { %v16237_v0 = vsub.f32 %v16174_v58, %v6931_v63  ;;  %v6932_v41 = vmul.f32 0.03125, %v6909_v56  ;;  %v16318_v63 = vld [vmem:[%s17324_s14 + $0x158] sm:$0xff]  ;;  %7511 = vmatprep.subr.bf16.mxu0 %v10456_v17 }
0x12af   :  { %v10457_v56 = vcombine.low %v16309_v20, %v16318_v63 }
0x12b0   :  { %v16240_v5 = vsub.f32 %v16177_v52, %v6932_v41  ;;  %v6949_v23 = vmul.f32 %v16237_v0, %v16237_v0  ;;  %v10458_v41 = vcombine.high %v16309_v20, %v16318_v63 }
0x12b2   :  { %v6958_v48 = vsel %vm611_vm7, %v6949_v23, 0.0  ;;  %v6950_v53 = vmul.f32 %v16240_v5, %v16240_v5  ;;  %7592 = vmatprep.subr.bf16.mxu1 %v10458_v41 }
0x12b3   :  { %v6912_v54 = vpop.xlane.xlu1 %6911  ;;  %6959 = vadd.xlane.f32.xlu0 %v6958_v48 }
0x12b4   :  { %v6933_v55 = vmul.f32 0.03125, %v6912_v54  ;;  %v6961_v7 = vsel %vm611_vm7, %v6950_v53, 0.0 }
0x12b5   :  { %6962 = vadd.xlane.f32.xlu1 %v6961_v7  ;;  %v6915_v27 = vpop.xlane.xlu0 %6914 }
0x12b6   :  { %v16249_v49 = vsub.f32 %v16184_v62, %v6933_v55  ;;  %v6934_v16 = vmul.f32 0.03125, %v6915_v27 }
0x12b8   :  { %v16252_v31 = vsub.f32 %v16187_v36, %v6934_v16  ;;  %v6951_v32 = vmul.f32 %v16249_v49, %v16249_v49 }
0x12ba   :  { %v6964_v11 = vsel %vm611_vm7, %v6951_v32, 0.0  ;;  %v6952_v37 = vmul.f32 %v16252_v31, %v16252_v31 }
0x12bb   :  { %v6918_v39 = vpop.xlane.xlu1 %6917  ;;  %6965 = vadd.xlane.f32.xlu0 %v6964_v11 }
0x12bc   :  { %v6935_v3 = vmul.f32 0.03125, %v6918_v39  ;;  %v6967_v9 = vsel %vm611_vm7, %v6952_v37, 0.0 }
0x12bd   :  { %6968 = vadd.xlane.f32.xlu1 %v6967_v9  ;;  %v6921_v57 = vpop.xlane.xlu0 %6920  ;;  %v16327_v9 = vld [vmem:[%s17322_s12 + $0x1] ss:$0 sm:$0xff] }
0x12be   :  { %v16261_v51 = vsub.f32 %v16194_v25, %v6935_v3  ;;  %v6936_v15 = vmul.f32 0.03125, %v6921_v57 }
0x12c0   :  { %v16264_v33 = vsub.f32 %v16197_v12, %v6936_v15  ;;  %v6953_v1 = vmul.f32 %v16261_v51, %v16261_v51 }
0x12c2   :  { %v6970_v40 = vsel %vm611_vm7, %v6953_v1, 0.0  ;;  %v6954_v4 = vmul.f32 %v16264_v33, %v16264_v33 }
0x12c3   :  { %v6924_v8 = vpop.xlane.xlu1 %6923  ;;  %6971 = vadd.xlane.f32.xlu0 %v6970_v40 }
0x12c4   :  { %v6937_v29 = vmul.f32 0.03125, %v6924_v8  ;;  %v6973_v60 = vsel %vm611_vm7, %v6954_v4, 0.0 }
0x12c5   :  { %6974 = vadd.xlane.f32.xlu1 %v6973_v60  ;;  %v6927_v21 = vpop.xlane.xlu0 %6926  ;;  %v16335_v60 = vld [vmem:[%s17323_s13 + $0x1] ss:$0 sm:$0xff] }
0x12c6   :  { %v16273_v42 = vsub.f32 %v16204_v50, %v6937_v29  ;;  %v6938_v26 = vmul.f32 0.03125, %v6927_v21 }
0x12c8   :  { %v16276_v2 = vsub.f32 %v16207_v10, %v6938_v26  ;;  %v6955_v43 = vmul.f32 %v16273_v42, %v16273_v42 }
0x12ca   :  { %v6976_v34 = vsel %vm611_vm7, %v6955_v43, 0.0  ;;  %v6956_v61 = vmul.f32 %v16276_v2, %v16276_v2 }
0x12cb   :  { %6977 = vadd.xlane.f32.xlu0 %v6976_v34  ;;  %v6930_v19 = vpop.xlane.xlu1 %6929 }
0x12cc   :  { %v6939_v22 = vmul.f32 0.03125, %v6930_v19  ;;  %v6979_v28 = vsel %vm611_vm7, %v6956_v61, 0.0  ;;  %v10443_v19 = vld [vmem:[%s17324_s14 + $0x1d0] sm:$0xff] }
0x12cd   :  { %6980 = vadd.xlane.f32.xlu1 %v6979_v28  ;;  %v10444_v28 = vld [vmem:[%s17324_s14 + $0x1d8] sm:$0xff] }
0x12ce   :  { %v16285_v35 = vsub.f32 %v16214_v24, %v6939_v22  ;;  %v10436_v22 = vld [vmem:[%s17324_s14 + $0x198] sm:$0xff] }
0x12cf   :  { %v10474_v41 = vcombine.high %v10436_v22, %v10444_v28 }
0x12d0   :  { %v6957_v18 = vmul.f32 %v16285_v35, %v16285_v35 }
0x12d2   :  { %v6982_v45 = vsel %vm611_vm7, %v6957_v18, 0.0 }
0x12d3   :  { %6983 = vadd.xlane.f32.xlu0 %v6982_v45 }
0x1340   :  { %v6960_v23 = vpop.xlane.xlu0 %6959 }
0x1341   :  { %v6985_v48 = vmul.f32 0.03125, %v6960_v23  ;;  %v16358_v23 = vld [vmem:[%s17324_s14 + $0x120] sm:$0xff] }
0x1342   :  { %v6963_v53 = vpop.xlane.xlu1 %6962 }
0x1343   :  { %v6994_v54 = vadd.f32 1e-05, %v6985_v48  ;;  %v6986_v55 = vmul.f32 0.03125, %v6963_v53  ;;  %v16363_v48 = vld [vmem:[%s17324_s14 + $0x160] sm:$0xff] }
0x1345   :  { %13112 = vrsqrt.f32 %v6994_v54  ;;  %v6995_v7 = vadd.f32 1e-05, %v6986_v55  ;;  %v16374_v55 = vld [vmem:[%s17324_s14 + $0x128] sm:$0xff] }
0x1347   :  { %13114 = vrsqrt.f32 %v6995_v7  ;;  %v16379_v7 = vld [vmem:[%s17324_s14 + $0x168] sm:$0xff] }
0x1348   :  { %v6966_v27 = vpop.xlane.xlu0 %6965  ;;  %v10462_v14 = vcombine.high %v16374_v55, %v16379_v7 }
0x1349   :  { %v6987_v16 = vmul.f32 0.03125, %v6966_v27 }
0x134a   :  { %v6969_v32 = vpop.xlane.xlu1 %6968 }
0x134b   :  { %v6996_v11 = vadd.f32 1e-05, %v6987_v16  ;;  %v6988_v37 = vmul.f32 0.03125, %v6969_v32 }
0x134d   :  { %13116 = vrsqrt.f32 %v6996_v11  ;;  %v6997_v39 = vadd.f32 1e-05, %v6988_v37  ;;  %v10473_v11 = vcombine.low %v10436_v22, %v10444_v28  ;;  %v10460_v37 = vcombine.high %v16358_v23, %v16363_v48 }
0x134f   :  { %v13113_v3 = vpop.eup %13112  ;;  %13118 = vrsqrt.f32 %v6997_v39 }
0x1350   :  { %v7012_v57 = vmul.f32 %v13113_v3, %v16237_v0  ;;  %v6972_v15 = vpop.xlane.xlu0 %6971  ;;  %v10435_v0 = vld [vmem:[%s17324_s14 + $0x190] sm:$0xff] }
0x1351   :  { %v13115_v1 = vpop.eup %13114  ;;  %v6989_v40 = vmul.f32 0.03125, %v6972_v15  ;;  %v10472_v17 = vcombine.high %v10435_v0, %v10443_v19 }
0x1352   :  { %v7027_v4 = vmul.f32 %v16327_v9, %v7012_v57  ;;  %v7013_v8 = vmul.f32 %v13115_v1, %v16240_v5  ;;  %v6975_v29 = vpop.xlane.xlu1 %6974 }
0x1353   :  { %v6998_v21 = vadd.f32 1e-05, %v6989_v40  ;;  %v6990_v26 = vmul.f32 0.03125, %v6975_v29 }
0x1354   :  { %v7028_v43 = vmul.f32 %v16327_v9, %v7013_v8  ;;  %v7042_v61 = vadd.f32 %v16335_v60, %v7027_v4 }
0x1355   :  { %13120 = vrsqrt.f32 %v6998_v21  ;;  %v6999_v34 = vadd.f32 1e-05, %v6990_v26 }
0x1356   :  { %v7043_v5 = vadd.f32 %v16335_v60, %v7028_v43 }
0x1357   :  { %v13117_v18 = vpop.eup %13116  ;;  %13122 = vrsqrt.f32 %v6999_v34 }
0x1358   :  { %v16352_v45 = vpack.c.bf16 %v7043_v5, %v7042_v61  ;;  %v7014_v38 = vmul.f32 %v13117_v18, %v16249_v49  ;;  %v6978_v30 = vpop.xlane.xlu0 %6977 }
0x1359   :  { %v13119_v59 = vpop.eup %13118  ;;  %v6991_v44 = vmul.f32 0.03125, %v6978_v30  ;;  %v10446_v30 = vld [vmem:[%s17324_s14 + $0x1e8] sm:$0xff] }
0x135a   :  { %v7029_v53 = vmul.f32 %v16327_v9, %v7014_v38  ;;  %v7015_v54 = vmul.f32 %v13119_v59, %v16252_v31  ;;  %v6981_v49 = vpop.xlane.xlu1 %6980  ;;  %10483 = vmatmul.mubr.msk.bf16.vlgmr.msra.gmra.mrb[24].mxu0 %vm611_vm7, %v16352_v45  ;;  %10488 = vmatmul.mubr.msk.bf16.vlgmr.msra.gmra.mrb[20].mxu1 %vm611_vm7, %v16352_v45  ;;  %v10471_v31 = vcombine.low %v10435_v0, %v10443_v19 }
0x135b   :  { %v7000_v27 = vadd.f32 1e-05, %v6991_v44  ;;  %v6992_v16 = vmul.f32 0.03125, %v6981_v49  ;;  %7512 = vmatpush1.bf16.msra.mxu0 %v10455_v47  ;;  %7391 = vmatprep.mubr.bf16.mxu0 %v17418_v6  ;;  %v10459_v59 = vcombine.low %v16358_v23, %v16363_v48  ;;  %v10461_v44 = vcombine.low %v16374_v55, %v16379_v7  ;;  %v10424_v23 = vld [vmem:[%s17324_s14 + $0x138] sm:$0xff] }
0x135c   :  { %v7030_v32 = vmul.f32 %v16327_v9, %v7015_v54  ;;  %7472 = vmatprep.mubr.bf16.mxu1 %v17418_v6  ;;  %7593 = vmatpush1.bf16.msra.mxu1 %v10457_v56  ;;  %v7044_v13 = vadd.f32 %v16335_v60, %v7029_v53  ;;  %v10423_v53 = vld [vmem:[%s17324_s14 + $0x130] sm:$0xff]  ;;  %v10432_v48 = vld [vmem:[%s17324_s14 + $0x178] sm:$0xff] }
0x135d   :  { %13124 = vrsqrt.f32 %v7000_v27  ;;  %v7001_v39 = vadd.f32 1e-05, %v6992_v16  ;;  %7513 = vmatprep.subr.bf16.mxu0 %v10472_v17  ;;  %7594 = vmatprep.subr.bf16.mxu1 %v10474_v41  ;;  %v10431_v54 = vld [vmem:[%s17324_s14 + $0x170] sm:$0xff]  ;;  %v10466_v27 = vcombine.high %v10424_v23, %v10432_v48 }
0x135e   :  { %v7045_v47 = vadd.f32 %v16335_v60, %v7030_v32  ;;  %v10464_v7 = vcombine.high %v10423_v53, %v10431_v54  ;;  %v10439_v16 = vld [vmem:[%s17324_s14 + $0x1b0] sm:$0xff]  ;;  %v10440_v32 = vld [vmem:[%s17324_s14 + $0x1b8] sm:$0xff] }
0x135f   :  { %v13121_v3 = vpop.eup %13120  ;;  %13126 = vrsqrt.f32 %v7001_v39  ;;  %7514 = vmatpush1.bf16.msra.mxu0 %v10471_v31  ;;  %v10447_v31 = vld [vmem:[%s17324_s14 + $0x1f0] sm:$0xff]  ;;  %v10465_v39 = vcombine.low %v10424_v23, %v10432_v48  ;;  %v17447_v23 = vld [vmem:[#allocation21_spill] sm:$0xff] }
0x1360   :  { %v16396_v20 = vpack.c.bf16 %v7045_v47, %v7044_v13  ;;  %v7016_v63 = vmul.f32 %v13121_v3, %v16261_v51  ;;  %v6984_v56 = vpop.xlane.xlu0 %6983  ;;  %7595 = vmatpush1.bf16.msra.mxu1 %v10473_v11  ;;  %7673 = vmatprep.subr.bf16.mxu0 %v10460_v37  ;;  %v10448_v11 = vld [vmem:[%s17324_s14 + $0x1f8] sm:$0xff]  ;;  %v10463_v37 = vcombine.low %v10423_v53, %v10431_v54  ;;  %v17446_v53 = vld [vmem:[#allocation11_spill] sm:$0xff] }
0x1361   :  { %v13123_v57 = vpop.eup %13122  ;;  %v6993_v15 = vmul.f32 0.03125, %v6984_v56  ;;  %7754 = vmatprep.subr.bf16.mxu1 %v10462_v14  ;;  %v10480_v14 = vcombine.high %v10439_v16, %v10447_v31  ;;  %v10482_v13 = vcombine.high %v10440_v32, %v10448_v11  ;;  %v10479_v47 = vcombine.low %v10439_v16, %v10447_v31  ;;  %v12644_v56 = vld [vmem:[%s17326_s16 + $0x4c0] sm:$0xff]  }
0x1362   :  { %v7031_v1 = vmul.f32 %v16327_v9, %v7016_v63  ;;  %v7017_v40 = vmul.f32 %v13123_v57, %v16264_v33  ;;  %10484 = vmatmul.mubr.msk.bf16.gmra.mrb[28].mxu0 %vm611_vm7, %v16396_v20  ;;  %10489 = vmatmul.mubr.msk.bf16.gmra.mrb[24].mxu1 %vm611_vm7, %v16396_v20  ;;  %v10481_v3 = vcombine.low %v10440_v32, %v10448_v11  ;;  %v12642_v63 = vld [vmem:[%s17326_s16 + $0x440] sm:$0xff]  }
0x1363   :  { %v7002_v4 = vadd.f32 1e-05, %v6993_v15  ;;  %7401 = vmatprep.mubr.bf16.mxu0 %v17418_v6  ;;  %7482 = vmatprep.mubr.bf16.mxu1 %v17418_v6  ;;  %v12643_v57 = vld [vmem:[%s17326_s16 + $0x400] sm:$0xff]  }
0x1364   :  { %v7032_v51 = vmul.f32 %v16327_v9, %v7017_v40  ;;  %v7046_v8 = vadd.f32 %v16335_v60, %v7031_v1  ;;  %v12645_v15 = vld [vmem:[%s17326_s16 + $0x480] sm:$0xff]   ;;  %v12646_v1 = vld [vmem:[%s17326_s16 + $0x448] sm:$0xff]  }
0x1365   :  { %13128 = vrsqrt.f32 %v7002_v4  ;;  %v12648_v40 = vld [vmem:[%s17326_s16 + $0x4c8] sm:$0xff]  }
0x1366   :  { %v7047_v29 = vadd.f32 %v16335_v60, %v7032_v51  ;;  %v12647_v4 = vld [vmem:[%s17326_s16 + $0x408] sm:$0xff]  }
0x1367   :  { %v13125_v21 = vpop.eup %13124  ;;  %v12649_v51 = vld [vmem:[%s17326_s16 + $0x488] sm:$0xff]  }
0x1368   :  { %v16410_v33 = vpack.c.bf16 %v7047_v29, %v7046_v8  ;;  %v7018_v26 = vmul.f32 %v13125_v21, %v16273_v42  ;;  %v12652_v8 = vld [vmem:[%s17326_s16 + $0x4d0] sm:$0xff]  }
0x1369   :  { %v13127_v43 = vpop.eup %13126  ;;  %v12651_v29 = vld [vmem:[%s17326_s16 + $0x410] sm:$0xff]  }
0x136a   :  { %v7033_v34 = vmul.f32 %v16327_v9, %v7018_v26  ;;  %v7019_v0 = vmul.f32 %v13127_v43, %v16276_v2  ;;  %10485 = vmatmul.mubr.msk.bf16.gmra.mrb[32].mxu0 %vm611_vm7, %v16410_v33  ;;  %10490 = vmatmul.mubr.msk.bf16.gmra.mrb[28].mxu1 %vm611_vm7, %v16410_v33  ;;  %v12653_v21 = vld [vmem:[%s17326_s16 + $0x490] sm:$0xff]   ;;  %v12654_v26 = vld [vmem:[%s17326_s16 + $0x458] sm:$0xff]  }
0x136b   :  { %7411 = vmatprep.mubr.bf16.mxu0 %v17418_v6  ;;  %7492 = vmatprep.mubr.bf16.mxu1 %v17418_v6  ;;  %v12656_v43 = vld [vmem:[%s17326_s16 + $0x4d8] sm:$0xff]  }
0x136c   :  { %v7034_v61 = vmul.f32 %v16327_v9, %v7019_v0  ;;  %v7048_v5 = vadd.f32 %v16335_v60, %v7033_v34  ;;  %v12655_v34 = vld [vmem:[%s17326_s16 + $0x418] sm:$0xff]  }
0x136d   :  { %v12657_v0 = vld [vmem:[%s17326_s16 + $0x498] sm:$0xff]  }
0x136e   :  { %v7049_v42 = vadd.f32 %v16335_v60, %v7034_v61  ;;  %v12659_v61 = vld [vmem:[%s17326_s16 + $0x4e0] sm:$0xff]  }
0x136f   :  { %v13129_v19 = vpop.eup %13128 }
0x1370   :  { %v16424_v22 = vpack.c.bf16 %v7049_v42, %v7048_v5  ;;  %v7020_v2 = vmul.f32 %v13129_v19, %v16285_v35  ;;  %v10437_v35 = vld [vmem:[%s17324_s14 + $0x1a0] sm:$0xff]  ;;  %v12662_v19 = vld [vmem:[%s17326_s16 + $0x468] sm:$0xff]  }
0x1371   :  { %v12660_v5 = vld [vmem:[%s17326_s16 + $0x420] sm:$0xff]  }
0x1372   :  { %v7035_v28 = vmul.f32 %v16327_v9, %v7020_v2  ;;  %10486 = vmatmul.mubr.msk.bf16.gmra.mrb[36].mxu0 %vm611_vm7, %v16424_v22  ;;  %10491 = vmatmul.mubr.msk.bf16.gmra.mrb[32].mxu1 %vm611_vm7, %v16424_v22  ;;  %v10445_v9 = vld [vmem:[%s17324_s14 + $0x1e0] sm:$0xff]  ;;  %v12663_v2 = vld [vmem:[%s17326_s16 + $0x4e8] sm:$0xff]  }
0x1373   :  { %7421 = vmatprep.mubr.bf16.mxu0 %v17418_v6  ;;  %7502 = vmatprep.mubr.bf16.mxu1 %v17418_v6  ;;  %v10476_v17 = vcombine.high %v10437_v35, %v10445_v9  ;;  %v10475_v49 = vcombine.low %v10437_v35, %v10445_v9  ;;  %v12661_v42 = vld [vmem:[%s17326_s16 + $0x4a0] sm:$0xff]   ;;  %v12667_v35 = vld [vmem:[%s17326_s16 + $0x4f0] sm:$0xff]  }
0x1374   :  { %v7050_v18 = vadd.f32 %v16335_v60, %v7035_v28  ;;  %v10438_v60 = vld [vmem:[%s17324_s14 + $0x1a8] sm:$0xff]  ;;  %v12668_v9 = vld [vmem:[%s17326_s16 + $0x430] sm:$0xff]   ;;  %s13130_s14 = scalar_lea.vmem %s9968_s30, 16 }
0x1375   :  { %v10478_v41 = vcombine.high %v10438_v60, %v10446_v30  ;;  %v10477_v55 = vcombine.low %v10438_v60, %v10446_v30  ;;  %v12664_v28 = vld [vmem:[%s17326_s16 + $0x428] sm:$0xff]   ;;  %v12669_v60 = vld [vmem:[%s17326_s16 + $0x4b0] sm:$0xff]   ;;  %v12670_v30 = vld [vmem:[%s17326_s16 + $0x478] sm:$0xff]   ;;  %p13131_p0 = scmp.ne.s32.totalorder %s9968_s30, %s13130_s14  ;;  %p13136_p2 = scmp.lt.s32.totalorder %s13134_s0, %s13130_s14 }
0x1376   :  { %v16435_v38 = vpack.c.bf16 %v7050_v18, %v7050_v18  ;;  %v12665_v18 = vld [vmem:[%s17326_s16 + $0x4a8] sm:$0xff]  }
0x1377   :  { %p13137_p3 = por %p13136_p2, %p13135_p1 }
0x1379   :  { %p13138_p4 = pnand %p13137_p3, %p13131_p0 }
0x137a   :  { %10487 = vmatmul.mubr.msk.bf16.gmra.mrb[40].mxu0 %vm611_vm7, %v16435_v38  ;;  %10492 = vmatmul.mubr.msk.bf16.gmra.mrb[36].mxu1 %vm611_vm7, %v16435_v38 }
0x137b   :  { %7543 = vmatprep.mubr.bf16.mxu0 %v17418_v6  ;;  %7624 = vmatprep.mubr.bf16.mxu1 %v17418_v6 }
0x1382   :  { %10493 = vmatmul.mubr.msk.bf16.vlgmr.msra.gmra.mrb[44].mxu0 %vm611_vm7, %v16352_v45  ;;  %10498 = vmatmul.mubr.msk.bf16.vlgmr.msra.gmra.mrb[40].mxu1 %vm611_vm7, %v16352_v45 }
0x1383   :  { %7674 = vmatpush1.bf16.msra.mxu0 %v10459_v59  ;;  %7553 = vmatprep.mubr.bf16.mxu0 %v17418_v6  ;;  %v12671_v59 = vld [vmem:[%s17326_s16 + $0x4f8] sm:$0xff]  }
0x1384   :  { %7634 = vmatprep.mubr.bf16.mxu1 %v17418_v6  ;;  %7755 = vmatpush1.bf16.msra.mxu1 %v10461_v44  ;;  %v12672_v44 = vld [vmem:[%s17326_s16 + $0x438] sm:$0xff]  }
0x1385   :  { %7675 = vmatprep.subr.bf16.mxu0 %v10476_v17  ;;  %7756 = vmatprep.subr.bf16.mxu1 %v10478_v41  ;;  %v12673_v17 = vld [vmem:[%s17326_s16 + $0x4b8] sm:$0xff]   ;;  %v16676_v41 = vld [vmem:[%s17325_s15 + $0x10] sm:$0xff] }
0x1386   :  { %v16680_v54 = vrot.slane %v16676_v41, %v17446_v53  ;;  %v16684_v48 = vrot.slane %v16676_v41, %v17447_v23 }
0x1387   :  { %7676 = vmatpush1.bf16.msra.mxu0 %v10475_v49  ;;  %v17448_v49 = vld [vmem:[#allocation22_spill] sm:$0xff] }
0x1388   :  { %7757 = vmatpush1.bf16.msra.mxu1 %v10477_v55  ;;  %7835 = vmatprep.subr.bf16.mxu0 %v10464_v7  ;;  %v16688_v55 = vrot.slane %v16676_v41, %v17448_v49  ;;  %v17449_v7 = vld [vmem:[#allocation23_spill] sm:$0xff] }
0x1389   :  { %7916 = vmatprep.subr.bf16.mxu1 %v10466_v27 }
0x138a   :  { %10494 = vmatmul.mubr.msk.bf16.gmra.mrb[48].mxu0 %vm611_vm7, %v16396_v20  ;;  %10499 = vmatmul.mubr.msk.bf16.gmra.mrb[44].mxu1 %vm611_vm7, %v16396_v20 }
0x138b   :  { %7563 = vmatprep.mubr.bf16.mxu0 %v17418_v6  ;;  %7644 = vmatprep.mubr.bf16.mxu1 %v17418_v6 }
0x1392   :  { %10495 = vmatmul.mubr.msk.bf16.gmra.mrb[52].mxu0 %vm611_vm7, %v16410_v33  ;;  %10500 = vmatmul.mubr.msk.bf16.gmra.mrb[48].mxu1 %vm611_vm7, %v16410_v33 }
0x1393   :  { %7573 = vmatprep.mubr.bf16.mxu0 %v17418_v6  ;;  %7654 = vmatprep.mubr.bf16.mxu1 %v17418_v6 }
0x139a   :  { %10496 = vmatmul.mubr.msk.bf16.gmra.mrb[60].mxu0 %vm611_vm7, %v16424_v22  ;;  %10501 = vmatmul.mubr.msk.bf16.gmra.mrb[52].mxu1 %vm611_vm7, %v16424_v22 }
0x139b   :  { %7583 = vmatprep.mubr.bf16.mxu0 %v17418_v6  ;;  %7664 = vmatprep.mubr.bf16.mxu1 %v17418_v6 }
0x13a2   :  { %10497 = vmatmul.mubr.msk.bf16.gmra.mrb[64].mxu0 %vm611_vm7, %v16435_v38  ;;  %10502 = vmatmul.mubr.msk.bf16.gmra.mrb[56].mxu1 %vm611_vm7, %v16435_v38 }
0x13a3   :  { %7705 = vmatprep.mubr.bf16.mxu0 %v17418_v6  ;;  %7786 = vmatprep.mubr.bf16.mxu1 %v17418_v6 }
0x13aa   :  { %10503 = vmatmul.mubr.msk.bf16.vlgmr.msra.gmra.mrb[68].mxu0 %vm611_vm7, %v16352_v45  ;;  %10508 = vmatmul.mubr.msk.bf16.vlgmr.msra.gmra.mrb[60].mxu1 %vm611_vm7, %v16352_v45 }
0x13ab   :  { %7836 = vmatpush1.bf16.msra.mxu0 %v10463_v37  ;;  %7715 = vmatprep.mubr.bf16.mxu0 %v17418_v6 }
0x13ac   :  { %7796 = vmatprep.mubr.bf16.mxu1 %v17418_v6  ;;  %7917 = vmatpush1.bf16.msra.mxu1 %v10465_v39 }
0x13ad   :  { %7837 = vmatprep.subr.bf16.mxu0 %v10480_v14  ;;  %7918 = vmatprep.subr.bf16.mxu1 %v10482_v13 }
0x13af   :  { %7838 = vmatpush1.bf16.msra.mxu0 %v10479_v47 }
0x13b0   :  { %7919 = vmatpush1.bf16.msra.mxu1 %v10481_v3  ;;  %11507 = vmatprep.subr.bf16.mxu0 %v12642_v63 }
0x13b1   :  { %11553 = vmatprep.subr.bf16.mxu1 %v12644_v56 }
0x13b2   :  { %10504 = vmatmul.mubr.msk.bf16.gmra.mrb[72].mxu0 %vm611_vm7, %v16396_v20  ;;  %10509 = vmatmul.mubr.msk.bf16.gmra.mrb[64].mxu1 %vm611_vm7, %v16396_v20 }
0x13b3   :  { %7725 = vmatprep.mubr.bf16.mxu0 %v17418_v6  ;;  %7806 = vmatprep.mubr.bf16.mxu1 %v17418_v6 }
0x13ba   :  { %10505 = vmatmul.mubr.msk.bf16.gmra.mrb[76].mxu0 %vm611_vm7, %v16410_v33  ;;  %10510 = vmatmul.mubr.msk.bf16.gmra.mrb[68].mxu1 %vm611_vm7, %v16410_v33 }
0x13bb   :  { %7735 = vmatprep.mubr.bf16.mxu0 %v17418_v6  ;;  %7816 = vmatprep.mubr.bf16.mxu1 %v17418_v6 }
0x13c2   :  { %10506 = vmatmul.mubr.msk.bf16.gmra.mrb[80].mxu0 %vm611_vm7, %v16424_v22  ;;  %10511 = vmatmul.mubr.msk.bf16.gmra.mrb[72].mxu1 %vm611_vm7, %v16424_v22 }
0x13c3   :  { %7745 = vmatprep.mubr.bf16.mxu0 %v17418_v6  ;;  %7826 = vmatprep.mubr.bf16.mxu1 %v17418_v6 }
0x13ca   :  { %10507 = vmatmul.mubr.msk.bf16.gmra.mrb[84].mxu0 %vm611_vm7, %v16435_v38  ;;  %10512 = vmatmul.mubr.msk.bf16.gmra.mrb[76].mxu1 %vm611_vm7, %v16435_v38 }
0x13cb   :  { %7867 = vmatprep.mubr.bf16.mxu0 %v17418_v6  ;;  %7948 = vmatprep.mubr.bf16.mxu1 %v17418_v6 }
0x13d2   :  { %10513 = vmatmul.mubr.msk.bf16.vlgmr.msra.gmra.mrb[88].mxu0 %vm611_vm7, %v16352_v45  ;;  %10518 = vmatmul.mubr.msk.bf16.vlgmr.msra.gmra.mrb[80].mxu1 %vm611_vm7, %v16352_v45  ;;  %v12650_v45 = vld [vmem:[%s17326_s16 + $0x450] sm:$0xff]  }
0x13d3   :  { %7877 = vmatprep.mubr.bf16.mxu0 %v17418_v6  ;;  %7958 = vmatprep.mubr.bf16.mxu1 %v17418_v6 }
0x13d4   :  { %11508 = vmatpush3.bf16.msra.mxu0 %v12643_v57  ;;  %11554 = vmatpush3.bf16.msra.mxu1 %v12645_v15 }
0x13d5   :  { %11509 = vmatprep.subr.bf16.mxu0 %v12646_v1  ;;  %11555 = vmatprep.subr.bf16.mxu1 %v12648_v40 }
0x13d8   :  { %11510 = vmatpush3.bf16.msra.mxu0 %v12647_v4  ;;  %11556 = vmatpush3.bf16.msra.mxu1 %v12649_v51 }
0x13d9   :  { %11511 = vmatprep.subr.bf16.mxu0 %v12650_v45  ;;  %11557 = vmatprep.subr.bf16.mxu1 %v12652_v8 }
0x13da   :  { %10514 = vmatmul.mubr.msk.bf16.gmra.mrb[92].mxu0 %vm611_vm7, %v16396_v20  ;;  %10519 = vmatmul.mubr.msk.bf16.gmra.mrb[84].mxu1 %vm611_vm7, %v16396_v20  ;;  %v12658_v20 = vld [vmem:[%s17326_s16 + $0x460] sm:$0xff]  }
0x13db   :  { %7887 = vmatprep.mubr.bf16.mxu0 %v17418_v6  ;;  %7968 = vmatprep.mubr.bf16.mxu1 %v17418_v6 }
0x13dc   :  { %11512 = vmatpush3.bf16.msra.mxu0 %v12651_v29  ;;  %11558 = vmatpush3.bf16.msra.mxu1 %v12653_v21 }
0x13dd   :  { %11513 = vmatprep.subr.bf16.mxu0 %v12654_v26  ;;  %11559 = vmatprep.subr.bf16.mxu1 %v12656_v43 }
0x13e0   :  { %11514 = vmatpush3.bf16.msra.mxu0 %v12655_v34  ;;  %11560 = vmatpush3.bf16.msra.mxu1 %v12657_v0 }
0x13e1   :  { %11515 = vmatprep.subr.bf16.mxu0 %v12658_v20  ;;  %11561 = vmatprep.subr.bf16.mxu1 %v12659_v61 }
0x13e2   :  { %10515 = vmatmul.mubr.msk.bf16.gmra.mrb[96].mxu0 %vm611_vm7, %v16410_v33  ;;  %10520 = vmatmul.mubr.msk.bf16.gmra.mrb[88].mxu1 %vm611_vm7, %v16410_v33  ;;  %v12666_v33 = vld [vmem:[%s17326_s16 + $0x470] sm:$0xff]  }
0x13e3   :  { %7897 = vmatprep.mubr.bf16.mxu0 %v17418_v6  ;;  %7978 = vmatprep.mubr.bf16.mxu1 %v17418_v6 }
0x13e4   :  { %11516 = vmatpush3.bf16.msra.mxu0 %v12660_v5  ;;  %11562 = vmatpush3.bf16.msra.mxu1 %v12661_v42  ;;  %v12675_v42 = vld [vmem:[%s17326_s16 + $0x500] sm:$0xff]  }
0x13e5   :  { %11517 = vmatprep.subr.bf16.mxu0 %v12662_v19  ;;  %11563 = vmatprep.subr.bf16.mxu1 %v12663_v2  ;;  %v12677_v19 = vld [vmem:[%s17326_s16 + $0x580] sm:$0xff]  }
0x13e8   :  { %11518 = vmatpush3.bf16.msra.mxu0 %v12664_v28  ;;  %11564 = vmatpush3.bf16.msra.mxu1 %v12665_v18 }
0x13e9   :  { %11519 = vmatprep.subr.bf16.mxu0 %v12666_v33  ;;  %11565 = vmatprep.subr.bf16.mxu1 %v12667_v35  ;;  %v12678_v35 = vld [vmem:[%s17326_s16 + $0x548] sm:$0xff]  }
0x13ea   :  { %10516 = vmatmul.mubr.msk.bf16.gmra.mrb[100].mxu0 %vm611_vm7, %v16424_v22  ;;  %10521 = vmatmul.mubr.msk.bf16.gmra.mrb[92].mxu1 %vm611_vm7, %v16424_v22  ;;  %v12674_v22 = vld [vmem:[%s17326_s16 + $0x540] sm:$0xff]  }
0x13eb   :  { %7907 = vmatprep.mubr.bf16.mxu0 %v17418_v6  ;;  %7988 = vmatprep.mubr.bf16.mxu1 %v17418_v6  ;;  %v12676_v6 = vld [vmem:[%s17326_s16 + $0x5c0] sm:$0xff]  }
0x13ec   :  { %11520 = vmatpush3.bf16.msra.mxu0 %v12668_v9  ;;  %11566 = vmatpush3.bf16.msra.mxu1 %v12669_v60  ;;  %v12680_v9 = vld [vmem:[%s17326_s16 + $0x5c8] sm:$0xff]  }
0x13ed   :  { %11521 = vmatprep.subr.bf16.mxu0 %v12670_v30  ;;  %11567 = vmatprep.subr.bf16.mxu1 %v12671_v59 }
0x13f0   :  { %11522 = vmatpush3.bf16.msra.mxu0 %v12672_v44  ;;  %11568 = vmatpush3.bf16.msra.mxu1 %v12673_v17 }
0x13f1   :  { %11599 = vmatprep.subr.bf16.mxu0 %v12674_v22  ;;  %11645 = vmatprep.subr.bf16.mxu1 %v12676_v6 }
0x13f2   :  { %10517 = vmatmul.mubr.msk.bf16.gmra.mrb[104].mxu0 %vm611_vm7, %v16435_v38  ;;  %10522 = vmatmul.mubr.msk.bf16.gmra.mrb[96].mxu1 %vm611_vm7, %v16435_v38  ;;  %v16692_v38 = vrot.slane %v16676_v41, %v17449_v7 }
0x142d   :  { %v7383_v27 = vpop.f32.mrb[24].mxu0  ;;  %v7464_v16 = vpop.f32.mrb[20].mxu1 }
0x142e   :  { %v7384_v31 = vadd.f32 %v7383_v27, %v16680_v54  ;;  %v7465_v32 = vadd.f32 %v7464_v16, %v16684_v48  ;;  %v7385_v11 = vpop.f32.mrb[25].mxu0  ;;  %v7466_v37 = vpop.f32.mrb[21].mxu1 }
0x142f   :  { %v7386_v39 = vadd.f32 %v7385_v11, %v16688_v55  ;;  %v7467_v14 = vadd.f32 %v7466_v37, %v16692_v38  ;;  %v7387_v13 = vpop.f32.mrb[26].mxu0  ;;  %v7468_v47 = vpop.f32.mrb[22].mxu1  ;;  %v12681_v11 = vld [vmem:[%s17326_s16 + $0x588] sm:$0xff]  }
0x1430   :  { %v7388_v3 = vadd.f32 %v7387_v13, %v16680_v54  ;;  %v7469_v63 = vadd.f32 %v7468_v47, %v16684_v48  ;;  %v7389_v56 = vpop.f32.mrb[27].mxu0  ;;  %v7470_v57 = vpop.f32.mrb[23].mxu1  ;;  %v7997_v40 = vmax.f32 %v7384_v31, 0.0  ;;  %v7999_v4 = vmax.f32 %v7465_v32, 0.0  ;;  %v12679_v32 = vld [vmem:[%s17326_s16 + $0x508] sm:$0xff]   ;;  %v12682_v47 = vld [vmem:[%s17326_s16 + $0x550] sm:$0xff]  }
0x1431   :  { %v7390_v15 = vadd.f32 %v7389_v56, %v16688_v55  ;;  %v7471_v1 = vadd.f32 %v7470_v57, %v16692_v38  ;;  %v7998_v8 = vmax.f32 %v7386_v39, 0.0  ;;  %v8000_v29 = vmax.f32 %v7467_v14, 0.0 }
0x1432   :  { %v8013_v51 = vmax.f32 %v7388_v3, 0.0  ;;  %v8015_v45 = vmax.f32 %v7469_v63, 0.0  ;;  %v12684_v3 = vld [vmem:[%s17326_s16 + $0x5d0] sm:$0xff]  }
0x1433   :  { %v8014_v21 = vmax.f32 %v7390_v15, 0.0  ;;  %v8016_v26 = vmax.f32 %v7471_v1, 0.0 }
0x1434   :  { %v8141_v43 = vpack.c.bf16 %v8013_v51, %v7997_v40  ;;  %v8143_v34 = vpack.c.bf16 %v8015_v45, %v7999_v4 }
0x1435   :  { %v8142_v0 = vpack.c.bf16 %v8014_v21, %v7998_v8  ;;  %v8144_v20 = vpack.c.bf16 %v8016_v26, %v8000_v29  ;;  %v7393_v61 = vpop.f32.mrb[28].mxu0  ;;  %v7474_v5 = vpop.f32.mrb[24].mxu1  ;;  %v12683_v29 = vld [vmem:[%s17326_s16 + $0x510] sm:$0xff]  }
0x1436   :  { %v7394_v2 = vadd.f32 %v7393_v61, %v16680_v54  ;;  %v7475_v28 = vadd.f32 %v7474_v5, %v16684_v48  ;;  %v7395_v18 = vpop.f32.mrb[29].mxu0  ;;  %v7476_v33 = vpop.f32.mrb[25].mxu1  ;;  %v12685_v21 = vld [vmem:[%s17326_s16 + $0x590] sm:$0xff]   ;;  %v12688_v61 = vld [vmem:[%s17326_s16 + $0x5d8] sm:$0xff]  }
0x1437   :  { %v7396_v60 = vadd.f32 %v7395_v18, %v16688_v55  ;;  %v7477_v30 = vadd.f32 %v7476_v33, %v16692_v38  ;;  %v7397_v59 = vpop.f32.mrb[30].mxu0  ;;  %v7478_v44 = vpop.f32.mrb[26].mxu1  ;;  %9278 = vmatprep.mubr.bf16.mxu0 %v8142_v0  ;;  %9350 = vmatprep.mubr.bf16.mxu1 %v8144_v20  ;;  %v12686_v20 = vld [vmem:[%s17326_s16 + $0x558] sm:$0xff]  }
0x1438   :  { %v7398_v17 = vadd.f32 %v7397_v59, %v16680_v54  ;;  %v7479_v22 = vadd.f32 %v7478_v44, %v16684_v48  ;;  %v7399_v6 = vpop.f32.mrb[31].mxu0  ;;  %v7480_v27 = vpop.f32.mrb[27].mxu1  ;;  %9279 = vmatmul.mubr.bf16.vlgmr.msra.gmra.mrb[108].mxu0 %v8141_v43  ;;  %9351 = vmatmul.mubr.bf16.vlgmr.msra.gmra.mrb[100].mxu1 %v8143_v34  ;;  %v8029_v37 = vmax.f32 %v7394_v2, 0.0  ;;  %v8031_v39 = vmax.f32 %v7475_v28, 0.0  ;;  %v12689_v59 = vld [vmem:[%s17326_s16 + $0x598] sm:$0xff]  }
0x1439   :  { %v7400_v16 = vadd.f32 %v7399_v6, %v16688_v55  ;;  %v7481_v31 = vadd.f32 %v7480_v27, %v16692_v38  ;;  %11600 = vmatpush3.bf16.msra.mxu0 %v12675_v42  ;;  %11646 = vmatpush3.bf16.msra.mxu1 %v12677_v19  ;;  %v8030_v63 = vmax.f32 %v7396_v60, 0.0  ;;  %v8032_v56 = vmax.f32 %v7477_v30, 0.0  ;;  %v12687_v30 = vld [vmem:[%s17326_s16 + $0x518] sm:$0xff]   ;;  %v12690_v27 = vld [vmem:[%s17326_s16 + $0x560] sm:$0xff]  }
0x143a   :  { %v8045_v14 = vmax.f32 %v7398_v17, 0.0  ;;  %v8047_v13 = vmax.f32 %v7479_v22, 0.0  ;;  %11601 = vmatprep.subr.bf16.mxu0 %v12678_v35  ;;  %11647 = vmatprep.subr.bf16.mxu1 %v12680_v9 }
0x143b   :  { %v8046_v57 = vmax.f32 %v7400_v16, 0.0  ;;  %v8048_v15 = vmax.f32 %v7481_v31, 0.0  ;;  %v12691_v16 = vld [vmem:[%s17326_s16 + $0x5e0] sm:$0xff]  }
0x143c   :  { %v8157_v1 = vpack.c.bf16 %v8045_v14, %v8029_v37  ;;  %v8159_v40 = vpack.c.bf16 %v8047_v13, %v8031_v39 }
0x143d   :  { %v8158_v4 = vpack.c.bf16 %v8046_v57, %v8030_v63  ;;  %v8160_v51 = vpack.c.bf16 %v8048_v15, %v8032_v56  ;;  %v7403_v45 = vpop.f32.mrb[32].mxu0  ;;  %v7484_v8 = vpop.f32.mrb[28].mxu1  ;;  %11602 = vmatpush3.bf16.msra.mxu0 %v12679_v32  ;;  %11648 = vmatpush3.bf16.msra.mxu1 %v12681_v11  ;;  %v12692_v56 = vld [vmem:[%s17326_s16 + $0x520] sm:$0xff]  }
0x143e   :  { %v7404_v26 = vadd.f32 %v7403_v45, %v16680_v54  ;;  %v7485_v43 = vadd.f32 %v7484_v8, %v16684_v48  ;;  %v7405_v34 = vpop.f32.mrb[33].mxu0  ;;  %v7486_v0 = vpop.f32.mrb[29].mxu1  ;;  %11603 = vmatprep.subr.bf16.mxu0 %v12682_v47  ;;  %11649 = vmatprep.subr.bf16.mxu1 %v12684_v3  ;;  %v12693_v57 = vld [vmem:[%s17326_s16 + $0x5a0] sm:$0xff]   ;;  %v12695_v45 = vld [vmem:[%s17326_s16 + $0x5e8] sm:$0xff]  }
0x143f   :  { %v7406_v5 = vadd.f32 %v7405_v34, %v16688_v55  ;;  %v7487_v42 = vadd.f32 %v7486_v0, %v16692_v38  ;;  %v7407_v19 = vpop.f32.mrb[34].mxu0  ;;  %v7488_v2 = vpop.f32.mrb[30].mxu1  ;;  %9286 = vmatprep.mubr.bf16.mxu0 %v8158_v4  ;;  %9358 = vmatprep.mubr.bf16.mxu1 %v8160_v51  ;;  %v12694_v51 = vld [vmem:[%s17326_s16 + $0x568] sm:$0xff]  }
0x1440   :  { %v7408_v28 = vadd.f32 %v7407_v19, %v16680_v54  ;;  %v7489_v18 = vadd.f32 %v7488_v2, %v16684_v48  ;;  %v7409_v33 = vpop.f32.mrb[35].mxu0  ;;  %v7490_v35 = vpop.f32.mrb[31].mxu1  ;;  %9287 = vmatmul.mubr.bf16.gmra.mrb[112].mxu0 %v8157_v1  ;;  %9359 = vmatmul.mubr.bf16.gmra.mrb[104].mxu1 %v8159_v40  ;;  %v8061_v44 = vmax.f32 %v7404_v26, 0.0  ;;  %v8063_v17 = vmax.f32 %v7485_v43, 0.0  ;;  %v12697_v19 = vld [vmem:[%s17326_s16 + $0x5a8] sm:$0xff]  }
0x1441   :  { %v7410_v9 = vadd.f32 %v7409_v33, %v16688_v55  ;;  %v7491_v60 = vadd.f32 %v7490_v35, %v16692_v38  ;;  %11604 = vmatpush3.bf16.msra.mxu0 %v12683_v29  ;;  %11650 = vmatpush3.bf16.msra.mxu1 %v12685_v21  ;;  %v8062_v31 = vmax.f32 %v7406_v5, 0.0  ;;  %v8064_v32 = vmax.f32 %v7487_v42, 0.0  ;;  %v12696_v42 = vld [vmem:[%s17326_s16 + $0x528] sm:$0xff]   ;;  %v12698_v35 = vld [vmem:[%s17326_s16 + $0x570] sm:$0xff]  }
0x1442   :  { %v8077_v22 = vmax.f32 %v7408_v28, 0.0  ;;  %v8079_v6 = vmax.f32 %v7489_v18, 0.0  ;;  %11605 = vmatprep.subr.bf16.mxu0 %v12686_v20  ;;  %11651 = vmatprep.subr.bf16.mxu1 %v12688_v61 }
0x1443   :  { %v8078_v11 = vmax.f32 %v7410_v9, 0.0  ;;  %v8080_v37 = vmax.f32 %v7491_v60, 0.0  ;;  %v12699_v9 = vld [vmem:[%s17326_s16 + $0x5f0] sm:$0xff]  }
0x1444   :  { %v8173_v39 = vpack.c.bf16 %v8077_v22, %v8061_v44  ;;  %v8175_v14 = vpack.c.bf16 %v8079_v6, %v8063_v17 }
0x1445   :  { %v8174_v13 = vpack.c.bf16 %v8078_v11, %v8062_v31  ;;  %v8176_v47 = vpack.c.bf16 %v8080_v37, %v8064_v32  ;;  %v7413_v3 = vpop.f32.mrb[36].mxu0  ;;  %v7494_v63 = vpop.f32.mrb[32].mxu1  ;;  %11606 = vmatpush3.bf16.msra.mxu0 %v12687_v30  ;;  %11652 = vmatpush3.bf16.msra.mxu1 %v12689_v59  ;;  %v12700_v32 = vld [vmem:[%s17326_s16 + $0x530] sm:$0xff]  }
0x1446   :  { %v7414_v15 = vadd.f32 %v7413_v3, %v16680_v54  ;;  %v7495_v1 = vadd.f32 %v7494_v63, %v16684_v48  ;;  %v7415_v40 = vpop.f32.mrb[37].mxu0  ;;  %v7496_v4 = vpop.f32.mrb[33].mxu1  ;;  %11607 = vmatprep.subr.bf16.mxu0 %v12690_v27  ;;  %11653 = vmatprep.subr.bf16.mxu1 %v12691_v16  ;;  %v12701_v11 = vld [vmem:[%s17326_s16 + $0x5b0] sm:$0xff]   ;;  %v12703_v3 = vld [vmem:[%s17326_s16 + $0x5f8] sm:$0xff]  }
0x1447   :  { %v7416_v8 = vadd.f32 %v7415_v40, %v16688_v55  ;;  %v7497_v29 = vadd.f32 %v7496_v4, %v16692_v38  ;;  %v7417_v21 = vpop.f32.mrb[38].mxu0  ;;  %v7498_v26 = vpop.f32.mrb[34].mxu1  ;;  %9294 = vmatprep.mubr.bf16.mxu0 %v8174_v13  ;;  %9366 = vmatprep.mubr.bf16.mxu1 %v8176_v47  ;;  %v12702_v47 = vld [vmem:[%s17326_s16 + $0x578] sm:$0xff]  }
0x1448   :  { %v7418_v43 = vadd.f32 %v7417_v21, %v16680_v54  ;;  %v7499_v34 = vadd.f32 %v7498_v26, %v16684_v48  ;;  %v7419_v0 = vpop.f32.mrb[39].mxu0  ;;  %v7500_v20 = vpop.f32.mrb[35].mxu1  ;;  %9295 = vmatmul.mubr.bf16.gmra.mrb[116].mxu0 %v8173_v39  ;;  %9367 = vmatmul.mubr.bf16.gmra.mrb[108].mxu1 %v8175_v14  ;;  %v8093_v2 = vmax.f32 %v7414_v15, 0.0  ;;  %v8095_v28 = vmax.f32 %v7495_v1, 0.0  ;;  %v12705_v21 = vld [vmem:[%s17326_s16 + $0x5b8] sm:$0xff]  }
0x1449   :  { %v7420_v61 = vadd.f32 %v7419_v0, %v16688_v55  ;;  %v7501_v5 = vadd.f32 %v7500_v20, %v16692_v38  ;;  %11608 = vmatpush3.bf16.msra.mxu0 %v12692_v56  ;;  %11654 = vmatpush3.bf16.msra.mxu1 %v12693_v57  ;;  %v8094_v60 = vmax.f32 %v7416_v8, 0.0  ;;  %v8096_v30 = vmax.f32 %v7497_v29, 0.0  ;;  %v12704_v29 = vld [vmem:[%s17326_s16 + $0x538] sm:$0xff]   ;;  %v17453_v20 = vld [vmem:[#allocation27_spill] sm:$0xff] }
0x144a   :  { %v8109_v18 = vmax.f32 %v7418_v43, 0.0  ;;  %v8111_v33 = vmax.f32 %v7499_v34, 0.0  ;;  %11609 = vmatprep.subr.bf16.mxu0 %v12694_v51  ;;  %11655 = vmatprep.subr.bf16.mxu1 %v12695_v45  ;;  %v17450_v45 = vld [vmem:[#allocation24_spill] sm:$0xff]  ;;  %v17452_v34 = vld [vmem:[#allocation26_spill] sm:$0xff] }
0x144b   :  { %v8110_v59 = vmax.f32 %v7420_v61, 0.0  ;;  %v8112_v44 = vmax.f32 %v7501_v5, 0.0  ;;  %v16816_v8 = vrot.slane %v16676_v41, %v17450_v45  ;;  %v16830_v0 = vrot.slane %v16676_v41, %v17452_v34  ;;  %v12706_v5 = vld [vmem:[%s17326_s16 + $0x640] sm:$0xff]  }
0x144c   :  { %v8189_v17 = vpack.c.bf16 %v8109_v18, %v8093_v2  ;;  %v8191_v22 = vpack.c.bf16 %v8111_v33, %v8095_v28  ;;  %v16834_v61 = vrot.slane %v16676_v41, %v17453_v20 }
0x144d   :  { %v8190_v6 = vpack.c.bf16 %v8110_v59, %v8094_v60  ;;  %v8192_v27 = vpack.c.bf16 %v8112_v44, %v8096_v30  ;;  %v7423_v16 = vpop.f32.mrb[40].mxu0  ;;  %v7504_v31 = vpop.f32.mrb[36].mxu1  ;;  %11610 = vmatpush3.bf16.msra.mxu0 %v12696_v42  ;;  %11656 = vmatpush3.bf16.msra.mxu1 %v12697_v19  ;;  %v12708_v42 = vld [vmem:[%s17326_s16 + $0x6c0] sm:$0xff]  }
0x144e   :  { %v7424_v37 = vadd.f32 %v7423_v16, %v16680_v54  ;;  %v7505_v39 = vadd.f32 %v7504_v31, %v16684_v48  ;;  %v7425_v14 = vpop.f32.mrb[41].mxu0  ;;  %v7506_v13 = vpop.f32.mrb[37].mxu1  ;;  %11611 = vmatprep.subr.bf16.mxu0 %v12698_v35  ;;  %11657 = vmatprep.subr.bf16.mxu1 %v12699_v9 }
0x144f   :  { %v7426_v63 = vadd.f32 %v7425_v14, %v16688_v55  ;;  %v7507_v56 = vadd.f32 %v7506_v13, %v16692_v38  ;;  %v7427_v57 = vpop.f32.mrb[42].mxu0  ;;  %v7508_v54 = vpop.f32.mrb[38].mxu1  ;;  %9302 = vmatprep.mubr.bf16.mxu0 %v8190_v6  ;;  %9374 = vmatprep.mubr.bf16.mxu1 %v8192_v27  ;;  %v17451_v55 = vld [vmem:[#allocation25_spill] sm:$0xff] }
0x1450   :  { %v7428_v48 = vpop.f32.mrb[43].mxu0  ;;  %v7509_v15 = vpop.f32.mrb[39].mxu1  ;;  %9303 = vmatmul.mubr.bf16.gmra.mrb[120].mxu0 %v8189_v17  ;;  %9375 = vmatmul.mubr.bf16.gmra.mrb[112].mxu1 %v8191_v22  ;;  %v8125_v1 = vmax.f32 %v7424_v37, 0.0  ;;  %v8127_v51 = vmax.f32 %v7505_v39, 0.0  ;;  %v16820_v38 = vrot.slane %v16676_v41, %v17451_v55 }
0x1451   :  { %v8126_v40 = vmax.f32 %v7426_v63, 0.0  ;;  %v8128_v4 = vmax.f32 %v7507_v56, 0.0  ;;  %11612 = vmatpush3.bf16.msra.mxu0 %v12700_v32  ;;  %11658 = vmatpush3.bf16.msra.mxu1 %v12701_v11 }
0x1452   :  { %11613 = vmatprep.subr.bf16.mxu0 %v12702_v47  ;;  %11659 = vmatprep.subr.bf16.mxu1 %v12703_v3  ;;  %v8205_v19 = vpack.c.bf16 %v8125_v1, %v8125_v1  ;;  %v8207_v18 = vpack.c.bf16 %v8127_v51, %v8127_v51  ;;  %v12707_v1 = vld [vmem:[%s17326_s16 + $0x600] sm:$0xff]  }
0x1453   :  { %v8206_v26 = vpack.c.bf16 %v8126_v40, %v8126_v40  ;;  %v8208_v43 = vpack.c.bf16 %v8128_v4, %v8128_v4  ;;  %v12709_v40 = vld [vmem:[%s17326_s16 + $0x680] sm:$0xff]  }
0x1455   :  { %v7545_v2 = vpop.f32.mrb[44].mxu0  ;;  %v7626_v28 = vpop.f32.mrb[40].mxu1  ;;  %9310 = vmatprep.mubr.bf16.mxu0 %v8206_v26  ;;  %9382 = vmatprep.mubr.bf16.mxu1 %v8208_v43  ;;  %v12710_v26 = vld [vmem:[%s17326_s16 + $0x648] sm:$0xff]  }
0x1456   :  { %v7546_v33 = vadd.f32 %v7545_v2, %v16816_v8  ;;  %v7627_v35 = vadd.f32 %v7626_v28, %v16820_v38  ;;  %v7547_v41 = vpop.f32.mrb[45].mxu0  ;;  %v7628_v9 = vpop.f32.mrb[41].mxu1  ;;  %11614 = vmatpush3.bf16.msra.mxu0 %v12704_v29  ;;  %11660 = vmatpush3.bf16.msra.mxu1 %v12705_v21  ;;  %v12712_v43 = vld [vmem:[%s17326_s16 + $0x6c8] sm:$0xff]  }
0x1457   :  { %v7548_v60 = vadd.f32 %v7547_v41, %v16830_v0  ;;  %v7629_v30 = vadd.f32 %v7628_v9, %v16834_v61  ;;  %v7549_v59 = vpop.f32.mrb[46].mxu0  ;;  %v7630_v44 = vpop.f32.mrb[42].mxu1  ;;  %11691 = vmatprep.subr.bf16.mxu0 %v12706_v5  ;;  %11737 = vmatprep.subr.bf16.mxu1 %v12708_v42 }
0x1458   :  { %v7550_v17 = vadd.f32 %v7549_v59, %v16816_v8  ;;  %v7631_v22 = vadd.f32 %v7630_v44, %v16820_v38  ;;  %v7551_v6 = vpop.f32.mrb[47].mxu0  ;;  %v7632_v27 = vpop.f32.mrb[43].mxu1  ;;  %9311 = vmatmul.mubr.bf16.gmra.mrb[124].mxu0 %v8205_v19  ;;  %9383 = vmatmul.mubr.bf16.gmra.mrb[116].mxu1 %v8207_v18  ;;  %v8001_v32 = vmax.f32 %v7546_v33, 0.0  ;;  %v8003_v11 = vmax.f32 %v7627_v35, 0.0 }
0x1459   :  { %v7552_v16 = vadd.f32 %v7551_v6, %v16830_v0  ;;  %v7633_v31 = vadd.f32 %v7632_v27, %v16834_v61  ;;  %v8002_v14 = vmax.f32 %v7548_v60, 0.0  ;;  %v8004_v13 = vmax.f32 %v7629_v30, 0.0  ;;  %v12711_v60 = vld [vmem:[%s17326_s16 + $0x608] sm:$0xff]   ;;  %v12714_v6 = vld [vmem:[%s17326_s16 + $0x650] sm:$0xff]  }
0x145a   :  { %v8017_v37 = vmax.f32 %v7550_v17, 0.0  ;;  %v8019_v39 = vmax.f32 %v7631_v22, 0.0  ;;  %v12713_v30 = vld [vmem:[%s17326_s16 + $0x688] sm:$0xff]   ;;  %v12716_v27 = vld [vmem:[%s17326_s16 + $0x6d0] sm:$0xff]  }
0x145b   :  { %v8018_v47 = vmax.f32 %v7552_v16, 0.0  ;;  %v8020_v3 = vmax.f32 %v7633_v31, 0.0 }
0x145c   :  { %v8145_v63 = vpack.c.bf16 %v8017_v37, %v8001_v32  ;;  %v8147_v56 = vpack.c.bf16 %v8019_v39, %v8003_v11 }
0x145d   :  { %v8146_v57 = vpack.c.bf16 %v8018_v47, %v8002_v14  ;;  %v8148_v54 = vpack.c.bf16 %v8020_v3, %v8004_v13  ;;  %v7555_v48 = vpop.f32.mrb[48].mxu0  ;;  %v7636_v15 = vpop.f32.mrb[44].mxu1 }
0x145e   :  { %v7556_v4 = vadd.f32 %v7555_v48, %v16816_v8  ;;  %v7637_v51 = vadd.f32 %v7636_v15, %v16820_v38  ;;  %v7557_v29 = vpop.f32.mrb[49].mxu0  ;;  %v7638_v21 = vpop.f32.mrb[45].mxu1 }
0x145f   :  { %v7558_v5 = vadd.f32 %v7557_v29, %v16830_v0  ;;  %v7639_v42 = vadd.f32 %v7638_v21, %v16834_v61  ;;  %v7559_v19 = vpop.f32.mrb[50].mxu0  ;;  %v7640_v2 = vpop.f32.mrb[46].mxu1  ;;  %9422 = vmatprep.mubr.bf16.mxu0 %v8146_v57  ;;  %9494 = vmatprep.mubr.bf16.mxu1 %v8148_v54 }
0x1460   :  { %v7560_v28 = vadd.f32 %v7559_v19, %v16816_v8  ;;  %v7641_v18 = vadd.f32 %v7640_v2, %v16820_v38  ;;  %v7561_v33 = vpop.f32.mrb[51].mxu0  ;;  %v7642_v35 = vpop.f32.mrb[47].mxu1  ;;  %9423 = vmatmul.mubr.bf16.vlgmr.msra.gmra.mrb[128].mxu0 %v8145_v63  ;;  %9495 = vmatmul.mubr.bf16.vlgmr.msra.gmra.mrb[120].mxu1 %v8147_v56  ;;  %v8033_v59 = vmax.f32 %v7556_v4, 0.0  ;;  %v8035_v44 = vmax.f32 %v7637_v51, 0.0  ;;  %v12715_v63 = vld [vmem:[%s17326_s16 + $0x610] sm:$0xff]  }
0x1461   :  { %v7562_v41 = vadd.f32 %v7561_v33, %v16830_v0  ;;  %v7643_v9 = vadd.f32 %v7642_v35, %v16834_v61  ;;  %11692 = vmatpush3.bf16.msra.mxu0 %v12707_v1  ;;  %11738 = vmatpush3.bf16.msra.mxu1 %v12709_v40  ;;  %v8034_v16 = vmax.f32 %v7558_v5, 0.0  ;;  %v8036_v31 = vmax.f32 %v7639_v42, 0.0  ;;  %v12717_v56 = vld [vmem:[%s17326_s16 + $0x690] sm:$0xff]   ;;  %v12718_v1 = vld [vmem:[%s17326_s16 + $0x658] sm:$0xff]  }
0x1462   :  { %v8049_v17 = vmax.f32 %v7560_v28, 0.0  ;;  %v8051_v22 = vmax.f32 %v7641_v18, 0.0  ;;  %11693 = vmatprep.subr.bf16.mxu0 %v12710_v26  ;;  %11739 = vmatprep.subr.bf16.mxu1 %v12712_v43  ;;  %v12720_v40 = vld [vmem:[%s17326_s16 + $0x6d8] sm:$0xff]  }
0x1463   :  { %v8050_v32 = vmax.f32 %v7562_v41, 0.0  ;;  %v8052_v11 = vmax.f32 %v7643_v9, 0.0  ;;  %v12719_v28 = vld [vmem:[%s17326_s16 + $0x618] sm:$0xff]  }
0x1464   :  { %v8161_v37 = vpack.c.bf16 %v8049_v17, %v8033_v59  ;;  %v8163_v39 = vpack.c.bf16 %v8051_v22, %v8035_v44  ;;  %v12721_v18 = vld [vmem:[%s17326_s16 + $0x698] sm:$0xff]  }
0x1465   :  { %v8162_v14 = vpack.c.bf16 %v8050_v32, %v8034_v16  ;;  %v8164_v13 = vpack.c.bf16 %v8052_v11, %v8036_v31  ;;  %v7565_v47 = vpop.f32.mrb[52].mxu0  ;;  %v7646_v3 = vpop.f32.mrb[48].mxu1  ;;  %11694 = vmatpush3.bf16.msra.mxu0 %v12711_v60  ;;  %11740 = vmatpush3.bf16.msra.mxu1 %v12713_v30  ;;  %v12722_v60 = vld [vmem:[%s17326_s16 + $0x660] sm:$0xff]  }
0x1466   :  { %v7566_v57 = vadd.f32 %v7565_v47, %v16816_v8  ;;  %v7647_v54 = vadd.f32 %v7646_v3, %v16820_v38  ;;  %v7567_v48 = vpop.f32.mrb[53].mxu0  ;;  %v7648_v15 = vpop.f32.mrb[49].mxu1  ;;  %11695 = vmatprep.subr.bf16.mxu0 %v12714_v6  ;;  %11741 = vmatprep.subr.bf16.mxu1 %v12716_v27  ;;  %v12723_v30 = vld [vmem:[%s17326_s16 + $0x6e0] sm:$0xff]  }
0x1467   :  { %v7568_v4 = vadd.f32 %v7567_v48, %v16830_v0  ;;  %v7649_v51 = vadd.f32 %v7648_v15, %v16834_v61  ;;  %v7569_v29 = vpop.f32.mrb[54].mxu0  ;;  %v7650_v21 = vpop.f32.mrb[50].mxu1  ;;  %9430 = vmatprep.mubr.bf16.mxu0 %v8162_v14  ;;  %9502 = vmatprep.mubr.bf16.mxu1 %v8164_v13 }
0x1468   :  { %v7570_v26 = vadd.f32 %v7569_v29, %v16816_v8  ;;  %v7651_v43 = vadd.f32 %v7650_v21, %v16820_v38  ;;  %v7571_v5 = vpop.f32.mrb[55].mxu0  ;;  %v7652_v42 = vpop.f32.mrb[51].mxu1  ;;  %9431 = vmatmul.mubr.bf16.gmra.mrb[132].mxu0 %v8161_v37  ;;  %9503 = vmatmul.mubr.bf16.gmra.mrb[124].mxu1 %v8163_v39  ;;  %v8065_v33 = vmax.f32 %v7566_v57, 0.0  ;;  %v8067_v35 = vmax.f32 %v7647_v54, 0.0  ;;  %v12724_v37 = vld [vmem:[%s17326_s16 + $0x620] sm:$0xff]  }
0x1469   :  { %v7572_v19 = vadd.f32 %v7571_v5, %v16830_v0  ;;  %v7653_v2 = vadd.f32 %v7652_v42, %v16834_v61  ;;  %11696 = vmatpush3.bf16.msra.mxu0 %v12715_v63  ;;  %11742 = vmatpush3.bf16.msra.mxu1 %v12717_v56  ;;  %v8066_v59 = vmax.f32 %v7568_v4, 0.0  ;;  %v8068_v44 = vmax.f32 %v7649_v51, 0.0  ;;  %v12725_v39 = vld [vmem:[%s17326_s16 + $0x6a0] sm:$0xff]   ;;  %v12726_v63 = vld [vmem:[%s17326_s16 + $0x668] sm:$0xff]  }
0x146a   :  { %v8081_v41 = vmax.f32 %v7570_v26, 0.0  ;;  %v8083_v9 = vmax.f32 %v7651_v43, 0.0  ;;  %11697 = vmatprep.subr.bf16.mxu0 %v12718_v1  ;;  %11743 = vmatprep.subr.bf16.mxu1 %v12720_v40  ;;  %v12727_v56 = vld [vmem:[%s17326_s16 + $0x6e8] sm:$0xff]  }
0x146b   :  { %v8082_v17 = vmax.f32 %v7572_v19, 0.0  ;;  %v8084_v22 = vmax.f32 %v7653_v2, 0.0  ;;  %v12728_v26 = vld [vmem:[%s17326_s16 + $0x628] sm:$0xff]  }
0x146c   :  { %v8177_v6 = vpack.c.bf16 %v8081_v41, %v8065_v33  ;;  %v8179_v27 = vpack.c.bf16 %v8083_v9, %v8067_v35  ;;  %v12729_v43 = vld [vmem:[%s17326_s16 + $0x6a8] sm:$0xff]  }
0x146d   :  { %v8178_v16 = vpack.c.bf16 %v8082_v17, %v8066_v59  ;;  %v8180_v31 = vpack.c.bf16 %v8084_v22, %v8068_v44  ;;  %v7575_v32 = vpop.f32.mrb[60].mxu0  ;;  %v7656_v11 = vpop.f32.mrb[52].mxu1  ;;  %11698 = vmatpush3.bf16.msra.mxu0 %v12719_v28  ;;  %11744 = vmatpush3.bf16.msra.mxu1 %v12721_v18  ;;  %v12730_v28 = vld [vmem:[%s17326_s16 + $0x670] sm:$0xff]  }
0x146e   :  { %v7576_v14 = vadd.f32 %v7575_v32, %v16816_v8  ;;  %v7657_v13 = vadd.f32 %v7656_v11, %v16820_v38  ;;  %v7577_v47 = vpop.f32.mrb[61].mxu0  ;;  %v7658_v3 = vpop.f32.mrb[53].mxu1  ;;  %11699 = vmatprep.subr.bf16.mxu0 %v12722_v60  ;;  %11745 = vmatprep.subr.bf16.mxu1 %v12723_v30  ;;  %v12731_v18 = vld [vmem:[%s17326_s16 + $0x6f0] sm:$0xff]  }
0x146f   :  { %v7578_v57 = vadd.f32 %v7577_v47, %v16830_v0  ;;  %v7659_v54 = vadd.f32 %v7658_v3, %v16834_v61  ;;  %v7579_v48 = vpop.f32.mrb[62].mxu0  ;;  %v7660_v15 = vpop.f32.mrb[54].mxu1  ;;  %9438 = vmatprep.mubr.bf16.mxu0 %v8178_v16  ;;  %9510 = vmatprep.mubr.bf16.mxu1 %v8180_v31 }
0x1470   :  { %v7580_v1 = vadd.f32 %v7579_v48, %v16816_v8  ;;  %v7661_v40 = vadd.f32 %v7660_v15, %v16820_v38  ;;  %v7581_v4 = vpop.f32.mrb[63].mxu0  ;;  %v7662_v51 = vpop.f32.mrb[55].mxu1  ;;  %9439 = vmatmul.mubr.bf16.gmra.mrb[136].mxu0 %v8177_v6  ;;  %9511 = vmatmul.mubr.bf16.gmra.mrb[128].mxu1 %v8179_v27  ;;  %v8097_v5 = vmax.f32 %v7576_v14, 0.0  ;;  %v8099_v42 = vmax.f32 %v7657_v13, 0.0  ;;  %v12732_v6 = vld [vmem:[%s17326_s16 + $0x630] sm:$0xff]   ;;  %v12736_v15 = vld [vmem:[%s17326_s16 + $0x638] sm:$0xff]  }
0x1471   :  { %v7582_v29 = vadd.f32 %v7581_v4, %v16830_v0  ;;  %v7663_v21 = vadd.f32 %v7662_v51, %v16834_v61  ;;  %11700 = vmatpush3.bf16.msra.mxu0 %v12724_v37  ;;  %11746 = vmatpush3.bf16.msra.mxu1 %v12725_v39  ;;  %v8098_v33 = vmax.f32 %v7578_v57, 0.0  ;;  %v8100_v35 = vmax.f32 %v7659_v54, 0.0  ;;  %v12733_v27 = vld [vmem:[%s17326_s16 + $0x6b0] sm:$0xff]   ;;  %v12734_v37 = vld [vmem:[%s17326_s16 + $0x678] sm:$0xff]  }
0x1472   :  { %v8113_v19 = vmax.f32 %v7580_v1, 0.0  ;;  %v8115_v2 = vmax.f32 %v7661_v40, 0.0  ;;  %11701 = vmatprep.subr.bf16.mxu0 %v12726_v63  ;;  %11747 = vmatprep.subr.bf16.mxu1 %v12727_v56  ;;  %v12735_v39 = vld [vmem:[%s17326_s16 + $0x6f8] sm:$0xff]  }
0x1473   :  { %v8114_v41 = vmax.f32 %v7582_v29, 0.0  ;;  %v8116_v9 = vmax.f32 %v7663_v21, 0.0  ;;  %v12737_v1 = vld [vmem:[%s17326_s16 + $0x6b8] sm:$0xff]   ;;  %v12738_v29 = vld [vmem:[%s17326_s16 + $0x740] sm:$0xff]  }
0x1474   :  { %v8193_v60 = vpack.c.bf16 %v8113_v19, %v8097_v5  ;;  %v8195_v30 = vpack.c.bf16 %v8115_v2, %v8099_v42  ;;  %v12740_v21 = vld [vmem:[%s17326_s16 + $0x7c0] sm:$0xff]  }
0x1475   :  { %v8194_v59 = vpack.c.bf16 %v8114_v41, %v8098_v33  ;;  %v8196_v44 = vpack.c.bf16 %v8116_v9, %v8100_v35  ;;  %v7585_v17 = vpop.f32.mrb[64].mxu0  ;;  %v7666_v22 = vpop.f32.mrb[56].mxu1  ;;  %11702 = vmatpush3.bf16.msra.mxu0 %v12728_v26  ;;  %11748 = vmatpush3.bf16.msra.mxu1 %v12729_v43 }
0x1476   :  { %v7586_v16 = vadd.f32 %v7585_v17, %v16816_v8  ;;  %v7667_v31 = vadd.f32 %v7666_v22, %v16820_v38  ;;  %v7587_v32 = vpop.f32.mrb[65].mxu0  ;;  %v7668_v11 = vpop.f32.mrb[57].mxu1  ;;  %11703 = vmatprep.subr.bf16.mxu0 %v12730_v28  ;;  %11749 = vmatprep.subr.bf16.mxu1 %v12731_v18  ;;  %v16965_v38 = vld [vmem:[%s17325_s15 + $0x18] sm:$0xff] }
0x1477   :  { %v7588_v14 = vadd.f32 %v7587_v32, %v16830_v0  ;;  %v7669_v13 = vadd.f32 %v7668_v11, %v16834_v61  ;;  %v7589_v47 = vpop.f32.mrb[66].mxu0  ;;  %v7670_v8 = vpop.f32.mrb[58].mxu1  ;;  %9446 = vmatprep.mubr.bf16.mxu0 %v8194_v59  ;;  %9518 = vmatprep.mubr.bf16.mxu1 %v8196_v44  ;;  %v16969_v61 = vrot.slane %v16965_v38, %v17446_v53 }
0x1478   :  { %v7590_v3 = vpop.f32.mrb[67].mxu0  ;;  %v7671_v63 = vpop.f32.mrb[59].mxu1  ;;  %9447 = vmatmul.mubr.bf16.gmra.mrb[140].mxu0 %v8193_v60  ;;  %9519 = vmatmul.mubr.bf16.gmra.mrb[132].mxu1 %v8195_v30  ;;  %v8129_v56 = vmax.f32 %v7586_v16, 0.0  ;;  %v8131_v0 = vmax.f32 %v7667_v31, 0.0  ;;  %v16973_v48 = vrot.slane %v16965_v38, %v17447_v23  ;;  %v16983_v51 = vrot.slane %v16965_v38, %v17448_v49 }
0x1479   :  { %v8130_v57 = vmax.f32 %v7588_v14, 0.0  ;;  %v8132_v54 = vmax.f32 %v7669_v13, 0.0  ;;  %11704 = vmatpush3.bf16.msra.mxu0 %v12732_v6  ;;  %11750 = vmatpush3.bf16.msra.mxu1 %v12733_v27  ;;  %v16987_v23 = vrot.slane %v16965_v38, %v17449_v7  ;;  %v12739_v3 = vld [vmem:[%s17326_s16 + $0x700] sm:$0xff]  }
0x147a   :  { %11705 = vmatprep.subr.bf16.mxu0 %v12734_v37  ;;  %11751 = vmatprep.subr.bf16.mxu1 %v12735_v39  ;;  %v8209_v26 = vpack.c.bf16 %v8129_v56, %v8129_v56  ;;  %v8211_v42 = vpack.c.bf16 %v8131_v0, %v8131_v0  ;;  %v12741_v63 = vld [vmem:[%s17326_s16 + $0x780] sm:$0xff]  }
0x147b   :  { %v8210_v40 = vpack.c.bf16 %v8130_v57, %v8130_v57  ;;  %v8212_v4 = vpack.c.bf16 %v8132_v54, %v8132_v54 }
0x147d   :  { %v7707_v43 = vpop.f32.mrb[68].mxu0  ;;  %v7788_v5 = vpop.f32.mrb[60].mxu1  ;;  %9454 = vmatprep.mubr.bf16.mxu0 %v8210_v40  ;;  %9526 = vmatprep.mubr.bf16.mxu1 %v8212_v4 }
0x147e   :  { %v7708_v49 = vadd.f32 %v7707_v43, %v16969_v61  ;;  %v7789_v19 = vadd.f32 %v7788_v5, %v16973_v48  ;;  %v7709_v7 = vpop.f32.mrb[69].mxu0  ;;  %v7790_v2 = vpop.f32.mrb[61].mxu1  ;;  %11706 = vmatpush3.bf16.msra.mxu0 %v12736_v15  ;;  %11752 = vmatpush3.bf16.msra.mxu1 %v12737_v1  ;;  %v12742_v15 = vld [vmem:[%s17326_s16 + $0x748] sm:$0xff]  }
0x147f   :  { %v7710_v28 = vadd.f32 %v7709_v7, %v16983_v51  ;;  %v7791_v18 = vadd.f32 %v7790_v2, %v16987_v23  ;;  %v7711_v33 = vpop.f32.mrb[70].mxu0  ;;  %v7792_v35 = vpop.f32.mrb[62].mxu1  ;;  %11783 = vmatprep.subr.bf16.mxu0 %v12738_v29  ;;  %11829 = vmatprep.subr.bf16.mxu1 %v12740_v21  ;;  %v12744_v1 = vld [vmem:[%s17326_s16 + $0x7c8] sm:$0xff]  }
0x1480   :  { %v7712_v41 = vadd.f32 %v7711_v33, %v16969_v61  ;;  %v7793_v9 = vadd.f32 %v7792_v35, %v16973_v48  ;;  %v7713_v60 = vpop.f32.mrb[71].mxu0  ;;  %v7794_v30 = vpop.f32.mrb[63].mxu1  ;;  %9455 = vmatmul.mubr.bf16.gmra.mrb[144].mxu0 %v8209_v26  ;;  %9527 = vmatmul.mubr.bf16.gmra.mrb[136].mxu1 %v8211_v42  ;;  %v8005_v17 = vmax.f32 %v7708_v49, 0.0  ;;  %v8007_v22 = vmax.f32 %v7789_v19, 0.0  ;;  %v12743_v7 = vld [vmem:[%s17326_s16 + $0x708] sm:$0xff]  }
0x1481   :  { %v7714_v59 = vadd.f32 %v7713_v60, %v16983_v51  ;;  %v7795_v44 = vadd.f32 %v7794_v30, %v16987_v23  ;;  %v8006_v16 = vmax.f32 %v7710_v28, 0.0  ;;  %v8008_v31 = vmax.f32 %v7791_v18, 0.0  ;;  %v12745_v2 = vld [vmem:[%s17326_s16 + $0x788] sm:$0xff]  }
0x1482   :  { %v8021_v6 = vmax.f32 %v7712_v41, 0.0  ;;  %v8023_v27 = vmax.f32 %v7793_v9, 0.0  ;;  %v12746_v41 = vld [vmem:[%s17326_s16 + $0x750] sm:$0xff]  }
0x1483   :  { %v8022_v32 = vmax.f32 %v7714_v59, 0.0  ;;  %v8024_v11 = vmax.f32 %v7795_v44, 0.0  ;;  %v12748_v9 = vld [vmem:[%s17326_s16 + $0x7d0] sm:$0xff]  }
0x1484   :  { %v8149_v37 = vpack.c.bf16 %v8021_v6, %v8005_v17  ;;  %v8151_v39 = vpack.c.bf16 %v8023_v27, %v8007_v22 }
0x1485   :  { %v8150_v14 = vpack.c.bf16 %v8022_v32, %v8006_v16  ;;  %v8152_v13 = vpack.c.bf16 %v8024_v11, %v8008_v31  ;;  %v7717_v47 = vpop.f32.mrb[72].mxu0  ;;  %v7798_v8 = vpop.f32.mrb[64].mxu1  ;;  %v12747_v32 = vld [vmem:[%s17326_s16 + $0x710] sm:$0xff]  }
0x1486   :  { %v7718_v56 = vadd.f32 %v7717_v47, %v16969_v61  ;;  %v7799_v57 = vadd.f32 %v7798_v8, %v16973_v48  ;;  %v7719_v54 = vpop.f32.mrb[73].mxu0  ;;  %v7800_v0 = vpop.f32.mrb[65].mxu1  ;;  %v12749_v11 = vld [vmem:[%s17326_s16 + $0x790] sm:$0xff]   ;;  %v12750_v47 = vld [vmem:[%s17326_s16 + $0x758] sm:$0xff]  }
0x1487   :  { %v7720_v40 = vadd.f32 %v7719_v54, %v16983_v51  ;;  %v7801_v4 = vadd.f32 %v7800_v0, %v16987_v23  ;;  %v7721_v29 = vpop.f32.mrb[74].mxu0  ;;  %v7802_v21 = vpop.f32.mrb[66].mxu1  ;;  %9566 = vmatprep.mubr.bf16.mxu0 %v8150_v14  ;;  %9638 = vmatprep.mubr.bf16.mxu1 %v8152_v13  ;;  %v12752_v8 = vld [vmem:[%s17326_s16 + $0x7d8] sm:$0xff]  }
0x1488   :  { %v7722_v26 = vadd.f32 %v7721_v29, %v16969_v61  ;;  %v7803_v43 = vadd.f32 %v7802_v21, %v16973_v48  ;;  %v7723_v5 = vpop.f32.mrb[75].mxu0  ;;  %v7804_v42 = vpop.f32.mrb[67].mxu1  ;;  %9567 = vmatmul.mubr.bf16.vlgmr.msra.gmra.mrb[148].mxu0 %v8149_v37  ;;  %9639 = vmatmul.mubr.bf16.vlgmr.msra.gmra.mrb[140].mxu1 %v8151_v39  ;;  %v8037_v28 = vmax.f32 %v7718_v56, 0.0  ;;  %v8039_v18 = vmax.f32 %v7799_v57, 0.0  ;;  %v12751_v29 = vld [vmem:[%s17326_s16 + $0x718] sm:$0xff]  }
0x1489   :  { %v7724_v49 = vadd.f32 %v7723_v5, %v16983_v51  ;;  %v7805_v19 = vadd.f32 %v7804_v42, %v16987_v23  ;;  %11784 = vmatpush3.bf16.msra.mxu0 %v12739_v3  ;;  %11830 = vmatpush3.bf16.msra.mxu1 %v12741_v63  ;;  %v8038_v60 = vmax.f32 %v7720_v40, 0.0  ;;  %v8040_v30 = vmax.f32 %v7801_v4, 0.0  ;;  %v12753_v21 = vld [vmem:[%s17326_s16 + $0x798] sm:$0xff]  }
0x148a   :  { %v8053_v33 = vmax.f32 %v7722_v26, 0.0  ;;  %v8055_v35 = vmax.f32 %v7803_v43, 0.0  ;;  %11785 = vmatprep.subr.bf16.mxu0 %v12742_v15  ;;  %11831 = vmatprep.subr.bf16.mxu1 %v12744_v1 }
0x148b   :  { %v8054_v59 = vmax.f32 %v7724_v49, 0.0  ;;  %v8056_v44 = vmax.f32 %v7805_v19, 0.0  ;;  %v12754_v49 = vld [vmem:[%s17326_s16 + $0x760] sm:$0xff]  }
0x148c   :  { %v8165_v17 = vpack.c.bf16 %v8053_v33, %v8037_v28  ;;  %v8167_v22 = vpack.c.bf16 %v8055_v35, %v8039_v18  ;;  %v12755_v19 = vld [vmem:[%s17326_s16 + $0x7e0] sm:$0xff]  }
0x148d   :  { %v8166_v6 = vpack.c.bf16 %v8054_v59, %v8038_v60  ;;  %v8168_v27 = vpack.c.bf16 %v8056_v44, %v8040_v30  ;;  %v7727_v16 = vpop.f32.mrb[76].mxu0  ;;  %v7808_v31 = vpop.f32.mrb[68].mxu1  ;;  %11786 = vmatpush3.bf16.msra.mxu0 %v12743_v7  ;;  %11832 = vmatpush3.bf16.msra.mxu1 %v12745_v2  ;;  %v12756_v59 = vld [vmem:[%s17326_s16 + $0x720] sm:$0xff]  }
0x148e   :  { %v7728_v37 = vadd.f32 %v7727_v16, %v16969_v61  ;;  %v7809_v39 = vadd.f32 %v7808_v31, %v16973_v48  ;;  %v7729_v14 = vpop.f32.mrb[77].mxu0  ;;  %v7810_v13 = vpop.f32.mrb[69].mxu1  ;;  %11787 = vmatprep.subr.bf16.mxu0 %v12746_v41  ;;  %11833 = vmatprep.subr.bf16.mxu1 %v12748_v9  ;;  %v12757_v44 = vld [vmem:[%s17326_s16 + $0x7a0] sm:$0xff]   ;;  %v12758_v16 = vld [vmem:[%s17326_s16 + $0x768] sm:$0xff]  }
0x148f   :  { %v7730_v3 = vadd.f32 %v7729_v14, %v16983_v51  ;;  %v7811_v63 = vadd.f32 %v7810_v13, %v16987_v23  ;;  %v7731_v56 = vpop.f32.mrb[78].mxu0  ;;  %v7812_v57 = vpop.f32.mrb[70].mxu1  ;;  %9574 = vmatprep.mubr.bf16.mxu0 %v8166_v6  ;;  %9646 = vmatprep.mubr.bf16.mxu1 %v8168_v27  ;;  %v12759_v31 = vld [vmem:[%s17326_s16 + $0x7e8] sm:$0xff]  }
0x1490   :  { %v7732_v54 = vadd.f32 %v7731_v56, %v16969_v61  ;;  %v7813_v0 = vadd.f32 %v7812_v57, %v16973_v48  ;;  %v7733_v15 = vpop.f32.mrb[79].mxu0  ;;  %v7814_v1 = vpop.f32.mrb[71].mxu1  ;;  %9575 = vmatmul.mubr.bf16.gmra.mrb[152].mxu0 %v8165_v17  ;;  %9647 = vmatmul.mubr.bf16.gmra.mrb[144].mxu1 %v8167_v22  ;;  %v8069_v26 = vmax.f32 %v7728_v37, 0.0  ;;  %v8071_v43 = vmax.f32 %v7809_v39, 0.0  ;;  %v12760_v56 = vld [vmem:[%s17326_s16 + $0x728] sm:$0xff]  }
0x1491   :  { %v7734_v40 = vadd.f32 %v7733_v15, %v16983_v51  ;;  %v7815_v4 = vadd.f32 %v7814_v1, %v16987_v23  ;;  %11788 = vmatpush3.bf16.msra.mxu0 %v12747_v32  ;;  %11834 = vmatpush3.bf16.msra.mxu1 %v12749_v11  ;;  %v8070_v7 = vmax.f32 %v7730_v3, 0.0  ;;  %v8072_v2 = vmax.f32 %v7811_v63, 0.0  ;;  %v12761_v57 = vld [vmem:[%s17326_s16 + $0x7a8] sm:$0xff]  }
0x1492   :  { %v8085_v5 = vmax.f32 %v7732_v54, 0.0  ;;  %v8087_v42 = vmax.f32 %v7813_v0, 0.0  ;;  %11789 = vmatprep.subr.bf16.mxu0 %v12750_v47  ;;  %11835 = vmatprep.subr.bf16.mxu1 %v12752_v8 }
0x1493   :  { %v8086_v28 = vmax.f32 %v7734_v40, 0.0  ;;  %v8088_v18 = vmax.f32 %v7815_v4, 0.0  ;;  %v12762_v40 = vld [vmem:[%s17326_s16 + $0x770] sm:$0xff]  }
0x1494   :  { %v8181_v33 = vpack.c.bf16 %v8085_v5, %v8069_v26  ;;  %v8183_v35 = vpack.c.bf16 %v8087_v42, %v8071_v43  ;;  %v12763_v4 = vld [vmem:[%s17326_s16 + $0x7f0] sm:$0xff]  }
0x1495   :  { %v8182_v41 = vpack.c.bf16 %v8086_v28, %v8070_v7  ;;  %v8184_v9 = vpack.c.bf16 %v8088_v18, %v8072_v2  ;;  %v7737_v60 = vpop.f32.mrb[80].mxu0  ;;  %v7818_v30 = vpop.f32.mrb[72].mxu1  ;;  %11790 = vmatpush3.bf16.msra.mxu0 %v12751_v29  ;;  %11836 = vmatpush3.bf16.msra.mxu1 %v12753_v21  ;;  %v12764_v28 = vld [vmem:[%s17326_s16 + $0x730] sm:$0xff]  }
0x1496   :  { %v7738_v17 = vadd.f32 %v7737_v60, %v16969_v61  ;;  %v7819_v22 = vadd.f32 %v7818_v30, %v16973_v48  ;;  %v7739_v6 = vpop.f32.mrb[81].mxu0  ;;  %v7820_v27 = vpop.f32.mrb[73].mxu1  ;;  %11791 = vmatprep.subr.bf16.mxu0 %v12754_v49  ;;  %11837 = vmatprep.subr.bf16.mxu1 %v12755_v19  ;;  %v12765_v18 = vld [vmem:[%s17326_s16 + $0x7b0] sm:$0xff]   ;;  %v12766_v60 = vld [vmem:[%s17326_s16 + $0x778] sm:$0xff]  }
0x1497   :  { %v7740_v32 = vadd.f32 %v7739_v6, %v16983_v51  ;;  %v7821_v11 = vadd.f32 %v7820_v27, %v16987_v23  ;;  %v7741_v37 = vpop.f32.mrb[82].mxu0  ;;  %v7822_v39 = vpop.f32.mrb[74].mxu1  ;;  %9582 = vmatprep.mubr.bf16.mxu0 %v8182_v41  ;;  %9654 = vmatprep.mubr.bf16.mxu1 %v8184_v9  ;;  %v12767_v30 = vld [vmem:[%s17326_s16 + $0x7f8] sm:$0xff]  }
0x1498   :  { %v7742_v14 = vadd.f32 %v7741_v37, %v16969_v61  ;;  %v7823_v13 = vadd.f32 %v7822_v39, %v16973_v48  ;;  %v7743_v47 = vpop.f32.mrb[83].mxu0  ;;  %v7824_v8 = vpop.f32.mrb[75].mxu1  ;;  %9583 = vmatmul.mubr.bf16.gmra.mrb[156].mxu0 %v8181_v33  ;;  %9655 = vmatmul.mubr.bf16.gmra.mrb[148].mxu1 %v8183_v35  ;;  %v8101_v54 = vmax.f32 %v7738_v17, 0.0  ;;  %v8103_v0 = vmax.f32 %v7819_v22, 0.0 }
0x1499   :  { %v7744_v3 = vadd.f32 %v7743_v47, %v16983_v51  ;;  %v7825_v63 = vadd.f32 %v7824_v8, %v16987_v23  ;;  %11792 = vmatpush3.bf16.msra.mxu0 %v12756_v59  ;;  %11838 = vmatpush3.bf16.msra.mxu1 %v12757_v44  ;;  %v8102_v29 = vmax.f32 %v7740_v32, 0.0  ;;  %v8104_v21 = vmax.f32 %v7821_v11, 0.0  ;;  %v12769_v11 = vld [vmem:[%s17326_s16 + $0x7b8] sm:$0xff]  }
0x149a   :  { %v8117_v15 = vmax.f32 %v7742_v14, 0.0  ;;  %v8119_v1 = vmax.f32 %v7823_v13, 0.0  ;;  %11793 = vmatprep.subr.bf16.mxu0 %v12758_v16  ;;  %11839 = vmatprep.subr.bf16.mxu1 %v12759_v31  ;;  %v17117_v32 = vrot.slane %v16965_v38, %v17450_v45  ;;  %v17131_v45 = vrot.slane %v16965_v38, %v17452_v34 }
0x149b   :  { %v8118_v26 = vmax.f32 %v7744_v3, 0.0  ;;  %v8120_v43 = vmax.f32 %v7825_v63, 0.0 }
0x149c   :  { %v8197_v5 = vpack.c.bf16 %v8117_v15, %v8101_v54  ;;  %v8199_v42 = vpack.c.bf16 %v8119_v1, %v8103_v0  ;;  %v17454_v0 = vmov 0.0|0.0  }
0x149d   :  { %v8198_v49 = vpack.c.bf16 %v8118_v26, %v8102_v29  ;;  %v8200_v19 = vpack.c.bf16 %v8120_v43, %v8104_v21  ;;  %v7747_v7 = vpop.f32.mrb[84].mxu0  ;;  %v7828_v2 = vpop.f32.mrb[76].mxu1  ;;  %11794 = vmatpush3.bf16.msra.mxu0 %v12760_v56  ;;  %11840 = vmatpush3.bf16.msra.mxu1 %v12761_v57 }
0x149e   :  { %v7748_v33 = vadd.f32 %v7747_v7, %v16969_v61  ;;  %v7829_v35 = vadd.f32 %v7828_v2, %v16973_v48  ;;  %v7749_v41 = vpop.f32.mrb[85].mxu0  ;;  %v7830_v9 = vpop.f32.mrb[77].mxu1  ;;  %11795 = vmatprep.subr.bf16.mxu0 %v12762_v40  ;;  %11841 = vmatprep.subr.bf16.mxu1 %v12763_v4 }
0x149f   :  { %v7750_v59 = vadd.f32 %v7749_v41, %v16983_v51  ;;  %v7831_v44 = vadd.f32 %v7830_v9, %v16987_v23  ;;  %v7751_v17 = vpop.f32.mrb[86].mxu0  ;;  %v7832_v61 = vpop.f32.mrb[78].mxu1  ;;  %9590 = vmatprep.mubr.bf16.mxu0 %v8198_v49  ;;  %9662 = vmatprep.mubr.bf16.mxu1 %v8200_v19  ;;  %v17121_v51 = vrot.slane %v16965_v38, %v17451_v55  ;;  %v12768_v23 = vld [vmem:[%s17326_s16 + $0x738] sm:$0xff]  }
0x14a0   :  { %v7752_v48 = vpop.f32.mrb[87].mxu0  ;;  %v7833_v22 = vpop.f32.mrb[79].mxu1  ;;  %9591 = vmatmul.mubr.bf16.gmra.mrb[160].mxu0 %v8197_v5  ;;  %9663 = vmatmul.mubr.bf16.gmra.mrb[152].mxu1 %v8199_v42  ;;  %v8133_v6 = vmax.f32 %v7748_v33, 0.0  ;;  %v8135_v31 = vmax.f32 %v7829_v35, 0.0  ;;  %v17135_v55 = vrot.slane %v16965_v38, %v17453_v20 }
0x14a1   :  { %v8134_v27 = vmax.f32 %v7750_v59, 0.0  ;;  %v8136_v16 = vmax.f32 %v7831_v44, 0.0  ;;  %11796 = vmatpush3.bf16.msra.mxu0 %v12764_v28  ;;  %11842 = vmatpush3.bf16.msra.mxu1 %v12765_v18 }
0x14a2   :  { %11797 = vmatprep.subr.bf16.mxu0 %v12766_v60  ;;  %11843 = vmatprep.subr.bf16.mxu1 %v12767_v30  ;;  %v8213_v14 = vpack.c.bf16 %v8133_v6, %v8133_v6  ;;  %v8215_v8 = vpack.c.bf16 %v8135_v31, %v8135_v31 }
0x14a3   :  { %v8214_v37 = vpack.c.bf16 %v8134_v27, %v8134_v27  ;;  %v8216_v39 = vpack.c.bf16 %v8136_v16, %v8136_v16 }
0x14a5   :  { %v7869_v13 = vpop.f32.mrb[88].mxu0  ;;  %v7950_v47 = vpop.f32.mrb[80].mxu1  ;;  %9598 = vmatprep.mubr.bf16.mxu0 %v8214_v37  ;;  %9670 = vmatprep.mubr.bf16.mxu1 %v8216_v39 }
0x14a6   :  { %v7870_v3 = vadd.f32 %v7869_v13, %v17117_v32  ;;  %v7951_v63 = vadd.f32 %v7950_v47, %v17121_v51  ;;  %v7871_v56 = vpop.f32.mrb[89].mxu0  ;;  %v7952_v57 = vpop.f32.mrb[81].mxu1  ;;  %11798 = vmatpush3.bf16.msra.mxu0 %v12768_v23  ;;  %11844 = vmatpush3.bf16.msra.mxu1 %v12769_v11 }
0x14a7   :  { %v7872_v34 = vadd.f32 %v7871_v56, %v17131_v45  ;;  %v7953_v54 = vadd.f32 %v7952_v57, %v17135_v55  ;;  %v7873_v20 = vpop.f32.mrb[90].mxu0  ;;  %v7954_v38 = vpop.f32.mrb[82].mxu1  ;;  %12395 = vmatprep.subr.bf16.mxu0 %v17454_v0 }
0x14a8   :  { %v7874_v15 = vadd.f32 %v7873_v20, %v17117_v32  ;;  %v7955_v1 = vadd.f32 %v7954_v38, %v17121_v51  ;;  %v7875_v40 = vpop.f32.mrb[91].mxu0  ;;  %v7956_v4 = vpop.f32.mrb[83].mxu1  ;;  %9599 = vmatmul.mubr.bf16.gmra.mrb[164].mxu0 %v8213_v14  ;;  %9671 = vmatmul.mubr.bf16.gmra.mrb[156].mxu1 %v8215_v8  ;;  %v8009_v26 = vmax.f32 %v7870_v3, 0.0  ;;  %v8011_v43 = vmax.f32 %v7951_v63, 0.0 }
0x14a9   :  { %v7876_v29 = vadd.f32 %v7875_v40, %v17131_v45  ;;  %v7957_v21 = vadd.f32 %v7956_v4, %v17135_v55  ;;  %v8010_v49 = vmax.f32 %v7872_v34, 0.0  ;;  %v8012_v19 = vmax.f32 %v7953_v54, 0.0 }
0x14aa   :  { %v8025_v5 = vmax.f32 %v7874_v15, 0.0  ;;  %v8027_v42 = vmax.f32 %v7955_v1, 0.0 }
0x14ab   :  { %v8026_v7 = vmax.f32 %v7876_v29, 0.0  ;;  %v8028_v2 = vmax.f32 %v7957_v21, 0.0 }
0x14ac   :  { %v8153_v28 = vpack.c.bf16 %v8025_v5, %v8009_v26  ;;  %v8155_v18 = vpack.c.bf16 %v8027_v42, %v8011_v43 }
0x14ad   :  { %v8154_v33 = vpack.c.bf16 %v8026_v7, %v8010_v49  ;;  %v8156_v35 = vpack.c.bf16 %v8028_v2, %v8012_v19  ;;  %v7879_v41 = vpop.f32.mrb[92].mxu0  ;;  %v7960_v9 = vpop.f32.mrb[84].mxu1 }
0x14ae   :  { %v7880_v60 = vadd.f32 %v7879_v41, %v17117_v32  ;;  %v7961_v30 = vadd.f32 %v7960_v9, %v17121_v51  ;;  %v7881_v59 = vpop.f32.mrb[93].mxu0  ;;  %v7962_v44 = vpop.f32.mrb[85].mxu1 }
0x14af   :  { %v7882_v17 = vadd.f32 %v7881_v59, %v17131_v45  ;;  %v7963_v61 = vadd.f32 %v7962_v44, %v17135_v55  ;;  %v7883_v48 = vpop.f32.mrb[94].mxu0  ;;  %v7964_v22 = vpop.f32.mrb[86].mxu1  ;;  %9710 = vmatprep.mubr.bf16.mxu0 %v8154_v33  ;;  %9782 = vmatprep.mubr.bf16.mxu1 %v8156_v35 }
0x14b0   :  { %v7884_v6 = vadd.f32 %v7883_v48, %v17117_v32  ;;  %v7965_v27 = vadd.f32 %v7964_v22, %v17121_v51  ;;  %v7885_v16 = vpop.f32.mrb[95].mxu0  ;;  %v7966_v31 = vpop.f32.mrb[87].mxu1  ;;  %9711 = vmatmul.mubr.bf16.vlgmr.msra.gmra.mrb[168].mxu0 %v8153_v28  ;;  %9783 = vmatmul.mubr.bf16.vlgmr.msra.gmra.mrb[160].mxu1 %v8155_v18  ;;  %v8041_v37 = vmax.f32 %v7880_v60, 0.0  ;;  %v8043_v39 = vmax.f32 %v7961_v30, 0.0 }
0x14b1   :  { %v7886_v23 = vadd.f32 %v7885_v16, %v17131_v45  ;;  %v7967_v11 = vadd.f32 %v7966_v31, %v17135_v55  ;;  %v8042_v47 = vmax.f32 %v7882_v17, 0.0  ;;  %v8044_v8 = vmax.f32 %v7963_v61, 0.0 }
0x14b2   :  { %v8057_v14 = vmax.f32 %v7884_v6, 0.0  ;;  %v8059_v13 = vmax.f32 %v7965_v27, 0.0 }
0x14b3   :  { %v8058_v3 = vmax.f32 %v7886_v23, 0.0  ;;  %v8060_v63 = vmax.f32 %v7967_v11, 0.0 }
0x14b4   :  { %v8169_v56 = vpack.c.bf16 %v8057_v14, %v8041_v37  ;;  %v8171_v57 = vpack.c.bf16 %v8059_v13, %v8043_v39 }
0x14b5   :  { %v8170_v34 = vpack.c.bf16 %v8058_v3, %v8042_v47  ;;  %v8172_v54 = vpack.c.bf16 %v8060_v63, %v8044_v8  ;;  %v7889_v20 = vpop.f32.mrb[96].mxu0  ;;  %v7970_v38 = vpop.f32.mrb[88].mxu1 }
0x14b6   :  { %v7890_v15 = vadd.f32 %v7889_v20, %v17117_v32  ;;  %v7971_v1 = vadd.f32 %v7970_v38, %v17121_v51  ;;  %v7891_v40 = vpop.f32.mrb[97].mxu0  ;;  %v7972_v4 = vpop.f32.mrb[89].mxu1 }
0x14b7   :  { %v7892_v29 = vadd.f32 %v7891_v40, %v17131_v45  ;;  %v7973_v21 = vadd.f32 %v7972_v4, %v17135_v55  ;;  %v7893_v26 = vpop.f32.mrb[98].mxu0  ;;  %v7974_v43 = vpop.f32.mrb[90].mxu1  ;;  %9718 = vmatprep.mubr.bf16.mxu0 %v8170_v34  ;;  %9790 = vmatprep.mubr.bf16.mxu1 %v8172_v54 }
0x14b8   :  { %v7894_v5 = vadd.f32 %v7893_v26, %v17117_v32  ;;  %v7975_v42 = vadd.f32 %v7974_v43, %v17121_v51  ;;  %v7895_v49 = vpop.f32.mrb[99].mxu0  ;;  %v7976_v19 = vpop.f32.mrb[91].mxu1  ;;  %9719 = vmatmul.mubr.bf16.gmra.mrb[172].mxu0 %v8169_v56  ;;  %9791 = vmatmul.mubr.bf16.gmra.mrb[164].mxu1 %v8171_v57  ;;  %v8073_v28 = vmax.f32 %v7890_v15, 0.0  ;;  %v8075_v18 = vmax.f32 %v7971_v1, 0.0 }
0x14b9   :  { %v7896_v7 = vadd.f32 %v7895_v49, %v17131_v45  ;;  %v7977_v2 = vadd.f32 %v7976_v19, %v17135_v55  ;;  %v8074_v41 = vmax.f32 %v7892_v29, 0.0  ;;  %v8076_v9 = vmax.f32 %v7973_v21, 0.0 }
0x14ba   :  { %v8089_v33 = vmax.f32 %v7894_v5, 0.0  ;;  %v8091_v35 = vmax.f32 %v7975_v42, 0.0 }
0x14bb   :  { %v8090_v60 = vmax.f32 %v7896_v7, 0.0  ;;  %v8092_v30 = vmax.f32 %v7977_v2, 0.0 }
0x14bc   :  { %v8185_v59 = vpack.c.bf16 %v8089_v33, %v8073_v28  ;;  %v8187_v44 = vpack.c.bf16 %v8091_v35, %v8075_v18 }
0x14bd   :  { %v8186_v17 = vpack.c.bf16 %v8090_v60, %v8074_v41  ;;  %v8188_v61 = vpack.c.bf16 %v8092_v30, %v8076_v9  ;;  %v7899_v48 = vpop.f32.mrb[100].mxu0  ;;  %v7980_v22 = vpop.f32.mrb[92].mxu1 }
0x14be   :  { %v7900_v6 = vadd.f32 %v7899_v48, %v17117_v32  ;;  %v7981_v27 = vadd.f32 %v7980_v22, %v17121_v51  ;;  %v7901_v16 = vpop.f32.mrb[101].mxu0  ;;  %v7982_v31 = vpop.f32.mrb[93].mxu1 }
0x14bf   :  { %v7902_v23 = vadd.f32 %v7901_v16, %v17131_v45  ;;  %v7983_v11 = vadd.f32 %v7982_v31, %v17135_v55  ;;  %v7903_v37 = vpop.f32.mrb[102].mxu0  ;;  %v7984_v39 = vpop.f32.mrb[94].mxu1  ;;  %9726 = vmatprep.mubr.bf16.mxu0 %v8186_v17  ;;  %9798 = vmatprep.mubr.bf16.mxu1 %v8188_v61 }
0x14c0   :  { %v7904_v14 = vadd.f32 %v7903_v37, %v17117_v32  ;;  %v7985_v13 = vadd.f32 %v7984_v39, %v17121_v51  ;;  %v7905_v47 = vpop.f32.mrb[103].mxu0  ;;  %v7986_v8 = vpop.f32.mrb[95].mxu1  ;;  %9727 = vmatmul.mubr.bf16.gmra.mrb[176].mxu0 %v8185_v59  ;;  %9799 = vmatmul.mubr.bf16.gmra.mrb[168].mxu1 %v8187_v44  ;;  %v8105_v56 = vmax.f32 %v7900_v6, 0.0  ;;  %v8107_v57 = vmax.f32 %v7981_v27, 0.0 }
0x14c1   :  { %v7906_v3 = vadd.f32 %v7905_v47, %v17131_v45  ;;  %v7987_v63 = vadd.f32 %v7986_v8, %v17135_v55  ;;  %v8106_v20 = vmax.f32 %v7902_v23, 0.0  ;;  %v8108_v38 = vmax.f32 %v7983_v11, 0.0 }
0x14c2   :  { %v8121_v34 = vmax.f32 %v7904_v14, 0.0  ;;  %v8123_v54 = vmax.f32 %v7985_v13, 0.0 }
0x14c3   :  { %v8122_v15 = vmax.f32 %v7906_v3, 0.0  ;;  %v8124_v1 = vmax.f32 %v7987_v63, 0.0 }
0x14c4   :  { %v8201_v40 = vpack.c.bf16 %v8121_v34, %v8105_v56  ;;  %v8203_v4 = vpack.c.bf16 %v8123_v54, %v8107_v57 }
0x14c5   :  { %v8202_v29 = vpack.c.bf16 %v8122_v15, %v8106_v20  ;;  %v8204_v21 = vpack.c.bf16 %v8124_v1, %v8108_v38  ;;  %v7909_v26 = vpop.f32.mrb[104].mxu0  ;;  %v7990_v43 = vpop.f32.mrb[96].mxu1 }
0x14c6   :  { %v7910_v5 = vadd.f32 %v7909_v26, %v17117_v32  ;;  %v7991_v42 = vadd.f32 %v7990_v43, %v17121_v51  ;;  %v7911_v49 = vpop.f32.mrb[105].mxu0  ;;  %v7992_v19 = vpop.f32.mrb[97].mxu1 }
0x14c7   :  { %v7912_v7 = vadd.f32 %v7911_v49, %v17131_v45  ;;  %v7993_v2 = vadd.f32 %v7992_v19, %v17135_v55  ;;  %v7913_v28 = vpop.f32.mrb[106].mxu0  ;;  %v7994_v18 = vpop.f32.mrb[98].mxu1  ;;  %9734 = vmatprep.mubr.bf16.mxu0 %v8202_v29  ;;  %9806 = vmatprep.mubr.bf16.mxu1 %v8204_v21 }
0x14c8   :  { %v7914_v33 = vpop.f32.mrb[107].mxu0  ;;  %v7995_v35 = vpop.f32.mrb[99].mxu1  ;;  %9735 = vmatmul.mubr.bf16.gmra.mrb[180].mxu0 %v8201_v40  ;;  %9807 = vmatmul.mubr.bf16.gmra.mrb[172].mxu1 %v8203_v4  ;;  %v8137_v60 = vmax.f32 %v7910_v5, 0.0  ;;  %v8139_v32 = vmax.f32 %v7991_v42, 0.0 }
0x14c9   :  { %v8138_v41 = vmax.f32 %v7912_v7, 0.0  ;;  %v8140_v9 = vmax.f32 %v7993_v2, 0.0 }
0x14ca   :  { %v8217_v59 = vpack.c.bf16 %v8137_v60, %v8137_v60  ;;  %v8219_v45 = vpack.c.bf16 %v8139_v32, %v8139_v32 }
0x14cb   :  { %v8218_v30 = vpack.c.bf16 %v8138_v41, %v8138_v41  ;;  %v8220_v51 = vpack.c.bf16 %v8140_v9, %v8140_v9 }
0x14cd   :  { %9742 = vmatprep.mubr.bf16.mxu0 %v8218_v30  ;;  %9814 = vmatprep.mubr.bf16.mxu1 %v8220_v51 }
0x14d0   :  { %9743 = vmatmul.mubr.bf16.gmra.mrb[184].mxu0 %v8217_v59  ;;  %9815 = vmatmul.mubr.bf16.gmra.mrb[176].mxu1 %v8219_v45 }
0x14d1   :  { %12308 = vmatprep.mubr.msk.f32.mxu0 %vm13156_vm5, %v17417_v46  ;;  %vm9959_vm5 = vcmask 581632  }
0x150b   :  { %v11523_v55 = vpop.f32.mrb[108].mxu0  ;;  %v11569_v44 = vpop.f32.mrb[100].mxu1 }
0x150c   :  { %v11524_v17 = vpop.f32.mrb[109].mxu0  ;;  %v11570_v61 = vpop.f32.mrb[101].mxu1 }
0x150d   :  { %v11525_v48 = vadd.f32 %v11524_v17, %v11523_v55  ;;  %v11571_v22 = vadd.f32 %v11570_v61, %v11569_v44  ;;  %v11526_v6 = vpop.f32.mrb[110].mxu0  ;;  %v11572_v27 = vpop.f32.mrb[102].mxu1 }
0x150e   :  { %v11527_v16 = vpop.f32.mrb[111].mxu0  ;;  %v11573_v31 = vpop.f32.mrb[103].mxu1 }
0x150f   :  { %v17176_v23 = vadd.f32 %v11571_v22, %v11525_v48  ;;  %v11528_v11 = vadd.f32 %v11527_v16, %v11526_v6  ;;  %v11574_v37 = vadd.f32 %v11573_v31, %v11572_v27 }
0x1511   :  { %v17178_v39 = vadd.f32 %v11574_v37, %v11528_v11 }
0x1513   :  { %v11529_v14 = vpop.f32.mrb[112].mxu0  ;;  %v11575_v13 = vpop.f32.mrb[104].mxu1 }
0x1514   :  { %v11530_v47 = vpop.f32.mrb[113].mxu0  ;;  %v11576_v8 = vpop.f32.mrb[105].mxu1 }
0x1515   :  { %v11531_v3 = vadd.f32 %v11530_v47, %v11529_v14  ;;  %v11577_v63 = vadd.f32 %v11576_v8, %v11575_v13  ;;  %v11532_v56 = vpop.f32.mrb[114].mxu0  ;;  %v11578_v57 = vpop.f32.mrb[106].mxu1 }
0x1516   :  { %v11533_v34 = vpop.f32.mrb[115].mxu0  ;;  %v11579_v54 = vpop.f32.mrb[107].mxu1 }
0x1517   :  { %v17180_v20 = vadd.f32 %v11577_v63, %v11531_v3  ;;  %v11534_v38 = vadd.f32 %v11533_v34, %v11532_v56  ;;  %v11580_v15 = vadd.f32 %v11579_v54, %v11578_v57 }
0x1519   :  { %v17182_v1 = vadd.f32 %v11580_v15, %v11534_v38 }
0x151b   :  { %v11535_v40 = vpop.f32.mrb[116].mxu0  ;;  %v11581_v4 = vpop.f32.mrb[108].mxu1 }
0x151c   :  { %v11536_v29 = vpop.f32.mrb[117].mxu0  ;;  %v11582_v21 = vpop.f32.mrb[109].mxu1 }
0x151d   :  { %v11537_v26 = vadd.f32 %v11536_v29, %v11535_v40  ;;  %v11583_v43 = vadd.f32 %v11582_v21, %v11581_v4  ;;  %v11538_v5 = vpop.f32.mrb[118].mxu0  ;;  %v11584_v42 = vpop.f32.mrb[110].mxu1  ;;  %v9849_v4 = vld [vmem:[#allocation2] sm:$0x1] }
0x151e   :  { %v11539_v49 = vpop.f32.mrb[119].mxu0  ;;  %v11585_v19 = vpop.f32.mrb[111].mxu1  ;;  %9852 = vperm.xlu1 %12504, %v9849_v4  }
0x151f   :  { %v17184_v7 = vadd.f32 %v11583_v43, %v11537_v26  ;;  %v11540_v2 = vadd.f32 %v11539_v49, %v11538_v5  ;;  %v11586_v28 = vadd.f32 %v11585_v19, %v11584_v42 }
0x1521   :  { %v17186_v18 = vadd.f32 %v11586_v28, %v11540_v2 }
0x1523   :  { %v11541_v33 = vpop.f32.mrb[120].mxu0  ;;  %v11587_v35 = vpop.f32.mrb[112].mxu1 }
0x1524   :  { %v11542_v41 = vpop.f32.mrb[121].mxu0  ;;  %v11588_v9 = vpop.f32.mrb[113].mxu1 }
0x1525   :  { %v11543_v60 = vadd.f32 %v11542_v41, %v11541_v33  ;;  %v11589_v32 = vadd.f32 %v11588_v9, %v11587_v35  ;;  %v11544_v30 = vpop.f32.mrb[122].mxu0  ;;  %v11590_v51 = vpop.f32.mrb[114].mxu1 }
0x1526   :  { %v11545_v59 = vpop.f32.mrb[123].mxu0  ;;  %v11591_v45 = vpop.f32.mrb[115].mxu1 }
0x1527   :  { %v17188_v55 = vadd.f32 %v11589_v32, %v11543_v60  ;;  %v11546_v44 = vadd.f32 %v11545_v59, %v11544_v30  ;;  %v11592_v17 = vadd.f32 %v11591_v45, %v11590_v51 }
0x1529   :  { %v17190_v61 = vadd.f32 %v11592_v17, %v11546_v44 }
0x152b   :  { %v11547_v48 = vpop.f32.mrb[124].mxu0  ;;  %v11593_v22 = vpop.f32.mrb[116].mxu1 }
0x152c   :  { %v11548_v6 = vpop.f32.mrb[125].mxu0  ;;  %v11594_v27 = vpop.f32.mrb[117].mxu1 }
0x152d   :  { %v11549_v16 = vadd.f32 %v11548_v6, %v11547_v48  ;;  %v11595_v31 = vadd.f32 %v11594_v27, %v11593_v22  ;;  %v11550_v11 = vpop.f32.mrb[126].mxu0  ;;  %v11596_v37 = vpop.f32.mrb[118].mxu1 }
0x152e   :  { %v11551_v14 = vpop.f32.mrb[127].mxu0  ;;  %v11597_v13 = vpop.f32.mrb[119].mxu1 }
0x152f   :  { %v17192_v47 = vadd.f32 %v11595_v31, %v11549_v16 }
0x1533   :  { %v11615_v8 = vpop.f32.mrb[128].mxu0  ;;  %v11661_v3 = vpop.f32.mrb[120].mxu1 }
0x1534   :  { %v11616_v63 = vpop.f32.mrb[129].mxu0  ;;  %v11662_v56 = vpop.f32.mrb[121].mxu1 }
0x1535   :  { %v11617_v57 = vadd.f32 %v11616_v63, %v11615_v8  ;;  %v11663_v34 = vadd.f32 %v11662_v56, %v11661_v3  ;;  %v11618_v54 = vpop.f32.mrb[130].mxu0  ;;  %v11664_v38 = vpop.f32.mrb[122].mxu1 }
0x1536   :  { %v11619_v15 = vpop.f32.mrb[131].mxu0  ;;  %v11665_v40 = vpop.f32.mrb[123].mxu1 }
0x1537   :  { %v9425_v29 = vadd.f32 %v11617_v57, %v17176_v23  ;;  %v11620_v21 = vadd.f32 %v11619_v15, %v11618_v54  ;;  %v11666_v26 = vadd.f32 %v11665_v40, %v11664_v38 }
0x1539   :  { %v17195_v43 = vadd.f32 %v11663_v34, %v9425_v29  ;;  %v9428_v5 = vadd.f32 %v11620_v21, %v17178_v39 }
0x153b   :  { %v17198_v42 = vadd.f32 %v11666_v26, %v9428_v5  ;;  %v11621_v49 = vpop.f32.mrb[132].mxu0  ;;  %v11667_v19 = vpop.f32.mrb[124].mxu1 }
0x153c   :  { %v11622_v2 = vpop.f32.mrb[133].mxu0  ;;  %v11668_v28 = vpop.f32.mrb[125].mxu1 }
0x153d   :  { %v11623_v33 = vadd.f32 %v11622_v2, %v11621_v49  ;;  %v11669_v35 = vadd.f32 %v11668_v28, %v11667_v19  ;;  %v11624_v41 = vpop.f32.mrb[134].mxu0  ;;  %v11670_v9 = vpop.f32.mrb[126].mxu1 }
0x153e   :  { %v11625_v60 = vpop.f32.mrb[135].mxu0  ;;  %v11671_v32 = vpop.f32.mrb[127].mxu1 }
0x153f   :  { %v9433_v23 = vadd.f32 %v11623_v33, %v17180_v20  ;;  %v11626_v30 = vadd.f32 %v11625_v60, %v11624_v41  ;;  %v11672_v51 = vadd.f32 %v11671_v32, %v11670_v9 }
0x1541   :  { %v17201_v59 = vadd.f32 %v11669_v35, %v9433_v23  ;;  %v9436_v39 = vadd.f32 %v11626_v30, %v17182_v1 }
0x1543   :  { %v17204_v45 = vadd.f32 %v11672_v51, %v9436_v39  ;;  %v11627_v44 = vpop.f32.mrb[136].mxu0  ;;  %v11673_v17 = vpop.f32.mrb[128].mxu1 }
0x1544   :  { %v11628_v48 = vpop.f32.mrb[137].mxu0  ;;  %v11674_v22 = vpop.f32.mrb[129].mxu1 }
0x1545   :  { %v11629_v6 = vadd.f32 %v11628_v48, %v11627_v44  ;;  %v11675_v27 = vadd.f32 %v11674_v22, %v11673_v17  ;;  %v11630_v16 = vpop.f32.mrb[138].mxu0  ;;  %v11676_v31 = vpop.f32.mrb[130].mxu1 }
0x1546   :  { %v11631_v11 = vpop.f32.mrb[139].mxu0  ;;  %v11677_v37 = vpop.f32.mrb[131].mxu1 }
0x1547   :  { %v9441_v20 = vadd.f32 %v11629_v6, %v17184_v7  ;;  %v11632_v14 = vadd.f32 %v11631_v11, %v11630_v16  ;;  %v11678_v13 = vadd.f32 %v11677_v37, %v11676_v31 }
0x1549   :  { %v17207_v8 = vadd.f32 %v11675_v27, %v9441_v20  ;;  %v9444_v1 = vadd.f32 %v11632_v14, %v17186_v18 }
0x154b   :  { %v17210_v3 = vadd.f32 %v11678_v13, %v9444_v1  ;;  %v11633_v63 = vpop.f32.mrb[140].mxu0  ;;  %v11679_v56 = vpop.f32.mrb[132].mxu1 }
0x154c   :  { %v11634_v57 = vpop.f32.mrb[141].mxu0  ;;  %v11680_v34 = vpop.f32.mrb[133].mxu1 }
0x154d   :  { %v11635_v54 = vadd.f32 %v11634_v57, %v11633_v63  ;;  %v11681_v38 = vadd.f32 %v11680_v34, %v11679_v56  ;;  %v11636_v15 = vpop.f32.mrb[142].mxu0  ;;  %v11682_v40 = vpop.f32.mrb[134].mxu1 }
0x154e   :  { %v11637_v4 = vpop.f32.mrb[143].mxu0  ;;  %v11683_v29 = vpop.f32.mrb[135].mxu1 }
0x154f   :  { %v9449_v7 = vadd.f32 %v11635_v54, %v17188_v55  ;;  %v11638_v21 = vadd.f32 %v11637_v4, %v11636_v15  ;;  %v11684_v26 = vadd.f32 %v11683_v29, %v11682_v40 }
0x1551   :  { %v17213_v5 = vadd.f32 %v11681_v38, %v9449_v7  ;;  %v9452_v18 = vadd.f32 %v11638_v21, %v17190_v61 }
0x1553   :  { %v17216_v49 = vadd.f32 %v11684_v26, %v9452_v18  ;;  %v11639_v19 = vpop.f32.mrb[144].mxu0  ;;  %v11685_v2 = vpop.f32.mrb[136].mxu1 }
0x1554   :  { %v11640_v28 = vpop.f32.mrb[145].mxu0  ;;  %v11686_v33 = vpop.f32.mrb[137].mxu1 }
0x1555   :  { %v11641_v35 = vadd.f32 %v11640_v28, %v11639_v19  ;;  %v11687_v41 = vadd.f32 %v11686_v33, %v11685_v2  ;;  %v11642_v9 = vpop.f32.mrb[146].mxu0  ;;  %v11688_v60 = vpop.f32.mrb[138].mxu1 }
0x1556   :  { %v11643_v32 = vpop.f32.mrb[147].mxu0  ;;  %v11689_v23 = vpop.f32.mrb[139].mxu1 }
0x1557   :  { %v9457_v55 = vadd.f32 %v11641_v35, %v17192_v47 }
0x1559   :  { %v17219_v30 = vadd.f32 %v11687_v41, %v9457_v55 }
0x155b   :  { %v11707_v51 = vpop.f32.mrb[148].mxu0  ;;  %v11753_v39 = vpop.f32.mrb[140].mxu1 }
0x155c   :  { %v11708_v44 = vpop.f32.mrb[149].mxu0  ;;  %v11754_v61 = vpop.f32.mrb[141].mxu1 }
0x155d   :  { %v11709_v17 = vadd.f32 %v11708_v44, %v11707_v51  ;;  %v11755_v48 = vadd.f32 %v11754_v61, %v11753_v39  ;;  %v11710_v22 = vpop.f32.mrb[150].mxu0  ;;  %v11756_v6 = vpop.f32.mrb[142].mxu1 }
0x155e   :  { %v11711_v27 = vpop.f32.mrb[151].mxu0  ;;  %v11757_v16 = vpop.f32.mrb[143].mxu1 }
0x155f   :  { %v9569_v31 = vadd.f32 %v11709_v17, %v17195_v43  ;;  %v11712_v11 = vadd.f32 %v11711_v27, %v11710_v22  ;;  %v11758_v37 = vadd.f32 %v11757_v16, %v11756_v6 }
0x1561   :  { %v17222_v20 = vadd.f32 %v11755_v48, %v9569_v31  ;;  %v9572_v47 = vadd.f32 %v11712_v11, %v17198_v42 }
0x1563   :  { %v17225_v14 = vadd.f32 %v11758_v37, %v9572_v47  ;;  %v11713_v13 = vpop.f32.mrb[152].mxu0  ;;  %v11759_v1 = vpop.f32.mrb[144].mxu1 }
0x1564   :  { %v11714_v63 = vpop.f32.mrb[153].mxu0  ;;  %v11760_v56 = vpop.f32.mrb[145].mxu1 }
0x1565   :  { %v11715_v57 = vadd.f32 %v11714_v63, %v11713_v13  ;;  %v11761_v34 = vadd.f32 %v11760_v56, %v11759_v1  ;;  %v11716_v54 = vpop.f32.mrb[154].mxu0  ;;  %v11762_v38 = vpop.f32.mrb[146].mxu1 }
0x1566   :  { %v11717_v15 = vpop.f32.mrb[155].mxu0  ;;  %v11763_v40 = vpop.f32.mrb[147].mxu1 }
0x1567   :  { %v9577_v43 = vadd.f32 %v11715_v57, %v17201_v59  ;;  %v11718_v4 = vadd.f32 %v11717_v15, %v11716_v54  ;;  %v11764_v29 = vadd.f32 %v11763_v40, %v11762_v38 }
0x1569   :  { %v17228_v7 = vadd.f32 %v11761_v34, %v9577_v43  ;;  %v9580_v42 = vadd.f32 %v11718_v4, %v17204_v45 }
0x156b   :  { %v17231_v21 = vadd.f32 %v11764_v29, %v9580_v42  ;;  %v11719_v26 = vpop.f32.mrb[156].mxu0  ;;  %v11765_v18 = vpop.f32.mrb[148].mxu1 }
0x156c   :  { %v11720_v19 = vpop.f32.mrb[157].mxu0  ;;  %v11766_v2 = vpop.f32.mrb[149].mxu1 }
0x156d   :  { %v11721_v28 = vadd.f32 %v11720_v19, %v11719_v26  ;;  %v11767_v33 = vadd.f32 %v11766_v2, %v11765_v18  ;;  %v11722_v35 = vpop.f32.mrb[158].mxu0  ;;  %v11768_v41 = vpop.f32.mrb[150].mxu1 }
0x156e   :  { %v11723_v9 = vpop.f32.mrb[159].mxu0  ;;  %v11769_v60 = vpop.f32.mrb[151].mxu1 }
0x156f   :  { %v9585_v59 = vadd.f32 %v11721_v28, %v17207_v8  ;;  %v11724_v32 = vadd.f32 %v11723_v9, %v11722_v35  ;;  %v11770_v23 = vadd.f32 %v11769_v60, %v11768_v41 }
0x1571   :  { %v17234_v55 = vadd.f32 %v11767_v33, %v9585_v59  ;;  %v9588_v45 = vadd.f32 %v11724_v32, %v17210_v3 }
0x1573   :  { %v17237_v51 = vadd.f32 %v11770_v23, %v9588_v45  ;;  %v11725_v39 = vpop.f32.mrb[160].mxu0  ;;  %v11771_v44 = vpop.f32.mrb[152].mxu1  ;;  %v17254_v23 = vld [vmem:[%s17327_s17 + $0x1] ss:$0 sm:$0xff] }
0x1574   :  { %v11726_v61 = vpop.f32.mrb[161].mxu0  ;;  %v11772_v17 = vpop.f32.mrb[153].mxu1 }
0x1575   :  { %v11727_v48 = vadd.f32 %v11726_v61, %v11725_v39  ;;  %v11773_v22 = vadd.f32 %v11772_v17, %v11771_v44  ;;  %v11728_v6 = vpop.f32.mrb[162].mxu0  ;;  %v11774_v27 = vpop.f32.mrb[154].mxu1 }
0x1576   :  { %v11729_v16 = vpop.f32.mrb[163].mxu0  ;;  %v11775_v31 = vpop.f32.mrb[155].mxu1 }
0x1577   :  { %v9593_v8 = vadd.f32 %v11727_v48, %v17213_v5  ;;  %v11730_v11 = vadd.f32 %v11729_v16, %v11728_v6  ;;  %v11776_v37 = vadd.f32 %v11775_v31, %v11774_v27 }
0x1579   :  { %v17240_v47 = vadd.f32 %v11773_v22, %v9593_v8  ;;  %v9596_v3 = vadd.f32 %v11730_v11, %v17216_v49 }
0x157b   :  { %v17243_v13 = vadd.f32 %v11776_v37, %v9596_v3  ;;  %v11731_v1 = vpop.f32.mrb[164].mxu0  ;;  %v11777_v63 = vpop.f32.mrb[156].mxu1 }
0x157c   :  { %v11732_v56 = vpop.f32.mrb[165].mxu0  ;;  %v11778_v57 = vpop.f32.mrb[157].mxu1 }
0x157d   :  { %v11733_v34 = vadd.f32 %v11732_v56, %v11731_v1  ;;  %v11779_v54 = vadd.f32 %v11778_v57, %v11777_v63  ;;  %v11734_v38 = vpop.f32.mrb[166].mxu0  ;;  %v11780_v15 = vpop.f32.mrb[158].mxu1 }
0x157e   :  { %v11735_v40 = vpop.f32.mrb[167].mxu0  ;;  %v11781_v43 = vpop.f32.mrb[159].mxu1 }
0x157f   :  { %v9601_v5 = vadd.f32 %v11733_v34, %v17219_v30 }
0x1581   :  { %v17246_v4 = vadd.f32 %v11779_v54, %v9601_v5 }
0x1583   :  { %v11799_v29 = vpop.f32.mrb[168].mxu0  ;;  %v11845_v42 = vpop.f32.mrb[160].mxu1 }
0x1584   :  { %v11800_v26 = vpop.f32.mrb[169].mxu0  ;;  %v11846_v49 = vpop.f32.mrb[161].mxu1 }
0x1585   :  { %v11801_v18 = vadd.f32 %v11800_v26, %v11799_v29  ;;  %v11847_v19 = vadd.f32 %v11846_v49, %v11845_v42  ;;  %v11802_v2 = vpop.f32.mrb[170].mxu0  ;;  %v11848_v28 = vpop.f32.mrb[162].mxu1 }
0x1586   :  { %v11803_v33 = vpop.f32.mrb[171].mxu0  ;;  %v11849_v35 = vpop.f32.mrb[163].mxu1 }
0x1587   :  { %v9713_v41 = vadd.f32 %v11801_v18, %v17222_v20  ;;  %v11804_v9 = vadd.f32 %v11803_v33, %v11802_v2  ;;  %v11850_v60 = vadd.f32 %v11849_v35, %v11848_v28 }
0x1589   :  { %v9785_v59 = vadd.f32 %v11847_v19, %v9713_v41  ;;  %v9716_v32 = vadd.f32 %v11804_v9, %v17225_v14 }
0x158b   :  { %v9822_v30 = vadd.f32 %v9785_v59, %v16174_v58  ;;  %v9788_v45 = vadd.f32 %v11850_v60, %v9716_v32  ;;  %v11805_v39 = vpop.f32.mrb[172].mxu0  ;;  %v11851_v44 = vpop.f32.mrb[164].mxu1 }
0x158c   :  { %v11806_v61 = vpop.f32.mrb[173].mxu0  ;;  %v11852_v17 = vpop.f32.mrb[165].mxu1 }
0x158d   :  { %v9823_v48 = vadd.f32 %v9788_v45, %v16177_v52  ;;  %v11807_v20 = vadd.f32 %v11806_v61, %v11805_v39  ;;  %v11853_v22 = vadd.f32 %v11852_v17, %v11851_v44  ;;  %v11808_v6 = vpop.f32.mrb[174].mxu0  ;;  %v11854_v27 = vpop.f32.mrb[166].mxu1  ;;  %v9839_v14 = vadd.f32 %v17254_v23, %v9822_v30 }
0x158e   :  { %v11809_v16 = vpop.f32.mrb[175].mxu0  ;;  %v11855_v58 = vpop.f32.mrb[167].mxu1 }
0x158f   :  { %v9840_v31 = vadd.f32 %v17254_v23, %v9823_v48  ;;  %v9721_v8 = vadd.f32 %v11807_v20, %v17228_v7  ;;  %v11810_v11 = vadd.f32 %v11809_v16, %v11808_v6  ;;  %v11856_v37 = vadd.f32 %v11855_v58, %v11854_v27 }
0x1591   :  { %v12396_v3 = vpack.c.bf16 %v9840_v31, %v9839_v14  ;;  %v9793_v1 = vadd.f32 %v11853_v22, %v9721_v8  ;;  %v9724_v63 = vadd.f32 %v11810_v11, %v17231_v21 }
0x1593   :  { %v9824_v52 = vadd.f32 %v9793_v1, %v16184_v62  ;;  %v9796_v56 = vadd.f32 %v11856_v37, %v9724_v63  ;;  %v11811_v57 = vpop.f32.mrb[176].mxu0  ;;  %v11857_v34 = vpop.f32.mrb[168].mxu1  ;;  %12398 = vmatpush3.bf16.xpose.msk.msra.mxu0 %vm13508_vm9, %v12396_v3 }
0x1594   :  { %v11812_v38 = vpop.f32.mrb[177].mxu0  ;;  %v11858_v15 = vpop.f32.mrb[169].mxu1  ;;  %12399 = vmatprep.subr.bf16.mxu0 %v17454_v0 }
0x1595   :  { %v9825_v7 = vadd.f32 %v9796_v56, %v16187_v36  ;;  %v11813_v40 = vadd.f32 %v11812_v38, %v11811_v57  ;;  %v11859_v43 = vadd.f32 %v11858_v15, %v11857_v34  ;;  %v11814_v5 = vpop.f32.mrb[178].mxu0  ;;  %v11860_v29 = vpop.f32.mrb[170].mxu1  ;;  %v9841_v21 = vadd.f32 %v17254_v23, %v9824_v52  ;;  %v9848_v38 = vld [vmem:[%s17328_s18] sm:$0x1] }
0x1596   :  { %v11815_v42 = vpop.f32.mrb[179].mxu0  ;;  %v11861_v62 = vpop.f32.mrb[171].mxu1 }
0x1597   :  { %v9842_v26 = vadd.f32 %v17254_v23, %v9825_v7  ;;  %v9729_v49 = vadd.f32 %v11813_v40, %v17234_v55  ;;  %v11816_v18 = vadd.f32 %v11815_v42, %v11814_v5  ;;  %v11862_v19 = vadd.f32 %v11861_v62, %v11860_v29 }
0x1599   :  { %v12400_v2 = vpack.c.bf16 %v9842_v26, %v9841_v21  ;;  %v9801_v28 = vadd.f32 %v11859_v43, %v9729_v49  ;;  %v9732_v33 = vadd.f32 %v11816_v18, %v17237_v51 }
0x159b   :  { %v9826_v36 = vadd.f32 %v9801_v28, %v16194_v25  ;;  %v9804_v35 = vadd.f32 %v11862_v19, %v9732_v33  ;;  %v11817_v41 = vpop.f32.mrb[180].mxu0  ;;  %v11863_v9 = vpop.f32.mrb[172].mxu1  ;;  %12402 = vmatpush3.bf16.xpose.msk.msra.mxu0 %vm13508_vm9, %v12400_v2 }
0x159c   :  { %v11818_v60 = vpop.f32.mrb[181].mxu0  ;;  %v11864_v59 = vpop.f32.mrb[173].mxu1  ;;  %12403 = vmatprep.subr.bf16.mxu0 %v17454_v0 }
0x159d   :  { %v9827_v55 = vadd.f32 %v9804_v35, %v16197_v12  ;;  %v11819_v32 = vadd.f32 %v11818_v60, %v11817_v41  ;;  %v11865_v30 = vadd.f32 %v11864_v59, %v11863_v9  ;;  %v11820_v45 = vpop.f32.mrb[182].mxu0  ;;  %v11866_v39 = vpop.f32.mrb[174].mxu1  ;;  %v9843_v51 = vadd.f32 %v17254_v23, %v9826_v36 }
0x159e   :  { %v11821_v44 = vpop.f32.mrb[183].mxu0  ;;  %v11867_v25 = vpop.f32.mrb[175].mxu1 }
0x159f   :  { %v9844_v61 = vadd.f32 %v17254_v23, %v9827_v55  ;;  %v9737_v17 = vadd.f32 %v11819_v32, %v17240_v47  ;;  %v11822_v48 = vadd.f32 %v11821_v44, %v11820_v45  ;;  %v11868_v20 = vadd.f32 %v11867_v25, %v11866_v39 }
0x15a1   :  { %v12404_v22 = vpack.c.bf16 %v9844_v61, %v9843_v51  ;;  %v9809_v6 = vadd.f32 %v11865_v30, %v9737_v17  ;;  %v9740_v27 = vadd.f32 %v11822_v48, %v17243_v13 }
0x15a3   :  { %v9828_v12 = vadd.f32 %v9809_v6, %v16204_v50  ;;  %v9812_v14 = vadd.f32 %v11868_v20, %v9740_v27  ;;  %v11823_v16 = vpop.f32.mrb[184].mxu0  ;;  %v11869_v58 = vpop.f32.mrb[176].mxu1  ;;  %12406 = vmatpush3.bf16.xpose.msk.msra.mxu0 %vm13508_vm9, %v12404_v22 }
0x15a4   :  { %v11824_v31 = vpop.f32.mrb[185].mxu0  ;;  %v11870_v8 = vpop.f32.mrb[177].mxu1  ;;  %12407 = vmatprep.subr.bf16.mxu0 %v17454_v0 }
0x15a5   :  { %v9829_v47 = vadd.f32 %v9812_v14, %v16207_v10  ;;  %v11825_v11 = vadd.f32 %v11824_v31, %v11823_v16  ;;  %v11871_v37 = vadd.f32 %v11870_v8, %v11869_v58  ;;  %v11826_v3 = vpop.f32.mrb[186].mxu0  ;;  %v11872_v1 = vpop.f32.mrb[178].mxu1  ;;  %v9845_v50 = vadd.f32 %v17254_v23, %v9828_v12 }
0x15a6   :  { %v11827_v63 = vpop.f32.mrb[187].mxu0  ;;  %v11873_v13 = vpop.f32.mrb[179].mxu1 }
0x15a7   :  { %v9846_v52 = vadd.f32 %v17254_v23, %v9829_v47  ;;  %v9745_v56 = vadd.f32 %v11825_v11, %v17246_v4  ;;  %v9853_v4 = vpop.permute.xlu1 %9852 }
0x15a8   :  { %v9858_v15 = vrot.slane %v9853_v4, %v17446_v53 }
0x15a9   :  { %v12408_v57 = vpack.c.bf16 %v9846_v52, %v9845_v50  ;;  %v9817_v34 = vadd.f32 %v11871_v37, %v9745_v56 }
0x15ab   :  { %12410 = vmatpush3.bf16.xpose.msk.msra.mxu0 %vm13508_vm9, %v12408_v57  ;;  %v9830_v10 = vadd.f32 %v9817_v34, %v16214_v24 }
0x15ac   :  { %12306 = vmatprep.subr.mxu0 %v17417_v46 }
0x15ad   :  { %v9847_v0 = vadd.f32 %v17254_v23, %v9830_v10 }
0x15b3   :  { %12307 = vmatpush3.xpose.msk.msra.mxu0 %vm611_vm7, %v9847_v0 }
0x15b6   :  { %12309 = vmatmul.mubr.msk.f32.vlgmr.msra.gmra.mrb[2].mxu0 %vm611_vm7, %v9848_v38 }
0x1689   :  { %v9955_v54 = vpop.f32.mrb[2].mxu0 }
0x168a   :  { %v9956_v46 = vadd.f32 %v9955_v54, %v9858_v15  ;;  %v12310_v7 = vpop.f32.mrb[3].mxu0 }
0x168c   :  { %9960 = vst.msk [vmem:[#allocation3] sm:$0x1] %vm9959_vm5, %v9956_v46 }
0x168d   :  { %13141 = shalt.err (!%p13138_p4)
}
0x168e   :  { %s13142_s10 = scalar_lea.hbm %s17330_s20, 16 }
0x168f   :  { %p13143_p5 = scmp.ne.s32.totalorder %s17330_s20, %s13142_s10  ;;  %p13146_p6 = scmp.lt.u32.totalorder %s13142_s10, %s17330_s20 }
0x1691   :  { %p13148_p7 = pnand %p13146_p6, %p13143_p5 }
0x1693   :  { %13151 = shalt.err (!%p13148_p7)
}
0x1694   :  { %9970 = dma.vmem_to_hbm [thread:$0]  %s9968_s30, 16, %s17330_s20, [#allocation4]  }
0x1695   :  { %13152 = dma.done.wait [#allocation4], 16  }
0x1696   :  { %13153 = vsyncadd [#allocation4], 4294967280 }
0x1697   :  { %9974 = vsyncpa [#allocation4], 1 }

</bundles_post_ra>
